<compile_context>
chip_gen: v7x
topology: tpu7x:2x2x1
jax: 0.10.0
libtpu: 0.0.40
codegen_flags: <defaults>
</compile_context>

<pallas_src>
import functools

import jax
import jax.numpy as jnp
import numpy as np
from jax.experimental import pallas as pl
from jax.experimental.pallas import tpu as pltpu

_VMEM_LIMIT_BYTES = 48 * 1024 * 1024  # safe on v7x (64 MiB/TC); plenty on v5e/v6e
_NEG_BIG = -1e30


def _round_up(n, m):
    return ((n + m - 1) // m) * m


def _pick_block(n_pad, cap, min_blocks=1):
    """Largest power-of-two block <= cap that divides n_pad (>= min_blocks blocks)."""
    for b in (1024, 512, 256, 128):
        if b <= cap and n_pad % b == 0 and n_pad // b >= min_blocks:
            return b
    return 128


def _bf16_eup_supported():
    """bf16 transcendentals pay off on v6e / v7x; keep f32 on v5e and older."""
    try:
        kind = jax.devices()[0].device_kind.lower()
    except Exception:
        return False
    return ("v6" in kind) or ("v7" in kind) or ("7x" in kind)


def _cat(parts):
    return parts[0] if len(parts) == 1 else jnp.concatenate(parts, axis=-1)


def _pack_attention(attention, heads, out_channels):
    """(1, H, 2C) attention param -> (H*C, 2H) block-diagonal score matrix.

    Column h holds a_dst[h] (target / x_i term) in rows h*C:(h+1)*C; column
    H + h holds a_src[h] (source / x_j term).  Turns the per-head score
    reductions into a single MXU matmul: sc = xw @ A.
    """
    a = attention.reshape(heads, 2 * out_channels).astype(jnp.float32)
    a_dst, a_src = a[:, :out_channels], a[:, out_channels:]
    eye = jnp.eye(heads, dtype=jnp.float32)
    dst = (a_dst[:, :, None] * eye[:, None, :]).reshape(heads * out_channels, heads)
    src = (a_src[:, :, None] * eye[:, None, :]).reshape(heads * out_channels, heads)
    return jnp.concatenate([dst, src], axis=1)  # (H*C, 2H)


# --------------------------------------------------------------------------
# Kernel 1: linear projection + packed attention-score matmul (all MXU).
# --------------------------------------------------------------------------
def _gat_project_kernel(x_ref, w_ref, a_ref, xw_ref, sc_ref):
    x = x_ref[...].astype(jnp.bfloat16)                              # (bn, C_in)
    xw = jnp.dot(x, w_ref[...], preferred_element_type=jnp.float32)  # (bn, H*C) f32
    # Packed scores: columns [s_0..s_{H-1}, t_0..t_{H-1}].
    sc_ref[...] = jnp.dot(xw, a_ref[...], preferred_element_type=jnp.float32)
    xw_ref[...] = xw.astype(jnp.bfloat16)


def _project(x, w_bf16, a_packed, *, block_rows):
    n_pad, c_in = x.shape
    hc = w_bf16.shape[1]
    two_h = a_packed.shape[1]
    return pl.pallas_call(
        _gat_project_kernel,
        grid=(n_pad // block_rows,),
        in_specs=[
            pl.BlockSpec((block_rows, c_in), lambda i: (i, 0)),
            pl.BlockSpec((c_in, hc), lambda i: (0, 0)),           # resident
            pl.BlockSpec((hc, two_h), lambda i: (0, 0)),          # resident
        ],
        out_specs=[
            pl.BlockSpec((block_rows, hc), lambda i: (i, 0)),
            pl.BlockSpec((block_rows, two_h), lambda i: (i, 0)),
        ],
        out_shape=[
            jax.ShapeDtypeStruct((n_pad, hc), jnp.bfloat16),
            jax.ShapeDtypeStruct((n_pad, two_h), jnp.float32),
        ],
        compiler_params=pltpu.CompilerParams(
            dimension_semantics=("parallel",),
            vmem_limit_bytes=_VMEM_LIMIT_BYTES),
    )(x, w_bf16, a_packed)


# --------------------------------------------------------------------------
# Kernel 2: block-sparse online-softmax attention + aggregation (+ fused ELU).
# --------------------------------------------------------------------------
def _gat_attention_kernel(tbl_ref, s_ref, t_ref, adj_ref, xw_ref, out_ref,
                          m_scr, l_scr, acc_scr,
                          *, heads, out_channels, concat, apply_elu,
                          block_j, exp_dtype):
    i = pl.program_id(0)
    j = pl.program_id(1)

    @pl.when(j == 0)
    def _init():
        m_scr[...] = jnp.full(m_scr.shape, _NEG_BIG, jnp.float32)
        l_scr[...] = jnp.zeros(l_scr.shape, jnp.float32)
        acc_scr[...] = jnp.zeros(acc_scr.shape, jnp.float32)

    # Block-sparsity skip: do nothing if this (i, j) adjacency block is empty.
    @pl.when(tbl_ref[i, j] > 0)
    def _process():
        adj_f = adj_ref[...].astype(jnp.float32)       # (bi, bj) 0/1
        bias = (adj_f - 1.0) * (-_NEG_BIG)             # 0 on edges, -1e30 else
        col0 = pl.multiple_of(j * block_j, block_j)
        xw_j = xw_ref[pl.ds(col0, block_j), :]         # (bj, H*C) bf16, resident
        t_blk = t_ref[:, pl.ds(col0, block_j)]         # (H, bj) f32, resident
        s_blk = s_ref[...]                             # (bi, H) f32

        # Single load / single store of the running stats per grid step.
        m_prev = m_scr[...]
        l_prev = l_scr[...]
        acc_prev = acc_scr[...]

        m_cols, l_cols, acc_parts = [], [], []
        for h in range(heads):
            hs = slice(h * out_channels, (h + 1) * out_channels)
            logits = s_blk[:, h:h + 1] + t_blk[h:h + 1, :]        # (bi, bj)
            logits = jnp.maximum(logits, 0.2 * logits)            # leaky_relu(0.2)
            masked = logits + bias
            m_h = m_prev[:, h:h + 1]
            m_new = jnp.maximum(m_h, jnp.max(masked, axis=-1, keepdims=True))
            scale = jnp.exp(m_h - m_new)                          # rescale old blocks
            # bf16 exp on v6e/v7x (EUP ~2x), f32 on v5e; -1e30 bias kills non-edges.
            e = jnp.exp((masked - m_new).astype(exp_dtype))
            l_cols.append(scale * l_prev[:, h:h + 1]
                          + jnp.sum(e.astype(jnp.float32), axis=-1, keepdims=True))
            acc_parts.append(scale * acc_prev[:, hs]
                             + jnp.dot(e.astype(jnp.bfloat16), xw_j[:, hs],
                                       preferred_element_type=jnp.float32))
            m_cols.append(m_new)
            # TODO(synk): F.dropout(p=0.6) on attention weights is identity in eval.

        m_scr[...] = _cat(m_cols)
        l_scr[...] = _cat(l_cols)
        acc_scr[...] = _cat(acc_parts)

    @pl.when(j == pl.num_programs(1) - 1)
    def _finalize():
        # Guard denominator (rows with no edges are only padded rows, sliced off).
        inv = pl.reciprocal(jnp.maximum(l_scr[...], 1e-20), approx=True)  # (bi, H)
        acc = acc_scr[...]
        parts = [acc[:, h * out_channels:(h + 1) * out_channels] * inv[:, h:h + 1]
                 for h in range(heads)]
        if concat:
            result = _cat(parts)
        else:
            result = parts[0]
            for p in parts[1:]:
                result = result + p
            result = result * (1.0 / heads)
        if apply_elu:
            result = jnp.where(result > 0.0, result, jnp.exp(result) - 1.0)
        out_ref[...] = result.astype(out_ref.dtype)     # single lane-dense store


def _attention(blk_tbl, s, t_t, adj, xw, *, heads, out_channels, concat,
               apply_elu, block_i, block_j, out_dtype, exp_dtype):
    n_pad = adj.shape[0]
    hc = heads * out_channels
    d_out = hc if concat else out_channels
    kernel = functools.partial(_gat_attention_kernel, heads=heads,
                               out_channels=out_channels, concat=concat,
                               apply_elu=apply_elu, block_j=block_j,
                               exp_dtype=exp_dtype)
    return pl.pallas_call(
        kernel,
        grid_spec=pltpu.PrefetchScalarGridSpec(
            num_scalar_prefetch=1,
            grid=(n_pad // block_i, n_pad // block_j),
            in_specs=[
                pl.BlockSpec((block_i, heads), lambda i, j, tbl: (i, 0)),  # s_i
                pl.BlockSpec((heads, n_pad), lambda i, j, tbl: (0, 0)),    # t (resident)
                pl.BlockSpec((block_i, block_j), lambda i, j, tbl: (i, j)),  # adj int8
                pl.BlockSpec((n_pad, hc), lambda i, j, tbl: (0, 0)),       # xw (resident)
            ],
            out_specs=pl.BlockSpec((block_i, d_out), lambda i, j, tbl: (i, 0)),
            scratch_shapes=[
                pltpu.VMEM((block_i, heads), jnp.float32),   # running max
                pltpu.VMEM((block_i, heads), jnp.float32),   # running denom
                pltpu.VMEM((block_i, hc), jnp.float32),      # accumulator
            ],
        ),
        out_shape=jax.ShapeDtypeStruct((n_pad, d_out), out_dtype),
        compiler_params=pltpu.CompilerParams(
            dimension_semantics=("parallel", "arbitrary"),
            vmem_limit_bytes=_VMEM_LIMIT_BYTES),
    )(blk_tbl, s, t_t, adj, xw)


def gat_layer(x, adj, blk_tbl, weight, attention, *, heads, out_channels,
              concat, apply_elu, block_i, block_j, proj_rows, out_dtype,
              exp_dtype):
    """One GATConv layer (projection + block-sparse flash-style attention)."""
    a_packed = _pack_attention(attention, heads, out_channels)
    xw, scores = _project(x, weight.astype(jnp.bfloat16), a_packed,
                          block_rows=proj_rows)
    s = scores[:, :heads]                          # (N_pad, H)  target term
    # TODO(synk): emit t already transposed from the projection kernel; the
    # wrapper transpose of a tiny (N_pad, H) array is a negligible XLA op.
    t_t = jnp.transpose(scores[:, heads:])         # (H, N_pad)  source term
    return _attention(blk_tbl, s, t_t, adj, xw, heads=heads,
                      out_channels=out_channels, concat=concat,
                      apply_elu=apply_elu, block_i=block_i, block_j=block_j,
                      out_dtype=out_dtype, exp_dtype=exp_dtype)


def gat_forward(params, x, adj, *, hidden_channels, out_channels, heads):
    """Full 3-layer GAT forward. adj[i, j] = 1 iff edge j -> i or i == j."""
    n = x.shape[0]
    n_pad = _round_up(n, 128)
    # j tiles up to 512 (reduction axis); i tiles up to 256 but keep >= 2
    # blocks on the "parallel" axis so both v7x TensorCores get work.
    block_j = _pick_block(n_pad, cap=512)
    block_i = _pick_block(n_pad, cap=256, min_blocks=2)
    proj_rows = _pick_block(n_pad, cap=512)

    x_pad = jnp.pad(x, ((0, n_pad - n), (0, 0)))
    adj_pad = jnp.pad(adj, ((0, n_pad - n), (0, n_pad - n))).astype(jnp.int8)

    # Per-block edge occupancy table (shared by all 3 layers), prefetched to SMEM.
    ni, nj = n_pad // block_i, n_pad // block_j
    blk_tbl = (adj_pad.astype(jnp.int32)
               .reshape(ni, block_i, nj, block_j)
               .sum(axis=(1, 3)) > 0).astype(jnp.int32)

    exp_dtype = jnp.bfloat16 if _bf16_eup_supported() else jnp.float32
    common = dict(block_i=block_i, block_j=block_j, proj_rows=proj_rows,
                  exp_dtype=exp_dtype)

    h = gat_layer(x_pad, adj_pad, blk_tbl, params["w1"], params["a1"],
                  heads=heads, out_channels=hidden_channels, concat=True,
                  apply_elu=True, out_dtype=jnp.bfloat16, **common)
    h = gat_layer(h, adj_pad, blk_tbl, params["w2"], params["a2"],
                  heads=heads, out_channels=hidden_channels, concat=True,
                  apply_elu=True, out_dtype=jnp.bfloat16, **common)
    out = gat_layer(h, adj_pad, blk_tbl, params["w3"], params["a3"],
                    heads=1, out_channels=out_channels, concat=False,
                    apply_elu=False, out_dtype=jnp.float32, **common)
    return out[:n]


# --------------------------------------------------------------------------
# Parameter init (xavier_uniform, as in the PyTorch module).
# --------------------------------------------------------------------------
def xavier_uniform(key, shape, fan_in, fan_out):
    bound = float(np.sqrt(6.0 / (fan_in + fan_out)))
    return jax.random.uniform(key, shape, jnp.float32, -bound, bound)


def make_gat_params(key, in_channels, hidden_channels, out_channels, heads):
    keys = jax.random.split(key, 6)
    return {
        "w1": xavier_uniform(keys[0], (in_channels, heads * hidden_channels),
                             in_channels, heads * hidden_channels),
        "a1": xavier_uniform(keys[1], (1, heads, 2 * hidden_channels),
                             heads * 2 * hidden_channels, 2 * hidden_channels),
        "w2": xavier_uniform(keys[2],
                             (hidden_channels * heads, heads * hidden_channels),
                             hidden_channels * heads, heads * hidden_channels),
        "a2": xavier_uniform(keys[3], (1, heads, 2 * hidden_channels),
                             heads * 2 * hidden_channels, 2 * hidden_channels),
        "w3": xavier_uniform(keys[4], (hidden_channels * heads, out_channels),
                             hidden_channels * heads, out_channels),
        "a3": xavier_uniform(keys[5], (1, 1, 2 * out_channels),
                             2 * out_channels, 2 * out_channels),
    }


# --------------------------------------------------------------------------
# Pure-JAX reference (same math & dtype choices, no Pallas) for correctness.
# --------------------------------------------------------------------------
def _ref_conv(x, adj, weight, attention, *, heads, out_channels, concat=True):
    xw = jnp.dot(x.astype(jnp.bfloat16), weight.astype(jnp.bfloat16),
                 preferred_element_type=jnp.float32)
    xw_r = xw.reshape(x.shape[0], heads, out_channels)
    att = attention.reshape(heads, 2 * out_channels)
    a_dst, a_src = att[:, :out_channels], att[:, out_channels:]
    s = jnp.einsum("nhc,hc->nh", xw_r, a_dst)
    t = jnp.einsum("nhc,hc->nh", xw_r, a_src)
    logits = s[:, None, :] + t[None, :, :]              # (i, j, h)
    logits = jnp.where(logits >= 0, logits, 0.2 * logits)
    mask = adj[:, :, None] > 0
    masked = jnp.where(mask, logits, _NEG_BIG)
    m = jnp.max(masked, axis=1, keepdims=True)
    e = jnp.where(mask, jnp.exp(masked - m), 0.0)
    denom = jnp.maximum(jnp.sum(e, axis=1), 1e-20)       # (i, h)
    num = jnp.einsum("ijh,jhc->ihc", e.astype(jnp.bfloat16),
                     xw_r.astype(jnp.bfloat16),
                     preferred_element_type=jnp.float32)
    out = num / denom[:, :, None]
    if concat:
        return out.reshape(x.shape[0], heads * out_channels)
    return out.mean(axis=1)


def _ref_forward(params, x, adj, *, hidden_channels, out_channels, heads):
    h = jax.nn.elu(_ref_conv(x, adj, params["w1"], params["a1"],
                             heads=heads, out_channels=hidden_channels))
    h = jax.nn.elu(_ref_conv(h, adj, params["w2"], params["a2"],
                             heads=heads, out_channels=hidden_channels))
    return _ref_conv(h, adj, params["w3"], params["a3"],
                     heads=1, out_channels=out_channels, concat=False)


if __name__ == "__main__":
    N = 200          # nodes (padded to 256 inside the wrapper)
    IN_C = 16        # data.x feature dim
    HIDDEN = 8
    OUT_C = 4
    HEADS = 2

    key = jax.random.PRNGKey(0)
    kx, kp = jax.random.split(key, 2)

    x = jax.random.normal(kx, (N, IN_C), jnp.float32)

    # Deterministic edge list: ring both ways plus a few chords.
    src = list(range(N)) + [(i + 1) % N for i in range(N)] + [0, 3, 7, 11, 50, 123]
    dst = [(i + 1) % N for i in range(N)] + list(range(N)) + [8, 12, 2, 5, 160, 40]
    edge_index = np.stack([np.array(src), np.array(dst)])           # (2, E)

    # Dense adjacency mask with self-loops: adj[i, j] = 1 iff edge j -> i.
    adj_np = np.zeros((N, N), np.float32)
    adj_np[edge_index[1], edge_index[0]] = 1.0
    adj_np[np.arange(N), np.arange(N)] = 1.0                         # self-loops
    adj = jnp.asarray(adj_np)

    params = make_gat_params(kp, IN_C, HIDDEN, OUT_C, HEADS)

    fwd = jax.jit(functools.partial(gat_forward, hidden_channels=HIDDEN,
                                    out_channels=OUT_C, heads=HEADS))
    out = jax.block_until_ready(fwd(params, x, adj))
    assert out.shape == (N, OUT_C), out.shape

    ref = _ref_forward(params, x, adj,
                       hidden_channels=HIDDEN, out_channels=OUT_C, heads=HEADS)
    np.testing.assert_allclose(np.asarray(out), np.asarray(ref),
                               rtol=5e-2, atol=5e-2)

    print("KERNEL_OK")
</pallas_src>

<mosaic_0001>
module attributes {stable_mosaic.version = 11 : i64} {
  func.func @_gat_project_kernel(%arg0: i32, %arg1: memref<256x16xf32, #tpu.memory_space<vmem>>, %arg2: memref<16x16xbf16, #tpu.memory_space<vmem>>, %arg3: memref<16x4xf32, #tpu.memory_space<vmem>>, %arg4: memref<256x16xbf16, #tpu.memory_space<vmem>>, %arg5: memref<256x4xf32, #tpu.memory_space<vmem>>) attributes {dimension_semantics = [#tpu.dimension_semantics<parallel>], iteration_bounds = array<i64: 1>, scalar_prefetch = 0 : i64, scratch_operands = 0 : i64, tpu.core_type = #tpu.core_type<tc>, window_params = [{transform_indices = @transform_0, window_bounds = array<i64: 256, 16>}, {pipeline_mode = #tpu.pipeline_mode<synchronous>, transform_indices = @transform_1, window_bounds = array<i64: 16, 16>}, {pipeline_mode = #tpu.pipeline_mode<synchronous>, transform_indices = @transform_2, window_bounds = array<i64: 16, 4>}, {transform_indices = @transform_3, window_bounds = array<i64: 256, 16>}, {transform_indices = @transform_4, window_bounds = array<i64: 256, 4>}]} {
    %c0 = arith.constant 0 : index
    %c0_0 = arith.constant 0 : index
    %0 = vector.load %arg1[%c0, %c0_0] : memref<256x16xf32, #tpu.memory_space<vmem>>, vector<256x16xf32>
    %1 = arith.truncf %0 : vector<256x16xf32> to vector<256x16xbf16>
    %c0_1 = arith.constant 0 : index
    %c0_2 = arith.constant 0 : index
    %2 = vector.load %arg2[%c0_1, %c0_2] : memref<16x16xbf16, #tpu.memory_space<vmem>>, vector<16x16xbf16>
    %cst = arith.constant dense<0.000000e+00> : vector<256x16xf32>
    %3 = tpu.matmul %1, %2, %cst {dimension_numbers = #tpu.dot_dimension_numbers<[1], [0], [0], [1], [0, 0, 1, 1], [], []>} : vector<256x16xbf16>, vector<16x16xbf16>, vector<256x16xf32> -> vector<256x16xf32>
    %c0_3 = arith.constant 0 : index
    %c0_4 = arith.constant 0 : index
    %4 = vector.load %arg3[%c0_3, %c0_4] : memref<16x4xf32, #tpu.memory_space<vmem>>, vector<16x4xf32>
    %cst_5 = arith.constant dense<0.000000e+00> : vector<256x4xf32>
    %5 = tpu.matmul %3, %4, %cst_5 {dimension_numbers = #tpu.dot_dimension_numbers<[1], [0], [0], [1], [0, 0, 1, 1], [], []>} : vector<256x16xf32>, vector<16x4xf32>, vector<256x4xf32> -> vector<256x4xf32>
    %c0_6 = arith.constant 0 : index
    %c0_7 = arith.constant 0 : index
    %6 = vector.load %arg5[%c0_6, %c0_7] : memref<256x4xf32, #tpu.memory_space<vmem>>, vector<256x4xf32>
    tpu.vector_store %arg5[%c0_6, %c0_7], %5 {strides = array<i32>} : memref<256x4xf32, #tpu.memory_space<vmem>>, vector<256x4xf32>,
    %7 = arith.truncf %3 : vector<256x16xf32> to vector<256x16xbf16>
    %c0_8 = arith.constant 0 : index
    %c0_9 = arith.constant 0 : index
    %8 = vector.load %arg4[%c0_8, %c0_9] : memref<256x16xbf16, #tpu.memory_space<vmem>>, vector<256x16xbf16>
    tpu.vector_store %arg4[%c0_8, %c0_9], %7 {strides = array<i32>} : memref<256x16xbf16, #tpu.memory_space<vmem>>, vector<256x16xbf16>,
    return
  }
  func.func @transform_0(%arg0: i32) -> (i32, i32) {
    %c0_i32 = arith.constant 0 : i32
    %c0_i32_0 = arith.constant 0 : i32
    return %arg0, %c0_i32 : i32, i32
  }
  func.func @transform_1(%arg0: i32) -> (i32, i32) {
    %c0_i32 = arith.constant 0 : i32
    %c0_i32_0 = arith.constant 0 : i32
    %c0_i32_1 = arith.constant 0 : i32
    return %c0_i32, %c0_i32_0 : i32, i32
  }
  func.func @transform_2(%arg0: i32) -> (i32, i32) {
    %c0_i32 = arith.constant 0 : i32
    %c0_i32_0 = arith.constant 0 : i32
    %c0_i32_1 = arith.constant 0 : i32
    return %c0_i32, %c0_i32_0 : i32, i32
  }
  func.func @transform_3(%arg0: i32) -> (i32, i32) {
    %c0_i32 = arith.constant 0 : i32
    %c0_i32_0 = arith.constant 0 : i32
    return %arg0, %c0_i32 : i32, i32
  }
  func.func @transform_4(%arg0: i32) -> (i32, i32) {
    %c0_i32 = arith.constant 0 : i32
    %c0_i32_0 = arith.constant 0 : i32
    return %arg0, %c0_i32 : i32, i32
  }
}

module attributes {stable_mosaic.version = 11 : i64} {
  func.func @_gat_project_kernel(%arg0: i32, %arg1: memref<256x16xbf16, #tpu.memory_space<vmem>>, %arg2: memref<16x16xbf16, #tpu.memory_space<vmem>>, %arg3: memref<16x4xf32, #tpu.memory_space<vmem>>, %arg4: memref<256x16xbf16, #tpu.memory_space<vmem>>, %arg5: memref<256x4xf32, #tpu.memory_space<vmem>>) attributes {dimension_semantics = [#tpu.dimension_semantics<parallel>], iteration_bounds = array<i64: 1>, scalar_prefetch = 0 : i64, scratch_operands = 0 : i64, tpu.core_type = #tpu.core_type<tc>, window_params = [{transform_indices = @transform_0, window_bounds = array<i64: 256, 16>}, {pipeline_mode = #tpu.pipeline_mode<synchronous>, transform_indices = @transform_1, window_bounds = array<i64: 16, 16>}, {pipeline_mode = #tpu.pipeline_mode<synchronous>, transform_indices = @transform_2, window_bounds = array<i64: 16, 4>}, {transform_indices = @transform_3, window_bounds = array<i64: 256, 16>}, {transform_indices = @transform_4, window_bounds = array<i64: 256, 4>}]} {
    %c0 = arith.constant 0 : index
    %c0_0 = arith.constant 0 : index
    %0 = vector.load %arg1[%c0, %c0_0] : memref<256x16xbf16, #tpu.memory_space<vmem>>, vector<256x16xbf16>
    %c0_1 = arith.constant 0 : index
    %c0_2 = arith.constant 0 : index
    %1 = vector.load %arg2[%c0_1, %c0_2] : memref<16x16xbf16, #tpu.memory_space<vmem>>, vector<16x16xbf16>
    %cst = arith.constant dense<0.000000e+00> : vector<256x16xf32>
    %2 = tpu.matmul %0, %1, %cst {dimension_numbers = #tpu.dot_dimension_numbers<[1], [0], [0], [1], [0, 0, 1, 1], [], []>} : vector<256x16xbf16>, vector<16x16xbf16>, vector<256x16xf32> -> vector<256x16xf32>
    %c0_3 = arith.constant 0 : index
    %c0_4 = arith.constant 0 : index
    %3 = vector.load %arg3[%c0_3, %c0_4] : memref<16x4xf32, #tpu.memory_space<vmem>>, vector<16x4xf32>
    %cst_5 = arith.constant dense<0.000000e+00> : vector<256x4xf32>
    %4 = tpu.matmul %2, %3, %cst_5 {dimension_numbers = #tpu.dot_dimension_numbers<[1], [0], [0], [1], [0, 0, 1, 1], [], []>} : vector<256x16xf32>, vector<16x4xf32>, vector<256x4xf32> -> vector<256x4xf32>
    %c0_6 = arith.constant 0 : index
    %c0_7 = arith.constant 0 : index
    %5 = vector.load %arg5[%c0_6, %c0_7] : memref<256x4xf32, #tpu.memory_space<vmem>>, vector<256x4xf32>
    tpu.vector_store %arg5[%c0_6, %c0_7], %4 {strides = array<i32>} : memref<256x4xf32, #tpu.memory_space<vmem>>, vector<256x4xf32>,
    %6 = arith.truncf %2 : vector<256x16xf32> to vector<256x16xbf16>
    %c0_8 = arith.constant 0 : index
    %c0_9 = arith.constant 0 : index
    %7 = vector.load %arg4[%c0_8, %c0_9] : memref<256x16xbf16, #tpu.memory_space<vmem>>, vector<256x16xbf16>
    tpu.vector_store %arg4[%c0_8, %c0_9], %6 {strides = array<i32>} : memref<256x16xbf16, #tpu.memory_space<vmem>>, vector<256x16xbf16>,
    return
  }
  func.func @transform_0(%arg0: i32) -> (i32, i32) {
    %c0_i32 = arith.constant 0 : i32
    %c0_i32_0 = arith.constant 0 : i32
    return %arg0, %c0_i32 : i32, i32
  }
  func.func @transform_1(%arg0: i32) -> (i32, i32) {
    %c0_i32 = arith.constant 0 : i32
    %c0_i32_0 = arith.constant 0 : i32
    %c0_i32_1 = arith.constant 0 : i32
    return %c0_i32, %c0_i32_0 : i32, i32
  }
  func.func @transform_2(%arg0: i32) -> (i32, i32) {
    %c0_i32 = arith.constant 0 : i32
    %c0_i32_0 = arith.constant 0 : i32
    %c0_i32_1 = arith.constant 0 : i32
    return %c0_i32, %c0_i32_0 : i32, i32
  }
  func.func @transform_3(%arg0: i32) -> (i32, i32) {
    %c0_i32 = arith.constant 0 : i32
    %c0_i32_0 = arith.constant 0 : i32
    return %arg0, %c0_i32 : i32, i32
  }
  func.func @transform_4(%arg0: i32) -> (i32, i32) {
    %c0_i32 = arith.constant 0 : i32
    %c0_i32_0 = arith.constant 0 : i32
    return %arg0, %c0_i32 : i32, i32
  }
}

module attributes {stable_mosaic.version = 11 : i64} {
  func.func @_gat_attention_kernel(%arg0: i32, %arg1: i32, %arg2: memref<2x1xi32, #tpu.memory_space<smem>>, %arg3: memref<128x2xf32, #tpu.memory_space<vmem>>, %arg4: memref<2x256xf32, #tpu.memory_space<vmem>>, %arg5: memref<128x256xi8, #tpu.memory_space<vmem>>, %arg6: memref<256x16xbf16, #tpu.memory_space<vmem>>, %arg7: memref<128x16xbf16, #tpu.memory_space<vmem>>, %arg8: memref<128x2xf32, #tpu.memory_space<vmem>>, %arg9: memref<128x2xf32, #tpu.memory_space<vmem>>, %arg10: memref<128x16xf32, #tpu.memory_space<vmem>>) attributes {dimension_semantics = [#tpu.dimension_semantics<parallel>, #tpu.dimension_semantics<arbitrary>], iteration_bounds = array<i64: 2, 1>, scalar_prefetch = 1 : i64, scratch_operands = 3 : i64, tpu.core_type = #tpu.core_type<tc>, window_params = [{transform_indices = @transform_0, window_bounds = array<i64: 128, 2>}, {pipeline_mode = #tpu.pipeline_mode<synchronous>, transform_indices = @transform_1, window_bounds = array<i64: 2, 256>}, {transform_indices = @transform_2, window_bounds = array<i64: 128, 256>}, {pipeline_mode = #tpu.pipeline_mode<synchronous>, transform_indices = @transform_3, window_bounds = array<i64: 256, 16>}, {transform_indices = @transform_4, window_bounds = array<i64: 128, 16>}]} {
    %c0_i32 = arith.constant 0 : i32
    %0 = arith.cmpi eq, %arg1, %c0_i32 : i32
    %1 = arith.extui %0 : i1 to i32
    %c0_i32_0 = arith.constant 0 : i32
    %2 = arith.cmpi ne, %1, %c0_i32_0 : i32
    scf.if %2 {
      %cst = arith.constant -1.000000e+30 : f32
      %12 = vector.broadcast %cst : f32 to vector<128x2xf32>
      %c0 = arith.constant 0 : index
      %c0_5 = arith.constant 0 : index
      %13 = vector.load %arg8[%c0, %c0_5] : memref<128x2xf32, #tpu.memory_space<vmem>>, vector<128x2xf32>
      tpu.vector_store %arg8[%c0, %c0_5], %12 {strides = array<i32>} : memref<128x2xf32, #tpu.memory_space<vmem>>, vector<128x2xf32>,
      %cst_6 = arith.constant 0.000000e+00 : f32
      %14 = vector.broadcast %cst_6 : f32 to vector<128x2xf32>
      %c0_7 = arith.constant 0 : index
      %c0_8 = arith.constant 0 : index
      %15 = vector.load %arg9[%c0_7, %c0_8] : memref<128x2xf32, #tpu.memory_space<vmem>>, vector<128x2xf32>
      tpu.vector_store %arg9[%c0_7, %c0_8], %14 {strides = array<i32>} : memref<128x2xf32, #tpu.memory_space<vmem>>, vector<128x2xf32>,
      %cst_9 = arith.constant 0.000000e+00 : f32
      %16 = vector.broadcast %cst_9 : f32 to vector<128x16xf32>
      %c0_10 = arith.constant 0 : index
      %c0_11 = arith.constant 0 : index
      %17 = vector.load %arg10[%c0_10, %c0_11] : memref<128x16xf32, #tpu.memory_space<vmem>>, vector<128x16xf32>
      tpu.vector_store %arg10[%c0_10, %c0_11], %16 {strides = array<i32>} : memref<128x16xf32, #tpu.memory_space<vmem>>, vector<128x16xf32>,
    } else {
    }
    %3 = arith.index_cast %arg0 : i32 to index
    %4 = arith.index_cast %arg1 : i32 to index
    %5 = memref.load %arg2[%3, %4] : memref<2x1xi32, #tpu.memory_space<smem>>
    %c0_i32_1 = arith.constant 0 : i32
    %6 = arith.cmpi sgt, %5, %c0_i32_1 : i32
    %7 = arith.extui %6 : i1 to i32
    %c0_i32_2 = arith.constant 0 : i32
    %8 = arith.cmpi ne, %7, %c0_i32_2 : i32
    scf.if %8 {
      %c0 = arith.constant 0 : index
      %c0_5 = arith.constant 0 : index
      %12 = vector.load %arg5[%c0, %c0_5] : memref<128x256xi8, #tpu.memory_space<vmem>>, vector<128x256xi8>
      %13 = arith.sitofp %12 : vector<128x256xi8> to vector<128x256xf32>
      %cst = arith.constant 1.000000e+00 : f32
      %14 = vector.broadcast %cst : f32 to vector<128x256xf32>
      %15 = arith.subf %13, %14 : vector<128x256xf32>
      %cst_6 = arith.constant 1.000000e+30 : f32
      %16 = vector.broadcast %cst_6 : f32 to vector<128x256xf32>
      %17 = arith.mulf %15, %16 : vector<128x256xf32>
      %c256_i32 = arith.constant 256 : i32
      %18 = arith.muli %arg1, %c256_i32 : i32
      %19 = tpu.assume_multiple %18, 256 : i32
      %20 = arith.index_cast %19 : i32 to index
      %c0_7 = arith.constant 0 : index
      %21 = vector.load %arg6[%20, %c0_7] : memref<256x16xbf16, #tpu.memory_space<vmem>>, vector<256x16xbf16>
      %c0_8 = arith.constant 0 : index
      %22 = arith.index_cast %19 : i32 to index
      %23 = vector.load %arg4[%c0_8, %22] : memref<2x256xf32, #tpu.memory_space<vmem>>, vector<2x256xf32>
      %c0_9 = arith.constant 0 : index
      %c0_10 = arith.constant 0 : index
      %24 = vector.load %arg3[%c0_9, %c0_10] : memref<128x2xf32, #tpu.memory_space<vmem>>, vector<128x2xf32>
      %c0_11 = arith.constant 0 : index
      %c0_12 = arith.constant 0 : index
      %25 = vector.load %arg8[%c0_11, %c0_12] : memref<128x2xf32, #tpu.memory_space<vmem>>, vector<128x2xf32>
      %c0_13 = arith.constant 0 : index
      %c0_14 = arith.constant 0 : index
      %26 = vector.load %arg9[%c0_13, %c0_14] : memref<128x2xf32, #tpu.memory_space<vmem>>, vector<128x2xf32>
      %c0_15 = arith.constant 0 : index
      %c0_16 = arith.constant 0 : index
      %27 = vector.load %arg10[%c0_15, %c0_16] : memref<128x16xf32, #tpu.memory_space<vmem>>, vector<128x16xf32>
      %28 = vector.extract_strided_slice %24 {offsets = [0, 0], sizes = [128, 1], strides = [1, 1]} : vector<128x2xf32> to vector<128x1xf32>
      %29 = vector.extract_strided_slice %23 {offsets = [0, 0], sizes = [1, 256], strides = [1, 1]} : vector<2x256xf32> to vector<1x256xf32>
      %30 = vector.broadcast %28 : vector<128x1xf32> to vector<128x256xf32>
      %31 = vector.broadcast %29 : vector<1x256xf32> to vector<128x256xf32>
      %32 = arith.addf %30, %31 : vector<128x256xf32>
      %cst_17 = arith.constant 2.000000e-01 : f32
      %33 = vector.broadcast %cst_17 : f32 to vector<128x256xf32>
      %34 = arith.mulf %33, %32 : vector<128x256xf32>
      %35 = arith.maximumf %32, %34 : vector<128x256xf32>
      %36 = arith.addf %35, %17 : vector<128x256xf32>
      %37 = vector.extract_strided_slice %25 {offsets = [0, 0], sizes = [128, 1], strides = [1, 1]} : vector<128x2xf32> to vector<128x1xf32>
      %cst_18 = arith.constant dense<0xFF800000> : vector<128xf32>
      %38 = vector.multi_reduction <maximumf>, %36, %cst_18 [1] : vector<128x256xf32> to vector<128xf32>
      %39 = vector.shape_cast %38 : vector<128xf32> to vector<128x1xf32>
      %40 = arith.maximumf %37, %39 : vector<128x1xf32>
      %41 = arith.subf %37, %40 : vector<128x1xf32>
      %42 = math.exp %41 : vector<128x1xf32>
      %43 = vector.broadcast %40 : vector<128x1xf32> to vector<128x256xf32>
      %44 = arith.subf %36, %43 : vector<128x256xf32>
      %45 = math.exp %44 : vector<128x256xf32>
      %46 = vector.extract_strided_slice %26 {offsets = [0, 0], sizes = [128, 1], strides = [1, 1]} : vector<128x2xf32> to vector<128x1xf32>
      %47 = arith.mulf %42, %46 : vector<128x1xf32>
      %cst_19 = arith.constant dense<0.000000e+00> : vector<128xf32>
      %48 = vector.multi_reduction <add>, %45, %cst_19 [1] : vector<128x256xf32> to vector<128xf32>
      %49 = vector.shape_cast %48 : vector<128xf32> to vector<128x1xf32>
      %50 = arith.addf %47, %49 : vector<128x1xf32>
      %51 = vector.extract_strided_slice %27 {offsets = [0, 0], sizes = [128, 8], strides = [1, 1]} : vector<128x16xf32> to vector<128x8xf32>
      %52 = vector.broadcast %42 : vector<128x1xf32> to vector<128x8xf32>
      %53 = arith.mulf %52, %51 : vector<128x8xf32>
      %54 = arith.truncf %45 : vector<128x256xf32> to vector<128x256xbf16>
      %55 = vector.extract_strided_slice %21 {offsets = [0, 0], sizes = [256, 8], strides = [1, 1]} : vector<256x16xbf16> to vector<256x8xbf16>
      %cst_20 = arith.constant dense<0.000000e+00> : vector<128x8xf32>
      %56 = tpu.matmul %54, %55, %cst_20 {dimension_numbers = #tpu.dot_dimension_numbers<[1], [0], [0], [1], [0, 0, 1, 1], [], []>} : vector<128x256xbf16>, vector<256x8xbf16>, vector<128x8xf32> -> vector<128x8xf32>
      %57 = arith.addf %53, %56 : vector<128x8xf32>
      %58 = vector.extract_strided_slice %24 {offsets = [0, 1], sizes = [128, 1], strides = [1, 1]} : vector<128x2xf32> to vector<128x1xf32>
      %59 = vector.extract_strided_slice %23 {offsets = [1, 0], sizes = [1, 256], strides = [1, 1]} : vector<2x256xf32> to vector<1x256xf32>
      %60 = vector.broadcast %58 : vector<128x1xf32> to vector<128x256xf32>
      %61 = vector.broadcast %59 : vector<1x256xf32> to vector<128x256xf32>
      %62 = arith.addf %60, %61 : vector<128x256xf32>
      %cst_21 = arith.constant 2.000000e-01 : f32
      %63 = vector.broadcast %cst_21 : f32 to vector<128x256xf32>
      %64 = arith.mulf %63, %62 : vector<128x256xf32>
      %65 = arith.maximumf %62, %64 : vector<128x256xf32>
      %66 = arith.addf %65, %17 : vector<128x256xf32>
      %67 = vector.extract_strided_slice %25 {offsets = [0, 1], sizes = [128, 1], strides = [1, 1]} : vector<128x2xf32> to vector<128x1xf32>
      %cst_22 = arith.constant dense<0xFF800000> : vector<128xf32>
      %68 = vector.multi_reduction <maximumf>, %66, %cst_22 [1] : vector<128x256xf32> to vector<128xf32>
      %69 = vector.shape_cast %68 : vector<128xf32> to vector<128x1xf32>
      %70 = arith.maximumf %67, %69 : vector<128x1xf32>
      %71 = arith.subf %67, %70 : vector<128x1xf32>
      %72 = math.exp %71 : vector<128x1xf32>
      %73 = vector.broadcast %70 : vector<128x1xf32> to vector<128x256xf32>
      %74 = arith.subf %66, %73 : vector<128x256xf32>
      %75 = math.exp %74 : vector<128x256xf32>
      %76 = vector.extract_strided_slice %26 {offsets = [0, 1], sizes = [128, 1], strides = [1, 1]} : vector<128x2xf32> to vector<128x1xf32>
      %77 = arith.mulf %72, %76 : vector<128x1xf32>
      %cst_23 = arith.constant dense<0.000000e+00> : vector<128xf32>
      %78 = vector.multi_reduction <add>, %75, %cst_23 [1] : vector<128x256xf32> to vector<128xf32>
      %79 = vector.shape_cast %78 : vector<128xf32> to vector<128x1xf32>
      %80 = arith.addf %77, %79 : vector<128x1xf32>
      %81 = vector.extract_strided_slice %27 {offsets = [0, 8], sizes = [128, 8], strides = [1, 1]} : vector<128x16xf32> to vector<128x8xf32>
      %82 = vector.broadcast %72 : vector<128x1xf32> to vector<128x8xf32>
      %83 = arith.mulf %82, %81 : vector<128x8xf32>
      %84 = arith.truncf %75 : vector<128x256xf32> to vector<128x256xbf16>
      %85 = vector.extract_strided_slice %21 {offsets = [0, 8], sizes = [256, 8], strides = [1, 1]} : vector<256x16xbf16> to vector<256x8xbf16>
      %cst_24 = arith.constant dense<0.000000e+00> : vector<128x8xf32>
      %86 = tpu.matmul %84, %85, %cst_24 {dimension_numbers = #tpu.dot_dimension_numbers<[1], [0], [0], [1], [0, 0, 1, 1], [], []>} : vector<128x256xbf16>, vector<256x8xbf16>, vector<128x8xf32> -> vector<128x8xf32>
      %87 = arith.addf %83, %86 : vector<128x8xf32>
      %88 = tpu.concatenate %40, %70 in 1 : vector<128x1xf32>, vector<128x1xf32> -> vector<128x2xf32>
      %c0_25 = arith.constant 0 : index
      %c0_26 = arith.constant 0 : index
      %89 = vector.load %arg8[%c0_25, %c0_26] : memref<128x2xf32, #tpu.memory_space<vmem>>, vector<128x2xf32>
      tpu.vector_store %arg8[%c0_25, %c0_26], %88 {strides = array<i32>} : memref<128x2xf32, #tpu.memory_space<vmem>>, vector<128x2xf32>,
      %90 = tpu.concatenate %50, %80 in 1 : vector<128x1xf32>, vector<128x1xf32> -> vector<128x2xf32>
      %c0_27 = arith.constant 0 : index
      %c0_28 = arith.constant 0 : index
      %91 = vector.load %arg9[%c0_27, %c0_28] : memref<128x2xf32, #tpu.memory_space<vmem>>, vector<128x2xf32>
      tpu.vector_store %arg9[%c0_27, %c0_28], %90 {strides = array<i32>} : memref<128x2xf32, #tpu.memory_space<vmem>>, vector<128x2xf32>,
      %92 = tpu.concatenate %57, %87 in 1 : vector<128x8xf32>, vector<128x8xf32> -> vector<128x16xf32>
      %c0_29 = arith.constant 0 : index
      %c0_30 = arith.constant 0 : index
      %93 = vector.load %arg10[%c0_29, %c0_30] : memref<128x16xf32, #tpu.memory_space<vmem>>, vector<128x16xf32>
      tpu.vector_store %arg10[%c0_29, %c0_30], %92 {strides = array<i32>} : memref<128x16xf32, #tpu.memory_space<vmem>>, vector<128x16xf32>,
    } else {
    }
    %c0_i32_3 = arith.constant 0 : i32
    %9 = arith.cmpi eq, %arg1, %c0_i32_3 : i32
    %10 = arith.extui %9 : i1 to i32
    %c0_i32_4 = arith.constant 0 : i32
    %11 = arith.cmpi ne, %10, %c0_i32_4 : i32
    scf.if %11 {
      %c0 = arith.constant 0 : index
      %c0_5 = arith.constant 0 : index
      %12 = vector.load %arg9[%c0, %c0_5] : memref<128x2xf32, #tpu.memory_space<vmem>>, vector<128x2xf32>
      %cst = arith.constant 9.99999968E-21 : f32
      %13 = vector.broadcast %cst : f32 to vector<128x2xf32>
      %14 = arith.maximumf %12, %13 : vector<128x2xf32>
      %15 = tpu.reciprocal %14 {approx = true} : vector<128x2xf32> -> vector<128x2xf32>
      %c0_6 = arith.constant 0 : index
      %c0_7 = arith.constant 0 : index
      %16 = vector.load %arg10[%c0_6, %c0_7] : memref<128x16xf32, #tpu.memory_space<vmem>>, vector<128x16xf32>
      %17 = vector.extract_strided_slice %16 {offsets = [0, 0], sizes = [128, 8], strides = [1, 1]} : vector<128x16xf32> to vector<128x8xf32>
      %18 = vector.extract_strided_slice %15 {offsets = [0, 0], sizes = [128, 1], strides = [1, 1]} : vector<128x2xf32> to vector<128x1xf32>
      %19 = vector.broadcast %18 : vector<128x1xf32> to vector<128x8xf32>
      %20 = arith.mulf %17, %19 : vector<128x8xf32>
      %21 = vector.extract_strided_slice %16 {offsets = [0, 8], sizes = [128, 8], strides = [1, 1]} : vector<128x16xf32> to vector<128x8xf32>
      %22 = vector.extract_strided_slice %15 {offsets = [0, 1], sizes = [128, 1], strides = [1, 1]} : vector<128x2xf32> to vector<128x1xf32>
      %23 = vector.broadcast %22 : vector<128x1xf32> to vector<128x8xf32>
      %24 = arith.mulf %21, %23 : vector<128x8xf32>
      %25 = tpu.concatenate %20, %24 in 1 : vector<128x8xf32>, vector<128x8xf32> -> vector<128x16xf32>
      %cst_8 = arith.constant 0.000000e+00 : f32
      %26 = vector.broadcast %cst_8 : f32 to vector<128x16xf32>
      %27 = arith.cmpf ogt, %25, %26 : vector<128x16xf32>
      %28 = math.exp %25 : vector<128x16xf32>
      %cst_9 = arith.constant 1.000000e+00 : f32
      %29 = vector.broadcast %cst_9 : f32 to vector<128x16xf32>
      %30 = arith.subf %28, %29 : vector<128x16xf32>
      %31 = arith.select %27, %25, %30 : vector<128x16xi1>, vector<128x16xf32>
      %32 = arith.truncf %31 : vector<128x16xf32> to vector<128x16xbf16>
      %c0_10 = arith.constant 0 : index
      %c0_11 = arith.constant 0 : index
      %33 = vector.load %arg7[%c0_10, %c0_11] : memref<128x16xbf16, #tpu.memory_space<vmem>>, vector<128x16xbf16>
      tpu.vector_store %arg7[%c0_10, %c0_11], %32 {strides = array<i32>} : memref<128x16xbf16, #tpu.memory_space<vmem>>, vector<128x16xbf16>,
    } else {
    }
    return
  }
  func.func @transform_0(%arg0: i32, %arg1: i32, %arg2: memref<2x1xi32, #tpu.memory_space<smem>>) -> (i32, i32) {
    %c0_i32 = arith.constant 0 : i32
    %c0_i32_0 = arith.constant 0 : i32
    return %arg0, %c0_i32 : i32, i32
  }
  func.func @transform_1(%arg0: i32, %arg1: i32, %arg2: memref<2x1xi32, #tpu.memory_space<smem>>) -> (i32, i32) {
    %c0_i32 = arith.constant 0 : i32
    %c0_i32_0 = arith.constant 0 : i32
    %c0_i32_1 = arith.constant 0 : i32
    return %c0_i32, %c0_i32_0 : i32, i32
  }
  func.func @transform_2(%arg0: i32, %arg1: i32, %arg2: memref<2x1xi32, #tpu.memory_space<smem>>) -> (i32, i32) {
    %c0_i32 = arith.constant 0 : i32
    return %arg0, %arg1 : i32, i32
  }
  func.func @transform_3(%arg0: i32, %arg1: i32, %arg2: memref<2x1xi32, #tpu.memory_space<smem>>) -> (i32, i32) {
    %c0_i32 = arith.constant 0 : i32
    %c0_i32_0 = arith.constant 0 : i32
    %c0_i32_1 = arith.constant 0 : i32
    return %c0_i32, %c0_i32_0 : i32, i32
  }
  func.func @transform_4(%arg0: i32, %arg1: i32, %arg2: memref<2x1xi32, #tpu.memory_space<smem>>) -> (i32, i32) {
    %c0_i32 = arith.constant 0 : i32
    %c0_i32_0 = arith.constant 0 : i32
    return %arg0, %c0_i32 : i32, i32
  }
}

module attributes {stable_mosaic.version = 11 : i64} {
  func.func @_gat_project_kernel(%arg0: i32, %arg1: memref<256x16xbf16, #tpu.memory_space<vmem>>, %arg2: memref<16x4xbf16, #tpu.memory_space<vmem>>, %arg3: memref<4x2xf32, #tpu.memory_space<vmem>>, %arg4: memref<256x4xbf16, #tpu.memory_space<vmem>>, %arg5: memref<256x2xf32, #tpu.memory_space<vmem>>) attributes {dimension_semantics = [#tpu.dimension_semantics<parallel>], iteration_bounds = array<i64: 1>, scalar_prefetch = 0 : i64, scratch_operands = 0 : i64, tpu.core_type = #tpu.core_type<tc>, window_params = [{transform_indices = @transform_0, window_bounds = array<i64: 256, 16>}, {pipeline_mode = #tpu.pipeline_mode<synchronous>, transform_indices = @transform_1, window_bounds = array<i64: 16, 4>}, {pipeline_mode = #tpu.pipeline_mode<synchronous>, transform_indices = @transform_2, window_bounds = array<i64: 4, 2>}, {transform_indices = @transform_3, window_bounds = array<i64: 256, 4>}, {transform_indices = @transform_4, window_bounds = array<i64: 256, 2>}]} {
    %c0 = arith.constant 0 : index
    %c0_0 = arith.constant 0 : index
    %0 = vector.load %arg1[%c0, %c0_0] : memref<256x16xbf16, #tpu.memory_space<vmem>>, vector<256x16xbf16>
    %c0_1 = arith.constant 0 : index
    %c0_2 = arith.constant 0 : index
    %1 = vector.load %arg2[%c0_1, %c0_2] : memref<16x4xbf16, #tpu.memory_space<vmem>>, vector<16x4xbf16>
    %cst = arith.constant dense<0.000000e+00> : vector<256x4xf32>
    %2 = tpu.matmul %0, %1, %cst {dimension_numbers = #tpu.dot_dimension_numbers<[1], [0], [0], [1], [0, 0, 1, 1], [], []>} : vector<256x16xbf16>, vector<16x4xbf16>, vector<256x4xf32> -> vector<256x4xf32>
    %c0_3 = arith.constant 0 : index
    %c0_4 = arith.constant 0 : index
    %3 = vector.load %arg3[%c0_3, %c0_4] : memref<4x2xf32, #tpu.memory_space<vmem>>, vector<4x2xf32>
    %cst_5 = arith.constant dense<0.000000e+00> : vector<256x2xf32>
    %4 = tpu.matmul %2, %3, %cst_5 {dimension_numbers = #tpu.dot_dimension_numbers<[1], [0], [0], [1], [0, 0, 1, 1], [], []>} : vector<256x4xf32>, vector<4x2xf32>, vector<256x2xf32> -> vector<256x2xf32>
    %c0_6 = arith.constant 0 : index
    %c0_7 = arith.constant 0 : index
    %5 = vector.load %arg5[%c0_6, %c0_7] : memref<256x2xf32, #tpu.memory_space<vmem>>, vector<256x2xf32>
    tpu.vector_store %arg5[%c0_6, %c0_7], %4 {strides = array<i32>} : memref<256x2xf32, #tpu.memory_space<vmem>>, vector<256x2xf32>,
    %6 = arith.truncf %2 : vector<256x4xf32> to vector<256x4xbf16>
    %c0_8 = arith.constant 0 : index
    %c0_9 = arith.constant 0 : index
    %7 = vector.load %arg4[%c0_8, %c0_9] : memref<256x4xbf16, #tpu.memory_space<vmem>>, vector<256x4xbf16>
    tpu.vector_store %arg4[%c0_8, %c0_9], %6 {strides = array<i32>} : memref<256x4xbf16, #tpu.memory_space<vmem>>, vector<256x4xbf16>,
    return
  }
  func.func @transform_0(%arg0: i32) -> (i32, i32) {
    %c0_i32 = arith.constant 0 : i32
    %c0_i32_0 = arith.constant 0 : i32
    return %arg0, %c0_i32 : i32, i32
  }
  func.func @transform_1(%arg0: i32) -> (i32, i32) {
    %c0_i32 = arith.constant 0 : i32
    %c0_i32_0 = arith.constant 0 : i32
    %c0_i32_1 = arith.constant 0 : i32
    return %c0_i32, %c0_i32_0 : i32, i32
  }
  func.func @transform_2(%arg0: i32) -> (i32, i32) {
    %c0_i32 = arith.constant 0 : i32
    %c0_i32_0 = arith.constant 0 : i32
    %c0_i32_1 = arith.constant 0 : i32
    return %c0_i32, %c0_i32_0 : i32, i32
  }
  func.func @transform_3(%arg0: i32) -> (i32, i32) {
    %c0_i32 = arith.constant 0 : i32
    %c0_i32_0 = arith.constant 0 : i32
    return %arg0, %c0_i32 : i32, i32
  }
  func.func @transform_4(%arg0: i32) -> (i32, i32) {
    %c0_i32 = arith.constant 0 : i32
    %c0_i32_0 = arith.constant 0 : i32
    return %arg0, %c0_i32 : i32, i32
  }
}

module attributes {stable_mosaic.version = 11 : i64} {
  func.func @_gat_attention_kernel(%arg0: i32, %arg1: i32, %arg2: memref<2x1xi32, #tpu.memory_space<smem>>, %arg3: memref<128x1xf32, #tpu.memory_space<vmem>>, %arg4: memref<1x256xf32, #tpu.memory_space<vmem>>, %arg5: memref<128x256xi8, #tpu.memory_space<vmem>>, %arg6: memref<256x4xbf16, #tpu.memory_space<vmem>>, %arg7: memref<128x4xf32, #tpu.memory_space<vmem>>, %arg8: memref<128x1xf32, #tpu.memory_space<vmem>>, %arg9: memref<128x1xf32, #tpu.memory_space<vmem>>, %arg10: memref<128x4xf32, #tpu.memory_space<vmem>>) attributes {dimension_semantics = [#tpu.dimension_semantics<parallel>, #tpu.dimension_semantics<arbitrary>], iteration_bounds = array<i64: 2, 1>, scalar_prefetch = 1 : i64, scratch_operands = 3 : i64, tpu.core_type = #tpu.core_type<tc>, window_params = [{transform_indices = @transform_0, window_bounds = array<i64: 128, 1>}, {pipeline_mode = #tpu.pipeline_mode<synchronous>, transform_indices = @transform_1, window_bounds = array<i64: 1, 256>}, {transform_indices = @transform_2, window_bounds = array<i64: 128, 256>}, {pipeline_mode = #tpu.pipeline_mode<synchronous>, transform_indices = @transform_3, window_bounds = array<i64: 256, 4>}, {transform_indices = @transform_4, window_bounds = array<i64: 128, 4>}]} {
    %c0_i32 = arith.constant 0 : i32
    %0 = arith.cmpi eq, %arg1, %c0_i32 : i32
    %1 = arith.extui %0 : i1 to i32
    %c0_i32_0 = arith.constant 0 : i32
    %2 = arith.cmpi ne, %1, %c0_i32_0 : i32
    scf.if %2 {
      %cst = arith.constant -1.000000e+30 : f32
      %12 = vector.broadcast %cst : f32 to vector<128x1xf32>
      %c0 = arith.constant 0 : index
      %c0_5 = arith.constant 0 : index
      %13 = vector.load %arg8[%c0, %c0_5] : memref<128x1xf32, #tpu.memory_space<vmem>>, vector<128x1xf32>
      tpu.vector_store %arg8[%c0, %c0_5], %12 {strides = array<i32>} : memref<128x1xf32, #tpu.memory_space<vmem>>, vector<128x1xf32>,
      %cst_6 = arith.constant 0.000000e+00 : f32
      %14 = vector.broadcast %cst_6 : f32 to vector<128x1xf32>
      %c0_7 = arith.constant 0 : index
      %c0_8 = arith.constant 0 : index
      %15 = vector.load %arg9[%c0_7, %c0_8] : memref<128x1xf32, #tpu.memory_space<vmem>>, vector<128x1xf32>
      tpu.vector_store %arg9[%c0_7, %c0_8], %14 {strides = array<i32>} : memref<128x1xf32, #tpu.memory_space<vmem>>, vector<128x1xf32>,
      %cst_9 = arith.constant 0.000000e+00 : f32
      %16 = vector.broadcast %cst_9 : f32 to vector<128x4xf32>
      %c0_10 = arith.constant 0 : index
      %c0_11 = arith.constant 0 : index
      %17 = vector.load %arg10[%c0_10, %c0_11] : memref<128x4xf32, #tpu.memory_space<vmem>>, vector<128x4xf32>
      tpu.vector_store %arg10[%c0_10, %c0_11], %16 {strides = array<i32>} : memref<128x4xf32, #tpu.memory_space<vmem>>, vector<128x4xf32>,
    } else {
    }
    %3 = arith.index_cast %arg0 : i32 to index
    %4 = arith.index_cast %arg1 : i32 to index
    %5 = memref.load %arg2[%3, %4] : memref<2x1xi32, #tpu.memory_space<smem>>
    %c0_i32_1 = arith.constant 0 : i32
    %6 = arith.cmpi sgt, %5, %c0_i32_1 : i32
    %7 = arith.extui %6 : i1 to i32
    %c0_i32_2 = arith.constant 0 : i32
    %8 = arith.cmpi ne, %7, %c0_i32_2 : i32
    scf.if %8 {
      %c0 = arith.constant 0 : index
      %c0_5 = arith.constant 0 : index
      %12 = vector.load %arg5[%c0, %c0_5] : memref<128x256xi8, #tpu.memory_space<vmem>>, vector<128x256xi8>
      %13 = arith.sitofp %12 : vector<128x256xi8> to vector<128x256xf32>
      %cst = arith.constant 1.000000e+00 : f32
      %14 = vector.broadcast %cst : f32 to vector<128x256xf32>
      %15 = arith.subf %13, %14 : vector<128x256xf32>
      %cst_6 = arith.constant 1.000000e+30 : f32
      %16 = vector.broadcast %cst_6 : f32 to vector<128x256xf32>
      %17 = arith.mulf %15, %16 : vector<128x256xf32>
      %c256_i32 = arith.constant 256 : i32
      %18 = arith.muli %arg1, %c256_i32 : i32
      %19 = tpu.assume_multiple %18, 256 : i32
      %20 = arith.index_cast %19 : i32 to index
      %c0_7 = arith.constant 0 : index
      %21 = vector.load %arg6[%20, %c0_7] : memref<256x4xbf16, #tpu.memory_space<vmem>>, vector<256x4xbf16>
      %c0_8 = arith.constant 0 : index
      %22 = arith.index_cast %19 : i32 to index
      %23 = vector.load %arg4[%c0_8, %22] : memref<1x256xf32, #tpu.memory_space<vmem>>, vector<1x256xf32>
      %c0_9 = arith.constant 0 : index
      %c0_10 = arith.constant 0 : index
      %24 = vector.load %arg3[%c0_9, %c0_10] : memref<128x1xf32, #tpu.memory_space<vmem>>, vector<128x1xf32>
      %c0_11 = arith.constant 0 : index
      %c0_12 = arith.constant 0 : index
      %25 = vector.load %arg8[%c0_11, %c0_12] : memref<128x1xf32, #tpu.memory_space<vmem>>, vector<128x1xf32>
      %c0_13 = arith.constant 0 : index
      %c0_14 = arith.constant 0 : index
      %26 = vector.load %arg9[%c0_13, %c0_14] : memref<128x1xf32, #tpu.memory_space<vmem>>, vector<128x1xf32>
      %c0_15 = arith.constant 0 : index
      %c0_16 = arith.constant 0 : index
      %27 = vector.load %arg10[%c0_15, %c0_16] : memref<128x4xf32, #tpu.memory_space<vmem>>, vector<128x4xf32>
      %28 = vector.broadcast %24 : vector<128x1xf32> to vector<128x256xf32>
      %29 = vector.broadcast %23 : vector<1x256xf32> to vector<128x256xf32>
      %30 = arith.addf %28, %29 : vector<128x256xf32>
      %cst_17 = arith.constant 2.000000e-01 : f32
      %31 = vector.broadcast %cst_17 : f32 to vector<128x256xf32>
      %32 = arith.mulf %31, %30 : vector<128x256xf32>
      %33 = arith.maximumf %30, %32 : vector<128x256xf32>
      %34 = arith.addf %33, %17 : vector<128x256xf32>
      %cst_18 = arith.constant dense<0xFF800000> : vector<128xf32>
      %35 = vector.multi_reduction <maximumf>, %34, %cst_18 [1] : vector<128x256xf32> to vector<128xf32>
      %36 = vector.shape_cast %35 : vector<128xf32> to vector<128x1xf32>
      %37 = arith.maximumf %25, %36 : vector<128x1xf32>
      %38 = arith.subf %25, %37 : vector<128x1xf32>
      %39 = math.exp %38 : vector<128x1xf32>
      %40 = vector.broadcast %37 : vector<128x1xf32> to vector<128x256xf32>
      %41 = arith.subf %34, %40 : vector<128x256xf32>
      %42 = math.exp %41 : vector<128x256xf32>
      %43 = arith.mulf %39, %26 : vector<128x1xf32>
      %cst_19 = arith.constant dense<0.000000e+00> : vector<128xf32>
      %44 = vector.multi_reduction <add>, %42, %cst_19 [1] : vector<128x256xf32> to vector<128xf32>
      %45 = vector.shape_cast %44 : vector<128xf32> to vector<128x1xf32>
      %46 = arith.addf %43, %45 : vector<128x1xf32>
      %47 = vector.broadcast %39 : vector<128x1xf32> to vector<128x4xf32>
      %48 = arith.mulf %47, %27 : vector<128x4xf32>
      %49 = arith.truncf %42 : vector<128x256xf32> to vector<128x256xbf16>
      %cst_20 = arith.constant dense<0.000000e+00> : vector<128x4xf32>
      %50 = tpu.matmul %49, %21, %cst_20 {dimension_numbers = #tpu.dot_dimension_numbers<[1], [0], [0], [1], [0, 0, 1, 1], [], []>} : vector<128x256xbf16>, vector<256x4xbf16>, vector<128x4xf32> -> vector<128x4xf32>
      %51 = arith.addf %48, %50 : vector<128x4xf32>
      %c0_21 = arith.constant 0 : index
      %c0_22 = arith.constant 0 : index
      %52 = vector.load %arg8[%c0_21, %c0_22] : memref<128x1xf32, #tpu.memory_space<vmem>>, vector<128x1xf32>
      tpu.vector_store %arg8[%c0_21, %c0_22], %37 {strides = array<i32>} : memref<128x1xf32, #tpu.memory_space<vmem>>, vector<128x1xf32>,
      %c0_23 = arith.constant 0 : index
      %c0_24 = arith.constant 0 : index
      %53 = vector.load %arg9[%c0_23, %c0_24] : memref<128x1xf32, #tpu.memory_space<vmem>>, vector<128x1xf32>
      tpu.vector_store %arg9[%c0_23, %c0_24], %46 {strides = array<i32>} : memref<128x1xf32, #tpu.memory_space<vmem>>, vector<128x1xf32>,
      %c0_25 = arith.constant 0 : index
      %c0_26 = arith.constant 0 : index
      %54 = vector.load %arg10[%c0_25, %c0_26] : memref<128x4xf32, #tpu.memory_space<vmem>>, vector<128x4xf32>
      tpu.vector_store %arg10[%c0_25, %c0_26], %51 {strides = array<i32>} : memref<128x4xf32, #tpu.memory_space<vmem>>, vector<128x4xf32>,
    } else {
    }
    %c0_i32_3 = arith.constant 0 : i32
    %9 = arith.cmpi eq, %arg1, %c0_i32_3 : i32
    %10 = arith.extui %9 : i1 to i32
    %c0_i32_4 = arith.constant 0 : i32
    %11 = arith.cmpi ne, %10, %c0_i32_4 : i32
    scf.if %11 {
      %c0 = arith.constant 0 : index
      %c0_5 = arith.constant 0 : index
      %12 = vector.load %arg9[%c0, %c0_5] : memref<128x1xf32, #tpu.memory_space<vmem>>, vector<128x1xf32>
      %cst = arith.constant 9.99999968E-21 : f32
      %13 = vector.broadcast %cst : f32 to vector<128x1xf32>
      %14 = arith.maximumf %12, %13 : vector<128x1xf32>
      %15 = tpu.reciprocal %14 {approx = true} : vector<128x1xf32> -> vector<128x1xf32>
      %c0_6 = arith.constant 0 : index
      %c0_7 = arith.constant 0 : index
      %16 = vector.load %arg10[%c0_6, %c0_7] : memref<128x4xf32, #tpu.memory_space<vmem>>, vector<128x4xf32>
      %17 = vector.broadcast %15 : vector<128x1xf32> to vector<128x4xf32>
      %18 = arith.mulf %16, %17 : vector<128x4xf32>
      %cst_8 = arith.constant 1.000000e+00 : f32
      %19 = vector.broadcast %cst_8 : f32 to vector<128x4xf32>
      %20 = arith.mulf %18, %19 : vector<128x4xf32>
      %c0_9 = arith.constant 0 : index
      %c0_10 = arith.constant 0 : index
      %21 = vector.load %arg7[%c0_9, %c0_10] : memref<128x4xf32, #tpu.memory_space<vmem>>, vector<128x4xf32>
      tpu.vector_store %arg7[%c0_9, %c0_10], %20 {strides = array<i32>} : memref<128x4xf32, #tpu.memory_space<vmem>>, vector<128x4xf32>,
    } else {
    }
    return
  }
  func.func @transform_0(%arg0: i32, %arg1: i32, %arg2: memref<2x1xi32, #tpu.memory_space<smem>>) -> (i32, i32) {
    %c0_i32 = arith.constant 0 : i32
    %c0_i32_0 = arith.constant 0 : i32
    return %arg0, %c0_i32 : i32, i32
  }
  func.func @transform_1(%arg0: i32, %arg1: i32, %arg2: memref<2x1xi32, #tpu.memory_space<smem>>) -> (i32, i32) {
    %c0_i32 = arith.constant 0 : i32
    %c0_i32_0 = arith.constant 0 : i32
    %c0_i32_1 = arith.constant 0 : i32
    return %c0_i32, %c0_i32_0 : i32, i32
  }
  func.func @transform_2(%arg0: i32, %arg1: i32, %arg2: memref<2x1xi32, #tpu.memory_space<smem>>) -> (i32, i32) {
    %c0_i32 = arith.constant 0 : i32
    return %arg0, %arg1 : i32, i32
  }
  func.func @transform_3(%arg0: i32, %arg1: i32, %arg2: memref<2x1xi32, #tpu.memory_space<smem>>) -> (i32, i32) {
    %c0_i32 = arith.constant 0 : i32
    %c0_i32_0 = arith.constant 0 : i32
    %c0_i32_1 = arith.constant 0 : i32
    return %c0_i32, %c0_i32_0 : i32, i32
  }
  func.func @transform_4(%arg0: i32, %arg1: i32, %arg2: memref<2x1xi32, #tpu.memory_space<smem>>) -> (i32, i32) {
    %c0_i32 = arith.constant 0 : i32
    %c0_i32_0 = arith.constant 0 : i32
    return %arg0, %c0_i32 : i32, i32
  }
}

</mosaic_0001>

<bundles_post_ra>
// kernel: gat_forward.6
= control target key start
LH: loop header
LB: loop body
LE: loop exit
PB: predicated region body
PF: predicated region fallthrough
CT: control target
= control target key end

     0   :  { %vm73_vm0 = vcmask 130048   ;;  %vm767_vm1 = vcmask 125952   ;;  %vm606_vm2 = vcmask 31744   ;;  %s1497_s1 = inlined_call_operand.vmem [shape: bf16[16,16], index: 1, kind: input, shape index: {}]   ;;  %s1498_s0 = inlined_call_operand.vmem [shape: f32[256,16], index: 0, kind: input, shape index: {}]   ;;  %s1499_s2 = inlined_call_operand.vmem [shape: f32[16,4], index: 2, kind: input, shape index: {}]   ;;  %s1500_s3 = inlined_call_operand.vmem [shape: bf16[256,16], index: 3, kind: output, shape index: {0}]   ;;  %s1501_s4 = inlined_call_operand.vmem [shape: f32[256,4], index: 4, kind: output, shape index: {1}]  }
   0x1   :  { %v1062_v0 = vld [vmem:[%s1497_s1] sm:$0xff]   ;;  %v18_v2 = vld [vmem:[%s1498_s0 + $0x8] sm:$0xff]  ;;  %v19_v3 = vld [vmem:[%s1498_s0 + $0x10] sm:$0xff] }
   0x2   :  { %v17_v1 = vld [vmem:[%s1498_s0] sm:$0xff]  ;;  %972 = vmatprep.subr.bf16.mxu0 %v1062_v0  ;;  %v20_v5 = vld [vmem:[%s1498_s0 + $0x18] sm:$0xff]  ;;  %v22_v7 = vld [vmem:[%s1498_s0 + $0x28] sm:$0xff] }
   0x3   :  { %v49_v4 = vpack.c.bf16 %v18_v2, %v17_v1  ;;  %v21_v6 = vld [vmem:[%s1498_s0 + $0x20] sm:$0xff]  ;;  %973 = vmatpush3.bf16.msra.mxu0 %v1062_v0  ;;  %v50_v8 = vpack.c.bf16 %v20_v5, %v19_v3  ;;  %v23_v10 = vld [vmem:[%s1498_s0 + $0x30] sm:$0xff]  ;;  %v24_v11 = vld [vmem:[%s1498_s0 + $0x38] sm:$0xff] }
   0x4   :  { %v51_v9 = vpack.c.bf16 %v22_v7, %v21_v6  ;;  %v25_v12 = vld [vmem:[%s1498_s0 + $0x40] sm:$0xff]  ;;  %v26_v13 = vld [vmem:[%s1498_s0 + $0x48] sm:$0xff]  ;;  %v52_v14 = vpack.c.bf16 %v24_v11, %v23_v10  ;;  %v27_v16 = vld [vmem:[%s1498_s0 + $0x50] sm:$0xff] }
   0x5   :  { %974 = vmatprep.mubr.msk.bf16.mxu0 %vm73_vm0, %v49_v4  ;;  %v53_v15 = vpack.c.bf16 %v26_v13, %v25_v12  ;;  %v28_v17 = vld [vmem:[%s1498_s0 + $0x58] sm:$0xff]  ;;  %v29_v18 = vld [vmem:[%s1498_s0 + $0x60] sm:$0xff]  ;;  %v30_v19 = vld [vmem:[%s1498_s0 + $0x68] sm:$0xff] }
   0x6   :  { %975 = vmatmul.mubr.msk.bf16.vlgmr.msra.gmra.mrb[0].mxu0 %vm73_vm0, %v50_v8  ;;  %v54_v20 = vpack.c.bf16 %v28_v17, %v27_v16  ;;  %v55_v21 = vpack.c.bf16 %v30_v19, %v29_v18  ;;  %v31_v22 = vld [vmem:[%s1498_s0 + $0x70] sm:$0xff]  ;;  %v32_v23 = vld [vmem:[%s1498_s0 + $0x78] sm:$0xff]  ;;  %v33_v24 = vld [vmem:[%s1498_s0 + $0x80] sm:$0xff] }
   0x7   :  { %978 = vmatprep.mubr.msk.bf16.mxu0 %vm73_vm0, %v51_v9  ;;  %v34_v25 = vld [vmem:[%s1498_s0 + $0x88] sm:$0xff]  ;;  %v56_v26 = vpack.c.bf16 %v32_v23, %v31_v22  ;;  %v35_v28 = vld [vmem:[%s1498_s0 + $0x90] sm:$0xff]  ;;  %v36_v29 = vld [vmem:[%s1498_s0 + $0x98] sm:$0xff] }
   0x8   :  { %v57_v27 = vpack.c.bf16 %v34_v25, %v33_v24  ;;  %v37_v30 = vld [vmem:[%s1498_s0 + $0xa0] sm:$0xff]  ;;  %v38_v31 = vld [vmem:[%s1498_s0 + $0xa8] sm:$0xff]  ;;  %v58_v32 = vpack.c.bf16 %v36_v29, %v35_v28  ;;  %v39_v34 = vld [vmem:[%s1498_s0 + $0xb0] sm:$0xff] }
   0x9   :  { %v59_v33 = vpack.c.bf16 %v38_v31, %v37_v30  ;;  %v40_v35 = vld [vmem:[%s1498_s0 + $0xb8] sm:$0xff]  ;;  %v41_v36 = vld [vmem:[%s1498_s0 + $0xc0] sm:$0xff]  ;;  %v42_v37 = vld [vmem:[%s1498_s0 + $0xc8] sm:$0xff] }
   0xa   :  { %v60_v38 = vpack.c.bf16 %v40_v35, %v39_v34  ;;  %v61_v39 = vpack.c.bf16 %v42_v37, %v41_v36  ;;  %v43_v40 = vld [vmem:[%s1498_s0 + $0xd0] sm:$0xff]  ;;  %v44_v41 = vld [vmem:[%s1498_s0 + $0xd8] sm:$0xff]  ;;  %v45_v42 = vld [vmem:[%s1498_s0 + $0xe0] sm:$0xff] }
   0xb   :  { %v46_v43 = vld [vmem:[%s1498_s0 + $0xe8] sm:$0xff]  ;;  %v62_v44 = vpack.c.bf16 %v44_v41, %v43_v40  ;;  %v47_v46 = vld [vmem:[%s1498_s0 + $0xf0] sm:$0xff]  ;;  %v48_v47 = vld [vmem:[%s1498_s0 + $0xf8] sm:$0xff] }
   0xc   :  { %v63_v45 = vpack.c.bf16 %v46_v43, %v45_v42  ;;  %v64_v48 = vpack.c.bf16 %v48_v47, %v47_v46  ;;  %v283_v49 = vld [vmem:[%s1499_s2] sm:$0xff]  ;;  %v284_v50 = vld [vmem:[%s1499_s2 + $0x8] sm:$0xff] }
   0xd   :  { %v1058_v51 = vpack.c.bf16 %v284_v50, %v283_v49 }
   0xe   :  { %979 = vmatmul.mubr.msk.bf16.gmra.mrb[4].mxu0 %vm73_vm0, %v52_v14 }
   0xf   :  { %982 = vmatprep.mubr.msk.bf16.mxu0 %vm73_vm0, %v53_v15  ;;  %1059 = vmatprep.subr.bf16.mxu1 %v1058_v51 }
  0x10   :  { %1061 = vmatpush3.bf16.msra.mxu1 %v1058_v51 }
  0x16   :  { %983 = vmatmul.mubr.msk.bf16.gmra.mrb[8].mxu0 %vm73_vm0, %v54_v20 }
  0x17   :  { %986 = vmatprep.mubr.msk.bf16.mxu0 %vm73_vm0, %v55_v21 }
  0x1e   :  { %987 = vmatmul.mubr.msk.bf16.gmra.mrb[12].mxu0 %vm73_vm0, %v56_v26 }
  0x1f   :  { %990 = vmatprep.mubr.msk.bf16.mxu0 %vm73_vm0, %v57_v27 }
  0x26   :  { %991 = vmatmul.mubr.msk.bf16.gmra.mrb[16].mxu0 %vm73_vm0, %v58_v32 }
  0x27   :  { %994 = vmatprep.mubr.msk.bf16.mxu0 %vm73_vm0, %v59_v33 }
  0x2e   :  { %995 = vmatmul.mubr.msk.bf16.gmra.mrb[20].mxu0 %vm73_vm0, %v60_v38 }
  0x2f   :  { %998 = vmatprep.mubr.msk.bf16.mxu0 %vm73_vm0, %v61_v39 }
  0x36   :  { %999 = vmatmul.mubr.msk.bf16.gmra.mrb[24].mxu0 %vm73_vm0, %v62_v44 }
  0x37   :  { %1002 = vmatprep.mubr.msk.bf16.mxu0 %vm73_vm0, %v63_v45 }
  0x3e   :  { %1003 = vmatmul.mubr.msk.bf16.gmra.mrb[28].mxu0 %vm73_vm0, %v64_v48 }
  0xd9   :  { %v976_v52 = vpop.f32.mrb[0].mxu0 }
  0xda   :  { %v891_v53 = vpack.c.bf16 %v976_v52, %v976_v52  ;;  %v156_v54 = vpop.f32.mrb[1].mxu0 }
  0xdb   :  { %v889_v55 = vpack.c.bf16 %v156_v54, %v156_v54  ;;  %v977_v56 = vpop.f32.mrb[2].mxu0  ;;  %1010 = vmatprep.mubr.msk.f32.mxu1 %vm73_vm0, %v156_v54 }
  0xdc   :  { %770 = vst.msk [vmem:[%s1500_s3 + $0x8] sm:$0xf] %vm767_vm1, %v891_v53  ;;  %v892_v57 = vpack.c.bf16 %v977_v56, %v977_v56  ;;  %v159_v58 = vpop.f32.mrb[3].mxu0 }
  0xdd   :  { %768 = vst.msk [vmem:[%s1500_s3] sm:$0xf] %vm767_vm1, %v889_v55  ;;  %v890_v59 = vpack.c.bf16 %v159_v58, %v159_v58  ;;  %1011 = vmatmul.mubr.msk.f32.vlgmr.msra.gmra.mrb[0].mxu1 %vm73_vm0, %v159_v58 }
  0xde   :  { %771 = vst.msk [vmem:[%s1500_s3 + $0xc] sm:$0xf] %vm767_vm1, %v892_v57  ;;  %1013 = vmatprep.mubr.msk.f32.mxu1 %vm73_vm0, %v976_v52 }
  0xdf   :  { %769 = vst.msk [vmem:[%s1500_s3 + $0x4] sm:$0xf] %vm767_vm1, %v890_v59 }
  0xe1   :  { %v980_v60 = vpop.f32.mrb[4].mxu0  ;;  %1014 = vmatmul.mubr.msk.f32.gmra.mrb[2].mxu1 %vm73_vm0, %v977_v56 }
  0xe2   :  { %v895_v61 = vpack.c.bf16 %v980_v60, %v980_v60  ;;  %v172_v62 = vpop.f32.mrb[5].mxu0 }
  0xe3   :  { %v893_v63 = vpack.c.bf16 %v172_v62, %v172_v62  ;;  %v981_v0 = vpop.f32.mrb[6].mxu0  ;;  %1016 = vmatprep.mubr.msk.f32.mxu1 %vm73_vm0, %v172_v62 }
  0xe4   :  { %774 = vst.msk [vmem:[%s1500_s3 + $0x18] sm:$0xf] %vm767_vm1, %v895_v61  ;;  %v896_v1 = vpack.c.bf16 %v981_v0, %v981_v0  ;;  %v175_v2 = vpop.f32.mrb[7].mxu0 }
  0xe5   :  { %772 = vst.msk [vmem:[%s1500_s3 + $0x10] sm:$0xf] %vm767_vm1, %v893_v63  ;;  %v894_v3 = vpack.c.bf16 %v175_v2, %v175_v2  ;;  %1017 = vmatmul.mubr.msk.f32.gmra.mrb[4].mxu1 %vm73_vm0, %v175_v2 }
  0xe6   :  { %775 = vst.msk [vmem:[%s1500_s3 + $0x1c] sm:$0xf] %vm767_vm1, %v896_v1  ;;  %1019 = vmatprep.mubr.msk.f32.mxu1 %vm73_vm0, %v980_v60 }
  0xe7   :  { %773 = vst.msk [vmem:[%s1500_s3 + $0x14] sm:$0xf] %vm767_vm1, %v894_v3 }
  0xe9   :  { %v984_v4 = vpop.f32.mrb[8].mxu0  ;;  %1020 = vmatmul.mubr.msk.f32.gmra.mrb[6].mxu1 %vm73_vm0, %v981_v0 }
  0xea   :  { %v899_v5 = vpack.c.bf16 %v984_v4, %v984_v4  ;;  %v188_v6 = vpop.f32.mrb[9].mxu0 }
  0xeb   :  { %v897_v7 = vpack.c.bf16 %v188_v6, %v188_v6  ;;  %v985_v8 = vpop.f32.mrb[10].mxu0  ;;  %1022 = vmatprep.mubr.msk.f32.mxu1 %vm73_vm0, %v188_v6 }
  0xec   :  { %778 = vst.msk [vmem:[%s1500_s3 + $0x28] sm:$0xf] %vm767_vm1, %v899_v5  ;;  %v900_v9 = vpack.c.bf16 %v985_v8, %v985_v8  ;;  %v191_v10 = vpop.f32.mrb[11].mxu0 }
  0xed   :  { %776 = vst.msk [vmem:[%s1500_s3 + $0x20] sm:$0xf] %vm767_vm1, %v897_v7  ;;  %v898_v11 = vpack.c.bf16 %v191_v10, %v191_v10  ;;  %1023 = vmatmul.mubr.msk.f32.gmra.mrb[8].mxu1 %vm73_vm0, %v191_v10 }
  0xee   :  { %779 = vst.msk [vmem:[%s1500_s3 + $0x2c] sm:$0xf] %vm767_vm1, %v900_v9  ;;  %1025 = vmatprep.mubr.msk.f32.mxu1 %vm73_vm0, %v984_v4 }
  0xef   :  { %777 = vst.msk [vmem:[%s1500_s3 + $0x24] sm:$0xf] %vm767_vm1, %v898_v11 }
  0xf1   :  { %v988_v12 = vpop.f32.mrb[12].mxu0  ;;  %1026 = vmatmul.mubr.msk.f32.gmra.mrb[10].mxu1 %vm73_vm0, %v985_v8 }
  0xf2   :  { %v903_v13 = vpack.c.bf16 %v988_v12, %v988_v12  ;;  %v204_v14 = vpop.f32.mrb[13].mxu0 }
  0xf3   :  { %v901_v15 = vpack.c.bf16 %v204_v14, %v204_v14  ;;  %v989_v16 = vpop.f32.mrb[14].mxu0  ;;  %1028 = vmatprep.mubr.msk.f32.mxu1 %vm73_vm0, %v204_v14 }
  0xf4   :  { %782 = vst.msk [vmem:[%s1500_s3 + $0x38] sm:$0xf] %vm767_vm1, %v903_v13  ;;  %v904_v17 = vpack.c.bf16 %v989_v16, %v989_v16  ;;  %v207_v18 = vpop.f32.mrb[15].mxu0 }
  0xf5   :  { %780 = vst.msk [vmem:[%s1500_s3 + $0x30] sm:$0xf] %vm767_vm1, %v901_v15  ;;  %v902_v19 = vpack.c.bf16 %v207_v18, %v207_v18  ;;  %1029 = vmatmul.mubr.msk.f32.gmra.mrb[12].mxu1 %vm73_vm0, %v207_v18 }
  0xf6   :  { %783 = vst.msk [vmem:[%s1500_s3 + $0x3c] sm:$0xf] %vm767_vm1, %v904_v17  ;;  %1031 = vmatprep.mubr.msk.f32.mxu1 %vm73_vm0, %v988_v12 }
  0xf7   :  { %781 = vst.msk [vmem:[%s1500_s3 + $0x34] sm:$0xf] %vm767_vm1, %v902_v19 }
  0xf9   :  { %v992_v20 = vpop.f32.mrb[16].mxu0  ;;  %1032 = vmatmul.mubr.msk.f32.gmra.mrb[14].mxu1 %vm73_vm0, %v989_v16 }
  0xfa   :  { %v907_v21 = vpack.c.bf16 %v992_v20, %v992_v20  ;;  %v220_v22 = vpop.f32.mrb[17].mxu0 }
  0xfb   :  { %v905_v23 = vpack.c.bf16 %v220_v22, %v220_v22  ;;  %v993_v24 = vpop.f32.mrb[18].mxu0  ;;  %1034 = vmatprep.mubr.msk.f32.mxu1 %vm73_vm0, %v220_v22 }
  0xfc   :  { %786 = vst.msk [vmem:[%s1500_s3 + $0x48] sm:$0xf] %vm767_vm1, %v907_v21  ;;  %v908_v25 = vpack.c.bf16 %v993_v24, %v993_v24  ;;  %v223_v26 = vpop.f32.mrb[19].mxu0 }
  0xfd   :  { %784 = vst.msk [vmem:[%s1500_s3 + $0x40] sm:$0xf] %vm767_vm1, %v905_v23  ;;  %v906_v27 = vpack.c.bf16 %v223_v26, %v223_v26  ;;  %1035 = vmatmul.mubr.msk.f32.gmra.mrb[16].mxu1 %vm73_vm0, %v223_v26 }
  0xfe   :  { %787 = vst.msk [vmem:[%s1500_s3 + $0x4c] sm:$0xf] %vm767_vm1, %v908_v25  ;;  %1037 = vmatprep.mubr.msk.f32.mxu1 %vm73_vm0, %v992_v20 }
  0xff   :  { %785 = vst.msk [vmem:[%s1500_s3 + $0x44] sm:$0xf] %vm767_vm1, %v906_v27 }
 0x101   :  { %v996_v28 = vpop.f32.mrb[20].mxu0  ;;  %1038 = vmatmul.mubr.msk.f32.gmra.mrb[18].mxu1 %vm73_vm0, %v993_v24 }
 0x102   :  { %v911_v29 = vpack.c.bf16 %v996_v28, %v996_v28  ;;  %v236_v30 = vpop.f32.mrb[21].mxu0 }
 0x103   :  { %v909_v31 = vpack.c.bf16 %v236_v30, %v236_v30  ;;  %v997_v32 = vpop.f32.mrb[22].mxu0  ;;  %1040 = vmatprep.mubr.msk.f32.mxu1 %vm73_vm0, %v236_v30 }
 0x104   :  { %790 = vst.msk [vmem:[%s1500_s3 + $0x58] sm:$0xf] %vm767_vm1, %v911_v29  ;;  %v912_v33 = vpack.c.bf16 %v997_v32, %v997_v32  ;;  %v239_v34 = vpop.f32.mrb[23].mxu0 }
 0x105   :  { %788 = vst.msk [vmem:[%s1500_s3 + $0x50] sm:$0xf] %vm767_vm1, %v909_v31  ;;  %v910_v35 = vpack.c.bf16 %v239_v34, %v239_v34  ;;  %1041 = vmatmul.mubr.msk.f32.gmra.mrb[20].mxu1 %vm73_vm0, %v239_v34 }
 0x106   :  { %791 = vst.msk [vmem:[%s1500_s3 + $0x5c] sm:$0xf] %vm767_vm1, %v912_v33  ;;  %1043 = vmatprep.mubr.msk.f32.mxu1 %vm73_vm0, %v996_v28 }
 0x107   :  { %789 = vst.msk [vmem:[%s1500_s3 + $0x54] sm:$0xf] %vm767_vm1, %v910_v35 }
 0x109   :  { %v1000_v36 = vpop.f32.mrb[24].mxu0  ;;  %1044 = vmatmul.mubr.msk.f32.gmra.mrb[22].mxu1 %vm73_vm0, %v997_v32 }
 0x10a   :  { %v915_v37 = vpack.c.bf16 %v1000_v36, %v1000_v36  ;;  %v252_v38 = vpop.f32.mrb[25].mxu0 }
 0x10b   :  { %v913_v39 = vpack.c.bf16 %v252_v38, %v252_v38  ;;  %v1001_v40 = vpop.f32.mrb[26].mxu0  ;;  %1046 = vmatprep.mubr.msk.f32.mxu1 %vm73_vm0, %v252_v38 }
 0x10c   :  { %794 = vst.msk [vmem:[%s1500_s3 + $0x68] sm:$0xf] %vm767_vm1, %v915_v37  ;;  %v916_v41 = vpack.c.bf16 %v1001_v40, %v1001_v40  ;;  %v255_v42 = vpop.f32.mrb[27].mxu0 }
 0x10d   :  { %792 = vst.msk [vmem:[%s1500_s3 + $0x60] sm:$0xf] %vm767_vm1, %v913_v39  ;;  %v914_v43 = vpack.c.bf16 %v255_v42, %v255_v42  ;;  %1047 = vmatmul.mubr.msk.f32.gmra.mrb[24].mxu1 %vm73_vm0, %v255_v42 }
 0x10e   :  { %795 = vst.msk [vmem:[%s1500_s3 + $0x6c] sm:$0xf] %vm767_vm1, %v916_v41  ;;  %1049 = vmatprep.mubr.msk.f32.mxu1 %vm73_vm0, %v1000_v36 }
 0x10f   :  { %793 = vst.msk [vmem:[%s1500_s3 + $0x64] sm:$0xf] %vm767_vm1, %v914_v43 }
 0x111   :  { %v1004_v44 = vpop.f32.mrb[28].mxu0  ;;  %1050 = vmatmul.mubr.msk.f32.gmra.mrb[26].mxu1 %vm73_vm0, %v1001_v40 }
 0x112   :  { %v919_v45 = vpack.c.bf16 %v1004_v44, %v1004_v44  ;;  %v268_v46 = vpop.f32.mrb[29].mxu0 }
 0x113   :  { %v917_v47 = vpack.c.bf16 %v268_v46, %v268_v46  ;;  %v1005_v48 = vpop.f32.mrb[30].mxu0  ;;  %1052 = vmatprep.mubr.msk.f32.mxu1 %vm73_vm0, %v268_v46 }
 0x114   :  { %798 = vst.msk [vmem:[%s1500_s3 + $0x78] sm:$0xf] %vm767_vm1, %v919_v45  ;;  %v920_v49 = vpack.c.bf16 %v1005_v48, %v1005_v48  ;;  %v271_v50 = vpop.f32.mrb[31].mxu0 }
 0x115   :  { %796 = vst.msk [vmem:[%s1500_s3 + $0x70] sm:$0xf] %vm767_vm1, %v917_v47  ;;  %v918_v51 = vpack.c.bf16 %v271_v50, %v271_v50  ;;  %1053 = vmatmul.mubr.msk.f32.gmra.mrb[28].mxu1 %vm73_vm0, %v271_v50 }
 0x116   :  { %799 = vst.msk [vmem:[%s1500_s3 + $0x7c] sm:$0xf] %vm767_vm1, %v920_v49  ;;  %1055 = vmatprep.mubr.msk.f32.mxu1 %vm73_vm0, %v1004_v44 }
 0x117   :  { %797 = vst.msk [vmem:[%s1500_s3 + $0x74] sm:$0xf] %vm767_vm1, %v918_v51 }
 0x119   :  { %1056 = vmatmul.mubr.msk.f32.gmra.mrb[30].mxu1 %vm73_vm0, %v1005_v48 }
 0x1b0   :  { %v1012_v52 = vpop.f32.mrb[0].mxu1 }
 0x1b1   :  { %608 = vst.msk [vmem:[%s1501_s4 + $0x8] sm:$0xff] %vm606_vm2, %v1012_v52  ;;  %v447_v53 = vpop.f32.mrb[1].mxu1 }
 0x1b2   :  { %607 = vst.msk [vmem:[%s1501_s4] sm:$0xff] %vm606_vm2, %v447_v53 }
 0x1b4   :  { %v1015_v54 = vpop.f32.mrb[2].mxu1 }
 0x1b5   :  { %610 = vst.msk [vmem:[%s1501_s4 + $0x18] sm:$0xff] %vm606_vm2, %v1015_v54  ;;  %v457_v55 = vpop.f32.mrb[3].mxu1 }
 0x1b6   :  { %609 = vst.msk [vmem:[%s1501_s4 + $0x10] sm:$0xff] %vm606_vm2, %v457_v55 }
 0x1b8   :  { %v1018_v56 = vpop.f32.mrb[4].mxu1 }
 0x1b9   :  { %612 = vst.msk [vmem:[%s1501_s4 + $0x28] sm:$0xff] %vm606_vm2, %v1018_v56  ;;  %v467_v57 = vpop.f32.mrb[5].mxu1 }
 0x1ba   :  { %611 = vst.msk [vmem:[%s1501_s4 + $0x20] sm:$0xff] %vm606_vm2, %v467_v57 }
 0x1bc   :  { %v1021_v58 = vpop.f32.mrb[6].mxu1 }
 0x1bd   :  { %614 = vst.msk [vmem:[%s1501_s4 + $0x38] sm:$0xff] %vm606_vm2, %v1021_v58  ;;  %v477_v59 = vpop.f32.mrb[7].mxu1 }
 0x1be   :  { %613 = vst.msk [vmem:[%s1501_s4 + $0x30] sm:$0xff] %vm606_vm2, %v477_v59 }
 0x1c0   :  { %v1024_v60 = vpop.f32.mrb[8].mxu1 }
 0x1c1   :  { %616 = vst.msk [vmem:[%s1501_s4 + $0x48] sm:$0xff] %vm606_vm2, %v1024_v60  ;;  %v487_v61 = vpop.f32.mrb[9].mxu1 }
 0x1c2   :  { %615 = vst.msk [vmem:[%s1501_s4 + $0x40] sm:$0xff] %vm606_vm2, %v487_v61 }
 0x1c4   :  { %v1027_v62 = vpop.f32.mrb[10].mxu1 }
 0x1c5   :  { %618 = vst.msk [vmem:[%s1501_s4 + $0x58] sm:$0xff] %vm606_vm2, %v1027_v62  ;;  %v497_v63 = vpop.f32.mrb[11].mxu1 }
 0x1c6   :  { %617 = vst.msk [vmem:[%s1501_s4 + $0x50] sm:$0xff] %vm606_vm2, %v497_v63 }
 0x1c8   :  { %v1030_v0 = vpop.f32.mrb[12].mxu1 }
 0x1c9   :  { %620 = vst.msk [vmem:[%s1501_s4 + $0x68] sm:$0xff] %vm606_vm2, %v1030_v0  ;;  %v507_v1 = vpop.f32.mrb[13].mxu1 }
 0x1ca   :  { %619 = vst.msk [vmem:[%s1501_s4 + $0x60] sm:$0xff] %vm606_vm2, %v507_v1 }
 0x1cc   :  { %v1033_v2 = vpop.f32.mrb[14].mxu1 }
 0x1cd   :  { %622 = vst.msk [vmem:[%s1501_s4 + $0x78] sm:$0xff] %vm606_vm2, %v1033_v2  ;;  %v517_v3 = vpop.f32.mrb[15].mxu1 }
 0x1ce   :  { %621 = vst.msk [vmem:[%s1501_s4 + $0x70] sm:$0xff] %vm606_vm2, %v517_v3 }
 0x1d0   :  { %v1036_v4 = vpop.f32.mrb[16].mxu1 }
 0x1d1   :  { %624 = vst.msk [vmem:[%s1501_s4 + $0x88] sm:$0xff] %vm606_vm2, %v1036_v4  ;;  %v527_v5 = vpop.f32.mrb[17].mxu1 }
 0x1d2   :  { %623 = vst.msk [vmem:[%s1501_s4 + $0x80] sm:$0xff] %vm606_vm2, %v527_v5 }
 0x1d4   :  { %v1039_v6 = vpop.f32.mrb[18].mxu1 }
 0x1d5   :  { %626 = vst.msk [vmem:[%s1501_s4 + $0x98] sm:$0xff] %vm606_vm2, %v1039_v6  ;;  %v537_v7 = vpop.f32.mrb[19].mxu1 }
 0x1d6   :  { %625 = vst.msk [vmem:[%s1501_s4 + $0x90] sm:$0xff] %vm606_vm2, %v537_v7 }
 0x1d8   :  { %v1042_v8 = vpop.f32.mrb[20].mxu1 }
 0x1d9   :  { %628 = vst.msk [vmem:[%s1501_s4 + $0xa8] sm:$0xff] %vm606_vm2, %v1042_v8  ;;  %v547_v9 = vpop.f32.mrb[21].mxu1 }
 0x1da   :  { %627 = vst.msk [vmem:[%s1501_s4 + $0xa0] sm:$0xff] %vm606_vm2, %v547_v9 }
 0x1dc   :  { %v1045_v10 = vpop.f32.mrb[22].mxu1 }
 0x1dd   :  { %630 = vst.msk [vmem:[%s1501_s4 + $0xb8] sm:$0xff] %vm606_vm2, %v1045_v10  ;;  %v557_v11 = vpop.f32.mrb[23].mxu1 }
 0x1de   :  { %629 = vst.msk [vmem:[%s1501_s4 + $0xb0] sm:$0xff] %vm606_vm2, %v557_v11 }
 0x1e0   :  { %v1048_v12 = vpop.f32.mrb[24].mxu1 }
 0x1e1   :  { %632 = vst.msk [vmem:[%s1501_s4 + $0xc8] sm:$0xff] %vm606_vm2, %v1048_v12  ;;  %v567_v13 = vpop.f32.mrb[25].mxu1 }
 0x1e2   :  { %631 = vst.msk [vmem:[%s1501_s4 + $0xc0] sm:$0xff] %vm606_vm2, %v567_v13 }
 0x1e4   :  { %v1051_v14 = vpop.f32.mrb[26].mxu1 }
 0x1e5   :  { %634 = vst.msk [vmem:[%s1501_s4 + $0xd8] sm:$0xff] %vm606_vm2, %v1051_v14  ;;  %v577_v15 = vpop.f32.mrb[27].mxu1 }
 0x1e6   :  { %633 = vst.msk [vmem:[%s1501_s4 + $0xd0] sm:$0xff] %vm606_vm2, %v577_v15 }
 0x1e8   :  { %v1054_v16 = vpop.f32.mrb[28].mxu1 }
 0x1e9   :  { %636 = vst.msk [vmem:[%s1501_s4 + $0xe8] sm:$0xff] %vm606_vm2, %v1054_v16  ;;  %v587_v17 = vpop.f32.mrb[29].mxu1 }
 0x1ea   :  { %635 = vst.msk [vmem:[%s1501_s4 + $0xe0] sm:$0xff] %vm606_vm2, %v587_v17 }
 0x1ec   :  { %v1057_v18 = vpop.f32.mrb[30].mxu1 }
 0x1ed   :  { %638 = vst.msk [vmem:[%s1501_s4 + $0xf8] sm:$0xff] %vm606_vm2, %v1057_v18  ;;  %v597_v19 = vpop.f32.mrb[31].mxu1 }
 0x1ee   :  { %637 = vst.msk [vmem:[%s1501_s4 + $0xf0] sm:$0xff] %vm606_vm2, %v597_v19 }

// kernel: gat_forward.8
= control target key start
LH: loop header
LB: loop body
LE: loop exit
PB: predicated region body
PF: predicated region fallthrough
CT: control target
= control target key end

     0   :  { %vm137_vm0 = vcmask 130048   ;;  %vm831_vm1 = vcmask 125952   ;;  %vm670_vm2 = vcmask 31744   ;;  %s1545_s1 = inlined_call_operand.vmem [shape: bf16[16,16], index: 1, kind: input, shape index: {}]   ;;  %s1546_s0 = inlined_call_operand.vmem [shape: bf16[256,16], index: 0, kind: input, shape index: {}]   ;;  %s1547_s2 = inlined_call_operand.vmem [shape: f32[16,4], index: 2, kind: input, shape index: {}]   ;;  %s1548_s3 = inlined_call_operand.vmem [shape: bf16[256,16], index: 3, kind: output, shape index: {0}]   ;;  %s1549_s4 = inlined_call_operand.vmem [shape: f32[256,4], index: 4, kind: output, shape index: {1}]  }
   0x1   :  { %v1142_v0 = vld [vmem:[%s1545_s1] sm:$0xff]   ;;  %v1144_v2 = vld [vmem:[%s1546_s0 + $0x8] sm:$0xff]   ;;  %v1145_v3 = vld [vmem:[%s1546_s0 + $0x10] sm:$0xff]  }
   0x2   :  { %v1143_v1 = vld [vmem:[%s1546_s0] sm:$0xff]   ;;  %1052 = vmatprep.subr.bf16.mxu0 %v1142_v0  ;;  %v1146_v4 = vld [vmem:[%s1546_s0 + $0x18] sm:$0xff]   ;;  %v1148_v6 = vld [vmem:[%s1546_s0 + $0x28] sm:$0xff]  }
   0x3   :  { %1053 = vmatpush3.bf16.msra.mxu0 %v1142_v0  ;;  %1054 = vmatprep.mubr.msk.bf16.mxu0 %vm137_vm0, %v1143_v1  ;;  %v1147_v5 = vld [vmem:[%s1546_s0 + $0x20] sm:$0xff]   ;;  %v1149_v7 = vld [vmem:[%s1546_s0 + $0x30] sm:$0xff]   ;;  %v1150_v8 = vld [vmem:[%s1546_s0 + $0x38] sm:$0xff]  }
   0x4   :  { %v1151_v9 = vld [vmem:[%s1546_s0 + $0x40] sm:$0xff]   ;;  %v1152_v10 = vld [vmem:[%s1546_s0 + $0x48] sm:$0xff]   ;;  %v1153_v11 = vld [vmem:[%s1546_s0 + $0x50] sm:$0xff]  }
   0x5   :  { %v1154_v12 = vld [vmem:[%s1546_s0 + $0x58] sm:$0xff]   ;;  %v1155_v13 = vld [vmem:[%s1546_s0 + $0x60] sm:$0xff]   ;;  %v1156_v14 = vld [vmem:[%s1546_s0 + $0x68] sm:$0xff]  }
   0x6   :  { %1055 = vmatmul.mubr.msk.bf16.vlgmr.msra.gmra.mrb[0].mxu0 %vm137_vm0, %v1144_v2  ;;  %v1157_v15 = vld [vmem:[%s1546_s0 + $0x70] sm:$0xff]   ;;  %v1158_v16 = vld [vmem:[%s1546_s0 + $0x78] sm:$0xff]   ;;  %v347_v17 = vld [vmem:[%s1547_s2] sm:$0xff] }
   0x7   :  { %1058 = vmatprep.mubr.msk.bf16.mxu0 %vm137_vm0, %v1145_v3  ;;  %v348_v18 = vld [vmem:[%s1547_s2 + $0x8] sm:$0xff] }
   0x8   :  { %v1138_v19 = vpack.c.bf16 %v348_v18, %v347_v17 }
   0xa   :  { %1139 = vmatprep.subr.bf16.mxu1 %v1138_v19 }
   0xb   :  { %1141 = vmatpush3.bf16.msra.mxu1 %v1138_v19 }
   0xe   :  { %1059 = vmatmul.mubr.msk.bf16.gmra.mrb[4].mxu0 %vm137_vm0, %v1146_v4 }
   0xf   :  { %1062 = vmatprep.mubr.msk.bf16.mxu0 %vm137_vm0, %v1147_v5 }
  0x16   :  { %1063 = vmatmul.mubr.msk.bf16.gmra.mrb[8].mxu0 %vm137_vm0, %v1148_v6 }
  0x17   :  { %1066 = vmatprep.mubr.msk.bf16.mxu0 %vm137_vm0, %v1149_v7 }
  0x1e   :  { %1067 = vmatmul.mubr.msk.bf16.gmra.mrb[12].mxu0 %vm137_vm0, %v1150_v8 }
  0x1f   :  { %1070 = vmatprep.mubr.msk.bf16.mxu0 %vm137_vm0, %v1151_v9 }
  0x26   :  { %1071 = vmatmul.mubr.msk.bf16.gmra.mrb[16].mxu0 %vm137_vm0, %v1152_v10 }
  0x27   :  { %1074 = vmatprep.mubr.msk.bf16.mxu0 %vm137_vm0, %v1153_v11 }
  0x2e   :  { %1075 = vmatmul.mubr.msk.bf16.gmra.mrb[20].mxu0 %vm137_vm0, %v1154_v12 }
  0x2f   :  { %1078 = vmatprep.mubr.msk.bf16.mxu0 %vm137_vm0, %v1155_v13 }
  0x36   :  { %1079 = vmatmul.mubr.msk.bf16.gmra.mrb[24].mxu0 %vm137_vm0, %v1156_v14 }
  0x37   :  { %1082 = vmatprep.mubr.msk.bf16.mxu0 %vm137_vm0, %v1157_v15 }
  0x3e   :  { %1083 = vmatmul.mubr.msk.bf16.gmra.mrb[28].mxu0 %vm137_vm0, %v1158_v16 }
  0xd9   :  { %v1056_v20 = vpop.f32.mrb[0].mxu0 }
  0xda   :  { %v971_v21 = vpack.c.bf16 %v1056_v20, %v1056_v20  ;;  %v220_v22 = vpop.f32.mrb[1].mxu0 }
  0xdb   :  { %v969_v23 = vpack.c.bf16 %v220_v22, %v220_v22  ;;  %v1057_v24 = vpop.f32.mrb[2].mxu0  ;;  %1090 = vmatprep.mubr.msk.f32.mxu1 %vm137_vm0, %v220_v22 }
  0xdc   :  { %834 = vst.msk [vmem:[%s1548_s3 + $0x8] sm:$0xf] %vm831_vm1, %v971_v21  ;;  %v972_v25 = vpack.c.bf16 %v1057_v24, %v1057_v24  ;;  %v223_v26 = vpop.f32.mrb[3].mxu0 }
  0xdd   :  { %832 = vst.msk [vmem:[%s1548_s3] sm:$0xf] %vm831_vm1, %v969_v23  ;;  %v970_v27 = vpack.c.bf16 %v223_v26, %v223_v26  ;;  %1091 = vmatmul.mubr.msk.f32.vlgmr.msra.gmra.mrb[0].mxu1 %vm137_vm0, %v223_v26 }
  0xde   :  { %835 = vst.msk [vmem:[%s1548_s3 + $0xc] sm:$0xf] %vm831_vm1, %v972_v25  ;;  %1093 = vmatprep.mubr.msk.f32.mxu1 %vm137_vm0, %v1056_v20 }
  0xdf   :  { %833 = vst.msk [vmem:[%s1548_s3 + $0x4] sm:$0xf] %vm831_vm1, %v970_v27 }
  0xe1   :  { %v1060_v28 = vpop.f32.mrb[4].mxu0  ;;  %1094 = vmatmul.mubr.msk.f32.gmra.mrb[2].mxu1 %vm137_vm0, %v1057_v24 }
  0xe2   :  { %v975_v29 = vpack.c.bf16 %v1060_v28, %v1060_v28  ;;  %v236_v30 = vpop.f32.mrb[5].mxu0 }
  0xe3   :  { %v973_v31 = vpack.c.bf16 %v236_v30, %v236_v30  ;;  %v1061_v32 = vpop.f32.mrb[6].mxu0  ;;  %1096 = vmatprep.mubr.msk.f32.mxu1 %vm137_vm0, %v236_v30 }
  0xe4   :  { %838 = vst.msk [vmem:[%s1548_s3 + $0x18] sm:$0xf] %vm831_vm1, %v975_v29  ;;  %v976_v33 = vpack.c.bf16 %v1061_v32, %v1061_v32  ;;  %v239_v34 = vpop.f32.mrb[7].mxu0 }
  0xe5   :  { %836 = vst.msk [vmem:[%s1548_s3 + $0x10] sm:$0xf] %vm831_vm1, %v973_v31  ;;  %v974_v35 = vpack.c.bf16 %v239_v34, %v239_v34  ;;  %1097 = vmatmul.mubr.msk.f32.gmra.mrb[4].mxu1 %vm137_vm0, %v239_v34 }
  0xe6   :  { %839 = vst.msk [vmem:[%s1548_s3 + $0x1c] sm:$0xf] %vm831_vm1, %v976_v33  ;;  %1099 = vmatprep.mubr.msk.f32.mxu1 %vm137_vm0, %v1060_v28 }
  0xe7   :  { %837 = vst.msk [vmem:[%s1548_s3 + $0x14] sm:$0xf] %vm831_vm1, %v974_v35 }
  0xe9   :  { %v1064_v36 = vpop.f32.mrb[8].mxu0  ;;  %1100 = vmatmul.mubr.msk.f32.gmra.mrb[6].mxu1 %vm137_vm0, %v1061_v32 }
  0xea   :  { %v979_v37 = vpack.c.bf16 %v1064_v36, %v1064_v36  ;;  %v252_v38 = vpop.f32.mrb[9].mxu0 }
  0xeb   :  { %v977_v39 = vpack.c.bf16 %v252_v38, %v252_v38  ;;  %v1065_v40 = vpop.f32.mrb[10].mxu0  ;;  %1102 = vmatprep.mubr.msk.f32.mxu1 %vm137_vm0, %v252_v38 }
  0xec   :  { %842 = vst.msk [vmem:[%s1548_s3 + $0x28] sm:$0xf] %vm831_vm1, %v979_v37  ;;  %v980_v41 = vpack.c.bf16 %v1065_v40, %v1065_v40  ;;  %v255_v42 = vpop.f32.mrb[11].mxu0 }
  0xed   :  { %840 = vst.msk [vmem:[%s1548_s3 + $0x20] sm:$0xf] %vm831_vm1, %v977_v39  ;;  %v978_v43 = vpack.c.bf16 %v255_v42, %v255_v42  ;;  %1103 = vmatmul.mubr.msk.f32.gmra.mrb[8].mxu1 %vm137_vm0, %v255_v42 }
  0xee   :  { %843 = vst.msk [vmem:[%s1548_s3 + $0x2c] sm:$0xf] %vm831_vm1, %v980_v41  ;;  %1105 = vmatprep.mubr.msk.f32.mxu1 %vm137_vm0, %v1064_v36 }
  0xef   :  { %841 = vst.msk [vmem:[%s1548_s3 + $0x24] sm:$0xf] %vm831_vm1, %v978_v43 }
  0xf1   :  { %v1068_v44 = vpop.f32.mrb[12].mxu0  ;;  %1106 = vmatmul.mubr.msk.f32.gmra.mrb[10].mxu1 %vm137_vm0, %v1065_v40 }
  0xf2   :  { %v983_v45 = vpack.c.bf16 %v1068_v44, %v1068_v44  ;;  %v268_v46 = vpop.f32.mrb[13].mxu0 }
  0xf3   :  { %v981_v47 = vpack.c.bf16 %v268_v46, %v268_v46  ;;  %v1069_v48 = vpop.f32.mrb[14].mxu0  ;;  %1108 = vmatprep.mubr.msk.f32.mxu1 %vm137_vm0, %v268_v46 }
  0xf4   :  { %846 = vst.msk [vmem:[%s1548_s3 + $0x38] sm:$0xf] %vm831_vm1, %v983_v45  ;;  %v984_v49 = vpack.c.bf16 %v1069_v48, %v1069_v48  ;;  %v271_v50 = vpop.f32.mrb[15].mxu0 }
  0xf5   :  { %844 = vst.msk [vmem:[%s1548_s3 + $0x30] sm:$0xf] %vm831_vm1, %v981_v47  ;;  %v982_v51 = vpack.c.bf16 %v271_v50, %v271_v50  ;;  %1109 = vmatmul.mubr.msk.f32.gmra.mrb[12].mxu1 %vm137_vm0, %v271_v50 }
  0xf6   :  { %847 = vst.msk [vmem:[%s1548_s3 + $0x3c] sm:$0xf] %vm831_vm1, %v984_v49  ;;  %1111 = vmatprep.mubr.msk.f32.mxu1 %vm137_vm0, %v1068_v44 }
  0xf7   :  { %845 = vst.msk [vmem:[%s1548_s3 + $0x34] sm:$0xf] %vm831_vm1, %v982_v51 }
  0xf9   :  { %v1072_v52 = vpop.f32.mrb[16].mxu0  ;;  %1112 = vmatmul.mubr.msk.f32.gmra.mrb[14].mxu1 %vm137_vm0, %v1069_v48 }
  0xfa   :  { %v987_v53 = vpack.c.bf16 %v1072_v52, %v1072_v52  ;;  %v284_v54 = vpop.f32.mrb[17].mxu0 }
  0xfb   :  { %v985_v55 = vpack.c.bf16 %v284_v54, %v284_v54  ;;  %v1073_v56 = vpop.f32.mrb[18].mxu0  ;;  %1114 = vmatprep.mubr.msk.f32.mxu1 %vm137_vm0, %v284_v54 }
  0xfc   :  { %850 = vst.msk [vmem:[%s1548_s3 + $0x48] sm:$0xf] %vm831_vm1, %v987_v53  ;;  %v988_v57 = vpack.c.bf16 %v1073_v56, %v1073_v56  ;;  %v287_v58 = vpop.f32.mrb[19].mxu0 }
  0xfd   :  { %848 = vst.msk [vmem:[%s1548_s3 + $0x40] sm:$0xf] %vm831_vm1, %v985_v55  ;;  %v986_v59 = vpack.c.bf16 %v287_v58, %v287_v58  ;;  %1115 = vmatmul.mubr.msk.f32.gmra.mrb[16].mxu1 %vm137_vm0, %v287_v58 }
  0xfe   :  { %851 = vst.msk [vmem:[%s1548_s3 + $0x4c] sm:$0xf] %vm831_vm1, %v988_v57  ;;  %1117 = vmatprep.mubr.msk.f32.mxu1 %vm137_vm0, %v1072_v52 }
  0xff   :  { %849 = vst.msk [vmem:[%s1548_s3 + $0x44] sm:$0xf] %vm831_vm1, %v986_v59 }
 0x101   :  { %v1076_v60 = vpop.f32.mrb[20].mxu0  ;;  %1118 = vmatmul.mubr.msk.f32.gmra.mrb[18].mxu1 %vm137_vm0, %v1073_v56 }
 0x102   :  { %v991_v61 = vpack.c.bf16 %v1076_v60, %v1076_v60  ;;  %v300_v62 = vpop.f32.mrb[21].mxu0 }
 0x103   :  { %v989_v63 = vpack.c.bf16 %v300_v62, %v300_v62  ;;  %v1077_v0 = vpop.f32.mrb[22].mxu0  ;;  %1120 = vmatprep.mubr.msk.f32.mxu1 %vm137_vm0, %v300_v62 }
 0x104   :  { %854 = vst.msk [vmem:[%s1548_s3 + $0x58] sm:$0xf] %vm831_vm1, %v991_v61  ;;  %v992_v1 = vpack.c.bf16 %v1077_v0, %v1077_v0  ;;  %v303_v2 = vpop.f32.mrb[23].mxu0 }
 0x105   :  { %852 = vst.msk [vmem:[%s1548_s3 + $0x50] sm:$0xf] %vm831_vm1, %v989_v63  ;;  %v990_v3 = vpack.c.bf16 %v303_v2, %v303_v2  ;;  %1121 = vmatmul.mubr.msk.f32.gmra.mrb[20].mxu1 %vm137_vm0, %v303_v2 }
 0x106   :  { %855 = vst.msk [vmem:[%s1548_s3 + $0x5c] sm:$0xf] %vm831_vm1, %v992_v1  ;;  %1123 = vmatprep.mubr.msk.f32.mxu1 %vm137_vm0, %v1076_v60 }
 0x107   :  { %853 = vst.msk [vmem:[%s1548_s3 + $0x54] sm:$0xf] %vm831_vm1, %v990_v3 }
 0x109   :  { %v1080_v4 = vpop.f32.mrb[24].mxu0  ;;  %1124 = vmatmul.mubr.msk.f32.gmra.mrb[22].mxu1 %vm137_vm0, %v1077_v0 }
 0x10a   :  { %v995_v5 = vpack.c.bf16 %v1080_v4, %v1080_v4  ;;  %v316_v6 = vpop.f32.mrb[25].mxu0 }
 0x10b   :  { %v993_v7 = vpack.c.bf16 %v316_v6, %v316_v6  ;;  %v1081_v8 = vpop.f32.mrb[26].mxu0  ;;  %1126 = vmatprep.mubr.msk.f32.mxu1 %vm137_vm0, %v316_v6 }
 0x10c   :  { %858 = vst.msk [vmem:[%s1548_s3 + $0x68] sm:$0xf] %vm831_vm1, %v995_v5  ;;  %v996_v9 = vpack.c.bf16 %v1081_v8, %v1081_v8  ;;  %v319_v10 = vpop.f32.mrb[27].mxu0 }
 0x10d   :  { %856 = vst.msk [vmem:[%s1548_s3 + $0x60] sm:$0xf] %vm831_vm1, %v993_v7  ;;  %v994_v11 = vpack.c.bf16 %v319_v10, %v319_v10  ;;  %1127 = vmatmul.mubr.msk.f32.gmra.mrb[24].mxu1 %vm137_vm0, %v319_v10 }
 0x10e   :  { %859 = vst.msk [vmem:[%s1548_s3 + $0x6c] sm:$0xf] %vm831_vm1, %v996_v9  ;;  %1129 = vmatprep.mubr.msk.f32.mxu1 %vm137_vm0, %v1080_v4 }
 0x10f   :  { %857 = vst.msk [vmem:[%s1548_s3 + $0x64] sm:$0xf] %vm831_vm1, %v994_v11 }
 0x111   :  { %v1084_v12 = vpop.f32.mrb[28].mxu0  ;;  %1130 = vmatmul.mubr.msk.f32.gmra.mrb[26].mxu1 %vm137_vm0, %v1081_v8 }
 0x112   :  { %v999_v13 = vpack.c.bf16 %v1084_v12, %v1084_v12  ;;  %v332_v14 = vpop.f32.mrb[29].mxu0 }
 0x113   :  { %v997_v15 = vpack.c.bf16 %v332_v14, %v332_v14  ;;  %v1085_v16 = vpop.f32.mrb[30].mxu0  ;;  %1132 = vmatprep.mubr.msk.f32.mxu1 %vm137_vm0, %v332_v14 }
 0x114   :  { %862 = vst.msk [vmem:[%s1548_s3 + $0x78] sm:$0xf] %vm831_vm1, %v999_v13  ;;  %v1000_v17 = vpack.c.bf16 %v1085_v16, %v1085_v16  ;;  %v335_v18 = vpop.f32.mrb[31].mxu0 }
 0x115   :  { %860 = vst.msk [vmem:[%s1548_s3 + $0x70] sm:$0xf] %vm831_vm1, %v997_v15  ;;  %v998_v19 = vpack.c.bf16 %v335_v18, %v335_v18  ;;  %1133 = vmatmul.mubr.msk.f32.gmra.mrb[28].mxu1 %vm137_vm0, %v335_v18 }
 0x116   :  { %863 = vst.msk [vmem:[%s1548_s3 + $0x7c] sm:$0xf] %vm831_vm1, %v1000_v17  ;;  %1135 = vmatprep.mubr.msk.f32.mxu1 %vm137_vm0, %v1084_v12 }
 0x117   :  { %861 = vst.msk [vmem:[%s1548_s3 + $0x74] sm:$0xf] %vm831_vm1, %v998_v19 }
 0x119   :  { %1136 = vmatmul.mubr.msk.f32.gmra.mrb[30].mxu1 %vm137_vm0, %v1085_v16 }
 0x1b0   :  { %v1092_v20 = vpop.f32.mrb[0].mxu1 }
 0x1b1   :  { %672 = vst.msk [vmem:[%s1549_s4 + $0x8] sm:$0xff] %vm670_vm2, %v1092_v20  ;;  %v511_v21 = vpop.f32.mrb[1].mxu1 }
 0x1b2   :  { %671 = vst.msk [vmem:[%s1549_s4] sm:$0xff] %vm670_vm2, %v511_v21 }
 0x1b4   :  { %v1095_v22 = vpop.f32.mrb[2].mxu1 }
 0x1b5   :  { %674 = vst.msk [vmem:[%s1549_s4 + $0x18] sm:$0xff] %vm670_vm2, %v1095_v22  ;;  %v521_v23 = vpop.f32.mrb[3].mxu1 }
 0x1b6   :  { %673 = vst.msk [vmem:[%s1549_s4 + $0x10] sm:$0xff] %vm670_vm2, %v521_v23 }
 0x1b8   :  { %v1098_v24 = vpop.f32.mrb[4].mxu1 }
 0x1b9   :  { %676 = vst.msk [vmem:[%s1549_s4 + $0x28] sm:$0xff] %vm670_vm2, %v1098_v24  ;;  %v531_v25 = vpop.f32.mrb[5].mxu1 }
 0x1ba   :  { %675 = vst.msk [vmem:[%s1549_s4 + $0x20] sm:$0xff] %vm670_vm2, %v531_v25 }
 0x1bc   :  { %v1101_v26 = vpop.f32.mrb[6].mxu1 }
 0x1bd   :  { %678 = vst.msk [vmem:[%s1549_s4 + $0x38] sm:$0xff] %vm670_vm2, %v1101_v26  ;;  %v541_v27 = vpop.f32.mrb[7].mxu1 }
 0x1be   :  { %677 = vst.msk [vmem:[%s1549_s4 + $0x30] sm:$0xff] %vm670_vm2, %v541_v27 }
 0x1c0   :  { %v1104_v28 = vpop.f32.mrb[8].mxu1 }
 0x1c1   :  { %680 = vst.msk [vmem:[%s1549_s4 + $0x48] sm:$0xff] %vm670_vm2, %v1104_v28  ;;  %v551_v29 = vpop.f32.mrb[9].mxu1 }
 0x1c2   :  { %679 = vst.msk [vmem:[%s1549_s4 + $0x40] sm:$0xff] %vm670_vm2, %v551_v29 }
 0x1c4   :  { %v1107_v30 = vpop.f32.mrb[10].mxu1 }
 0x1c5   :  { %682 = vst.msk [vmem:[%s1549_s4 + $0x58] sm:$0xff] %vm670_vm2, %v1107_v30  ;;  %v561_v31 = vpop.f32.mrb[11].mxu1 }
 0x1c6   :  { %681 = vst.msk [vmem:[%s1549_s4 + $0x50] sm:$0xff] %vm670_vm2, %v561_v31 }
 0x1c8   :  { %v1110_v32 = vpop.f32.mrb[12].mxu1 }
 0x1c9   :  { %684 = vst.msk [vmem:[%s1549_s4 + $0x68] sm:$0xff] %vm670_vm2, %v1110_v32  ;;  %v571_v33 = vpop.f32.mrb[13].mxu1 }
 0x1ca   :  { %683 = vst.msk [vmem:[%s1549_s4 + $0x60] sm:$0xff] %vm670_vm2, %v571_v33 }
 0x1cc   :  { %v1113_v34 = vpop.f32.mrb[14].mxu1 }
 0x1cd   :  { %686 = vst.msk [vmem:[%s1549_s4 + $0x78] sm:$0xff] %vm670_vm2, %v1113_v34  ;;  %v581_v35 = vpop.f32.mrb[15].mxu1 }
 0x1ce   :  { %685 = vst.msk [vmem:[%s1549_s4 + $0x70] sm:$0xff] %vm670_vm2, %v581_v35 }
 0x1d0   :  { %v1116_v36 = vpop.f32.mrb[16].mxu1 }
 0x1d1   :  { %688 = vst.msk [vmem:[%s1549_s4 + $0x88] sm:$0xff] %vm670_vm2, %v1116_v36  ;;  %v591_v37 = vpop.f32.mrb[17].mxu1 }
 0x1d2   :  { %687 = vst.msk [vmem:[%s1549_s4 + $0x80] sm:$0xff] %vm670_vm2, %v591_v37 }
 0x1d4   :  { %v1119_v38 = vpop.f32.mrb[18].mxu1 }
 0x1d5   :  { %690 = vst.msk [vmem:[%s1549_s4 + $0x98] sm:$0xff] %vm670_vm2, %v1119_v38  ;;  %v601_v39 = vpop.f32.mrb[19].mxu1 }
 0x1d6   :  { %689 = vst.msk [vmem:[%s1549_s4 + $0x90] sm:$0xff] %vm670_vm2, %v601_v39 }
 0x1d8   :  { %v1122_v40 = vpop.f32.mrb[20].mxu1 }
 0x1d9   :  { %692 = vst.msk [vmem:[%s1549_s4 + $0xa8] sm:$0xff] %vm670_vm2, %v1122_v40  ;;  %v611_v41 = vpop.f32.mrb[21].mxu1 }
 0x1da   :  { %691 = vst.msk [vmem:[%s1549_s4 + $0xa0] sm:$0xff] %vm670_vm2, %v611_v41 }
 0x1dc   :  { %v1125_v42 = vpop.f32.mrb[22].mxu1 }
 0x1dd   :  { %694 = vst.msk [vmem:[%s1549_s4 + $0xb8] sm:$0xff] %vm670_vm2, %v1125_v42  ;;  %v621_v43 = vpop.f32.mrb[23].mxu1 }
 0x1de   :  { %693 = vst.msk [vmem:[%s1549_s4 + $0xb0] sm:$0xff] %vm670_vm2, %v621_v43 }
 0x1e0   :  { %v1128_v44 = vpop.f32.mrb[24].mxu1 }
 0x1e1   :  { %696 = vst.msk [vmem:[%s1549_s4 + $0xc8] sm:$0xff] %vm670_vm2, %v1128_v44  ;;  %v631_v45 = vpop.f32.mrb[25].mxu1 }
 0x1e2   :  { %695 = vst.msk [vmem:[%s1549_s4 + $0xc0] sm:$0xff] %vm670_vm2, %v631_v45 }
 0x1e4   :  { %v1131_v46 = vpop.f32.mrb[26].mxu1 }
 0x1e5   :  { %698 = vst.msk [vmem:[%s1549_s4 + $0xd8] sm:$0xff] %vm670_vm2, %v1131_v46  ;;  %v641_v47 = vpop.f32.mrb[27].mxu1 }
 0x1e6   :  { %697 = vst.msk [vmem:[%s1549_s4 + $0xd0] sm:$0xff] %vm670_vm2, %v641_v47 }
 0x1e8   :  { %v1134_v48 = vpop.f32.mrb[28].mxu1 }
 0x1e9   :  { %700 = vst.msk [vmem:[%s1549_s4 + $0xe8] sm:$0xff] %vm670_vm2, %v1134_v48  ;;  %v651_v49 = vpop.f32.mrb[29].mxu1 }
 0x1ea   :  { %699 = vst.msk [vmem:[%s1549_s4 + $0xe0] sm:$0xff] %vm670_vm2, %v651_v49 }
 0x1ec   :  { %v1137_v50 = vpop.f32.mrb[30].mxu1 }
 0x1ed   :  { %702 = vst.msk [vmem:[%s1549_s4 + $0xf8] sm:$0xff] %vm670_vm2, %v1137_v50  ;;  %v661_v51 = vpop.f32.mrb[31].mxu1 }
 0x1ee   :  { %701 = vst.msk [vmem:[%s1549_s4 + $0xf0] sm:$0xff] %vm670_vm2, %v661_v51 }

// kernel: gat_forward.10
= control target key start
LH: loop header
LB: loop body
LE: loop exit
PB: predicated region body
PF: predicated region fallthrough
CT: control target
= control target key end

     0   :  { %vm137_vm0 = vcmask 130048   ;;  %vm445_vm1 = vcmask 1043456   ;;  %vm348_vm2 = vcmask 31744   ;;  %vm835_vm3 = vcmask 27648   ;;  %s1540_s1 = inlined_call_operand.vmem [shape: bf16[16,4], index: 1, kind: input, shape index: {}]   ;;  %s1541_s0 = inlined_call_operand.vmem [shape: bf16[256,16], index: 0, kind: input, shape index: {}]   ;;  %s1542_s2 = inlined_call_operand.vmem [shape: f32[4,2], index: 2, kind: input, shape index: {}]   ;;  %s1543_s3 = inlined_call_operand.vmem [shape: bf16[256,4], index: 3, kind: output, shape index: {0}]   ;;  %s1544_s4 = inlined_call_operand.vmem [shape: f32[256,2], index: 4, kind: output, shape index: {1}]  }
   0x1   :  { %v1140_v0 = vld [vmem:[%s1540_s1] sm:$0xff]   ;;  %v1142_v2 = vld [vmem:[%s1541_s0 + $0x8] sm:$0xff]   ;;  %v1143_v3 = vld [vmem:[%s1541_s0 + $0x10] sm:$0xff]   ;;  %vm674_vm4 = vcmask 15360  }
   0x2   :  { %v1141_v1 = vld [vmem:[%s1541_s0] sm:$0xff]   ;;  %1056 = vmatprep.subr.bf16.mxu0 %v1140_v0  ;;  %v1144_v4 = vld [vmem:[%s1541_s0 + $0x18] sm:$0xff]   ;;  %v1146_v6 = vld [vmem:[%s1541_s0 + $0x28] sm:$0xff]  }
   0x3   :  { %1057 = vmatpush3.bf16.msra.mxu0 %v1140_v0  ;;  %1058 = vmatprep.mubr.msk.bf16.mxu0 %vm137_vm0, %v1141_v1  ;;  %v1145_v5 = vld [vmem:[%s1541_s0 + $0x20] sm:$0xff]   ;;  %v1147_v7 = vld [vmem:[%s1541_s0 + $0x30] sm:$0xff]   ;;  %v1148_v8 = vld [vmem:[%s1541_s0 + $0x38] sm:$0xff]  }
   0x4   :  { %v1149_v9 = vld [vmem:[%s1541_s0 + $0x40] sm:$0xff]   ;;  %v1150_v10 = vld [vmem:[%s1541_s0 + $0x48] sm:$0xff]   ;;  %v1151_v11 = vld [vmem:[%s1541_s0 + $0x50] sm:$0xff]  }
   0x5   :  { %v1152_v12 = vld [vmem:[%s1541_s0 + $0x58] sm:$0xff]   ;;  %v1153_v13 = vld [vmem:[%s1541_s0 + $0x60] sm:$0xff]   ;;  %v1154_v14 = vld [vmem:[%s1541_s0 + $0x68] sm:$0xff]  }
   0x6   :  { %1059 = vmatmul.mubr.msk.bf16.vlgmr.msra.gmra.mrb[0].mxu0 %vm137_vm0, %v1142_v2  ;;  %v1155_v15 = vld [vmem:[%s1541_s0 + $0x70] sm:$0xff]   ;;  %v1156_v16 = vld [vmem:[%s1541_s0 + $0x78] sm:$0xff]   ;;  %v347_v17 = vld [vmem:[%s1542_s2] sm:$0xf] }
   0x7   :  { %1062 = vmatprep.mubr.msk.bf16.mxu0 %vm137_vm0, %v1143_v3  ;;  %1090 = vmatprep.subr.msk.mxu1 %vm445_vm1, %v347_v17 }
   0x8   :  { %1091 = vmatpush3.msk.msra.mxu1 %vm445_vm1, %v347_v17 }
   0xe   :  { %1063 = vmatmul.mubr.msk.bf16.gmra.mrb[4].mxu0 %vm137_vm0, %v1144_v4 }
   0xf   :  { %1066 = vmatprep.mubr.msk.bf16.mxu0 %vm137_vm0, %v1145_v5 }
  0x16   :  { %1067 = vmatmul.mubr.msk.bf16.gmra.mrb[8].mxu0 %vm137_vm0, %v1146_v6 }
  0x17   :  { %1070 = vmatprep.mubr.msk.bf16.mxu0 %vm137_vm0, %v1147_v7 }
  0x1e   :  { %1071 = vmatmul.mubr.msk.bf16.gmra.mrb[12].mxu0 %vm137_vm0, %v1148_v8 }
  0x1f   :  { %1074 = vmatprep.mubr.msk.bf16.mxu0 %vm137_vm0, %v1149_v9 }
  0x26   :  { %1075 = vmatmul.mubr.msk.bf16.gmra.mrb[16].mxu0 %vm137_vm0, %v1150_v10 }
  0x27   :  { %1078 = vmatprep.mubr.msk.bf16.mxu0 %vm137_vm0, %v1151_v11 }
  0x2e   :  { %1079 = vmatmul.mubr.msk.bf16.gmra.mrb[20].mxu0 %vm137_vm0, %v1152_v12 }
  0x2f   :  { %1082 = vmatprep.mubr.msk.bf16.mxu0 %vm137_vm0, %v1153_v13 }
  0x36   :  { %1083 = vmatmul.mubr.msk.bf16.gmra.mrb[24].mxu0 %vm137_vm0, %v1154_v14 }
  0x37   :  { %1086 = vmatprep.mubr.msk.bf16.mxu0 %vm137_vm0, %v1155_v15 }
  0x3e   :  { %1087 = vmatmul.mubr.msk.bf16.gmra.mrb[28].mxu0 %vm137_vm0, %v1156_v16 }
  0xd9   :  { %v1060_v18 = vpop.f32.mrb[0].mxu0 }
  0xda   :  { %v976_v19 = vpack.c.bf16 %v1060_v18, %v1060_v18  ;;  %v220_v20 = vpop.f32.mrb[1].mxu0 }
  0xdb   :  { %v974_v21 = vpack.c.bf16 %v220_v20, %v220_v20  ;;  %v1061_v22 = vpop.f32.mrb[2].mxu0  ;;  %1092 = vmatprep.mubr.msk.f32.mxu1 %vm348_vm2, %v220_v20 }
  0xdc   :  { %838 = vst.msk [vmem:[%s1543_s3 + $0x8] sm:$0xf] %vm835_vm3, %v976_v19  ;;  %v977_v23 = vpack.c.bf16 %v1061_v22, %v1061_v22  ;;  %v223_v24 = vpop.f32.mrb[3].mxu0 }
  0xdd   :  { %836 = vst.msk [vmem:[%s1543_s3] sm:$0xf] %vm835_vm3, %v974_v21  ;;  %v975_v25 = vpack.c.bf16 %v223_v24, %v223_v24  ;;  %1093 = vmatmul.mubr.msk.f32.vlgmr.msra.gmra.mrb[0].mxu1 %vm348_vm2, %v223_v24 }
  0xde   :  { %839 = vst.msk [vmem:[%s1543_s3 + $0xc] sm:$0xf] %vm835_vm3, %v977_v23  ;;  %1095 = vmatprep.mubr.msk.f32.mxu1 %vm348_vm2, %v1060_v18 }
  0xdf   :  { %837 = vst.msk [vmem:[%s1543_s3 + $0x4] sm:$0xf] %vm835_vm3, %v975_v25 }
  0xe1   :  { %v1064_v26 = vpop.f32.mrb[4].mxu0  ;;  %1096 = vmatmul.mubr.msk.f32.gmra.mrb[2].mxu1 %vm348_vm2, %v1061_v22 }
  0xe2   :  { %v980_v27 = vpack.c.bf16 %v1064_v26, %v1064_v26  ;;  %v236_v28 = vpop.f32.mrb[5].mxu0 }
  0xe3   :  { %v978_v29 = vpack.c.bf16 %v236_v28, %v236_v28  ;;  %v1065_v30 = vpop.f32.mrb[6].mxu0  ;;  %1098 = vmatprep.mubr.msk.f32.mxu1 %vm348_vm2, %v236_v28 }
  0xe4   :  { %842 = vst.msk [vmem:[%s1543_s3 + $0x18] sm:$0xf] %vm835_vm3, %v980_v27  ;;  %v981_v31 = vpack.c.bf16 %v1065_v30, %v1065_v30  ;;  %v239_v32 = vpop.f32.mrb[7].mxu0 }
  0xe5   :  { %840 = vst.msk [vmem:[%s1543_s3 + $0x10] sm:$0xf] %vm835_vm3, %v978_v29  ;;  %v979_v33 = vpack.c.bf16 %v239_v32, %v239_v32  ;;  %1099 = vmatmul.mubr.msk.f32.gmra.mrb[4].mxu1 %vm348_vm2, %v239_v32 }
  0xe6   :  { %843 = vst.msk [vmem:[%s1543_s3 + $0x1c] sm:$0xf] %vm835_vm3, %v981_v31  ;;  %1101 = vmatprep.mubr.msk.f32.mxu1 %vm348_vm2, %v1064_v26 }
  0xe7   :  { %841 = vst.msk [vmem:[%s1543_s3 + $0x14] sm:$0xf] %vm835_vm3, %v979_v33 }
  0xe9   :  { %v1068_v34 = vpop.f32.mrb[8].mxu0  ;;  %1102 = vmatmul.mubr.msk.f32.gmra.mrb[6].mxu1 %vm348_vm2, %v1065_v30 }
  0xea   :  { %v984_v35 = vpack.c.bf16 %v1068_v34, %v1068_v34  ;;  %v252_v36 = vpop.f32.mrb[9].mxu0 }
  0xeb   :  { %v982_v37 = vpack.c.bf16 %v252_v36, %v252_v36  ;;  %v1069_v38 = vpop.f32.mrb[10].mxu0  ;;  %1104 = vmatprep.mubr.msk.f32.mxu1 %vm348_vm2, %v252_v36 }
  0xec   :  { %846 = vst.msk [vmem:[%s1543_s3 + $0x28] sm:$0xf] %vm835_vm3, %v984_v35  ;;  %v985_v39 = vpack.c.bf16 %v1069_v38, %v1069_v38  ;;  %v255_v40 = vpop.f32.mrb[11].mxu0 }
  0xed   :  { %844 = vst.msk [vmem:[%s1543_s3 + $0x20] sm:$0xf] %vm835_vm3, %v982_v37  ;;  %v983_v41 = vpack.c.bf16 %v255_v40, %v255_v40  ;;  %1105 = vmatmul.mubr.msk.f32.gmra.mrb[8].mxu1 %vm348_vm2, %v255_v40 }
  0xee   :  { %847 = vst.msk [vmem:[%s1543_s3 + $0x2c] sm:$0xf] %vm835_vm3, %v985_v39  ;;  %1107 = vmatprep.mubr.msk.f32.mxu1 %vm348_vm2, %v1068_v34 }
  0xef   :  { %845 = vst.msk [vmem:[%s1543_s3 + $0x24] sm:$0xf] %vm835_vm3, %v983_v41 }
  0xf1   :  { %v1072_v42 = vpop.f32.mrb[12].mxu0  ;;  %1108 = vmatmul.mubr.msk.f32.gmra.mrb[10].mxu1 %vm348_vm2, %v1069_v38 }
  0xf2   :  { %v988_v43 = vpack.c.bf16 %v1072_v42, %v1072_v42  ;;  %v268_v44 = vpop.f32.mrb[13].mxu0 }
  0xf3   :  { %v986_v45 = vpack.c.bf16 %v268_v44, %v268_v44  ;;  %v1073_v46 = vpop.f32.mrb[14].mxu0  ;;  %1110 = vmatprep.mubr.msk.f32.mxu1 %vm348_vm2, %v268_v44 }
  0xf4   :  { %850 = vst.msk [vmem:[%s1543_s3 + $0x38] sm:$0xf] %vm835_vm3, %v988_v43  ;;  %v989_v47 = vpack.c.bf16 %v1073_v46, %v1073_v46  ;;  %v271_v48 = vpop.f32.mrb[15].mxu0 }
  0xf5   :  { %848 = vst.msk [vmem:[%s1543_s3 + $0x30] sm:$0xf] %vm835_vm3, %v986_v45  ;;  %v987_v49 = vpack.c.bf16 %v271_v48, %v271_v48  ;;  %1111 = vmatmul.mubr.msk.f32.gmra.mrb[12].mxu1 %vm348_vm2, %v271_v48 }
  0xf6   :  { %851 = vst.msk [vmem:[%s1543_s3 + $0x3c] sm:$0xf] %vm835_vm3, %v989_v47  ;;  %1113 = vmatprep.mubr.msk.f32.mxu1 %vm348_vm2, %v1072_v42 }
  0xf7   :  { %849 = vst.msk [vmem:[%s1543_s3 + $0x34] sm:$0xf] %vm835_vm3, %v987_v49 }
  0xf9   :  { %v1076_v50 = vpop.f32.mrb[16].mxu0  ;;  %1114 = vmatmul.mubr.msk.f32.gmra.mrb[14].mxu1 %vm348_vm2, %v1073_v46 }
  0xfa   :  { %v992_v51 = vpack.c.bf16 %v1076_v50, %v1076_v50  ;;  %v284_v52 = vpop.f32.mrb[17].mxu0 }
  0xfb   :  { %v990_v53 = vpack.c.bf16 %v284_v52, %v284_v52  ;;  %v1077_v54 = vpop.f32.mrb[18].mxu0  ;;  %1116 = vmatprep.mubr.msk.f32.mxu1 %vm348_vm2, %v284_v52 }
  0xfc   :  { %854 = vst.msk [vmem:[%s1543_s3 + $0x48] sm:$0xf] %vm835_vm3, %v992_v51  ;;  %v993_v55 = vpack.c.bf16 %v1077_v54, %v1077_v54  ;;  %v287_v56 = vpop.f32.mrb[19].mxu0 }
  0xfd   :  { %852 = vst.msk [vmem:[%s1543_s3 + $0x40] sm:$0xf] %vm835_vm3, %v990_v53  ;;  %v991_v57 = vpack.c.bf16 %v287_v56, %v287_v56  ;;  %1117 = vmatmul.mubr.msk.f32.gmra.mrb[16].mxu1 %vm348_vm2, %v287_v56 }
  0xfe   :  { %855 = vst.msk [vmem:[%s1543_s3 + $0x4c] sm:$0xf] %vm835_vm3, %v993_v55  ;;  %1119 = vmatprep.mubr.msk.f32.mxu1 %vm348_vm2, %v1076_v50 }
  0xff   :  { %853 = vst.msk [vmem:[%s1543_s3 + $0x44] sm:$0xf] %vm835_vm3, %v991_v57 }
 0x101   :  { %v1080_v58 = vpop.f32.mrb[20].mxu0  ;;  %1120 = vmatmul.mubr.msk.f32.gmra.mrb[18].mxu1 %vm348_vm2, %v1077_v54 }
 0x102   :  { %v996_v59 = vpack.c.bf16 %v1080_v58, %v1080_v58  ;;  %v300_v60 = vpop.f32.mrb[21].mxu0 }
 0x103   :  { %v994_v61 = vpack.c.bf16 %v300_v60, %v300_v60  ;;  %v1081_v62 = vpop.f32.mrb[22].mxu0  ;;  %1122 = vmatprep.mubr.msk.f32.mxu1 %vm348_vm2, %v300_v60 }
 0x104   :  { %858 = vst.msk [vmem:[%s1543_s3 + $0x58] sm:$0xf] %vm835_vm3, %v996_v59  ;;  %v997_v63 = vpack.c.bf16 %v1081_v62, %v1081_v62  ;;  %v303_v0 = vpop.f32.mrb[23].mxu0 }
 0x105   :  { %856 = vst.msk [vmem:[%s1543_s3 + $0x50] sm:$0xf] %vm835_vm3, %v994_v61  ;;  %v995_v1 = vpack.c.bf16 %v303_v0, %v303_v0  ;;  %1123 = vmatmul.mubr.msk.f32.gmra.mrb[20].mxu1 %vm348_vm2, %v303_v0 }
 0x106   :  { %859 = vst.msk [vmem:[%s1543_s3 + $0x5c] sm:$0xf] %vm835_vm3, %v997_v63  ;;  %1125 = vmatprep.mubr.msk.f32.mxu1 %vm348_vm2, %v1080_v58 }
 0x107   :  { %857 = vst.msk [vmem:[%s1543_s3 + $0x54] sm:$0xf] %vm835_vm3, %v995_v1 }
 0x109   :  { %v1084_v2 = vpop.f32.mrb[24].mxu0  ;;  %1126 = vmatmul.mubr.msk.f32.gmra.mrb[22].mxu1 %vm348_vm2, %v1081_v62 }
 0x10a   :  { %v1000_v3 = vpack.c.bf16 %v1084_v2, %v1084_v2  ;;  %v316_v4 = vpop.f32.mrb[25].mxu0 }
 0x10b   :  { %v998_v5 = vpack.c.bf16 %v316_v4, %v316_v4  ;;  %v1085_v6 = vpop.f32.mrb[26].mxu0  ;;  %1128 = vmatprep.mubr.msk.f32.mxu1 %vm348_vm2, %v316_v4 }
 0x10c   :  { %862 = vst.msk [vmem:[%s1543_s3 + $0x68] sm:$0xf] %vm835_vm3, %v1000_v3  ;;  %v1001_v7 = vpack.c.bf16 %v1085_v6, %v1085_v6  ;;  %v319_v8 = vpop.f32.mrb[27].mxu0 }
 0x10d   :  { %860 = vst.msk [vmem:[%s1543_s3 + $0x60] sm:$0xf] %vm835_vm3, %v998_v5  ;;  %v999_v9 = vpack.c.bf16 %v319_v8, %v319_v8  ;;  %1129 = vmatmul.mubr.msk.f32.gmra.mrb[24].mxu1 %vm348_vm2, %v319_v8 }
 0x10e   :  { %863 = vst.msk [vmem:[%s1543_s3 + $0x6c] sm:$0xf] %vm835_vm3, %v1001_v7  ;;  %1131 = vmatprep.mubr.msk.f32.mxu1 %vm348_vm2, %v1084_v2 }
 0x10f   :  { %861 = vst.msk [vmem:[%s1543_s3 + $0x64] sm:$0xf] %vm835_vm3, %v999_v9 }
 0x111   :  { %v1088_v10 = vpop.f32.mrb[28].mxu0  ;;  %1132 = vmatmul.mubr.msk.f32.gmra.mrb[26].mxu1 %vm348_vm2, %v1085_v6 }
 0x112   :  { %v1004_v11 = vpack.c.bf16 %v1088_v10, %v1088_v10  ;;  %v332_v12 = vpop.f32.mrb[29].mxu0 }
 0x113   :  { %v1002_v13 = vpack.c.bf16 %v332_v12, %v332_v12  ;;  %v1089_v14 = vpop.f32.mrb[30].mxu0  ;;  %1134 = vmatprep.mubr.msk.f32.mxu1 %vm348_vm2, %v332_v12 }
 0x114   :  { %866 = vst.msk [vmem:[%s1543_s3 + $0x78] sm:$0xf] %vm835_vm3, %v1004_v11  ;;  %v1005_v15 = vpack.c.bf16 %v1089_v14, %v1089_v14  ;;  %v335_v16 = vpop.f32.mrb[31].mxu0 }
 0x115   :  { %864 = vst.msk [vmem:[%s1543_s3 + $0x70] sm:$0xf] %vm835_vm3, %v1002_v13  ;;  %v1003_v17 = vpack.c.bf16 %v335_v16, %v335_v16  ;;  %1135 = vmatmul.mubr.msk.f32.gmra.mrb[28].mxu1 %vm348_vm2, %v335_v16 }
 0x116   :  { %867 = vst.msk [vmem:[%s1543_s3 + $0x7c] sm:$0xf] %vm835_vm3, %v1005_v15  ;;  %1137 = vmatprep.mubr.msk.f32.mxu1 %vm348_vm2, %v1088_v10 }
 0x117   :  { %865 = vst.msk [vmem:[%s1543_s3 + $0x74] sm:$0xf] %vm835_vm3, %v1003_v17 }
 0x119   :  { %1138 = vmatmul.mubr.msk.f32.gmra.mrb[30].mxu1 %vm348_vm2, %v1089_v14 }
 0x1b0   :  { %v1094_v18 = vpop.f32.mrb[0].mxu1 }
 0x1b1   :  { %676 = vst.msk [vmem:[%s1544_s4 + $0x8] sm:$0xff] %vm674_vm4, %v1094_v18  ;;  %v515_v19 = vpop.f32.mrb[1].mxu1 }
 0x1b2   :  { %675 = vst.msk [vmem:[%s1544_s4] sm:$0xff] %vm674_vm4, %v515_v19 }
 0x1b4   :  { %v1097_v20 = vpop.f32.mrb[2].mxu1 }
 0x1b5   :  { %678 = vst.msk [vmem:[%s1544_s4 + $0x18] sm:$0xff] %vm674_vm4, %v1097_v20  ;;  %v525_v21 = vpop.f32.mrb[3].mxu1 }
 0x1b6   :  { %677 = vst.msk [vmem:[%s1544_s4 + $0x10] sm:$0xff] %vm674_vm4, %v525_v21 }
 0x1b8   :  { %v1100_v22 = vpop.f32.mrb[4].mxu1 }
 0x1b9   :  { %680 = vst.msk [vmem:[%s1544_s4 + $0x28] sm:$0xff] %vm674_vm4, %v1100_v22  ;;  %v535_v23 = vpop.f32.mrb[5].mxu1 }
 0x1ba   :  { %679 = vst.msk [vmem:[%s1544_s4 + $0x20] sm:$0xff] %vm674_vm4, %v535_v23 }
 0x1bc   :  { %v1103_v24 = vpop.f32.mrb[6].mxu1 }
 0x1bd   :  { %682 = vst.msk [vmem:[%s1544_s4 + $0x38] sm:$0xff] %vm674_vm4, %v1103_v24  ;;  %v545_v25 = vpop.f32.mrb[7].mxu1 }
 0x1be   :  { %681 = vst.msk [vmem:[%s1544_s4 + $0x30] sm:$0xff] %vm674_vm4, %v545_v25 }
 0x1c0   :  { %v1106_v26 = vpop.f32.mrb[8].mxu1 }
 0x1c1   :  { %684 = vst.msk [vmem:[%s1544_s4 + $0x48] sm:$0xff] %vm674_vm4, %v1106_v26  ;;  %v555_v27 = vpop.f32.mrb[9].mxu1 }
 0x1c2   :  { %683 = vst.msk [vmem:[%s1544_s4 + $0x40] sm:$0xff] %vm674_vm4, %v555_v27 }
 0x1c4   :  { %v1109_v28 = vpop.f32.mrb[10].mxu1 }
 0x1c5   :  { %686 = vst.msk [vmem:[%s1544_s4 + $0x58] sm:$0xff] %vm674_vm4, %v1109_v28  ;;  %v565_v29 = vpop.f32.mrb[11].mxu1 }
 0x1c6   :  { %685 = vst.msk [vmem:[%s1544_s4 + $0x50] sm:$0xff] %vm674_vm4, %v565_v29 }
 0x1c8   :  { %v1112_v30 = vpop.f32.mrb[12].mxu1 }
 0x1c9   :  { %688 = vst.msk [vmem:[%s1544_s4 + $0x68] sm:$0xff] %vm674_vm4, %v1112_v30  ;;  %v575_v31 = vpop.f32.mrb[13].mxu1 }
 0x1ca   :  { %687 = vst.msk [vmem:[%s1544_s4 + $0x60] sm:$0xff] %vm674_vm4, %v575_v31 }
 0x1cc   :  { %v1115_v32 = vpop.f32.mrb[14].mxu1 }
 0x1cd   :  { %690 = vst.msk [vmem:[%s1544_s4 + $0x78] sm:$0xff] %vm674_vm4, %v1115_v32  ;;  %v585_v33 = vpop.f32.mrb[15].mxu1 }
 0x1ce   :  { %689 = vst.msk [vmem:[%s1544_s4 + $0x70] sm:$0xff] %vm674_vm4, %v585_v33 }
 0x1d0   :  { %v1118_v34 = vpop.f32.mrb[16].mxu1 }
 0x1d1   :  { %692 = vst.msk [vmem:[%s1544_s4 + $0x88] sm:$0xff] %vm674_vm4, %v1118_v34  ;;  %v595_v35 = vpop.f32.mrb[17].mxu1 }
 0x1d2   :  { %691 = vst.msk [vmem:[%s1544_s4 + $0x80] sm:$0xff] %vm674_vm4, %v595_v35 }
 0x1d4   :  { %v1121_v36 = vpop.f32.mrb[18].mxu1 }
 0x1d5   :  { %694 = vst.msk [vmem:[%s1544_s4 + $0x98] sm:$0xff] %vm674_vm4, %v1121_v36  ;;  %v605_v37 = vpop.f32.mrb[19].mxu1 }
 0x1d6   :  { %693 = vst.msk [vmem:[%s1544_s4 + $0x90] sm:$0xff] %vm674_vm4, %v605_v37 }
 0x1d8   :  { %v1124_v38 = vpop.f32.mrb[20].mxu1 }
 0x1d9   :  { %696 = vst.msk [vmem:[%s1544_s4 + $0xa8] sm:$0xff] %vm674_vm4, %v1124_v38  ;;  %v615_v39 = vpop.f32.mrb[21].mxu1 }
 0x1da   :  { %695 = vst.msk [vmem:[%s1544_s4 + $0xa0] sm:$0xff] %vm674_vm4, %v615_v39 }
 0x1dc   :  { %v1127_v40 = vpop.f32.mrb[22].mxu1 }
 0x1dd   :  { %698 = vst.msk [vmem:[%s1544_s4 + $0xb8] sm:$0xff] %vm674_vm4, %v1127_v40  ;;  %v625_v41 = vpop.f32.mrb[23].mxu1 }
 0x1de   :  { %697 = vst.msk [vmem:[%s1544_s4 + $0xb0] sm:$0xff] %vm674_vm4, %v625_v41 }
 0x1e0   :  { %v1130_v42 = vpop.f32.mrb[24].mxu1 }
 0x1e1   :  { %700 = vst.msk [vmem:[%s1544_s4 + $0xc8] sm:$0xff] %vm674_vm4, %v1130_v42  ;;  %v635_v43 = vpop.f32.mrb[25].mxu1 }
 0x1e2   :  { %699 = vst.msk [vmem:[%s1544_s4 + $0xc0] sm:$0xff] %vm674_vm4, %v635_v43 }
 0x1e4   :  { %v1133_v44 = vpop.f32.mrb[26].mxu1 }
 0x1e5   :  { %702 = vst.msk [vmem:[%s1544_s4 + $0xd8] sm:$0xff] %vm674_vm4, %v1133_v44  ;;  %v645_v45 = vpop.f32.mrb[27].mxu1 }
 0x1e6   :  { %701 = vst.msk [vmem:[%s1544_s4 + $0xd0] sm:$0xff] %vm674_vm4, %v645_v45 }
 0x1e8   :  { %v1136_v46 = vpop.f32.mrb[28].mxu1 }
 0x1e9   :  { %704 = vst.msk [vmem:[%s1544_s4 + $0xe8] sm:$0xff] %vm674_vm4, %v1136_v46  ;;  %v655_v47 = vpop.f32.mrb[29].mxu1 }
 0x1ea   :  { %703 = vst.msk [vmem:[%s1544_s4 + $0xe0] sm:$0xff] %vm674_vm4, %v655_v47 }
 0x1ec   :  { %v1139_v48 = vpop.f32.mrb[30].mxu1 }
 0x1ed   :  { %706 = vst.msk [vmem:[%s1544_s4 + $0xf8] sm:$0xff] %vm674_vm4, %v1139_v48  ;;  %v665_v49 = vpop.f32.mrb[31].mxu1 }
 0x1ee   :  { %705 = vst.msk [vmem:[%s1544_s4 + $0xf0] sm:$0xff] %vm674_vm4, %v665_v49 }

// kernel: gat_forward.7
= control target key start
LH: loop header
LB: loop body
LE: loop exit
PB: predicated region body
PF: predicated region fallthrough
CT: control target
= control target key end

     0   :  { %s5618_s0 = inlined_call_operand.vmem [shape: s32[2,1], index: 0, kind: input, shape index: {}]   ;;  %s5619_s1 = inlined_call_operand.vmem [shape: f32[256,2], index: 1, kind: input, shape index: {}]   ;;  %s5620_s2 = inlined_call_operand.vmem [shape: f32[2,256], index: 2, kind: input, shape index: {}]   ;;  %s5621_s3 = inlined_call_operand.vmem [shape: s8[256,256], index: 3, kind: input, shape index: {}]   ;;  %s5622_s4 = inlined_call_operand.vmem [shape: bf16[256,16], index: 4, kind: input, shape index: {}]   ;;  %s5623_s5 = inlined_call_operand.vmem [shape: bf16[256,16], index: 5, kind: output, shape index: {}]  }
   0x1   :  { %s10_s20 = sshll.u32 %s5618_s0, 4  ;;  %s11_s20 = int_to_ptr.vmem [resolvable:$true] %s10_s20 }
   0x2   :  { %s3571_s21 = scalar_lea.vmem %s11_s20, 32  ;;  %p3576_p1 = scmp.lt.s32.totalorder %s11_s20, %s11_s20 }
   0x3   :  { %p3572_p0 = scmp.ne.s32.totalorder %s11_s20, %s3571_s21  ;;  %p3577_p2 = scmp.lt.s32.totalorder %s3571_s21, %s3571_s21 }
   0x5   :  { %p3578_p3 = por %p3577_p2, %p3576_p1 }
   0x7   :  { %p3579_p4 = pnand %p3578_p3, %p3572_p0 }
   0x9   :  { %3582 = shalt.err (!%p3579_p4)  }
   0xa   :  { %s3609_s22 = smov [#allocation6]  }
   0xb   :  { %13 = dma.vmem_to_smem %s11_s20, 32, %s3609_s22, [#allocation5] }
   0xc   :  { %3595 = dma.done.wait [#allocation5], 32 }
   0xd   :  { %3596 = vsyncadd [#allocation5], 4294967264 }
   0xe   :  { %15 = sfence }
   0xf   :  { %s3651_s23 = smov 0   ;;  %s3653_s24 = smov 0  }
  0x10   :  { %s3655_s25 = smov 0  }
  0x11 LB: > { %s33_s0 = sadd.s32 1, %s3603_s24  ;;  %p3013_p5 = scmp.ge.s32.totalorder %s3607_s25, 1  ;;  %s3607_s25 = sphi %s3655_s25, %s21_s25   ;;  %s3603_s24 = sphi %s3653_s24, %s6013_s24   ;;  %s3599_s23 = sphi %s3651_s23, %s6012_s23  }
  0x12   : > { %p35_p6 = scmp.ge.s32.totalorder %s33_s0, 2  ;;  %p201_p7 = scmp.lt.s32.totalorder %s3607_s25, 3 }
  0x14   : > { %s6015_s0 = smov (%p35_p6, %s33_s0), 0  ;;  %p202_p8 = pnand %p3013_p5, %p201_p7 }
  0x15   : > { %s3014_s26 = sshll.u32 (!%p202_p8), %s3599_s23, 4  ;;  %s3016_s27 = sshll.u32 (!%p202_p8), %s3599_s23, 2  ;;  %vm266_vm0 = vcmask (!%p202_p8), 15360   ;;  %v3610_v0 = vmov (!%p202_p8), -1e+30   ;;  %v3611_v1 = vmov (!%p202_p8), 0.0  }
  0x16   : > { %205 = sbr.rel (%p202_p8) target bundleno = 1174 (0x496), region = 36  ;;  %p3675_p9 = scmp.lt.s32.totalorder (!%p202_p8), %s3014_s26, 31  ;;  %267 = vst.msk [vmem:[#allocation2] sm:$0xff] (!%p202_p8), %vm266_vm0, %v3610_v0  ;;  %268 = vst.msk [vmem:[#allocation2 + $0x8] sm:$0xff] (!%p202_p8), %vm266_vm0, %v3610_v0  ;;  %vm299_vm1 = vcmask (!%p202_p8), 130048  }
  0x17   : > { %p3681_p10 = scmp.lt.s32.totalorder (!%p202_p8), %s3016_s27, 7  ;;  %269 = vst.msk [vmem:[#allocation2 + $0x10] sm:$0xff] (!%p202_p8), %vm266_vm0, %v3610_v0  ;;  %270 = vst.msk [vmem:[#allocation2 + $0x18] sm:$0xff] (!%p202_p8), %vm266_vm0, %v3610_v0  ;;  %s3021_s30 = sshll.u32 (!%p202_p8), %s3599_s23, 7 }
  0x18   : > { %271 = vst.msk [vmem:[#allocation2 + $0x20] sm:$0xff] (!%p202_p8), %vm266_vm0, %v3610_v0  ;;  %272 = vst.msk [vmem:[#allocation2 + $0x28] sm:$0xff] (!%p202_p8), %vm266_vm0, %v3610_v0  ;;  %s323_s18 = sld [smem:[#allocation6 + %s3021_s30]] (!%p202_p8) }
  0x19   : > { %273 = vst.msk [vmem:[#allocation2 + $0x30] sm:$0xff] (!%p202_p8), %vm266_vm0, %v3610_v0  ;;  %274 = vst.msk [vmem:[#allocation2 + $0x38] sm:$0xff] (!%p202_p8), %vm266_vm0, %v3610_v0 }
  0x1a   : > { %275 = vst.msk [vmem:[#allocation2 + $0x40] sm:$0xff] (!%p202_p8), %vm266_vm0, %v3610_v0  ;;  %276 = vst.msk [vmem:[#allocation2 + $0x48] sm:$0xff] (!%p202_p8), %vm266_vm0, %v3610_v0 }
  0x1b   : > { %277 = vst.msk [vmem:[#allocation2 + $0x50] sm:$0xff] (!%p202_p8), %vm266_vm0, %v3610_v0  ;;  %278 = vst.msk [vmem:[#allocation2 + $0x58] sm:$0xff] (!%p202_p8), %vm266_vm0, %v3610_v0 }
  0x1c   : > { %279 = vst.msk [vmem:[#allocation2 + $0x60] sm:$0xff] (!%p202_p8), %vm266_vm0, %v3610_v0  ;;  %280 = vst.msk [vmem:[#allocation2 + $0x68] sm:$0xff] (!%p202_p8), %vm266_vm0, %v3610_v0 }
  0x1d   : > { %281 = vst.msk [vmem:[#allocation2 + $0x70] sm:$0xff] %vm266_vm0, %v3610_v0  ;;  %282 = vst.msk [vmem:[#allocation2 + $0x78] sm:$0xff] %vm266_vm0, %v3610_v0  ;;  %s6017_s26 = smov (!%p3675_p9, %s3014_s26), 31  ;;  %s6019_s27 = smov (!%p3681_p10, %s3016_s27), 7 }
  0x1e   : > { %283 = vst.msk [vmem:[#allocation3] sm:$0xff] %vm266_vm0, %v3611_v1  ;;  %284 = vst.msk [vmem:[#allocation3 + $0x8] sm:$0xff] %vm266_vm0, %v3611_v1  ;;  %s3015_s6 = sshll.u32 %s6017_s26, 3  ;;  %s3020_s7 = sshll.u32 %s6017_s26, 2 }
  0x1f   : > { %285 = vst.msk [vmem:[#allocation3 + $0x10] sm:$0xff] %vm266_vm0, %v3611_v1  ;;  %286 = vst.msk [vmem:[#allocation3 + $0x18] sm:$0xff] %vm266_vm0, %v3611_v1  ;;  %s3745_s10 = scalar_lea.vmem %s5619_s1, %s3015_s6  ;;  %s3105_s11 = sshll.u32 %s6019_s27, 4 }
  0x20   : > { %287 = vst.msk [vmem:[#allocation3 + $0x20] sm:$0xff] %vm266_vm0, %v3611_v1  ;;  %288 = vst.msk [vmem:[#allocation3 + $0x28] sm:$0xff] %vm266_vm0, %v3611_v1  ;;  %s3750_s14 = scalar_lea.vmem %s5621_s3, %s3105_s11  ;;  %s3755_s17 = scalar_lea.vmem %s5623_s5, %s3020_s7 }
  0x21   : > { %289 = vst.msk [vmem:[#allocation3 + $0x30] sm:$0xff] %vm266_vm0, %v3611_v1  ;;  %290 = vst.msk [vmem:[#allocation3 + $0x38] sm:$0xff] %vm266_vm0, %v3611_v1  ;;  %p3022_p11 = scmp.le.s32.totalorder %s323_s18, 0 }
  0x22   : > { %291 = vst.msk [vmem:[#allocation3 + $0x40] sm:$0xff] %vm266_vm0, %v3611_v1  ;;  %292 = vst.msk [vmem:[#allocation3 + $0x48] sm:$0xff] %vm266_vm0, %v3611_v1 }
  0x23   : > { %293 = vst.msk [vmem:[#allocation3 + $0x50] sm:$0xff] %vm266_vm0, %v3611_v1  ;;  %294 = vst.msk [vmem:[#allocation3 + $0x58] sm:$0xff] %vm266_vm0, %v3611_v1 }
  0x24   : > { %295 = vst.msk [vmem:[#allocation3 + $0x60] sm:$0xff] %vm266_vm0, %v3611_v1  ;;  %296 = vst.msk [vmem:[#allocation3 + $0x68] sm:$0xff] %vm266_vm0, %v3611_v1 }
  0x25   : > { %297 = vst.msk [vmem:[#allocation3 + $0x70] sm:$0xff] %vm266_vm0, %v3611_v1  ;;  %298 = vst.msk [vmem:[#allocation3 + $0x78] sm:$0xff] %vm266_vm0, %v3611_v1 }
  0x26   : > { %300 = vst.msk [vmem:[#allocation4] sm:$0xff] %vm299_vm1, %v3611_v1  ;;  %301 = vst.msk [vmem:[#allocation4 + $0x8] sm:$0xff] %vm299_vm1, %v3611_v1 }
  0x27   : > { %302 = vst.msk [vmem:[#allocation4 + $0x10] sm:$0xff] %vm299_vm1, %v3611_v1  ;;  %303 = vst.msk [vmem:[#allocation4 + $0x18] sm:$0xff] %vm299_vm1, %v3611_v1  ;;  %327 = sbr.rel (%p3022_p11) target bundleno = 948 (0x3b4), region = 44 }
  0x28   : > { %304 = vst.msk [vmem:[#allocation4 + $0x20] sm:$0xff] %vm299_vm1, %v3611_v1  ;;  %305 = vst.msk [vmem:[#allocation4 + $0x28] sm:$0xff] %vm299_vm1, %v3611_v1 }
  0x29   : > { %306 = vst.msk [vmem:[#allocation4 + $0x30] sm:$0xff] %vm299_vm1, %v3611_v1  ;;  %307 = vst.msk [vmem:[#allocation4 + $0x38] sm:$0xff] %vm299_vm1, %v3611_v1 }
  0x2a   : > { %308 = vst.msk [vmem:[#allocation4 + $0x40] sm:$0xff] %vm299_vm1, %v3611_v1  ;;  %309 = vst.msk [vmem:[#allocation4 + $0x48] sm:$0xff] %vm299_vm1, %v3611_v1 }
  0x2b   : > { %310 = vst.msk [vmem:[#allocation4 + $0x50] sm:$0xff] %vm299_vm1, %v3611_v1  ;;  %311 = vst.msk [vmem:[#allocation4 + $0x58] sm:$0xff] %vm299_vm1, %v3611_v1 }
  0x2c   : > { %312 = vst.msk [vmem:[#allocation4 + $0x60] sm:$0xff] %vm299_vm1, %v3611_v1  ;;  %313 = vst.msk [vmem:[#allocation4 + $0x68] sm:$0xff] %vm299_vm1, %v3611_v1 }
  0x2d   : > { %314 = vst.msk [vmem:[#allocation4 + $0x70] sm:$0xff] %vm299_vm1, %v3611_v1  ;;  %315 = vst.msk [vmem:[#allocation4 + $0x78] sm:$0xff] %vm299_vm1, %v3611_v1 }
  0x2e   : > { %v508_v2 = vld [vmem:[%s3745_s10 + $0x10] sm:$0xff]  ;;  %v507_v3 = vld [vmem:[%s3745_s10 + $0x8] sm:$0xff]  ;;  %v5626_v4 = vmov 1   ;;  %v5624_v5 = vmov 0   ;;  %v509_v6 = vld [vmem:[%s3745_s10 + $0x18] sm:$0xff]  ;;  %v651_v20 = vlaneseq  ;;  %s3614_s16 = smov 120  }
  0x2f   : > { %3285 = vset.pattern.permute.xlu0 %v5626_v4  ;;  %3283 = vset.pattern.permute.xlu1 %v5624_v5  ;;  %v510_v7 = vld [vmem:[%s3745_s10 + $0x20] sm:$0xff]  ;;  %v511_v8 = vld [vmem:[%s3745_s10 + $0x28] sm:$0xff]  ;;  %v512_v9 = vld [vmem:[%s3745_s10 + $0x30] sm:$0xff]  ;;  %vm2401_vm2 = vcmask 7168   ;;  %s3615_s11 = smov 8   ;;  %vm2467_vm3 = vcmask 64512  }
  0x30   : > { %582 = vperm.xlu1 %3283, %v508_v2   ;;  %1491 = vperm.xlu0 %3285, %v507_v3   ;;  %v513_v10 = vld [vmem:[%s3745_s10 + $0x38] sm:$0xff]  ;;  %v514_v11 = vld [vmem:[%s3745_s10 + $0x40] sm:$0xff]  ;;  %v515_v12 = vld [vmem:[%s3745_s10 + $0x48] sm:$0xff]  ;;  %v652_v23 = vshrl.u32 %v651_v20, 7 }
  0x31   : > { %v516_v13 = vld [vmem:[%s3745_s10 + $0x50] sm:$0xff]  ;;  %v517_v14 = vld [vmem:[%s3745_s10 + $0x58] sm:$0xff]  ;;  %v518_v15 = vld [vmem:[%s3745_s10 + $0x60] sm:$0xff] }
  0x32   : > { %v519_v16 = vld [vmem:[%s3745_s10 + $0x68] sm:$0xff]  ;;  %v520_v17 = vld [vmem:[%s3745_s10 + $0x70] sm:$0xff]  ;;  %v521_v18 = vld [vmem:[%s3745_s10 + $0x78] sm:$0xff]  ;;  %v1552_v30 = vsub.s32 1, %v652_v23  ;;  %v1556_v31 = vsub.s32 3, %v652_v23  ;;  %v653_v34 = vsub.s32 0, %v652_v23 }
  0x33   : > { %v506_v19 = vld [vmem:[%s3745_s10] sm:$0xff]  ;;  %v3782_v22 = vld [vmem:[%s3750_s14 + $0x8] sm:$0xff]  ;;  %v3785_v24 = vld [vmem:[%s3750_s14 + $0x10] sm:$0xff]  ;;  %v657_v35 = vsub.s32 2, %v652_v23 }
  0x34   : > { %587 = vperm.xlu1 %3283, %v509_v6   ;;  %1503 = vperm.xlu0 %3285, %v510_v7   ;;  %v3779_v21 = vld [vmem:[%s3750_s14] sm:$0xff]  ;;  %v3788_v25 = vld [vmem:[%s3750_s14 + $0x18] sm:$0xff]  ;;  %v339_v27 = vunpack.c.1.s8 %v3782_v22  ;;  %v344_v28 = vunpack.c.0.s8 %v3785_v24  ;;  %v348_v32 = vunpack.c.2.s8 %v3785_v24  ;;  %v3806_v43 = vld [vmem:[%s3750_s14 + $0x28] sm:$0xff]  ;;  %v341_v20 = vunpack.c.2.s8 %v3782_v22 }
  0x35   : > { %v338_v26 = vunpack.c.1.s8 %v3779_v21  ;;  %v345_v29 = vunpack.c.0.s8 %v3788_v25  ;;  %v505_v33 = vld [vmem:[%s5620_s2] sm:$0xf]  ;;  %v349_v36 = vunpack.c.2.s8 %v3788_v25  ;;  %v353_v53 = vunpack.c.0.s8 %v3806_v43  ;;  %v3812_v57 = vld [vmem:[%s3750_s14 + $0x30] sm:$0xff]  ;;  %v3820_v62 = vld [vmem:[%s3750_s14 + $0x38] sm:$0xff] }
  0x36   : > { %v371_v38 = vcvt.s32.f32 %v339_v27  ;;  %v3800_v39 = vld [vmem:[%s3750_s14 + $0x20] sm:$0xff]  ;;  %v376_v41 = vcvt.s32.f32 %v344_v28  ;;  %v1553_v44 = vrot.slane %v505_v33, %v1552_v30  ;;  %v1557_v45 = vrot.slane %v505_v33, %v1556_v31 }
  0x37   : > { %v370_v37 = vcvt.s32.f32 %v338_v26  ;;  %v3294_v40 = vld [vmem:[%s5622_s4 + $0x40] sm:$0xff]   ;;  %v377_v42 = vcvt.s32.f32 %v345_v29  ;;  %v380_v46 = vcvt.s32.f32 %v348_v32  ;;  %v654_v47 = vrot.slane %v505_v33, %v653_v34 }
  0x38   : > { %597 = vperm.xlu1 %3283, %v511_v8   ;;  %1511 = vperm.xlu0 %3285, %v512_v9   ;;  %v658_v48 = vrot.slane %v505_v33, %v657_v35  ;;  %v381_v49 = vcvt.s32.f32 %v349_v36  ;;  %v352_v50 = vunpack.c.0.s8 %v3800_v39  ;;  %v3026_v52 = vadd.f32 -1.0, %v371_v38 }
  0x39   : > { %3122 = vmatprep.subr.bf16.mxu0 %v3294_v40  ;;  %v3025_v51 = vadd.f32 -1.0, %v370_v37  ;;  %v3031_v54 = vadd.f32 -1.0, %v376_v41  ;;  %v3032_v55 = vadd.f32 -1.0, %v377_v42  ;;  %v356_v56 = vunpack.c.2.s8 %v3800_v39 }
  0x3a   : > { %v3814_v58 = vrot.slane %v1553_v44, %v1552_v30  ;;  %v3816_v59 = vrot.slane %v1557_v45, %v1552_v30  ;;  %v3035_v60 = vadd.f32 -1.0, %v380_v46  ;;  %v357_v61 = vunpack.c.2.s8 %v3806_v43 }
  0x3b   : > { %v3822_v63 = vrot.slane %v654_v47, %v653_v34  ;;  %v3824_v0 = vrot.slane %v658_v48, %v653_v34  ;;  %v3036_v1 = vadd.f32 -1.0, %v381_v49  ;;  %v342_v27 = vunpack.c.3.s8 %v3779_v21 }
  0x3c   : > { %607 = vperm.xlu1 %3283, %v513_v10   ;;  %1519 = vperm.xlu0 %3285, %v514_v11   ;;  %v343_v28 = vunpack.c.3.s8 %v3782_v22  ;;  %v346_v31 = vunpack.c.1.s8 %v3785_v24  ;;  %v364_v34 = vunpack.c.2.s8 %v3812_v57  ;;  %v365_v38 = vunpack.c.2.s8 %v3820_v62 }
  0x3d   : > { %v3846_v23 = vmul.f32 1e+30, %v3036_v1  ;;  %v373_v42 = vcvt.s32.f32 %v341_v20  ;;  %v374_v45 = vcvt.s32.f32 %v342_v27 }
  0x3e   : > { %v375_v46 = vcvt.s32.f32 %v343_v28  ;;  %v378_v49 = vcvt.s32.f32 %v346_v31 }
  0x3f   : > { %v3028_v1 = vadd.f32 -1.0, %v373_v42 }
  0x40   : > { %617 = vperm.xlu1 %3283, %v515_v12   ;;  %1527 = vperm.xlu0 %3285, %v516_v13  }
  0x41   : > { %v3886_v31 = vmul.f32 1e+30, %v3028_v1 }
  0x43   : > { %5740 = vst [vmem:[#allocation11_spill] sm:$0xff] %v3886_v31 }
  0x44   : > { %627 = vperm.xlu1 %3283, %v517_v14   ;;  %1535 = vperm.xlu0 %3285, %v518_v15  }
  0x48   : > { %637 = vperm.xlu1 %3283, %v519_v16   ;;  %1543 = vperm.xlu0 %3285, %v520_v17  }
  0x4c   : > { %647 = vperm.xlu1 %3283, %v521_v18   ;;  %3286 = vset.pattern.permute.xlu0 %v5624_v5 }
  0x4d   : > { %572 = vperm.xlu0 %3286, %v506_v19  }
  0x50   : > { %3284 = vset.pattern.permute.xlu1 %v5626_v4 }
  0x51   : > { %577 = vperm.xlu0 %3286, %v507_v3   ;;  %1487 = vperm.xlu1 %3284, %v506_v19   ;;  %v3826_v3 = vmul.f32 1e+30, %v3025_v51  ;;  %v340_v19 = vunpack.c.2.s8 %v3779_v21 }
  0x53   : > { %v372_v41 = vcvt.s32.f32 %v340_v19 }
  0x55   : > { %592 = vperm.xlu0 %3286, %v510_v7   ;;  %1495 = vperm.xlu1 %3284, %v508_v2   ;;  %v384_v2 = vcvt.s32.f32 %v352_v50  ;;  %v385_v7 = vcvt.s32.f32 %v353_v53 }
  0x57   : > { %v3039_v26 = vadd.f32 -1.0, %v384_v2  ;;  %v3040_v29 = vadd.f32 -1.0, %v385_v7  ;;  %v350_v7 = vunpack.c.3.s8 %v3785_v24  ;;  %v355_v24 = vunpack.c.1.s8 %v3806_v43 }
  0x59   : > { %602 = vperm.xlu0 %3286, %v512_v9   ;;  %1499 = vperm.xlu1 %3284, %v509_v6   ;;  %v3828_v6 = vmul.f32 1e+30, %v3026_v52  ;;  %v3831_v9 = vmul.f32 1e+30, %v3031_v54  ;;  %v3860_v47 = vmul.f32 1e+30, %v3040_v29  ;;  %v396_v52 = vcvt.s32.f32 %v364_v34 }
  0x5a   : > { %v3891_v34 = vld [vmem:[%s5622_s4] sm:$0xff]  }
  0x5b   : > { %v3051_v20 = vadd.f32 -1.0, %v396_v52  ;;  %5741 = vst [vmem:[#allocation12_spill] sm:$0xff] %v3891_v34  ;;  %3123 = vmatpush3.bf16.msra.mxu0 %v3891_v34 }
  0x5d   : > { %612 = vperm.xlu0 %3286, %v514_v11   ;;  %1507 = vperm.xlu1 %3284, %v511_v8   ;;  %v360_v8 = vunpack.c.0.s8 %v3812_v57  ;;  %v388_v11 = vcvt.s32.f32 %v356_v56  ;;  %v397_v56 = vcvt.s32.f32 %v365_v38  ;;  %v358_v38 = vunpack.c.3.s8 %v3800_v39 }
  0x5f   : > { %v392_v30 = vcvt.s32.f32 %v360_v8  ;;  %v3043_v32 = vadd.f32 -1.0, %v388_v11  ;;  %v3029_v8 = vadd.f32 -1.0, %v374_v45  ;;  %v3030_v11 = vadd.f32 -1.0, %v375_v46 }
  0x60   : > { %v3052_v29 = vadd.f32 -1.0, %v397_v56  ;;  %v362_v45 = vunpack.c.1.s8 %v3812_v57  ;;  %v3917_v56 = vld [vmem:[%s5622_s4 + $0x48] sm:$0xff]   ;;  %v390_v1 = vcvt.s32.f32 %v358_v38 }
  0x61   : > { %622 = vperm.xlu0 %3286, %v516_v13   ;;  %1515 = vperm.xlu1 %3284, %v513_v10   ;;  %v3833_v10 = vmul.f32 1e+30, %v3032_v55  ;;  %v336_v13 = vunpack.c.0.s8 %v3779_v21  ;;  %v347_v21 = vunpack.c.1.s8 %v3788_v25  ;;  %v3047_v48 = vadd.f32 -1.0, %v392_v30  ;;  %5745 = vst [vmem:[#allocation16_spill] sm:$0xff] %v3917_v56  ;;  %v3939_v38 = vld [vmem:[%s5622_s4 + $0x8] sm:$0xff]  }
  0x62   : > { %v3862_v50 = vmul.f32 1e+30, %v3043_v32  ;;  %3124 = vmatprep.subr.bf16.mxu0 %v3917_v56  ;;  %5749 = vst [vmem:[#allocation20_spill] sm:$0xff] %v3939_v38 }
  0x63   : > { %v368_v35 = vcvt.s32.f32 %v336_v13  ;;  %v379_v2 = vcvt.s32.f32 %v347_v21  ;;  %v3870_v13 = vmul.f32 1e+30, %v3047_v48  ;;  %v359_v21 = vunpack.c.3.s8 %v3806_v43  ;;  %3125 = vmatpush3.bf16.msra.mxu0 %v3939_v38 }
  0x64   : > { %v366_v43 = vunpack.c.3.s8 %v3812_v57 }
  0x65   : > { %632 = vperm.xlu0 %3286, %v518_v15   ;;  %1523 = vperm.xlu1 %3284, %v515_v12   ;;  %v361_v12 = vunpack.c.0.s8 %v3820_v62  ;;  %v3838_v15 = vmul.f32 1e+30, %v3035_v60  ;;  %v3023_v53 = vadd.f32 -1.0, %v368_v35  ;;  %v3034_v32 = vadd.f32 -1.0, %v379_v2 }
  0x66   : > { %v3893_v35 = vmul.f32 1e+30, %v3029_v8  ;;  %v3921_v2 = vmul.f32 1e+30, %v3051_v20  ;;  %v391_v57 = vcvt.s32.f32 %v359_v21 }
  0x67   : > { %v393_v33 = vcvt.s32.f32 %v361_v12  ;;  %v351_v12 = vunpack.c.3.s8 %v3788_v25  ;;  %v3877_v27 = vmul.f32 1e+30, %v3023_v53 }
  0x68   : > { %5742 = vst [vmem:[#allocation13_spill] sm:$0xff] %v3893_v35  ;;  %5746 = vst [vmem:[#allocation17_spill] sm:$0xff] %v3921_v2 }
  0x69   : > { %642 = vperm.xlu0 %3286, %v520_v17   ;;  %1531 = vperm.xlu1 %3284, %v517_v14   ;;  %v337_v14 = vunpack.c.0.s8 %v3782_v22  ;;  %v3856_v22 = vmul.f32 1e+30, %v3039_v26  ;;  %v3048_v51 = vadd.f32 -1.0, %v393_v33  ;;  %5737 = vst [vmem:[#allocation8_spill] sm:$0xff] %v3877_v27  ;;  %v382_v33 = vcvt.s32.f32 %v350_v7 }
  0x6a   : > { %v3923_v7 = vmul.f32 1e+30, %v3052_v29 }
  0x6b   : > { %v369_v36 = vcvt.s32.f32 %v337_v14  ;;  %v3033_v14 = vadd.f32 -1.0, %v378_v49  ;;  %v3873_v19 = vmul.f32 1e+30, %v3048_v51  ;;  %v387_v49 = vcvt.s32.f32 %v355_v24 }
  0x6c   : > { %v363_v51 = vunpack.c.1.s8 %v3820_v62  ;;  %v3037_v53 = vadd.f32 -1.0, %v382_v33  ;;  %5747 = vst [vmem:[#allocation18_spill] sm:$0xff] %v3923_v7  ;;  %v398_v33 = vcvt.s32.f32 %v366_v43 }
  0x6d   : > { %1539 = vperm.xlu1 %3284, %v519_v16   ;;  %v389_v16 = vcvt.s32.f32 %v357_v61  ;;  %v3024_v54 = vadd.f32 -1.0, %v369_v36  ;;  %v3027_v61 = vadd.f32 -1.0, %v372_v41  ;;  %v3895_v36 = vmul.f32 1e+30, %v3030_v11 }
  0x6e   : > { %v3898_v41 = vmul.f32 1e+30, %v3033_v14  ;;  %v395_v24 = vcvt.s32.f32 %v363_v51  ;;  %v3934_v29 = vmul.f32 1e+30, %v3037_v53  ;;  %v3046_v53 = vadd.f32 -1.0, %v391_v57 }
  0x6f   : > { %v3044_v37 = vadd.f32 -1.0, %v389_v16  ;;  %v354_v16 = vunpack.c.1.s8 %v3800_v39  ;;  %v3879_v28 = vmul.f32 1e+30, %v3024_v54  ;;  %v3884_v25 = vmul.f32 1e+30, %v3027_v61  ;;  %5743 = vst [vmem:[#allocation14_spill] sm:$0xff] %v3895_v36 }
  0x70   : > { %v3910_v39 = vmul.f32 1e+30, %v3034_v32  ;;  %v367_v54 = vunpack.c.3.s8 %v3820_v62  ;;  %v3050_v34 = vadd.f32 -1.0, %v395_v24 }
  0x71   : > { %1547 = vperm.xlu1 %3284, %v521_v18   ;;  %v3864_v55 = vmul.f32 1e+30, %v3044_v37  ;;  %5738 = vst [vmem:[#allocation9_spill] sm:$0xff] %v3879_v28  ;;  %5739 = vst [vmem:[#allocation10_spill] sm:$0xff] %v3884_v25  ;;  %v383_v37 = vcvt.s32.f32 %v351_v12  ;;  %v386_v42 = vcvt.s32.f32 %v354_v16  ;;  %v394_v12 = vcvt.s32.f32 %v362_v45 }
  0x72   : > { %v3042_v16 = vadd.f32 -1.0, %v387_v49 }
  0x73   : > { %v3041_v11 = vadd.f32 -1.0, %v386_v42  ;;  %v3049_v43 = vadd.f32 -1.0, %v394_v12 }
  0x74   : > { %v3952_v56 = vmul.f32 1e+30, %v3042_v16 }
  0x75   : > { %3287 = vset.pattern.permute.xlu1 %v5624_v5  ;;  %v3947_v51 = vmul.f32 1e+30, %v3041_v11  ;;  %v3960_v11 = vld [vmem:[%s5622_s4 + $0x50] sm:$0xff]   ;;  %v3972_v16 = vmul.f32 1e+30, %v3049_v43 }
  0x76   : > { %5751 = vst [vmem:[#allocation22_spill] sm:$0xff] %v3960_v11  ;;  %3126 = vmatprep.subr.bf16.mxu0 %v3960_v11 }
  0xaf   : > { %v3840_v17 = vpop.permute.xlu0 %1491  ;;  %v3842_v18 = vpop.permute.xlu1 %582 }
  0xb0   : > { %v673_v46 = vadd.f32 %v3822_v63, %v3842_v18  ;;  %v674_v48 = vadd.f32 %v3824_v0, %v3842_v18  ;;  %v3038_v18 = vadd.f32 -1.0, %v383_v37  ;;  %v1570_v8 = vadd.f32 %v3814_v58, %v3840_v17 }
  0xb1   : > { %v3930_v32 = vadd.f32 %v3816_v59, %v3840_v17  ;;  %v399_v37 = vcvt.s32.f32 %v367_v54  ;;  %v3045_v17 = vadd.f32 -1.0, %v390_v1 }
  0xb2   : > { %v705_v62 = vmul.f32 0.2, %v673_v46  ;;  %v706_v14 = vmul.f32 0.2, %v674_v48  ;;  %v3945_v45 = vmul.f32 1e+30, %v3038_v18 }
  0xb3   : > { %v3853_v40 = vpop.permute.xlu0 %1503  ;;  %v3858_v44 = vpop.permute.xlu1 %587  ;;  %v1602_v49 = vmul.f32 0.2, %v1570_v8  ;;  %v3053_v18 = vadd.f32 -1.0, %v398_v33  ;;  %v3054_v1 = vadd.f32 -1.0, %v399_v37  ;;  %v3966_v12 = vmul.f32 1e+30, %v3045_v17 }
  0xb4   : > { %v675_v42 = vadd.f32 %v3822_v63, %v3858_v44  ;;  %v676_v21 = vadd.f32 %v3824_v0, %v3858_v44  ;;  %v737_v5 = vmax.f32 %v673_v46, %v705_v62  ;;  %v738_v4 = vmax.f32 %v674_v48, %v706_v14 }
  0xb5   : > { %v3964_v57 = vadd.f32 %v3814_v58, %v3853_v40  ;;  %v3970_v14 = vmul.f32 1e+30, %v3046_v53  ;;  %v1634_v24 = vmax.f32 %v1570_v8, %v1602_v49  ;;  %v3983_v17 = vmul.f32 1e+30, %v3050_v34  ;;  %v3993_v8 = vld [vmem:[%s5622_s4 + $0x10] sm:$0xff]  }
  0xb6   : > { %v707_v46 = vmul.f32 0.2, %v675_v42  ;;  %v708_v48 = vmul.f32 0.2, %v676_v21  ;;  %v3978_v37 = vadd.f32 %v737_v5, %v3884_v25  ;;  %v3981_v38 = vadd.f32 %v738_v4, %v3886_v31  ;;  %5757 = vst [vmem:[#allocation28_spill] sm:$0xff] %v3993_v8  ;;  %3127 = vmatpush3.bf16.msra.mxu0 %v3993_v8 }
  0xb7   : > { %v3866_v60 = vpop.permute.xlu0 %1511  ;;  %v3875_v26 = vpop.permute.xlu1 %597  ;;  %5752 = vst [vmem:[#allocation23_spill] sm:$0xff] %v3964_v57  ;;  %v3986_v53 = vmul.f32 1e+30, %v3053_v18  ;;  %v3988_v43 = vmul.f32 1e+30, %v3054_v1  ;;  %v3997_v5 = vadd.f32 %v3816_v59, %v3853_v40  ;;  %v4010_v40 = vadd.f32 %v1634_v24, %v3826_v3 }
  0xb8   : > { %v679_v62 = vadd.f32 %v3822_v63, %v3875_v26  ;;  %v680_v33 = vadd.f32 %v3824_v0, %v3875_v26  ;;  %5753 = vst [vmem:[#allocation24_spill] sm:$0xff] %v3978_v37  ;;  %5754 = vst [vmem:[#allocation25_spill] sm:$0xff] %v3981_v38  ;;  %v4000_v4 = vmul.f32 0.2, %v3964_v57  ;;  %v739_v49 = vmax.f32 %v675_v42, %v707_v46 }
  0xb9   : > { %5755 = vst [vmem:[#allocation26_spill] sm:$0xff] %v3986_v53  ;;  %5756 = vst [vmem:[#allocation27_spill] sm:$0xff] %v3988_v43  ;;  %v4015_v31 = vadd.f32 %v3814_v58, %v3866_v60  ;;  %v4019_v42 = vadd.f32 %v3816_v59, %v3866_v60  ;;  %v803_v46 = vmax.f32 %v3978_v37, %v3981_v38 }
  0xba   : > { %5758 = vst [vmem:[#allocation29_spill] sm:$0xff] %v4000_v4  ;;  %v711_v18 = vmul.f32 0.2, %v679_v62  ;;  %5760 = vst [vmem:[#allocation31_spill] sm:$0xff] %v4010_v40  ;;  %v4032_v60 = vadd.f32 %v739_v49, %v3893_v35 }
  0xbb   : > { %v3882_v30 = vpop.permute.xlu0 %1519  ;;  %v3919_v61 = vpop.permute.xlu1 %607 }
  0xbc   : > { %v684_v25 = vadd.f32 %v3824_v0, %v3919_v61  ;;  %5762 = vst [vmem:[#allocation33_spill] sm:$0xff] %v4032_v60  ;;  %v743_v53 = vmax.f32 %v679_v62, %v711_v18 }
  0xbf   : > { %v3908_v52 = vpop.permute.xlu0 %1527  ;;  %v3950_v54 = vpop.permute.xlu1 %617 }
  0xc0   : > { %5744 = vst [vmem:[#allocation15_spill] sm:$0xff] %v3908_v52  ;;  %v687_v37 = vadd.f32 %v3822_v63, %v3950_v54  ;;  %v688_v38 = vadd.f32 %v3824_v0, %v3950_v54  ;;  %v4060_v54 = vadd.f32 %v743_v53, %v3898_v41 }
  0xc2   : > { %v719_v18 = vmul.f32 0.2, %v687_v37  ;;  %5765 = vst [vmem:[#allocation36_spill] sm:$0xff] %v4060_v54 }
  0xc3   : > { %v3932_v20 = vpop.permute.xlu0 %1535  ;;  %v628_v26 = vpop.permute.xlu1 %627 }
  0xc4   : > { %5748 = vst [vmem:[#allocation19_spill] sm:$0xff] %v3932_v20  ;;  %v1603_v20 = vmul.f32 0.2, %v3930_v32 }
  0xc6   : > { %v1635_v52 = vmax.f32 %v3930_v32, %v1603_v20  ;;  %v740_v32 = vmax.f32 %v676_v21, %v708_v48  ;;  %v4005_v20 = vld [vmem:[%s5622_s4 + $0x58] sm:$0xff]   ;;  %v712_v21 = vmul.f32 0.2, %v680_v33  ;;  %v683_v48 = vadd.f32 %v3822_v63, %v3919_v61 }
  0xc7   : > { %v3955_v44 = vpop.permute.xlu0 %1543  ;;  %5759 = vst [vmem:[#allocation30_spill] sm:$0xff] %v4005_v20  ;;  %3128 = vmatprep.subr.bf16.mxu0 %v4005_v20  ;;  %v4045_v61 = vadd.f32 %v3814_v58, %v3882_v30  ;;  %v638_v49 = vpop.permute.xlu1 %637 }
  0xc8   : > { %5750 = vst [vmem:[#allocation21_spill] sm:$0xff] %v3955_v44  ;;  %v4027_v8 = vadd.f32 %v1635_v52, %v3828_v6  ;;  %v4035_v43 = vadd.f32 %v740_v32, %v3895_v36  ;;  %v744_v32 = vmax.f32 %v680_v33, %v712_v21  ;;  %v715_v36 = vmul.f32 0.2, %v683_v48 }
  0xca   : > { %5761 = vst [vmem:[#allocation32_spill] sm:$0xff] %v4027_v8  ;;  %5763 = vst [vmem:[#allocation34_spill] sm:$0xff] %v4035_v43  ;;  %v716_v8 = vmul.f32 0.2, %v684_v25  ;;  %v806_v62 = vmax.f32 %v4032_v60, %v4035_v43  ;;  %v747_v43 = vmax.f32 %v683_v48, %v715_v36  ;;  %v4068_v60 = vadd.f32 %v3822_v63, %v628_v26 }
  0xcb   : > { %v751_v48 = vmax.f32 %v687_v37, %v719_v18 }
  0xcc   : > { %v573_v34 = vpop.permute.xlu0 %572 }
  0xcd   : > { %v669_v1 = vadd.f32 %v3822_v63, %v573_v34  ;;  %v670_v11 = vadd.f32 %v3824_v0, %v573_v34 }
  0xcf   : > { %v701_v24 = vmul.f32 0.2, %v669_v1  ;;  %v702_v34 = vmul.f32 0.2, %v670_v11 }
  0xd0   : > { %v578_v44 = vpop.permute.xlu0 %577 }
  0xd1   : > { %v671_v20 = vadd.f32 %v3822_v63, %v578_v44  ;;  %v672_v52 = vadd.f32 %v3824_v0, %v578_v44  ;;  %v733_v35 = vmax.f32 %v669_v1, %v701_v24  ;;  %v734_v40 = vmax.f32 %v670_v11, %v702_v34 }
  0xd2   : > { %v4065_v24 = vadd.f32 %v744_v32, %v3910_v39 }
  0xd3   : > { %v703_v4 = vmul.f32 0.2, %v671_v20  ;;  %v704_v57 = vmul.f32 0.2, %v672_v52  ;;  %v4050_v2 = vadd.f32 %v733_v35, %v3877_v27  ;;  %v4053_v44 = vadd.f32 %v734_v40, %v3879_v28  ;;  %v4070_v27 = vpop.permute.xlu1 %647 }
  0xd4   : > { %v593_v7 = vpop.permute.xlu0 %592  ;;  %5766 = vst [vmem:[#allocation37_spill] sm:$0xff] %v4065_v24  ;;  %v720_v40 = vmul.f32 0.2, %v688_v38 }
  0xd5   : > { %5764 = vst [vmem:[#allocation35_spill] sm:$0xff] %v4053_v44  ;;  %v677_v11 = vadd.f32 %v3822_v63, %v593_v7  ;;  %v678_v33 = vadd.f32 %v3824_v0, %v593_v7  ;;  %v797_v1 = vmax.f32 %v4050_v2, %v4053_v44  ;;  %v735_v21 = vmax.f32 %v671_v20, %v703_v4 }
  0xd6   : > { %v736_v35 = vmax.f32 %v672_v52, %v704_v57  ;;  %v748_v57 = vmax.f32 %v684_v25, %v716_v8  ;;  %v4079_v20 = vadd.f32 %v3824_v0, %v628_v26  ;;  %v4088_v25 = vadd.f32 %v747_v43, %v3934_v29 }
  0xd7   : > { %v709_v34 = vmul.f32 0.2, %v677_v11  ;;  %v710_v28 = vmul.f32 0.2, %v678_v33  ;;  %798 = vmax.xlane.f32.xlu0 %v797_v1  ;;  %v4073_v53 = vadd.f32 %v735_v21, %v3826_v3  ;;  %v812_v3 = vmax.f32 %v4060_v54, %v4065_v24 }
  0xd8   : > { %v603_v7 = vpop.permute.xlu0 %602  ;;  %v4076_v4 = vadd.f32 %v736_v35, %v3828_v6  ;;  %5768 = vst [vmem:[#allocation39_spill] sm:$0xff] %v4088_v25  ;;  %v752_v8 = vmax.f32 %v688_v38, %v720_v40  ;;  %v723_v26 = vmul.f32 0.2, %v4068_v60  ;;  %v1488_v40 = vpop.permute.xlu1 %1487 }
  0xd9   : > { %v681_v52 = vadd.f32 %v3822_v63, %v603_v7  ;;  %v682_v36 = vadd.f32 %v3824_v0, %v603_v7  ;;  %v741_v1 = vmax.f32 %v677_v11, %v709_v34  ;;  %v742_v44 = vmax.f32 %v678_v33, %v710_v28 }
  0xda   : > { %5767 = vst [vmem:[#allocation38_spill] sm:$0xff] %v4076_v4  ;;  %v800_v32 = vmax.f32 %v4073_v53, %v4076_v4  ;;  %v4098_v28 = vadd.f32 %v748_v57, %v3945_v45  ;;  %v724_v11 = vmul.f32 0.2, %v4079_v20  ;;  %v4104_v33 = vadd.f32 %v751_v48, %v3947_v51 }
  0xdb   : > { %v713_v21 = vmul.f32 0.2, %v681_v52  ;;  %v714_v6 = vmul.f32 0.2, %v682_v36  ;;  %804 = vmax.xlane.f32.xlu0 %v803_v46  ;;  %v4092_v37 = vadd.f32 %v741_v1, %v3831_v9  ;;  %v4095_v18 = vadd.f32 %v742_v44, %v3833_v10 }
  0xdc   : > { %801 = vmax.xlane.f32.xlu1 %v800_v32  ;;  %v613_v35 = vpop.permute.xlu0 %612  ;;  %5771 = vst [vmem:[#allocation42_spill] sm:$0xff] %v4098_v28  ;;  %5772 = vst [vmem:[#allocation43_spill] sm:$0xff] %v4104_v33  ;;  %v4107_v46 = vadd.f32 %v3822_v63, %v638_v49  ;;  %v4112_v57 = vadd.f32 %v3824_v0, %v638_v49  ;;  %v4115_v24 = vadd.f32 %v752_v8, %v3952_v56 }
  0xdd   : > { %5769 = vst [vmem:[#allocation40_spill] sm:$0xff] %v4092_v37  ;;  %5770 = vst [vmem:[#allocation41_spill] sm:$0xff] %v4095_v18  ;;  %v685_v43 = vadd.f32 %v3822_v63, %v613_v35  ;;  %v686_v38 = vadd.f32 %v3824_v0, %v613_v35  ;;  %v809_v44 = vmax.f32 %v4092_v37, %v4095_v18  ;;  %v4118_v48 = vmul.f32 0.2, %v3997_v5 }
  0xde   : > { %v745_v34 = vmax.f32 %v681_v52, %v713_v21  ;;  %v746_v7 = vmax.f32 %v682_v36, %v714_v6  ;;  %5773 = vst [vmem:[#allocation44_spill] sm:$0xff] %v4115_v24  ;;  %v755_v49 = vmax.f32 %v4068_v60, %v723_v26  ;;  %v818_v6 = vmax.f32 %v4088_v25, %v4098_v28  ;;  %v1496_v28 = vpop.permute.xlu1 %1495 }
  0xdf   : > { %v717_v32 = vmul.f32 0.2, %v685_v43  ;;  %v718_v1 = vmul.f32 0.2, %v686_v38  ;;  %807 = vmax.xlane.f32.xlu0 %v806_v62  ;;  %v756_v8 = vmax.f32 %v4079_v20, %v724_v11  ;;  %v727_v62 = vmul.f32 0.2, %v4107_v46 }
  0xe0   : > { %810 = vmax.xlane.f32.xlu1 %v809_v44  ;;  %v623_v35 = vpop.permute.xlu0 %622  ;;  %v4121_v54 = vadd.f32 %v745_v34, %v3838_v15  ;;  %v4124_v52 = vadd.f32 %v746_v7, %v3846_v23  ;;  %v728_v7 = vmul.f32 0.2, %v4112_v57  ;;  %v824_v26 = vmax.f32 %v4104_v33, %v4115_v24 }
  0xe1   : > { %v689_v36 = vadd.f32 %v3822_v63, %v623_v35  ;;  %v690_v21 = vadd.f32 %v3824_v0, %v623_v35  ;;  %v749_v34 = vmax.f32 %v685_v43, %v717_v32  ;;  %v750_v18 = vmax.f32 %v686_v38, %v718_v1 }
  0xe2   : > { %5774 = vst [vmem:[#allocation45_spill] sm:$0xff] %v4121_v54  ;;  %5775 = vst [vmem:[#allocation46_spill] sm:$0xff] %v4124_v52  ;;  %v815_v44 = vmax.f32 %v4121_v54, %v4124_v52  ;;  %v4139_v35 = vmul.f32 0.2, %v4015_v31  ;;  %v4148_v38 = vadd.f32 %v755_v49, %v3966_v12  ;;  %v4152_v32 = vadd.f32 %v3822_v63, %v4070_v27 }
  0xe3   : > { %v721_v37 = vmul.f32 0.2, %v689_v36  ;;  %v722_v60 = vmul.f32 0.2, %v690_v21  ;;  %813 = vmax.xlane.f32.xlu0 %v812_v3  ;;  %v4142_v11 = vadd.f32 %v749_v34, %v3856_v22  ;;  %v4145_v43 = vadd.f32 %v750_v18, %v3860_v47 }
  0xe4   : > { %816 = vmax.xlane.f32.xlu1 %v815_v44  ;;  %v633_v20 = vpop.permute.xlu0 %632  ;;  %5778 = vst [vmem:[#allocation49_spill] sm:$0xff] %v4148_v38  ;;  %v4157_v3 = vadd.f32 %v756_v8, %v3970_v14  ;;  %v4161_v44 = vadd.f32 %v3824_v0, %v4070_v27  ;;  %v759_v52 = vmax.f32 %v4107_v46, %v727_v62 }
  0xe5   : > { %5776 = vst [vmem:[#allocation47_spill] sm:$0xff] %v4142_v11  ;;  %5777 = vst [vmem:[#allocation48_spill] sm:$0xff] %v4145_v43  ;;  %v693_v1 = vadd.f32 %v3822_v63, %v633_v20  ;;  %v694_v24 = vadd.f32 %v3824_v0, %v633_v20  ;;  %v821_v18 = vmax.f32 %v4142_v11, %v4145_v43  ;;  %v4168_v20 = vmul.f32 0.2, %v4019_v42 }
  0xe6   : > { %5779 = vst [vmem:[#allocation50_spill] sm:$0xff] %v4157_v3  ;;  %v753_v49 = vmax.f32 %v689_v36, %v721_v37  ;;  %v754_v34 = vmax.f32 %v690_v21, %v722_v60  ;;  %v760_v54 = vmax.f32 %v4112_v57, %v728_v7  ;;  %v4171_v8 = vadd.f32 %v3814_v58, %v1488_v40  ;;  %v1500_v7 = vpop.permute.xlu1 %1499 }
  0xe7   : > { %v725_v33 = vmul.f32 0.2, %v693_v1  ;;  %v726_v25 = vmul.f32 0.2, %v694_v24  ;;  %819 = vmax.xlane.f32.xlu0 %v818_v6  ;;  %v731_v36 = vmul.f32 0.2, %v4152_v32  ;;  %v4181_v46 = vadd.f32 %v3816_v59, %v1488_v40 }
  0xe8   : > { %822 = vmax.xlane.f32.xlu1 %v821_v18  ;;  %v643_v27 = vpop.permute.xlu0 %642  ;;  %v4174_v4 = vadd.f32 %v753_v49, %v3862_v50  ;;  %v4177_v37 = vadd.f32 %v754_v34, %v3864_v55  ;;  %v732_v62 = vmul.f32 0.2, %v4161_v44  ;;  %v830_v43 = vmax.f32 %v4148_v38, %v4157_v3 }
  0xe9   : > { %v697_v57 = vadd.f32 %v3822_v63, %v643_v27  ;;  %v698_v21 = vadd.f32 %v3824_v0, %v643_v27  ;;  %v757_v60 = vmax.f32 %v693_v1, %v725_v33  ;;  %v758_v18 = vmax.f32 %v694_v24, %v726_v25  ;;  %v4206_v25 = vld [vmem:[%s5622_s4 + $0x18] sm:$0xff]  }
  0xea   : > { %5780 = vst [vmem:[#allocation51_spill] sm:$0xff] %v4174_v4  ;;  %5781 = vst [vmem:[#allocation52_spill] sm:$0xff] %v4177_v37  ;;  %v827_v6 = vmax.f32 %v4174_v4, %v4177_v37  ;;  %v4191_v40 = vadd.f32 %v759_v52, %v3972_v16  ;;  %v1600_v63 = vmul.f32 0.2, %v4171_v8  ;;  %v4201_v24 = vadd.f32 %v760_v54, %v3983_v17  ;;  %v5792_v4 = vld [vmem:[#allocation26_spill] sm:$0xff] }
  0xeb   : > { %v729_v49 = vmul.f32 0.2, %v697_v57  ;;  %v730_v34 = vmul.f32 0.2, %v698_v21  ;;  %825 = vmax.xlane.f32.xlu0 %v824_v26  ;;  %v4195_v0 = vadd.f32 %v757_v60, %v3870_v13  ;;  %v4198_v27 = vadd.f32 %v758_v18, %v3873_v19  ;;  %3129 = vmatpush3.bf16.msra.mxu0 %v4206_v25 }
  0xec   : > { %5782 = vst [vmem:[#allocation53_spill] sm:$0xff] %v4191_v40  ;;  %828 = vmax.xlane.f32.xlu1 %v827_v6  ;;  %5785 = vst [vmem:[#allocation56_spill] sm:$0xff] %v4201_v24  ;;  %v1601_v33 = vmul.f32 0.2, %v4181_v46  ;;  %v763_v26 = vmax.f32 %v4152_v32, %v731_v36  ;;  %v4213_v6 = vld [vmem:[%s5622_s4 + $0x60] sm:$0xff]   ;;  %v1572_v60 = vadd.f32 %v3814_v58, %v1496_v28  ;;  %v5788_v32 = vld [vmem:[#allocation18_spill] sm:$0xff] }
  0xed   : > { %5783 = vst [vmem:[#allocation54_spill] sm:$0xff] %v4195_v0  ;;  %5784 = vst [vmem:[#allocation55_spill] sm:$0xff] %v4198_v27  ;;  %v761_v52 = vmax.f32 %v697_v57, %v729_v49  ;;  %v762_v1 = vmax.f32 %v698_v21, %v730_v34  ;;  %v1573_v54 = vadd.f32 %v3816_v59, %v1496_v28  ;;  %v5786_v57 = vld [vmem:[#allocation17_spill] sm:$0xff]  ;;  %v5790_v49 = vld [vmem:[#allocation32_spill] sm:$0xff]  ;;  %3130 = vmatprep.subr.bf16.mxu0 %v4213_v6 }
  0xee   : > { %v833_v18 = vmax.f32 %v4195_v0, %v4198_v27  ;;  %v764_v3 = vmax.f32 %v4161_v44, %v732_v62  ;;  %v5791_v34 = vld [vmem:[#allocation31_spill] sm:$0xff]  ;;  %v1641_v11 = vmax.f32 %v3997_v5, %v4118_v48  ;;  %v1585_v28 = vadd.f32 %v3816_v59, %v3882_v30  ;;  %v1508_v62 = vpop.permute.xlu1 %1507 }
  0xef   : > { %v4222_v21 = vadd.f32 %v761_v52, %v5786_v57  ;;  %v4225_v36 = vadd.f32 %v762_v1, %v5788_v32  ;;  %v1699_v38 = vmax.f32 %v5791_v34, %v5790_v49  ;;  %v1616_v44 = vmul.f32 0.2, %v4045_v61  ;;  %831 = vmax.xlane.f32.xlu0 %v830_v43  ;;  %v5794_v43 = vld [vmem:[#allocation27_spill] sm:$0xff] }
  0xf0   : > { %834 = vmax.xlane.f32.xlu1 %v833_v18  ;;  %v836_v52 = vmax.f32 %v4191_v40, %v4201_v24  ;;  %v1632_v1 = vmax.f32 %v4171_v8, %v1600_v63  ;;  %v1574_v27 = vadd.f32 %v3814_v58, %v1500_v7  ;;  %v1575_v0 = vadd.f32 %v3816_v59, %v1500_v7  ;;  %v5796_v24 = vld [vmem:[#allocation23_spill] sm:$0xff]  ;;  %v5797_v8 = vld [vmem:[#allocation29_spill] sm:$0xff] }
  0xf1   : > { %5787 = vst [vmem:[#allocation17_spill] sm:$0xff] %v4222_v21  ;;  %5789 = vst [vmem:[#allocation18_spill] sm:$0xff] %v4225_v36  ;;  %v839_v5 = vmax.f32 %v4222_v21, %v4225_v36  ;;  %v1633_v48 = vmax.f32 %v4181_v46, %v1601_v33  ;;  %v1604_v30 = vmul.f32 0.2, %v1572_v60  ;;  %v1605_v37 = vmul.f32 0.2, %v1573_v54 }
  0xf2   : > { %v4244_v49 = vadd.f32 %v763_v26, %v5792_v4  ;;  %v4247_v18 = vadd.f32 %v764_v3, %v5794_v43  ;;  %v5798_v63 = vmax.f32 %v5796_v24, %v5797_v8  ;;  %v4256_v7 = vadd.f32 %v1641_v11, %v3833_v10  ;;  %v5799_v36 = vld [vmem:[#allocation21_spill] sm:$0xff] }
  0xf3   : > { %v1644_v46 = vmax.f32 %v4015_v31, %v4139_v35  ;;  %v1645_v33 = vmax.f32 %v4019_v42, %v4168_v20  ;;  %v1617_v26 = vmul.f32 0.2, %v1585_v28  ;;  %v1596_v3 = vadd.f32 %v3814_v58, %v5799_v36  ;;  %837 = vmax.xlane.f32.xlu0 %v836_v52  ;;  %v5801_v31 = vld [vmem:[#allocation9_spill] sm:$0xff]  ;;  %v1516_v20 = vpop.permute.xlu1 %1515 }
  0xf4   : > { %5793 = vst [vmem:[#allocation26_spill] sm:$0xff] %v4244_v49  ;;  %5795 = vst [vmem:[#allocation27_spill] sm:$0xff] %v4247_v18  ;;  %v4253_v40 = vadd.f32 %v5798_v63, %v3831_v9  ;;  %v1597_v21 = vadd.f32 %v3816_v59, %v5799_v36  ;;  %840 = vmax.xlane.f32.xlu1 %v839_v5  ;;  %v5800_v9 = vld [vmem:[#allocation8_spill] sm:$0xff]  ;;  %v1606_v10 = vmul.f32 0.2, %v1574_v27 }
  0xf5   : > { %v4267_v24 = vadd.f32 %v1632_v1, %v5800_v9  ;;  %v1607_v11 = vmul.f32 0.2, %v1575_v0  ;;  %v1578_v8 = vadd.f32 %v3814_v58, %v1508_v62  ;;  %v4271_v35 = vadd.f32 %v1633_v48, %v5801_v31 }
  0xf6   : > { %v1579_v42 = vadd.f32 %v3816_v59, %v1508_v62  ;;  %v842_v63 = vmax.f32 %v4244_v49, %v4247_v18  ;;  %v1636_v34 = vmax.f32 %v1572_v60, %v1604_v30  ;;  %v1637_v36 = vmax.f32 %v1573_v54, %v1605_v37 }
  0xf7   : > { %v1708_v52 = vmax.f32 %v4253_v40, %v4256_v7  ;;  %v4279_v1 = vadd.f32 %v1644_v46, %v3838_v15  ;;  %v4282_v5 = vadd.f32 %v1645_v33, %v3846_v23  ;;  %v1648_v48 = vmax.f32 %v4045_v61, %v1616_v44  ;;  %v5802_v23 = vld [vmem:[#allocation10_spill] sm:$0xff]  ;;  %v5803_v61 = vld [vmem:[#allocation11_spill] sm:$0xff] }
  0xf8   : > { %v1628_v9 = vmul.f32 0.2, %v1596_v3  ;;  %v1629_v31 = vmul.f32 0.2, %v1597_v21  ;;  %v1582_v62 = vadd.f32 %v3814_v58, %v1516_v20  ;;  %1700 = vmax.xlane.f32.xlu1 %v1699_v38  ;;  %843 = vmax.xlane.f32.xlu0 %v842_v63  ;;  %v1649_v18 = vmax.f32 %v1585_v28, %v1617_v26  ;;  %v1524_v63 = vpop.permute.xlu1 %1523 }
  0xf9   : > { %v1610_v60 = vmul.f32 0.2, %v1578_v8  ;;  %v1696_v37 = vmax.f32 %v4267_v24, %v4271_v35  ;;  %v1638_v54 = vmax.f32 %v1574_v27, %v1606_v10  ;;  %v1639_v30 = vmax.f32 %v1575_v0, %v1607_v11 }
  0xfa   : > { %v1611_v15 = vmul.f32 0.2, %v1579_v42  ;;  %v1583_v46 = vadd.f32 %v3816_v59, %v1516_v20  ;;  %v4290_v33 = vadd.f32 %v1636_v34, %v5802_v23  ;;  %v4293_v44 = vadd.f32 %v1637_v36, %v5803_v61  ;;  %v5804_v20 = vld [vmem:[#allocation13_spill] sm:$0xff]  ;;  %v5805_v23 = vld [vmem:[#allocation14_spill] sm:$0xff] }
  0xfb   : > { %v1714_v38 = vmax.f32 %v4279_v1, %v4282_v5  ;;  %v4298_v28 = vadd.f32 %v1648_v48, %v3856_v22  ;;  %v1614_v26 = vmul.f32 0.2, %v1582_v62  ;;  %v4301_v0 = vadd.f32 %v1649_v18, %v3860_v47  ;;  %v5806_v47 = vld [vmem:[#allocation15_spill] sm:$0xff] }
  0xfc   : > { %1709 = vmax.xlane.f32.xlu1 %v1708_v52  ;;  %1697 = vmax.xlane.f32.xlu0 %v1696_v37  ;;  %v1660_v27 = vmax.f32 %v1596_v3, %v1628_v9  ;;  %v1661_v10 = vmax.f32 %v1597_v21, %v1629_v31  ;;  %v1586_v34 = vadd.f32 %v3814_v58, %v1524_v63  ;;  %v1615_v22 = vmul.f32 0.2, %v1583_v46 }
  0xfd   : > { %v1587_v11 = vadd.f32 %v3816_v59, %v1524_v63  ;;  %v4306_v36 = vadd.f32 %v1638_v54, %v5804_v20  ;;  %v4309_v61 = vadd.f32 %v1639_v30, %v5805_v23  ;;  %v1702_v52 = vmax.f32 %v4290_v33, %v4293_v44 }
  0xfe   : > { %v1642_v48 = vmax.f32 %v1578_v8, %v1610_v60  ;;  %v1643_v37 = vmax.f32 %v1579_v42, %v1611_v15  ;;  %v1588_v18 = vadd.f32 %v3814_v58, %v5806_v47  ;;  %v1589_v21 = vadd.f32 %v3816_v59, %v5806_v47  ;;  %v1532_v60 = vpop.permute.xlu1 %1531 }
  0xff   : > { %v1720_v3 = vmax.f32 %v4298_v28, %v4301_v0  ;;  %v4320_v9 = vadd.f32 %v1660_v27, %v5786_v57  ;;  %v1618_v31 = vmul.f32 0.2, %v1586_v34  ;;  %v1619_v54 = vmul.f32 0.2, %v1587_v11 }
 0x100   : > { %1715 = vmax.xlane.f32.xlu1 %v1714_v38  ;;  %1703 = vmax.xlane.f32.xlu0 %v1702_v52  ;;  %v1705_v8 = vmax.f32 %v4306_v36, %v4309_v61  ;;  %v4325_v42 = vadd.f32 %v1661_v10, %v5788_v32  ;;  %v4328_v30 = vadd.f32 %v1642_v48, %v3898_v41  ;;  %v1620_v20 = vmul.f32 0.2, %v1588_v18 }
 0x101   : > { %5807 = vst [vmem:[#allocation23_spill] sm:$0xff] %v4320_v9  ;;  %v4331_v15 = vadd.f32 %v1643_v37, %v3910_v39  ;;  %v1646_v38 = vmax.f32 %v1582_v62, %v1614_v26  ;;  %v1647_v63 = vmax.f32 %v1583_v46, %v1615_v22  ;;  %v1621_v57 = vmul.f32 0.2, %v1589_v21  ;;  %v5809_v26 = vld [vmem:[#allocation19_spill] sm:$0xff] }
 0x102   : > { %5808 = vst [vmem:[#allocation29_spill] sm:$0xff] %v4325_v42  ;;  %v1590_v27 = vadd.f32 %v3814_v58, %v1532_v60  ;;  %v1591_v23 = vadd.f32 %v3816_v59, %v1532_v60  ;;  %v1738_v32 = vmax.f32 %v4320_v9, %v4325_v42  ;;  %v1650_v10 = vmax.f32 %v1586_v34, %v1618_v31  ;;  %v1540_v52 = vpop.permute.xlu1 %1539  ;;  %v4572_v9 = vld [vmem:[#allocation2 + $0x40] sm:$0xff] }
 0x103   : > { %v1711_v41 = vmax.f32 %v4328_v30, %v4331_v15  ;;  %v4340_v39 = vadd.f32 %v1646_v38, %v3934_v29  ;;  %v4343_v62 = vadd.f32 %v1647_v63, %v3945_v45  ;;  %v1651_v46 = vmax.f32 %v1587_v11, %v1619_v54  ;;  %5835 = vst [vmem:[#allocation60_spill] sm:$0xff] %v4572_v9 }
 0x104   : > { %1721 = vmax.xlane.f32.xlu1 %v1720_v3  ;;  %1706 = vmax.xlane.f32.xlu0 %v1705_v8  ;;  %v1592_v22 = vadd.f32 %v3814_v58, %v5809_v26  ;;  %v1593_v48 = vadd.f32 %v3816_v59, %v5809_v26  ;;  %v1622_v34 = vmul.f32 0.2, %v1590_v27  ;;  %v1623_v37 = vmul.f32 0.2, %v1591_v23 }
 0x105   : > { %v1652_v47 = vmax.f32 %v1588_v18, %v1620_v20  ;;  %v1717_v29 = vmax.f32 %v4340_v39, %v4343_v62  ;;  %v4352_v3 = vadd.f32 %v1650_v10, %v3947_v51  ;;  %v4355_v45 = vadd.f32 %v1651_v46, %v3952_v56 }
 0x106   : > { %v1653_v11 = vmax.f32 %v1589_v21, %v1621_v57  ;;  %v1594_v31 = vadd.f32 %v3814_v58, %v1540_v52  ;;  %v1624_v54 = vmul.f32 0.2, %v1592_v22  ;;  %v1625_v8 = vmul.f32 0.2, %v1593_v48  ;;  %v1548_v18 = vpop.permute.xlu1 %1547 }
 0x107   : > { %5810 = vst [vmem:[#allocation21_spill] sm:$0xff] %v4355_v45  ;;  %v1595_v60 = vadd.f32 %v3816_v59, %v1540_v52  ;;  %v4360_v38 = vadd.f32 %v1652_v47, %v3862_v50  ;;  %v1723_v63 = vmax.f32 %v4352_v3, %v4355_v45  ;;  %v1654_v56 = vmax.f32 %v1590_v27, %v1622_v34 }
 0x108   : > { %1739 = vmax.xlane.f32.xlu1 %v1738_v32  ;;  %1712 = vmax.xlane.f32.xlu0 %v1711_v41  ;;  %v4365_v51 = vadd.f32 %v1653_v11, %v3864_v55  ;;  %v1655_v20 = vmax.f32 %v1591_v23, %v1623_v37  ;;  %v1626_v21 = vmul.f32 0.2, %v1594_v31  ;;  %v1598_v32 = vadd.f32 %v3814_v58, %v1548_v18  ;;  %v4413_v11 = vld [vmem:[%s5622_s4 + $0x68] sm:$0xff]  }
 0x109   : > { %v1627_v57 = vmul.f32 0.2, %v1595_v60  ;;  %v1599_v10 = vadd.f32 %v3816_v59, %v1548_v18  ;;  %v1656_v41 = vmax.f32 %v1592_v22, %v1624_v54  ;;  %v4372_v46 = vadd.f32 %v1654_v56, %v3966_v12  ;;  %v4439_v54 = vld [vmem:[%s5622_s4 + $0x78] sm:$0xff]   ;;  %v5818_v18 = vld [vmem:[#allocation12_spill] sm:$0xff] }
 0x10a   : > { %v1726_v50 = vmax.f32 %v4360_v38, %v4365_v51  ;;  %v4375_v26 = vadd.f32 %v1655_v20, %v3970_v14  ;;  %v1657_v55 = vmax.f32 %v1593_v48, %v1625_v8  ;;  %v1630_v27 = vmul.f32 0.2, %v1598_v32  ;;  %v5814_v14 = vld [vmem:[#allocation30_spill] sm:$0xff]  ;;  %v4446_v8 = vld [vmem:[%s5622_s4 + $0x38] sm:$0xff]   ;;  %v5820_v56 = vld [vmem:[#allocation20_spill] sm:$0xff] }
 0x10b   : > { %5811 = vst [vmem:[#allocation8_spill] sm:$0xff] %v4372_v46  ;;  %v1631_v23 = vmul.f32 0.2, %v1599_v10  ;;  %v1658_v52 = vmax.f32 %v1594_v31, %v1626_v21  ;;  %v4380_v59 = vadd.f32 %v1656_v41, %v3870_v13  ;;  %v1659_v34 = vmax.f32 %v1595_v60, %v1627_v57  ;;  %v4434_v31 = vld [vmem:[%s5622_s4 + $0x30] sm:$0xff]   ;;  %v3502_v60 = vld [vmem:[%s5622_s4 + $0x40] sm:$0xff]   ;;  %v4470_v41 = vld [vmem:[#allocation2 + $0x8] sm:$0xff] }
 0x10c   : > { %1718 = vmax.xlane.f32.xlu0 %v1717_v29  ;;  %5812 = vst [vmem:[#allocation9_spill] sm:$0xff] %v4375_v26  ;;  %v1729_v58 = vmax.f32 %v4372_v46, %v4375_v26  ;;  %v4383_v22 = vadd.f32 %v1657_v55, %v3873_v19  ;;  %v1662_v13 = vmax.f32 %v1598_v32, %v1630_v27  ;;  %v4400_v19 = vld [vmem:[%s5622_s4 + $0x20] sm:$0xff]   ;;  %v5821_v20 = vld [vmem:[#allocation22_spill] sm:$0xff]  ;;  %5824 = vst [vmem:[#allocation19_spill] sm:$0xff] %v4470_v41 }
 0x10d   : > { %v4386_v12 = vadd.f32 %v1658_v52, %v3972_v16  ;;  %v4393_v37 = vadd.f32 %v1659_v34, %v3983_v17  ;;  %v1663_v47 = vmax.f32 %v1599_v10, %v1631_v23  ;;  %3131 = vmatpush3.bf16.msra.mxu0 %v4400_v19  ;;  %v5822_v21 = vld [vmem:[#allocation28_spill] sm:$0xff]  ;;  %v4485_v34 = vld [vmem:[#allocation2 + $0x18] sm:$0xff] }
 0x10e   : > { %v1732_v48 = vmax.f32 %v4380_v59, %v4383_v22  ;;  %v4405_v29 = vadd.f32 %v1662_v13, %v5792_v4  ;;  %3132 = vmatprep.subr.bf16.mxu0 %v4413_v11  ;;  %v4465_v57 = vld [vmem:[#allocation2] sm:$0xff] }
 0x10f   : > { %5813 = vst [vmem:[#allocation10_spill] sm:$0xff] %v4386_v12  ;;  %5815 = vst [vmem:[#allocation11_spill] sm:$0xff] %v4393_v37  ;;  %v1735_v16 = vmax.f32 %v4386_v12, %v4393_v37  ;;  %v4408_v17 = vadd.f32 %v1663_v47, %v5794_v43  ;;  %v4427_v43 = vld [vmem:[%s5622_s4 + $0x70] sm:$0xff]  }
 0x110   : > { %1724 = vmax.xlane.f32.xlu0 %v1723_v63  ;;  %5816 = vst [vmem:[#allocation13_spill] sm:$0xff] %v4405_v29  ;;  %v5819_v63 = vld [vmem:[#allocation16_spill] sm:$0xff]  ;;  %5823 = vst [vmem:[#allocation15_spill] sm:$0xff] %v4465_v57 }
 0x111   : > { %5817 = vst [vmem:[#allocation14_spill] sm:$0xff] %v4408_v17  ;;  %v1741_v4 = vmax.f32 %v4405_v29, %v4408_v17  ;;  %5827 = vst [vmem:[#allocation16_spill] sm:$0xff] %v4485_v34 }
 0x114   : > { %1727 = vmax.xlane.f32.xlu0 %v1726_v50  ;;  %v4472_v50 = vld [vmem:[#allocation2 + $0x10] sm:$0xff] }
 0x115   : > { %5825 = vst [vmem:[#allocation30_spill] sm:$0xff] %v4472_v50 }
 0x118   : > { %1730 = vmax.xlane.f32.xlu0 %v1729_v58  ;;  %v4483_v58 = vld [vmem:[#allocation2 + $0x20] sm:$0xff] }
 0x119   : > { %2198 = vrot.lane.b32.xlu1 %v5814_v14, %s3614_s16  ;;  %5826 = vst [vmem:[#allocation12_spill] sm:$0xff] %v4483_v58 }
 0x11c   : > { %1733 = vmax.xlane.f32.xlu0 %v1732_v48 }
 0x11d   : > { %2200 = vrot.lane.b32.xlu1 %v4213_v6, %s3614_s16  ;;  %v4420_v6 = vld [vmem:[%s5622_s4 + $0x28] sm:$0xff]  }
 0x11e   : > { %3133 = vmatpush3.bf16.msra.mxu0 %v4420_v6 }
 0x11f   : > { %3134 = vmatprep.subr.bf16.mxu0 %v4427_v43 }
 0x120   : > { %1736 = vmax.xlane.f32.xlu0 %v1735_v16 }
 0x122   : > { %3135 = vmatpush3.bf16.msra.mxu0 %v4434_v31 }
 0x123   : > { %3136 = vmatprep.subr.bf16.mxu0 %v4439_v54 }
 0x124   : > { %1742 = vmax.xlane.f32.xlu0 %v1741_v4 }
 0x126   : > { %3137 = vmatpush3.bf16.msra.mxu0 %v4446_v8 }
 0x13a   : > { %2192 = vrot.lane.b32.xlu0 %v3502_v60, %s3614_s16  ;;  %v4499_v60 = vld [vmem:[#allocation2 + $0x30] sm:$0xff] }
 0x13e   : > { %2176 = vrot.lane.b32.xlu0 %v5818_v18, %s3614_s16  ;;  %v4501_v18 = vld [vmem:[#allocation2 + $0x28] sm:$0xff] }
 0x142   : > { %2194 = vrot.lane.b32.xlu0 %v5819_v63, %s3614_s16 }
 0x146   : > { %2178 = vrot.lane.b32.xlu0 %v5820_v56, %s3614_s16 }
 0x14a   : > { %2196 = vrot.lane.b32.xlu0 %v5821_v20, %s3614_s16 }
 0x14e   : > { %2180 = vrot.lane.b32.xlu0 %v5822_v21, %s3614_s16 }
 0x152   : > { %2182 = vrot.lane.b32.xlu0 %v4206_v25, %s3614_s16 }
 0x164   : > { %v799_v32 = vpop.xlane.xlu0 %798 }
 0x165   : > { %v4468_v10 = vmax.f32 %v4465_v57, %v799_v32 }
 0x167   : > { %911 = vperm.xlu1 %3287, %v4468_v10  }
 0x168   : > { %v805_v23 = vpop.xlane.xlu0 %804 }
 0x169   : > { %v802_v27 = vpop.xlane.xlu1 %801  ;;  %v4481_v25 = vmax.f32 %v4472_v50, %v805_v23 }
 0x16a   : > { %v4478_v52 = vmax.f32 %v4470_v41, %v802_v27 }
 0x16b   : > { %921 = vperm.xlu1 %3287, %v4481_v25  }
 0x16c   : > { %916 = vperm.xlu0 %3286, %v4478_v52   ;;  %v808_v47 = vpop.xlane.xlu0 %807 }
 0x16d   : > { %v811_v13 = vpop.xlane.xlu1 %810  ;;  %v4497_v4 = vmax.f32 %v4485_v34, %v808_v47  ;;  %v5829_v47 = vmov 1  }
 0x16e   : > { %v4494_v16 = vmax.f32 %v4483_v58, %v811_v13 }
 0x170   : > { %931 = vperm.xlu1 %3287, %v4494_v16   ;;  %926 = vperm.xlu0 %3286, %v4497_v4   ;;  %v814_v21 = vpop.xlane.xlu0 %813 }
 0x171   : > { %v817_v20 = vpop.xlane.xlu1 %816  ;;  %v4513_v27 = vmax.f32 %v4501_v18, %v814_v21 }
 0x172   : > { %v4510_v32 = vmax.f32 %v4499_v60, %v817_v20 }
 0x174   : > { %5828 = vst [vmem:[#allocation20_spill] sm:$0xff] %v4510_v32  ;;  %936 = vperm.xlu1 %3287, %v4513_v27   ;;  %3289 = vset.pattern.permute.xlu0 %v5829_v47  ;;  %v4521_v63 = vpop.xlane.xlu0 %819 }
 0x175   : > { %v823_v56 = vpop.xlane.xlu1 %822 }
 0x176   : > { %v4587_v45 = vmax.f32 %v4572_v9, %v823_v56 }
 0x178   : > { %941 = vperm.xlu1 %3287, %v4510_v32   ;;  %v4526_v48 = vpop.xlane.xlu0 %825 }
 0x179   : > { %v4524_v20 = vpop.xlane.xlu1 %828 }
 0x17c   : > { %3288 = vset.pattern.permute.xlu1 %v5829_v47  ;;  %v4531_v23 = vpop.xlane.xlu0 %831 }
 0x17d   : > { %v4529_v21 = vpop.xlane.xlu1 %834 }
 0x180   : > { %v4533_v55 = vpop.xlane.xlu0 %837 }
 0x181   : > { %v841_v13 = vpop.xlane.xlu1 %840 }
 0x185   : > { %v1701_v14 = vpop.xlane.xlu1 %1700  ;;  %v4535_v49 = vpop.xlane.xlu0 %843 }
 0x186   : > { %v4538_v17 = vmax.f32 %v4470_v41, %v1701_v14 }
 0x188   : > { %5830 = vst [vmem:[#allocation22_spill] sm:$0xff] %v4538_v17  ;;  %v2403_v47 = vsel %vm2401_vm2, %v4478_v52, %v4538_v17  ;;  %1815 = vperm.xlu0 %3289, %v4538_v17  }
 0x189   : > { %2420 = vst.msk [vmem:[#allocation2 + $0x8] sm:$0xff] %vm266_vm0, %v2403_v47  ;;  %v1710_v37 = vpop.xlane.xlu1 %1709  ;;  %v1698_v12 = vpop.xlane.xlu0 %1697 }
 0x18a   : > { %v4548_v26 = vmax.f32 %v4483_v58, %v1710_v37  ;;  %v4551_v46 = vmax.f32 %v4465_v57, %v1698_v12 }
 0x18c   : > { %5831 = vst [vmem:[#allocation28_spill] sm:$0xff] %v4548_v26  ;;  %5832 = vst [vmem:[#allocation57_spill] sm:$0xff] %v4551_v46  ;;  %v2406_v29 = vsel %vm2401_vm2, %v4494_v16, %v4548_v26  ;;  %1810 = vperm.xlu1 %3288, %v4551_v46   ;;  %v2402_v37 = vsel %vm2401_vm2, %v4468_v10, %v4551_v46 }
 0x18d   : > { %2423 = vst.msk [vmem:[#allocation2 + $0x20] sm:$0xff] %vm266_vm0, %v2406_v29  ;;  %v1716_v12 = vpop.xlane.xlu1 %1715  ;;  %v1704_v47 = vpop.xlane.xlu0 %1703  ;;  %2419 = vst.msk [vmem:[#allocation2] sm:$0xff] %vm266_vm0, %v2402_v37 }
 0x18e   : > { %v4567_v14 = vmax.f32 %v4499_v60, %v1716_v12  ;;  %v4570_v42 = vmax.f32 %v4472_v50, %v1704_v47 }
 0x190   : > { %5833 = vst [vmem:[#allocation58_spill] sm:$0xff] %v4567_v14  ;;  %5834 = vst [vmem:[#allocation59_spill] sm:$0xff] %v4570_v42  ;;  %v2408_v29 = vsel %vm2401_vm2, %v4510_v32, %v4567_v14  ;;  %1820 = vperm.xlu1 %3288, %v4570_v42   ;;  %v2404_v37 = vsel %vm2401_vm2, %v4481_v25, %v4570_v42  ;;  %v4596_v32 = vld [vmem:[#allocation2 + $0x70] sm:$0xff] }
 0x191   : > { %2425 = vst.msk [vmem:[#allocation2 + $0x30] sm:$0xff] %vm266_vm0, %v2408_v29  ;;  %v1722_v12 = vpop.xlane.xlu1 %1721  ;;  %v1707_v47 = vpop.xlane.xlu0 %1706  ;;  %2421 = vst.msk [vmem:[#allocation2 + $0x10] sm:$0xff] %vm266_vm0, %v2404_v37  ;;  %v4613_v29 = vmax.f32 %v4596_v32, %v841_v13  ;;  %v4646_v13 = vld [vmem:[#allocation2 + $0x48] sm:$0xff] }
 0x192   : > { %v4591_v17 = vmax.f32 %v4572_v9, %v1722_v12  ;;  %v4594_v46 = vmax.f32 %v4485_v34, %v1707_v47  ;;  %v4622_v9 = vld [vmem:[#allocation2 + $0x38] sm:$0xff] }
 0x194   : > { %5836 = vst [vmem:[#allocation61_spill] sm:$0xff] %v4591_v17  ;;  %5837 = vst [vmem:[#allocation62_spill] sm:$0xff] %v4594_v46  ;;  %v2410_v42 = vsel %vm2401_vm2, %v4587_v45, %v4591_v17  ;;  %2202 = vrot.lane.b32.xlu1 %v4413_v11, %s3614_s16  ;;  %1825 = vperm.xlu0 %3289, %v4594_v46   ;;  %v2405_v37 = vsel %vm2401_vm2, %v4497_v4, %v4594_v46 }
 0x195   : > { %2427 = vst.msk [vmem:[#allocation2 + $0x40] sm:$0xff] %vm266_vm0, %v2410_v42  ;;  %v1740_v12 = vpop.xlane.xlu1 %1739  ;;  %v1713_v47 = vpop.xlane.xlu0 %1712  ;;  %2422 = vst.msk [vmem:[#allocation2 + $0x18] sm:$0xff] %vm266_vm0, %v2405_v37 }
 0x196   : > { %v4617_v56 = vmax.f32 %v4596_v32, %v1740_v12  ;;  %v4620_v11 = vmax.f32 %v4501_v18, %v1713_v47  ;;  %v4640_v47 = vmax.f32 %v4622_v9, %v4521_v63 }
 0x198   : > { %5838 = vst [vmem:[#allocation63_spill] sm:$0xff] %v4617_v56  ;;  %5839 = vst [vmem:[#allocation64_spill] sm:$0xff] %v4620_v11  ;;  %v2416_v46 = vsel %vm2401_vm2, %v4613_v29, %v4617_v56  ;;  %1830 = vperm.xlu1 %3288, %v4548_v26   ;;  %2184 = vrot.lane.b32.xlu0 %v4400_v19, %s3614_s16  ;;  %v2407_v37 = vsel %vm2401_vm2, %v4513_v27, %v4620_v11  ;;  %v4665_v19 = vld [vmem:[#allocation2 + $0x50] sm:$0xff]  ;;  %v4701_v26 = vld [vmem:[#allocation2 + $0x60] sm:$0xff] }
 0x199   : > { %2433 = vst.msk [vmem:[#allocation2 + $0x70] sm:$0xff] %vm266_vm0, %v2416_v46  ;;  %v1719_v12 = vpop.xlane.xlu0 %1718  ;;  %2424 = vst.msk [vmem:[#allocation2 + $0x28] sm:$0xff] %vm266_vm0, %v2407_v37  ;;  %v4660_v37 = vmax.f32 %v4646_v13, %v4526_v48  ;;  %v4678_v48 = vmax.f32 %v4665_v19, %v4524_v20 }
 0x19a   : > { %v4644_v42 = vmax.f32 %v4622_v9, %v1719_v12 }
 0x19c   : > { %5840 = vst [vmem:[#allocation65_spill] sm:$0xff] %v4644_v42  ;;  %v2409_v46 = vsel %vm2401_vm2, %v4640_v47, %v4644_v42  ;;  %2204 = vrot.lane.b32.xlu1 %v4427_v43, %s3614_s16  ;;  %2186 = vrot.lane.b32.xlu0 %v4420_v6, %s3614_s16 }
 0x19d   : > { %2426 = vst.msk [vmem:[#allocation2 + $0x38] sm:$0xff] %vm266_vm0, %v2409_v46  ;;  %v1725_v63 = vpop.xlane.xlu0 %1724 }
 0x19e   : > { %v4663_v12 = vmax.f32 %v4646_v13, %v1725_v63  ;;  %v4683_v63 = vld [vmem:[#allocation2 + $0x58] sm:$0xff] }
 0x1a0   : > { %5841 = vst [vmem:[#allocation66_spill] sm:$0xff] %v4663_v12  ;;  %v2411_v43 = vsel %vm2401_vm2, %v4660_v37, %v4663_v12  ;;  %2206 = vrot.lane.b32.xlu1 %v4439_v54, %s3614_s16  ;;  %1835 = vperm.xlu0 %3289, %v4620_v11  }
 0x1a1   : > { %2428 = vst.msk [vmem:[#allocation2 + $0x48] sm:$0xff] %vm266_vm0, %v2411_v43  ;;  %v1728_v6 = vpop.xlane.xlu0 %1727  ;;  %v4696_v43 = vmax.f32 %v4683_v63, %v4531_v23  ;;  %v4714_v23 = vmax.f32 %v4701_v26, %v4529_v21 }
 0x1a2   : > { %v4681_v46 = vmax.f32 %v4665_v19, %v1728_v6 }
 0x1a4   : > { %5842 = vst [vmem:[#allocation67_spill] sm:$0xff] %v4681_v46  ;;  %v2412_v54 = vsel %vm2401_vm2, %v4678_v48, %v4681_v46  ;;  %1840 = vperm.xlu1 %3288, %v4567_v14   ;;  %2188 = vrot.lane.b32.xlu0 %v4434_v31, %s3614_s16 }
 0x1a5   : > { %2429 = vst.msk [vmem:[#allocation2 + $0x50] sm:$0xff] %vm266_vm0, %v2412_v54  ;;  %v1731_v20 = vpop.xlane.xlu0 %1730 }
 0x1a6   : > { %v4699_v6 = vmax.f32 %v4683_v63, %v1731_v20  ;;  %v4719_v20 = vld [vmem:[#allocation2 + $0x68] sm:$0xff] }
 0x1a7   : > { %v4731_v21 = vmax.f32 %v4719_v20, %v4533_v55 }
 0x1a8   : > { %5843 = vst [vmem:[#allocation68_spill] sm:$0xff] %v4699_v6  ;;  %v2413_v14 = vsel %vm2401_vm2, %v4696_v43, %v4699_v6  ;;  %1850 = vperm.xlu1 %3288, %v4591_v17   ;;  %2190 = vrot.lane.b32.xlu0 %v4446_v8, %s3614_s16 }
 0x1a9   : > { %2430 = vst.msk [vmem:[#allocation2 + $0x58] sm:$0xff] %vm266_vm0, %v2413_v14  ;;  %v1734_v31 = vpop.xlane.xlu0 %1733 }
 0x1aa   : > { %v4717_v54 = vmax.f32 %v4701_v26, %v1734_v31  ;;  %v4736_v31 = vld [vmem:[#allocation2 + $0x78] sm:$0xff] }
 0x1ab   : > { %v4748_v55 = vmax.f32 %v4736_v31, %v4535_v49  ;;  %v5847_v49 = vmov 0  }
 0x1ac   : > { %5844 = vst [vmem:[#allocation69_spill] sm:$0xff] %v4717_v54  ;;  %v2414_v17 = vsel %vm2401_vm2, %v4714_v23, %v4717_v54  ;;  %1845 = vperm.xlu0 %3289, %v4644_v42   ;;  %1860 = vperm.xlu1 %3288, %v4681_v46  }
 0x1ad   : > { %2431 = vst.msk [vmem:[#allocation2 + $0x60] sm:$0xff] %vm266_vm0, %v2414_v17  ;;  %v1737_v8 = vpop.xlane.xlu0 %1736 }
 0x1ae   : > { %v4734_v14 = vmax.f32 %v4719_v20, %v1737_v8 }
 0x1b0   : > { %5845 = vst [vmem:[#allocation70_spill] sm:$0xff] %v4734_v14  ;;  %v2415_v42 = vsel %vm2401_vm2, %v4731_v21, %v4734_v14  ;;  %1855 = vperm.xlu0 %3289, %v4663_v12   ;;  %1870 = vperm.xlu1 %3288, %v4717_v54  }
 0x1b1   : > { %2432 = vst.msk [vmem:[#allocation2 + $0x68] sm:$0xff] %vm266_vm0, %v2415_v42  ;;  %v1743_v17 = vpop.xlane.xlu0 %1742 }
 0x1b2   : > { %v4751_v8 = vmax.f32 %v4736_v31, %v1743_v17 }
 0x1b4   : > { %5846 = vst [vmem:[#allocation71_spill] sm:$0xff] %v4751_v8  ;;  %v2417_v46 = vsel %vm2401_vm2, %v4748_v55, %v4751_v8  ;;  %1865 = vperm.xlu0 %3289, %v4699_v6   ;;  %1880 = vperm.xlu1 %3288, %v4617_v56   ;;  %v5848_v56 = vsub.f32 %v4470_v41, %v4478_v52 }
 0x1b5   : > { %2434 = vst.msk [vmem:[#allocation2 + $0x78] sm:$0xff] %vm266_vm0, %v2417_v46  ;;  %v2193_v42 = vpop.permute.xlu0 %2192  ;;  %v5849_v46 = vsub.f32 %v4465_v57, %v4468_v10  ;;  %v5851_v52 = vsub.f32 %v4483_v58, %v4494_v16 }
 0x1b6   : > { %3186 = vmatprep.subr.bf16.mxu1 %v2193_v42  ;;  %v879_v54 = vmul.f32 1.442695, %v5848_v56 }
 0x1b7   : > { %v877_v42 = vmul.f32 1.442695, %v5849_v46  ;;  %v885_v56 = vmul.f32 1.442695, %v5851_v52 }
 0x1b8   : > { %3290 = vset.pattern.permute.xlu1 %v5847_v49  ;;  %1875 = vperm.xlu0 %3289, %v4734_v14   ;;  %3310 = vpow2.f32 %v879_v54 }
 0x1b9   : > { %946 = vperm.xlu1 %3290, %v4640_v47   ;;  %v2177_v17 = vpop.permute.xlu0 %2176  ;;  %3312 = vpow2.f32 %v877_v42 }
 0x1ba   : > { %3187 = vmatpush3.bf16.msra.mxu1 %v2177_v17 }
 0x1bc   : > { %1885 = vperm.xlu0 %3289, %v4751_v8   ;;  %v5850_v8 = vsub.f32 %v4472_v50, %v4481_v25  ;;  %v5864_v50 = vld [vmem:[#allocation33_spill] sm:$0xff] }
 0x1bd   : > { %956 = vperm.xlu1 %3290, %v4660_v37   ;;  %v2195_v11 = vpop.permute.xlu0 %2194 }
 0x1be   : > { %3188 = vmatprep.subr.bf16.mxu1 %v2195_v11  ;;  %v881_v14 = vmul.f32 1.442695, %v5850_v8  ;;  %v5852_v11 = vsub.f32 %v4485_v34, %v4497_v4 }
 0x1c0   : > { %3291 = vset.pattern.permute.xlu0 %v5847_v49  ;;  %3314 = vpow2.f32 %v881_v14  ;;  %v883_v54 = vmul.f32 1.442695, %v5852_v11  ;;  %v2199_v49 = vpop.permute.xlu1 %2198 }
 0x1c1   : > { %961 = vperm.xlu1 %3290, %v4678_v48   ;;  %951 = vperm.xlu0 %3291, %v4587_v45   ;;  %v2179_v17 = vpop.permute.xlu0 %2178  ;;  %3316 = vpow2.f32 %v885_v56 }
 0x1c2   : > { %3189 = vmatpush3.bf16.msra.mxu1 %v2179_v17  ;;  %3318 = vpow2.f32 %v883_v54  ;;  %v4788_v16 = vpop.eup %3310 }
 0x1c3   : > { %5853 = vst [vmem:[#allocation72_spill] sm:$0xff] %v4788_v16  ;;  %v4792_v8 = vpop.eup %3312 }
 0x1c4   : > { %v2201_v4 = vpop.permute.xlu1 %2200  ;;  %5854 = vst [vmem:[#allocation73_spill] sm:$0xff] %v4792_v8 }
 0x1c5   : > { %971 = vperm.xlu1 %3290, %v4714_v23   ;;  %966 = vperm.xlu0 %3291, %v4696_v43   ;;  %v2197_v10 = vpop.permute.xlu0 %2196 }
 0x1c6   : > { %3190 = vmatprep.subr.bf16.mxu1 %v2197_v10  ;;  %v5858_v10 = vld [vmem:[#allocation35_spill] sm:$0xff] }
 0x1c9   : > { %981 = vperm.xlu1 %3290, %v4613_v29   ;;  %976 = vperm.xlu0 %3291, %v4731_v21   ;;  %v2181_v25 = vpop.permute.xlu0 %2180 }
 0x1ca   : > { %3191 = vmatpush3.bf16.msra.mxu1 %v2181_v25  ;;  %v4794_v46 = vpop.eup %3314 }
 0x1cb   : > { %3192 = vmatprep.subr.bf16.mxu1 %v2199_v49  ;;  %5855 = vst [vmem:[#allocation74_spill] sm:$0xff] %v4794_v46  ;;  %v4798_v42 = vpop.eup %3316 }
 0x1cc   : > { %5856 = vst [vmem:[#allocation75_spill] sm:$0xff] %v4798_v42  ;;  %v4800_v17 = vpop.eup %3318 }
 0x1cd   : > { %1172 = vperm.xlu1 %3290, %v4788_v16   ;;  %986 = vperm.xlu0 %3291, %v4748_v55   ;;  %v2183_v14 = vpop.permute.xlu0 %2182  ;;  %5857 = vst [vmem:[#allocation76_spill] sm:$0xff] %v4800_v17  ;;  %v5860_v16 = vld [vmem:[#allocation25_spill] sm:$0xff] }
 0x1ce   : > { %3193 = vmatpush3.bf16.msra.mxu1 %v2183_v14 }
 0x1cf   : > { %3194 = vmatprep.subr.bf16.mxu1 %v2201_v4  ;;  %v5859_v4 = vld [vmem:[#allocation24_spill] sm:$0xff] }
 0x1d1   : > { %1177 = vperm.xlu1 %3290, %v4794_v46   ;;  %1167 = vperm.xlu0 %3291, %v4792_v8  }
 0x1d5   : > { %1187 = vperm.xlu1 %3290, %v4798_v42   ;;  %1182 = vperm.xlu0 %3291, %v4800_v17   ;;  %v5861_v42 = vld [vmem:[#allocation38_spill] sm:$0xff] }
 0x1e6   : > { %v912_v52 = vpop.permute.xlu1 %911 }
 0x1e7   : > { %v989_v56 = vsub.f32 %v4050_v2, %v912_v52  ;;  %v990_v11 = vsub.f32 %v5858_v10, %v912_v52 }
 0x1e9   : > { %v1021_v54 = vmul.f32 1.442695, %v989_v56  ;;  %v1023_v49 = vmul.f32 1.442695, %v990_v11  ;;  %v5862_v56 = vld [vmem:[#allocation40_spill] sm:$0xff]  ;;  %v5863_v11 = vld [vmem:[#allocation41_spill] sm:$0xff] }
 0x1ea   : > { %v922_v25 = vpop.permute.xlu1 %921 }
 0x1eb   : > { %v917_v14 = vpop.permute.xlu0 %916  ;;  %3320 = vpow2.f32 %v1021_v54  ;;  %v993_v46 = vsub.f32 %v5859_v4, %v922_v25  ;;  %v994_v8 = vsub.f32 %v5860_v16, %v922_v25  ;;  %v5865_v16 = vld [vmem:[#allocation34_spill] sm:$0xff] }
 0x1ec   : > { %v991_v6 = vsub.f32 %v4073_v53, %v917_v14  ;;  %3322 = vpow2.f32 %v1023_v49  ;;  %v992_v12 = vsub.f32 %v5861_v42, %v917_v14 }
 0x1ed   : > { %v1029_v17 = vmul.f32 1.442695, %v993_v46  ;;  %v1031_v58 = vmul.f32 1.442695, %v994_v8 }
 0x1ee   : > { %v1025_v34 = vmul.f32 1.442695, %v991_v6  ;;  %v1027_v2 = vmul.f32 1.442695, %v992_v12  ;;  %v5866_v12 = vld [vmem:[#allocation36_spill] sm:$0xff] }
 0x1ef   : > { %v932_v57 = vpop.permute.xlu1 %931  ;;  %v927_v52 = vpop.permute.xlu0 %926  ;;  %3324 = vpow2.f32 %v1029_v17  ;;  %v5867_v17 = vld [vmem:[#allocation37_spill] sm:$0xff] }
 0x1f0   : > { %v997_v10 = vsub.f32 %v5862_v56, %v932_v57  ;;  %v998_v54 = vsub.f32 %v5863_v11, %v932_v57  ;;  %v995_v4 = vsub.f32 %v5864_v50, %v927_v52  ;;  %3326 = vpow2.f32 %v1031_v58  ;;  %v5869_v11 = vld [vmem:[#allocation46_spill] sm:$0xff] }
 0x1f1   : > { %v996_v25 = vsub.f32 %v5865_v16, %v927_v52  ;;  %3328 = vpow2.f32 %v1025_v34  ;;  %v5868_v34 = vld [vmem:[#allocation45_spill] sm:$0xff] }
 0x1f2   : > { %v1037_v53 = vmul.f32 1.442695, %v997_v10  ;;  %v1039_v49 = vmul.f32 1.442695, %v998_v54  ;;  %v1033_v42 = vmul.f32 1.442695, %v995_v4  ;;  %3330 = vpow2.f32 %v1027_v2 }
 0x1f3   : > { %v1035_v8 = vmul.f32 1.442695, %v996_v25  ;;  %v937_v6 = vpop.permute.xlu1 %936 }
 0x1f4   : > { %3332 = vpow2.f32 %v1037_v53  ;;  %v999_v46 = vsub.f32 %v5866_v12, %v937_v6  ;;  %v1000_v14 = vsub.f32 %v5867_v17, %v937_v6 }
 0x1f5   : > { %3334 = vpow2.f32 %v1039_v49  ;;  %v3321_v56 = vpop.eup %3320 }
 0x1f6   : > { %3336 = vpow2.f32 %v1033_v42  ;;  %v1041_v57 = vmul.f32 1.442695, %v999_v46  ;;  %v1043_v50 = vmul.f32 1.442695, %v1000_v14  ;;  %v3323_v58 = vpop.eup %3322 }
 0x1f7   : > { %3338 = vpow2.f32 %v1035_v8  ;;  %v942_v52 = vpop.permute.xlu1 %941  ;;  %v1101_v54 = vadd.f32 %v3323_v58, %v3321_v56 }
 0x1f8   : > { %3340 = vpow2.f32 %v1041_v57  ;;  %v1001_v10 = vsub.f32 %v5868_v34, %v942_v52  ;;  %v1002_v2 = vsub.f32 %v5869_v11, %v942_v52 }
 0x1f9   : > { %3342 = vpow2.f32 %v1043_v50  ;;  %v3325_v4 = vpop.eup %3324  ;;  %1102 = vadd.xlane.f32.xlu1 %v1101_v54 }
 0x1fa   : > { %v1045_v16 = vmul.f32 1.442695, %v1001_v10  ;;  %v1047_v25 = vmul.f32 1.442695, %v1002_v2  ;;  %v3327_v53 = vpop.eup %3326 }
 0x1fb   : > { %v3329_v49 = vpop.eup %3328  ;;  %v1107_v52 = vadd.f32 %v3327_v53, %v3325_v4 }
 0x1fc   : > { %3344 = vpow2.f32 %v1045_v16  ;;  %v3331_v42 = vpop.eup %3330  ;;  %v1261_v6 = vpack.c.bf16 %v3329_v49, %v3321_v56 }
 0x1fd   : > { %3346 = vpow2.f32 %v1047_v25  ;;  %v1262_v8 = vpack.c.bf16 %v3331_v42, %v3323_v58  ;;  %v1104_v46 = vadd.f32 %v3331_v42, %v3329_v49  ;;  %v5870_v42 = vld [vmem:[#allocation31_spill] sm:$0xff] }
 0x1fe   : > { %v3333_v12 = vpop.eup %3332 }
 0x1ff   : > { %v3335_v17 = vpop.eup %3334  ;;  %1405 = vmatprep.mubr.bf16.mxu0 %v1262_v8  ;;  %1105 = vadd.xlane.f32.xlu0 %v1104_v46  ;;  %v5871_v8 = vld [vmem:[#allocation32_spill] sm:$0xff] }
 0x200   : > { %v3337_v14 = vpop.eup %3336  ;;  %1406 = vmatmul.mubr.bf16.vlgmr.msra.gmra.mrb[0].mxu0 %v1261_v6  ;;  %v1113_v56 = vadd.f32 %v3335_v17, %v3333_v12 }
 0x201   : > { %v3339_v57 = vpop.eup %3338  ;;  %v1263_v16 = vpack.c.bf16 %v3337_v14, %v3325_v4 }
 0x202   : > { %v3341_v50 = vpop.eup %3340  ;;  %v1264_v34 = vpack.c.bf16 %v3339_v57, %v3327_v53  ;;  %v1110_v10 = vadd.f32 %v3339_v57, %v3337_v14 }
 0x203   : > { %v3343_v11 = vpop.eup %3342  ;;  %1108 = vadd.xlane.f32.xlu0 %v1107_v52 }
 0x204   : > { %1413 = vmatprep.mubr.bf16.mxu0 %v1264_v34  ;;  %1111 = vadd.xlane.f32.xlu1 %v1110_v10  ;;  %v1116_v2 = vadd.f32 %v3343_v11, %v3341_v50  ;;  %v1266_v49 = vpack.c.bf16 %v3343_v11, %v3335_v17  ;;  %v1265_v11 = vpack.c.bf16 %v3341_v50, %v3333_v12 }
 0x206   : > { %v4818_v54 = vpop.eup %3344 }
 0x207   : > { %v4820_v58 = vpop.eup %3346  ;;  %v1816_v25 = vpop.permute.xlu0 %1815  ;;  %1114 = vadd.xlane.f32.xlu0 %v1113_v56 }
 0x208   : > { %v1890_v6 = vsub.f32 %v5870_v42, %v1816_v25  ;;  %v1891_v46 = vsub.f32 %v5871_v8, %v1816_v25  ;;  %v1119_v53 = vadd.f32 %v4820_v58, %v4818_v54  ;;  %1117 = vadd.xlane.f32.xlu1 %v1116_v2  ;;  %1414 = vmatmul.mubr.bf16.gmra.mrb[4].mxu0 %v1263_v16 }
 0x209   : > { %1421 = vmatprep.mubr.bf16.mxu0 %v1266_v49 }
 0x20a   : > { %v1924_v57 = vmul.f32 1.442695, %v1890_v6  ;;  %v1926_v52 = vmul.f32 1.442695, %v1891_v46 }
 0x20b   : > { %v1811_v34 = vpop.permute.xlu1 %1810  ;;  %1120 = vadd.xlane.f32.xlu0 %v1119_v53 }
 0x20c   : > { %3348 = vpow2.f32 %v1924_v57  ;;  %v1888_v4 = vsub.f32 %v4267_v24, %v1811_v34  ;;  %v1889_v14 = vsub.f32 %v4271_v35, %v1811_v34 }
 0x20d   : > { %3350 = vpow2.f32 %v1926_v52 }
 0x20e   : > { %v1920_v17 = vmul.f32 1.442695, %v1888_v4  ;;  %v1922_v10 = vmul.f32 1.442695, %v1889_v14 }
 0x20f   : > { %v1821_v56 = vpop.permute.xlu1 %1820 }
 0x210   : > { %3352 = vpow2.f32 %v1920_v17  ;;  %v1892_v25 = vsub.f32 %v4290_v33, %v1821_v56  ;;  %v1893_v2 = vsub.f32 %v4293_v44, %v1821_v56  ;;  %1422 = vmatmul.mubr.bf16.gmra.mrb[8].mxu0 %v1265_v11 }
 0x211   : > { %3354 = vpow2.f32 %v1922_v10 }
 0x212   : > { %v1928_v16 = vmul.f32 1.442695, %v1892_v25  ;;  %v1930_v49 = vmul.f32 1.442695, %v1893_v2 }
 0x213   : > { %v2203_v42 = vpop.permute.xlu1 %2202  ;;  %v1826_v6 = vpop.permute.xlu0 %1825 }
 0x214   : > { %3356 = vpow2.f32 %v1928_v16  ;;  %v1894_v24 = vsub.f32 %v4306_v36, %v1826_v6  ;;  %v1895_v35 = vsub.f32 %v4309_v61, %v1826_v6 }
 0x215   : > { %3358 = vpow2.f32 %v1930_v49 }
 0x216   : > { %v4832_v8 = vpop.eup %3348  ;;  %v1932_v12 = vmul.f32 1.442695, %v1894_v24  ;;  %v1934_v50 = vmul.f32 1.442695, %v1895_v35 }
 0x217   : > { %v3351_v46 = vpop.eup %3350  ;;  %v1831_v33 = vpop.permute.xlu1 %1830 }
 0x218   : > { %v2185_v53 = vpop.permute.xlu0 %2184  ;;  %3360 = vpow2.f32 %v1932_v12  ;;  %v1896_v44 = vsub.f32 %v4253_v40, %v1831_v33  ;;  %v1897_v57 = vsub.f32 %v4256_v7, %v1831_v33  ;;  %v4837_v52 = vadd.f32 %v3351_v46, %v4832_v8 }
 0x219   : > { %3195 = vmatpush3.bf16.msra.mxu1 %v2185_v53  ;;  %3362 = vpow2.f32 %v1934_v50 }
 0x21a   : > { %3196 = vmatprep.subr.bf16.mxu1 %v2203_v42  ;;  %v3353_v36 = vpop.eup %3352  ;;  %v1936_v61 = vmul.f32 1.442695, %v1896_v44  ;;  %v1938_v34 = vmul.f32 1.442695, %v1897_v57 }
 0x21b   : > { %v3355_v4 = vpop.eup %3354  ;;  %v2205_v14 = vpop.permute.xlu1 %2204 }
 0x21c   : > { %v2187_v17 = vpop.permute.xlu0 %2186  ;;  %3364 = vpow2.f32 %v1936_v61  ;;  %v2161_v10 = vpack.c.bf16 %v3351_v46, %v3355_v4  ;;  %v4839_v11 = vadd.f32 %v3355_v4, %v3353_v36 }
 0x21d   : > { %3197 = vmatpush3.bf16.msra.mxu1 %v2187_v17  ;;  %3366 = vpow2.f32 %v1938_v34 }
 0x21e   : > { %3198 = vmatprep.subr.bf16.mxu1 %v2205_v14  ;;  %v4841_v40 = vpop.eup %3356  ;;  %2256 = vmatprep.mubr.bf16.mxu1 %v2161_v10  ;;  %v2160_v14 = vpack.c.bf16 %v4832_v8, %v3353_v36 }
 0x21f   : > { %v3359_v7 = vpop.eup %3358  ;;  %v2207_v56 = vpop.permute.xlu1 %2206 }
 0x220   : > { %v1836_v25 = vpop.permute.xlu0 %1835  ;;  %v4846_v49 = vadd.f32 %v3359_v7, %v4841_v40 }
 0x221   : > { %v1898_v2 = vsub.f32 %v4328_v30, %v1836_v25  ;;  %v1899_v16 = vsub.f32 %v4331_v15, %v1836_v25 }
 0x222   : > { %v4848_v42 = vpop.eup %3360 }
 0x223   : > { %v1940_v6 = vmul.f32 1.442695, %v1898_v2  ;;  %v1942_v24 = vmul.f32 1.442695, %v1899_v16  ;;  %v3363_v35 = vpop.eup %3362  ;;  %v1841_v12 = vpop.permute.xlu1 %1840 }
 0x224   : > { %v2189_v50 = vpop.permute.xlu0 %2188  ;;  %v1900_v46 = vsub.f32 %v4279_v1, %v1841_v12  ;;  %v1901_v33 = vsub.f32 %v4282_v5, %v1841_v12  ;;  %v4853_v30 = vadd.f32 %v3363_v35, %v4848_v42 }
 0x225   : > { %3368 = vpow2.f32 %v1940_v6  ;;  %3199 = vmatpush3.bf16.msra.mxu1 %v2189_v50 }
 0x226   : > { %3370 = vpow2.f32 %v1942_v24  ;;  %3200 = vmatprep.subr.bf16.mxu1 %v2207_v56  ;;  %v4855_v15 = vpop.eup %3364  ;;  %v1944_v53 = vmul.f32 1.442695, %v1900_v46  ;;  %v1946_v44 = vmul.f32 1.442695, %v1901_v33  ;;  %v2163_v56 = vpack.c.bf16 %v3363_v35, %v3359_v7 }
 0x227   : > { %v3367_v57 = vpop.eup %3366  ;;  %v1851_v61 = vpop.permute.xlu1 %1850  ;;  %v2162_v33 = vpack.c.bf16 %v4848_v42, %v4841_v40 }
 0x228   : > { %v2191_v34 = vpop.permute.xlu0 %2190  ;;  %3372 = vpow2.f32 %v1944_v53  ;;  %v1904_v4 = vsub.f32 %v4298_v28, %v1851_v61  ;;  %v1905_v1 = vsub.f32 %v4301_v0, %v1851_v61  ;;  %v4860_v5 = vadd.f32 %v3367_v57, %v4855_v15 }
 0x229   : > { %3201 = vmatpush3.bf16.msra.mxu1 %v2191_v34  ;;  %3374 = vpow2.f32 %v1946_v44 }
 0x22a   : > { %v1952_v17 = vmul.f32 1.442695, %v1904_v4  ;;  %v1954_v10 = vmul.f32 1.442695, %v1905_v1 }
 0x22b   : > { %v1861_v25 = vpop.permute.xlu1 %1860 }
 0x22c   : > { %2257 = vmatmul.mubr.bf16.vlgmr.msra.gmra.mrb[0].mxu1 %v2160_v14  ;;  %v1846_v2 = vpop.permute.xlu0 %1845  ;;  %3376 = vpow2.f32 %v1952_v17  ;;  %v1908_v16 = vsub.f32 %v4360_v38, %v1861_v25  ;;  %v1909_v28 = vsub.f32 %v4365_v51, %v1861_v25 }
 0x22d   : > { %v1902_v0 = vsub.f32 %v4340_v39, %v1846_v2  ;;  %2264 = vmatprep.mubr.bf16.mxu1 %v2163_v56  ;;  %3378 = vpow2.f32 %v1954_v10  ;;  %v1903_v6 = vsub.f32 %v4343_v62, %v1846_v2  ;;  %v5872_v62 = vld [vmem:[#allocation21_spill] sm:$0xff]  ;;  %v5875_v56 = vld [vmem:[#allocation8_spill] sm:$0xff] }
 0x22e   : > { %v1960_v12 = vmul.f32 1.442695, %v1908_v16  ;;  %v1962_v8 = vmul.f32 1.442695, %v1909_v28  ;;  %v5874_v10 = vld [vmem:[#allocation29_spill] sm:$0xff] }
 0x22f   : > { %v3369_v24 = vpop.eup %3368  ;;  %v1948_v36 = vmul.f32 1.442695, %v1902_v0  ;;  %v1950_v7 = vmul.f32 1.442695, %v1903_v6  ;;  %v1871_v35 = vpop.permute.xlu1 %1870  ;;  %v5876_v2 = vld [vmem:[#allocation9_spill] sm:$0xff] }
 0x230   : > { %v3371_v50 = vpop.eup %3370  ;;  %v1856_v46 = vpop.permute.xlu0 %1855  ;;  %3380 = vpow2.f32 %v1960_v12  ;;  %v1912_v38 = vsub.f32 %v4380_v59, %v1871_v35  ;;  %v1913_v39 = vsub.f32 %v4383_v22, %v1871_v35  ;;  %v5877_v35 = vld [vmem:[#allocation10_spill] sm:$0xff] }
 0x231   : > { %v1906_v51 = vsub.f32 %v4352_v3, %v1856_v46  ;;  %3382 = vpow2.f32 %v1962_v8  ;;  %v1907_v53 = vsub.f32 %v5872_v62, %v1856_v46  ;;  %v2165_v44 = vpack.c.bf16 %v3371_v50, %v3367_v57  ;;  %v5873_v3 = vld [vmem:[#allocation23_spill] sm:$0xff] }
 0x232   : > { %v4873_v61 = vadd.f32 %v3371_v50, %v3369_v24  ;;  %v4875_v34 = vpop.eup %3372  ;;  %3384 = vpow2.f32 %v1948_v36  ;;  %v1968_v4 = vmul.f32 1.442695, %v1912_v38  ;;  %v1970_v1 = vmul.f32 1.442695, %v1913_v39  ;;  %v5880_v62 = vld [vmem:[#allocation39_spill] sm:$0xff] }
 0x233   : > { %v1956_v14 = vmul.f32 1.442695, %v1906_v51  ;;  %v4877_v40 = vpop.eup %3374  ;;  %3386 = vpow2.f32 %v1950_v7  ;;  %v1958_v59 = vmul.f32 1.442695, %v1907_v53  ;;  %v1881_v42 = vpop.permute.xlu1 %1880 }
 0x234   : > { %2265 = vmatmul.mubr.bf16.gmra.mrb[4].mxu1 %v2162_v33  ;;  %v1866_v22 = vpop.permute.xlu0 %1865  ;;  %3388 = vpow2.f32 %v1968_v4  ;;  %v1916_v17 = vsub.f32 %v5873_v3, %v1881_v42  ;;  %v1917_v57 = vsub.f32 %v5874_v10, %v1881_v42  ;;  %v4885_v28 = vadd.f32 %v4877_v40, %v4875_v34  ;;  %v5878_v33 = vld [vmem:[#allocation11_spill] sm:$0xff] }
 0x235   : > { %v1910_v25 = vsub.f32 %v5875_v56, %v1866_v22  ;;  %2272 = vmatprep.mubr.bf16.mxu1 %v2165_v44  ;;  %3390 = vpow2.f32 %v1970_v1  ;;  %v1911_v16 = vsub.f32 %v5876_v2, %v1866_v22  ;;  %v5881_v44 = vld [vmem:[#allocation42_spill] sm:$0xff]  ;;  %v2164_v1 = vpack.c.bf16 %v3369_v24, %v4855_v15  ;;  %v5882_v56 = vld [vmem:[#allocation13_spill] sm:$0xff] }
 0x236   : > { %v4887_v0 = vpop.eup %3376  ;;  %3392 = vpow2.f32 %v1956_v14  ;;  %v1976_v6 = vmul.f32 1.442695, %v1916_v17  ;;  %v1978_v12 = vmul.f32 1.442695, %v1917_v57  ;;  %v5883_v2 = vld [vmem:[#allocation14_spill] sm:$0xff] }
 0x237   : > { %v1964_v8 = vmul.f32 1.442695, %v1910_v25  ;;  %v4889_v36 = vpop.eup %3378  ;;  %3394 = vpow2.f32 %v1958_v59  ;;  %v1966_v50 = vmul.f32 1.442695, %v1911_v16 }
 0x238   : > { %v1876_v7 = vpop.permute.xlu0 %1875  ;;  %3396 = vpow2.f32 %v1976_v6  ;;  %v947_v39 = vpop.permute.xlu1 %946  ;;  %v4895_v51 = vadd.f32 %v4889_v36, %v4887_v0 }
 0x239   : > { %v1914_v46 = vsub.f32 %v5877_v35, %v1876_v7  ;;  %v1915_v38 = vsub.f32 %v5878_v33, %v1876_v7  ;;  %3398 = vpow2.f32 %v1978_v12  ;;  %v1003_v53 = vsub.f32 %v5880_v62, %v947_v39  ;;  %v5885_v12 = vld [vmem:[#allocation43_spill] sm:$0xff] }
 0x23a   : > { %5879 = vst [vmem:[#allocation35_spill] sm:$0xff] %v4895_v51  ;;  %v1004_v4 = vsub.f32 %v5881_v44, %v947_v39  ;;  %v4900_v14 = vpop.eup %3380  ;;  %3400 = vpow2.f32 %v1964_v8 }
 0x23b   : > { %v1972_v59 = vmul.f32 1.442695, %v1914_v46  ;;  %v1974_v42 = vmul.f32 1.442695, %v1915_v38  ;;  %v4902_v22 = vpop.eup %3382  ;;  %3402 = vpow2.f32 %v1966_v50  ;;  %v1049_v3 = vmul.f32 1.442695, %v1003_v53 }
 0x23c   : > { %v1051_v17 = vmul.f32 1.442695, %v1004_v4  ;;  %2273 = vmatmul.mubr.bf16.gmra.mrb[8].mxu1 %v2164_v1  ;;  %v1886_v10 = vpop.permute.xlu0 %1885  ;;  %v3385_v57 = vpop.eup %3384  ;;  %v4908_v15 = vadd.f32 %v4902_v22, %v4900_v14  ;;  %v5886_v50 = vld [vmem:[#allocation44_spill] sm:$0xff] }
 0x23d   : > { %3404 = vpow2.f32 %v1972_v59  ;;  %v1918_v25 = vsub.f32 %v5882_v56, %v1886_v10  ;;  %v1919_v16 = vsub.f32 %v5883_v2, %v1886_v10  ;;  %v957_v6 = vpop.permute.xlu1 %956  ;;  %v3387_v24 = vpop.eup %3386  ;;  %v5888_v10 = vld [vmem:[#allocation51_spill] sm:$0xff]  ;;  %v5889_v56 = vld [vmem:[#allocation52_spill] sm:$0xff] }
 0x23e   : > { %5884 = vst [vmem:[#allocation24_spill] sm:$0xff] %v4908_v15  ;;  %3406 = vpow2.f32 %v1974_v42  ;;  %v1007_v8 = vsub.f32 %v5885_v12, %v957_v6  ;;  %v1008_v7 = vsub.f32 %v5886_v50, %v957_v6  ;;  %v4912_v35 = vpop.eup %3388  ;;  %v2167_v38 = vpack.c.bf16 %v3387_v24, %v4877_v40  ;;  %v5890_v2 = vld [vmem:[#allocation47_spill] sm:$0xff] }
 0x23f   : > { %3408 = vpow2.f32 %v1049_v3  ;;  %v1980_v46 = vmul.f32 1.442695, %v1918_v25  ;;  %v1982_v33 = vmul.f32 1.442695, %v1919_v16  ;;  %v4915_v39 = vpop.eup %3390  ;;  %v4917_v44 = vadd.f32 %v3387_v24, %v3385_v57  ;;  %v5891_v24 = vld [vmem:[#allocation48_spill] sm:$0xff] }
 0x240   : > { %3410 = vpow2.f32 %v1051_v17  ;;  %v1057_v62 = vmul.f32 1.442695, %v1007_v8  ;;  %v1059_v53 = vmul.f32 1.442695, %v1008_v7  ;;  %v4919_v4 = vpop.eup %3392  ;;  %2280 = vmatprep.mubr.bf16.mxu1 %v2167_v38  ;;  %v952_v59 = vpop.permute.xlu0 %951  ;;  %v2166_v42 = vpack.c.bf16 %v3385_v57, %v4875_v34 }
 0x241   : > { %3412 = vpow2.f32 %v1980_v46  ;;  %v962_v1 = vpop.permute.xlu1 %961  ;;  %v4924_v3 = vadd.f32 %v4915_v39, %v4912_v35  ;;  %v3395_v40 = vpop.eup %3394  ;;  %v1005_v16 = vsub.f32 %v5890_v2, %v952_v59  ;;  %v1006_v12 = vsub.f32 %v5891_v24, %v952_v59 }
 0x242   : > { %3414 = vpow2.f32 %v1982_v33  ;;  %v1009_v17 = vsub.f32 %v5888_v10, %v962_v1  ;;  %v1010_v25 = vsub.f32 %v5889_v56, %v962_v1  ;;  %v4929_v6 = vpop.eup %3396  ;;  %v2169_v8 = vpack.c.bf16 %v3395_v40, %v4889_v36 }
 0x243   : > { %5887 = vst [vmem:[#allocation25_spill] sm:$0xff] %v4924_v3  ;;  %3416 = vpow2.f32 %v1057_v62  ;;  %v4933_v34 = vpop.eup %3398  ;;  %v1053_v7 = vmul.f32 1.442695, %v1005_v16  ;;  %v1055_v33 = vmul.f32 1.442695, %v1006_v12  ;;  %v4938_v10 = vadd.f32 %v3395_v40, %v4919_v4  ;;  %v5897_v16 = vld [vmem:[#allocation50_spill] sm:$0xff] }
 0x244   : > { %3418 = vpow2.f32 %v1059_v53  ;;  %v1061_v57 = vmul.f32 1.442695, %v1009_v17  ;;  %v1063_v50 = vmul.f32 1.442695, %v1010_v25  ;;  %2281 = vmatmul.mubr.bf16.gmra.mrb[12].mxu1 %v2166_v42  ;;  %v4935_v46 = vpop.eup %3400  ;;  %v967_v1 = vpop.permute.xlu0 %966  ;;  %v4942_v62 = vadd.f32 %v4933_v34, %v4929_v6  ;;  %v5894_v53 = vld [vmem:[#allocation54_spill] sm:$0xff]  ;;  %v5895_v17 = vld [vmem:[#allocation55_spill] sm:$0xff] }
 0x245   : > { %v972_v38 = vpop.permute.xlu1 %971  ;;  %2288 = vmatprep.mubr.bf16.mxu1 %v2169_v8  ;;  %5892 = vst [vmem:[#allocation38_spill] sm:$0xff] %v4938_v10  ;;  %v3403_v36 = vpop.eup %3402  ;;  %v5896_v42 = vld [vmem:[#allocation49_spill] sm:$0xff]  ;;  %v1012_v24 = vsub.f32 %v5897_v16, %v967_v1  ;;  %v5899_v16 = vld [vmem:[#allocation18_spill] sm:$0xff] }
 0x246   : > { %5893 = vst [vmem:[#allocation40_spill] sm:$0xff] %v4942_v62  ;;  %3420 = vpow2.f32 %v1061_v57  ;;  %v1013_v59 = vsub.f32 %v5894_v53, %v972_v38  ;;  %v1014_v56 = vsub.f32 %v5895_v17, %v972_v38  ;;  %v1011_v25 = vsub.f32 %v5896_v42, %v967_v1 }
 0x247   : > { %v4947_v2 = vpop.eup %3404  ;;  %3422 = vpow2.f32 %v1063_v50  ;;  %v1067_v57 = vmul.f32 1.442695, %v1012_v24  ;;  %v2168_v38 = vpack.c.bf16 %v4919_v4, %v4887_v0  ;;  %v2171_v17 = vpack.c.bf16 %v3403_v36, %v4902_v22  ;;  %v5898_v50 = vld [vmem:[#allocation17_spill] sm:$0xff] }
 0x248   : > { %v4950_v12 = vpop.eup %3406  ;;  %3424 = vpow2.f32 %v1053_v7  ;;  %v1069_v40 = vmul.f32 1.442695, %v1013_v59  ;;  %v1071_v8 = vmul.f32 1.442695, %v1014_v56  ;;  %v1065_v41 = vmul.f32 1.442695, %v1011_v25  ;;  %v977_v53 = vpop.permute.xlu0 %976 }
 0x249   : > { %v3409_v62 = vpop.eup %3408  ;;  %3426 = vpow2.f32 %v1055_v33  ;;  %v982_v3 = vpop.permute.xlu1 %981  ;;  %v5900_v7 = vld [vmem:[#allocation53_spill] sm:$0xff]  ;;  %v5901_v33 = vld [vmem:[#allocation56_spill] sm:$0xff] }
 0x24a   : > { %v3411_v42 = vpop.eup %3410  ;;  %3428 = vpow2.f32 %v1069_v40  ;;  %v1017_v1 = vsub.f32 %v5898_v50, %v982_v3  ;;  %v1018_v15 = vsub.f32 %v5899_v16, %v982_v3  ;;  %v1015_v59 = vsub.f32 %v5900_v7, %v977_v53 }
 0x24b   : > { %v4958_v56 = vpop.eup %3412  ;;  %3430 = vpow2.f32 %v1071_v8  ;;  %v1016_v25 = vsub.f32 %v5901_v33, %v977_v53  ;;  %v1268_v24 = vpack.c.bf16 %v3411_v42, %v4820_v58  ;;  %v1122_v51 = vadd.f32 %v3411_v42, %v3409_v62  ;;  %v5902_v58 = vld [vmem:[#allocation26_spill] sm:$0xff]  ;;  %v5903_v42 = vld [vmem:[#allocation27_spill] sm:$0xff] }
 0x24c   : > { %v4962_v10 = vpop.eup %3414  ;;  %3432 = vpow2.f32 %v1065_v41  ;;  %v1077_v0 = vmul.f32 1.442695, %v1017_v1  ;;  %v1079_v22 = vmul.f32 1.442695, %v1018_v15  ;;  %v1073_v4 = vmul.f32 1.442695, %v1015_v59  ;;  %2289 = vmatmul.mubr.bf16.gmra.mrb[16].mxu1 %v2168_v38  ;;  %v987_v8 = vpop.permute.xlu0 %986 }
 0x24d   : > { %v3417_v40 = vpop.eup %3416  ;;  %3434 = vpow2.f32 %v1067_v57  ;;  %v1075_v3 = vmul.f32 1.442695, %v1016_v25  ;;  %1429 = vmatprep.mubr.bf16.mxu0 %v1268_v24  ;;  %1123 = vadd.xlane.f32.xlu1 %v1122_v51  ;;  %v1267_v50 = vpack.c.bf16 %v3409_v62, %v4818_v54  ;;  %v1019_v53 = vsub.f32 %v5902_v58, %v987_v8 }
 0x24e   : > { %v3419_v16 = vpop.eup %3418  ;;  %3436 = vpow2.f32 %v1077_v0  ;;  %2296 = vmatprep.mubr.bf16.mxu1 %v2171_v17  ;;  %v1020_v7 = vsub.f32 %v5903_v42, %v987_v8  ;;  %v4968_v15 = vadd.f32 %v3403_v36, %v4935_v46  ;;  %v4972_v54 = vadd.f32 %v4950_v12, %v4947_v2 }
 0x24f   : > { %3438 = vpow2.f32 %v1079_v22  ;;  %1430 = vmatmul.mubr.bf16.gmra.mrb[12].mxu0 %v1267_v50  ;;  %v1128_v41 = vadd.f32 %v3419_v16, %v3417_v40  ;;  %v1081_v38 = vmul.f32 1.442695, %v1019_v53  ;;  %v4976_v17 = vadd.f32 %v4962_v10, %v4958_v56 }
 0x250   : > { %v3421_v57 = vpop.eup %3420  ;;  %3440 = vpow2.f32 %v1073_v4  ;;  %v1083_v51 = vmul.f32 1.442695, %v1020_v7  ;;  %v2170_v36 = vpack.c.bf16 %v4935_v46, %v4900_v14  ;;  %v2173_v25 = vpack.c.bf16 %v4950_v12, %v4915_v39 }
 0x251   : > { %v3423_v62 = vpop.eup %3422  ;;  %3442 = vpow2.f32 %v1075_v3  ;;  %1129 = vadd.xlane.f32.xlu1 %v1128_v41  ;;  %v2172_v39 = vpack.c.bf16 %v4947_v2, %v4912_v35  ;;  %v2174_v35 = vpack.c.bf16 %v4958_v56, %v4929_v6  ;;  %v871_v56 = vsub.f32 %v4665_v19, %v4678_v48 }
 0x252   : > { %v3425_v1 = vpop.eup %3424  ;;  %3444 = vpow2.f32 %v1081_v38  ;;  %v1131_v58 = vadd.f32 %v3423_v62, %v3421_v57  ;;  %v875_v48 = vsub.f32 %v4596_v32, %v4613_v29 }
 0x253   : > { %v3427_v59 = vpop.eup %3426  ;;  %3446 = vpow2.f32 %v1083_v51  ;;  %v1269_v33 = vpack.c.bf16 %v3417_v40, %v3425_v1 }
 0x254   : > { %v3429_v24 = vpop.eup %3428  ;;  %v1270_v0 = vpack.c.bf16 %v3419_v16, %v3427_v59  ;;  %v1125_v22 = vadd.f32 %v3427_v59, %v3425_v1  ;;  %2297 = vmatmul.mubr.bf16.gmra.mrb[20].mxu1 %v2170_v36  ;;  %v2175_v16 = vpack.c.bf16 %v4962_v10, %v4933_v34  ;;  %v5904_v34 = vld [vmem:[#allocation20_spill] sm:$0xff] }
 0x255   : > { %v3431_v4 = vpop.eup %3430  ;;  %2304 = vmatprep.mubr.bf16.mxu1 %v2173_v25  ;;  %v5905_v10 = vsub.f32 %v4499_v60, %v5904_v34  ;;  %v5920_v34 = vld [vmem:[#allocation59_spill] sm:$0xff] }
 0x256   : > { %v3433_v3 = vpop.eup %3432  ;;  %1437 = vmatprep.mubr.bf16.mxu0 %v1270_v0  ;;  %1126 = vadd.xlane.f32.xlu0 %v1125_v22  ;;  %v1137_v7 = vadd.f32 %v3431_v4, %v3429_v24  ;;  %v5907_v0 = vsub.f32 %v4501_v18, %v4513_v27  ;;  %v873_v27 = vsub.f32 %v4701_v26, %v4714_v23  ;;  %v905_v23 = vmul.f32 1.442695, %v875_v48  ;;  %v5934_v48 = vld [vmem:[#allocation64_spill] sm:$0xff] }
 0x257   : > { %v3435_v50 = vpop.eup %3434  ;;  %1438 = vmatmul.mubr.bf16.gmra.mrb[16].mxu0 %v1269_v33  ;;  %v1271_v51 = vpack.c.bf16 %v3433_v3, %v3421_v57  ;;  %v889_v2 = vmul.f32 1.442695, %v5905_v10  ;;  %v5906_v57 = vld [vmem:[#allocation60_spill] sm:$0xff] }
 0x258   : > { %v3437_v8 = vpop.eup %3436  ;;  %v1272_v14 = vpack.c.bf16 %v3435_v50, %v3423_v62  ;;  %v1134_v46 = vadd.f32 %v3435_v50, %v3433_v3  ;;  %v869_v59 = vsub.f32 %v5906_v57, %v4587_v45  ;;  %v887_v22 = vmul.f32 1.442695, %v5907_v0  ;;  %v5926_v0 = vld [vmem:[#allocation62_spill] sm:$0xff] }
 0x259   : > { %v3439_v53 = vpop.eup %3438  ;;  %3448 = vpow2.f32 %v889_v2  ;;  %v870_v45 = vsub.f32 %v4646_v13, %v4660_v37  ;;  %v5922_v2 = vld [vmem:[#allocation15_spill] sm:$0xff] }
 0x25a   : > { %v3441_v40 = vpop.eup %3440  ;;  %1132 = vadd.xlane.f32.xlu0 %v1131_v58  ;;  %1445 = vmatprep.mubr.bf16.mxu0 %v1272_v14  ;;  %v1143_v36 = vadd.f32 %v3439_v53, %v3437_v8  ;;  %v893_v6 = vmul.f32 1.442695, %v869_v59  ;;  %3450 = vpow2.f32 %v887_v22  ;;  %v872_v58 = vsub.f32 %v4683_v63, %v4696_v43  ;;  %v5923_v59 = vld [vmem:[#allocation57_spill] sm:$0xff] }
 0x25b   : > { %v3443_v12 = vpop.eup %3442  ;;  %1135 = vadd.xlane.f32.xlu1 %v1134_v46  ;;  %v1273_v33 = vpack.c.bf16 %v3441_v40, %v3429_v24  ;;  %v897_v24 = vmul.f32 1.442695, %v871_v56  ;;  %v901_v14 = vmul.f32 1.442695, %v873_v27  ;;  %v876_v43 = vsub.f32 %v4736_v31, %v4748_v55  ;;  %v5929_v56 = vld [vmem:[#allocation28_spill] sm:$0xff] }
 0x25c   : > { %v3445_v42 = vpop.eup %3444  ;;  %v1140_v41 = vadd.f32 %v3443_v12, %v3441_v40  ;;  %2305 = vmatmul.mubr.bf16.gmra.mrb[24].mxu1 %v2172_v39  ;;  %v1274_v62 = vpack.c.bf16 %v3443_v12, %v3431_v4  ;;  %v868_v4 = vsub.f32 %v4622_v9, %v4640_v47  ;;  %3452 = vpow2.f32 %v893_v6  ;;  %v5928_v6 = vld [vmem:[#allocation12_spill] sm:$0xff] }
 0x25d   : > { %v3447_v38 = vpop.eup %3446  ;;  %2312 = vmatprep.mubr.bf16.mxu1 %v2175_v16  ;;  %v1275_v50 = vpack.c.bf16 %v3445_v42, %v3437_v8  ;;  %v895_v47 = vmul.f32 1.442695, %v870_v45  ;;  %v899_v37 = vmul.f32 1.442695, %v872_v58  ;;  %v874_v8 = vsub.f32 %v4719_v20, %v4731_v21 }
 0x25e   : > { %1138 = vadd.xlane.f32.xlu0 %v1137_v7  ;;  %v1146_v1 = vadd.f32 %v3447_v38, %v3445_v42  ;;  %v1276_v25 = vpack.c.bf16 %v3447_v38, %v3439_v53  ;;  %v891_v3 = vmul.f32 1.442695, %v868_v4  ;;  %v907_v21 = vmul.f32 1.442695, %v876_v43 }
 0x25f   : > { %1141 = vadd.xlane.f32.xlu1 %v1140_v41  ;;  %1446 = vmatmul.mubr.bf16.gmra.mrb[20].mxu0 %v1271_v51  ;;  %v903_v29 = vmul.f32 1.442695, %v874_v8  ;;  %v5909_v38 = vmov 1  }
 0x260   : > { %1453 = vmatprep.mubr.bf16.mxu0 %v1274_v62  ;;  %3454 = vpow2.f32 %v891_v3  ;;  %v5911_v62 = vld [vmem:[#allocation38_spill] sm:$0xff]  ;;  %v5930_v3 = vsub.f32 %v5928_v6, %v5929_v56 }
 0x261   : > { %3456 = vpow2.f32 %v897_v24  ;;  %v5931_v24 = vld [vmem:[#allocation66_spill] sm:$0xff] }
 0x262   : > { %1144 = vadd.xlane.f32.xlu0 %v1143_v36  ;;  %3458 = vpow2.f32 %v895_v47  ;;  %v1784_v45 = vmul.f32 1.442695, %v5930_v3  ;;  %v5932_v27 = vsub.f32 %v4646_v13, %v5931_v24  ;;  %v5129_v3 = vld [vmem:[#allocation4 + $0x18] sm:$0xff] }
 0x263   : > { %1147 = vadd.xlane.f32.xlu1 %v1146_v1  ;;  %v5008_v46 = vpop.eup %3448  ;;  %3460 = vpow2.f32 %v901_v14  ;;  %v5912_v1 = vld [vmem:[#allocation35_spill] sm:$0xff]  ;;  %v5087_v14 = vld [vmem:[#allocation4] sm:$0xff]  ;;  %5950 = vst [vmem:[#allocation31_spill] sm:$0xff] %v5129_v3 }
 0x264   : > { %2313 = vmatmul.mubr.bf16.gmra.mrb[28].mxu1 %v2174_v35  ;;  %v5013_v53 = vpop.eup %3450  ;;  %3462 = vpow2.f32 %v899_v37  ;;  %v5919_v35 = vld [vmem:[#allocation30_spill] sm:$0xff]  ;;  %5933 = vst [vmem:[#allocation34_spill] sm:$0xff] %v5087_v14  ;;  %v5935_v37 = vsub.f32 %v4501_v18, %v5934_v48 }
 0x265   : > { %3464 = vpow2.f32 %v905_v23  ;;  %v5939_v18 = vld [vmem:[#allocation58_spill] sm:$0xff] }
 0x266   : > { %v5015_v40 = vpop.eup %3452  ;;  %3466 = vpow2.f32 %v903_v29  ;;  %v1786_v23 = vmul.f32 1.442695, %v5935_v37  ;;  %v5936_v29 = vld [vmem:[#allocation68_spill] sm:$0xff] }
 0x267   : > { %1454 = vmatmul.mubr.bf16.gmra.mrb[24].mxu0 %v1273_v33  ;;  %3468 = vpow2.f32 %v907_v21  ;;  %v5937_v43 = vsub.f32 %v4683_v63, %v5936_v29  ;;  %v5096_v21 = vld [vmem:[#allocation4 + $0x8] sm:$0xff] }
 0x268   : > { %1461 = vmatprep.mubr.bf16.mxu0 %v1276_v25  ;;  %5938 = vst [vmem:[#allocation36_spill] sm:$0xff] %v5096_v21 }
 0x269   : > { %v1798_v13 = vmul.f32 1.442695, %v5937_v43  ;;  %v5952_v43 = vld [vmem:[#allocation61_spill] sm:$0xff] }
 0x26a   : > { %v5021_v39 = vpop.eup %3454 }
 0x26b   : > { %v5023_v12 = vpop.eup %3456 }
 0x26c   : > { %v5027_v16 = vpop.eup %3458 }
 0x26d   : > { %v5029_v42 = vpop.eup %3460 }
 0x26e   : > { %v5033_v55 = vpop.eup %3462 }
 0x26f   : > { %1462 = vmatmul.mubr.bf16.gmra.mrb[28].mxu0 %v1275_v50  ;;  %v5035_v7 = vpop.eup %3464  ;;  %v1794_v50 = vmul.f32 1.442695, %v5932_v27 }
 0x270   : > { %5908 = vst [vmem:[#allocation41_spill] sm:$0xff] %v5035_v7  ;;  %v5039_v41 = vpop.eup %3466 }
 0x271   : > { %v5043_v51 = vpop.eup %3468 }
 0x272   : > { %5910 = vst [vmem:[#allocation33_spill] sm:$0xff] %v5043_v51 }
 0x274   : > { %1197 = vperm.xlu1 %3290, %v5008_v46  }
 0x278   : > { %1207 = vperm.xlu1 %3290, %v5015_v40   ;;  %1192 = vperm.xlu0 %3291, %v5013_v53  }
 0x27c   : > { %1217 = vperm.xlu1 %3290, %v5023_v12   ;;  %1202 = vperm.xlu0 %3291, %v5021_v39  }
 0x280   : > { %1227 = vperm.xlu1 %3290, %v5029_v42   ;;  %1212 = vperm.xlu0 %3291, %v5027_v16  }
 0x284   : > { %1237 = vperm.xlu1 %3290, %v5035_v7   ;;  %1222 = vperm.xlu0 %3291, %v5033_v55   ;;  %v5245_v7 = vld [vmem:[#allocation4 + $0x48] sm:$0xff] }
 0x285   : > { %5975 = vst [vmem:[#allocation47_spill] sm:$0xff] %v5245_v7 }
 0x288   : > { %1232 = vperm.xlu0 %3291, %v5039_v41   ;;  %3293 = vset.pattern.permute.xlu1 %v5909_v38 }
 0x28c   : > { %1242 = vperm.xlu0 %3291, %v5043_v51  }
 0x290   : > { %3292 = vset.pattern.permute.xlu0 %v5909_v38  ;;  %v1173_v38 = vpop.permute.xlu1 %1172 }
 0x2a8   : > { %2001 = vadd.xlane.f32.xlu1 %v4839_v11  ;;  %v5913_v11 = vld [vmem:[#allocation24_spill] sm:$0xff] }
 0x2ab   : > { %2004 = vadd.xlane.f32.xlu0 %v4837_v52  ;;  %v1168_v52 = vpop.permute.xlu0 %1167 }
 0x2ac   : > { %2010 = vadd.xlane.f32.xlu1 %v4853_v30  ;;  %v5915_v30 = vld [vmem:[#allocation19_spill] sm:$0xff] }
 0x2af   : > { %2007 = vadd.xlane.f32.xlu0 %v4846_v49  ;;  %v5914_v49 = vld [vmem:[#allocation25_spill] sm:$0xff]  ;;  %v1183_v36 = vpop.permute.xlu0 %1182 }
 0x2b0   : > { %2016 = vadd.xlane.f32.xlu1 %v4873_v61 }
 0x2b3   : > { %2013 = vadd.xlane.f32.xlu0 %v4860_v5  ;;  %v5916_v5 = vld [vmem:[#allocation22_spill] sm:$0xff]  ;;  %v5072_v25 = vpop.xlane.xlu0 %1105 }
 0x2b4   : > { %2022 = vadd.xlane.f32.xlu1 %v4917_v44  ;;  %v5917_v61 = vsub.f32 %v5915_v30, %v5916_v5  ;;  %v5940_v5 = vsub.f32 %v4499_v60, %v5939_v18 }
 0x2b6   : > { %v1778_v44 = vmul.f32 1.442695, %v5917_v61  ;;  %v1788_v61 = vmul.f32 1.442695, %v5940_v5 }
 0x2b7   : > { %2019 = vadd.xlane.f32.xlu0 %v4885_v28  ;;  %v5918_v28 = vld [vmem:[#allocation40_spill] sm:$0xff]  ;;  %v5083_v47 = vpop.xlane.xlu0 %1108 }
 0x2b8   : > { %2028 = vadd.xlane.f32.xlu1 %v5911_v62  ;;  %3470 = vpow2.f32 %v1778_v44 }
 0x2bb   : > { %2025 = vadd.xlane.f32.xlu0 %v5912_v1  ;;  %v1245_v1 = vmul.f32 %v1168_v52, %v5087_v14  ;;  %v5105_v63 = vpop.xlane.xlu0 %1114  ;;  %v5942_v52 = vld [vmem:[#allocation70_spill] sm:$0xff]  ;;  %v5231_v14 = vld [vmem:[#allocation4 + $0x38] sm:$0xff] }
 0x2bc   : > { %2034 = vadd.xlane.f32.xlu1 %v4968_v15  ;;  %v5921_v15 = vsub.f32 %v5919_v35, %v5920_v34  ;;  %5971 = vst [vmem:[#allocation43_spill] sm:$0xff] %v5231_v14 }
 0x2be   : > { %v1780_v10 = vmul.f32 1.442695, %v5921_v15  ;;  %v5943_v15 = vsub.f32 %v4719_v20, %v5942_v52  ;;  %v5948_v20 = vld [vmem:[#allocation71_spill] sm:$0xff] }
 0x2bf   : > { %2031 = vadd.xlane.f32.xlu0 %v5913_v11  ;;  %v5949_v6 = vsub.f32 %v4736_v31, %v5948_v20 }
 0x2c0   : > { %2040 = vadd.xlane.f32.xlu1 %v4972_v54  ;;  %v5924_v54 = vsub.f32 %v5922_v2, %v5923_v59  ;;  %3472 = vpow2.f32 %v1780_v10  ;;  %v1802_v10 = vmul.f32 1.442695, %v5943_v15 }
 0x2c1   : > { %v1806_v56 = vmul.f32 1.442695, %v5949_v6 }
 0x2c2   : > { %v1776_v33 = vmul.f32 1.442695, %v5924_v54  ;;  %v5085_v58 = vpop.eup %3470  ;;  %v5119_v54 = vld [vmem:[#allocation4 + $0x10] sm:$0xff] }
 0x2c3   : > { %2037 = vadd.xlane.f32.xlu0 %v5914_v49  ;;  %5945 = vst [vmem:[#allocation46_spill] sm:$0xff] %v5119_v54 }
 0x2c4   : > { %2046 = vadd.xlane.f32.xlu1 %v4976_v17  ;;  %v5925_v17 = vld [vmem:[#allocation16_spill] sm:$0xff]  ;;  %3474 = vpow2.f32 %v1776_v33  ;;  %v1178_v33 = vpop.permute.xlu1 %1177 }
 0x2c5   : > { %v5927_v22 = vsub.f32 %v5925_v17, %v5926_v0  ;;  %v5946_v17 = vld [vmem:[#allocation65_spill] sm:$0xff]  ;;  %v1247_v27 = vmul.f32 %v1178_v33, %v5119_v54 }
 0x2c6   : > { %v5947_v0 = vsub.f32 %v4622_v9, %v5946_v17 }
 0x2c7   : > { %2043 = vadd.xlane.f32.xlu0 %v5918_v28  ;;  %v1782_v4 = vmul.f32 1.442695, %v5927_v22  ;;  %v1246_v28 = vmul.f32 %v1173_v38, %v5096_v21 }
 0x2c8   : > { %v1790_v22 = vmul.f32 1.442695, %v5947_v0  ;;  %v1188_v18 = vpop.permute.xlu1 %1187 }
 0x2c9   : > { %3476 = vpow2.f32 %v1782_v4 }
 0x2ca   : > { %3478 = vpow2.f32 %v1784_v45  ;;  %v5099_v30 = vpop.eup %3472 }
 0x2cb   : > { %3480 = vpow2.f32 %v1794_v50  ;;  %v5134_v50 = vpop.xlane.xlu0 %1120 }
 0x2cc   : > { %3482 = vpow2.f32 %v1786_v23 }
 0x2cd   : > { %3484 = vpow2.f32 %v1798_v13  ;;  %v5953_v13 = vsub.f32 %v5906_v57, %v5952_v43  ;;  %v5956_v57 = vld [vmem:[#allocation67_spill] sm:$0xff] }
 0x2ce   : > { %v5113_v2 = vpop.eup %3474  ;;  %3486 = vpow2.f32 %v1788_v61  ;;  %v5957_v61 = vsub.f32 %v4665_v19, %v5956_v57  ;;  %v5959_v19 = vld [vmem:[#allocation69_spill] sm:$0xff] }
 0x2cf   : > { %3488 = vpow2.f32 %v1802_v10  ;;  %v1792_v38 = vmul.f32 1.442695, %v5953_v13  ;;  %v5960_v20 = vsub.f32 %v4701_v26, %v5959_v19 }
 0x2d0   : > { %3490 = vpow2.f32 %v1790_v22 }
 0x2d1   : > { %3492 = vpow2.f32 %v1806_v56  ;;  %v1800_v6 = vmul.f32 1.442695, %v5960_v20 }
 0x2d2   : > { %3494 = vpow2.f32 %v1792_v38  ;;  %v5198_v38 = vld [vmem:[#allocation4 + $0x28] sm:$0xff] }
 0x2d3   : > { %v3138_v8 = vpop.f32.mrb[0].mxu0  ;;  %v5117_v59 = vpop.eup %3476  ;;  %5966 = vst [vmem:[#allocation11_spill] sm:$0xff] %v5198_v38 }
 0x2d4   : > { %v3139_v62 = vpop.f32.mrb[1].mxu0  ;;  %v5131_v24 = vpop.eup %3478 }
 0x2d5   : > { %2071 = vperm.xlu1 %3293, %v5085_v58   ;;  %v3140_v11 = vadd.f32 %v3139_v62, %v3138_v8  ;;  %v3141_v49 = vpop.f32.mrb[2].mxu0  ;;  %v5136_v37 = vpop.eup %3480  ;;  %v1248_v8 = vmul.f32 %v1183_v36, %v5129_v3  ;;  %v5154_v36 = vld [vmem:[#allocation4 + $0x20] sm:$0xff] }
 0x2d6   : > { %v3142_v44 = vpop.f32.mrb[3].mxu0  ;;  %v5146_v62 = vpop.eup %3482  ;;  %5955 = vst [vmem:[#allocation23_spill] sm:$0xff] %v5154_v36  ;;  %v1249_v52 = vmul.f32 %v1188_v18, %v5154_v36 }
 0x2d7   : > { %v5107_v35 = vadd.f32 %v3140_v11, %v1245_v1  ;;  %v3143_v34 = vadd.f32 %v3142_v44, %v3141_v49  ;;  %v5152_v49 = vpop.eup %3484  ;;  %v1796_v44 = vmul.f32 1.442695, %v5957_v61 }
 0x2d9   : > { %5941 = vst [vmem:[#allocation37_spill] sm:$0xff] %v5107_v35  ;;  %2076 = vperm.xlu1 %3293, %v5099_v30   ;;  %v5115_v60 = vadd.f32 %v3143_v34, %v1246_v28  ;;  %v5161_v34 = vpop.eup %3486  ;;  %3496 = vpow2.f32 %v1796_v44 }
 0x2da   : > { %v5166_v17 = vpop.eup %3488  ;;  %3498 = vpow2.f32 %v1800_v6 }
 0x2db   : > { %5944 = vst [vmem:[#allocation45_spill] sm:$0xff] %v5115_v60  ;;  %v3144_v4 = vpop.f32.mrb[4].mxu0  ;;  %v5175_v56 = vpop.eup %3490 }
 0x2dc   : > { %v3145_v45 = vpop.f32.mrb[5].mxu0 }
 0x2dd   : > { %2081 = vperm.xlu1 %3293, %v5117_v59   ;;  %2066 = vperm.xlu0 %3292, %v5113_v2   ;;  %v3146_v9 = vadd.f32 %v3145_v45, %v3144_v4  ;;  %v3147_v48 = vpop.f32.mrb[6].mxu0  ;;  %v5177_v45 = vpop.eup %3492 }
 0x2de   : > { %v3148_v23 = vpop.f32.mrb[7].mxu0  ;;  %5961 = vst [vmem:[#allocation8_spill] sm:$0xff] %v5177_v45 }
 0x2df   : > { %v5139_v29 = vadd.f32 %v3146_v9, %v1247_v27  ;;  %v3149_v31 = vadd.f32 %v3148_v23, %v3147_v48  ;;  %v5963_v9 = vld [vmem:[#allocation63_spill] sm:$0xff] }
 0x2e0   : > { %v5964_v48 = vsub.f32 %v4596_v32, %v5963_v9 }
 0x2e1   : > { %5951 = vst [vmem:[#allocation32_spill] sm:$0xff] %v5139_v29  ;;  %2086 = vperm.xlu1 %3293, %v5131_v24   ;;  %2111 = vperm.xlu0 %3292, %v5136_v37   ;;  %v5148_v1 = vadd.f32 %v3149_v31, %v1248_v8  ;;  %v5186_v8 = vpop.xlane.xlu1 %1102  ;;  %v5188_v31 = vpop.eup %3494 }
 0x2e2   : > { %v1804_v23 = vmul.f32 1.442695, %v5964_v48 }
 0x2e3   : > { %5954 = vst [vmem:[#allocation21_spill] sm:$0xff] %v5148_v1  ;;  %v5150_v11 = vpop.xlane.xlu0 %1126  ;;  %v3150_v5 = vpop.f32.mrb[8].mxu0 }
 0x2e4   : > { %v3151_v28 = vpop.f32.mrb[9].mxu0  ;;  %3500 = vpow2.f32 %v1804_v23  ;;  %v5195_v13 = vpop.eup %3496 }
 0x2e5   : > { %2091 = vperm.xlu1 %3293, %v5146_v62   ;;  %2121 = vperm.xlu0 %3292, %v5152_v49   ;;  %v3152_v15 = vadd.f32 %v3151_v28, %v3150_v5  ;;  %v3153_v10 = vpop.f32.mrb[10].mxu0  ;;  %v5191_v26 = vpop.xlane.xlu1 %1111 }
 0x2e6   : > { %v3154_v0 = vpop.f32.mrb[11].mxu0  ;;  %v5200_v18 = vpop.eup %3498 }
 0x2e7   : > { %v5164_v33 = vpop.xlane.xlu0 %1132  ;;  %v5168_v22 = vadd.f32 %v3152_v15, %v1249_v52  ;;  %v3155_v4 = vadd.f32 %v3154_v0, %v3153_v10 }
 0x2e9   : > { %5958 = vst [vmem:[#allocation29_spill] sm:$0xff] %v5168_v22  ;;  %2096 = vperm.xlu1 %3293, %v5161_v34   ;;  %2131 = vperm.xlu0 %3292, %v5166_v17   ;;  %v5203_v57 = vpop.xlane.xlu1 %1117 }
 0x2eb   : > { %v5179_v27 = vpop.xlane.xlu0 %1138 }
 0x2ec   : > { %5962 = vst [vmem:[#allocation9_spill] sm:$0xff] %v5179_v27 }
 0x2ed   : > { %2101 = vperm.xlu1 %3293, %v5175_v56   ;;  %2141 = vperm.xlu0 %3292, %v5177_v45   ;;  %v5210_v28 = vpop.xlane.xlu1 %1123  ;;  %v540_v45 = vld [vmem:[#allocation3 + $0x10] sm:$0xff] }
 0x2ee   : > { %v5208_v44 = vpop.eup %3500 }
 0x2ef   : > { %v5193_v43 = vpop.xlane.xlu0 %1144  ;;  %5968 = vst [vmem:[#allocation42_spill] sm:$0xff] %v5208_v44 }
 0x2f0   : > { %5965 = vst [vmem:[#allocation10_spill] sm:$0xff] %v5193_v43 }
 0x2f1   : > { %2106 = vperm.xlu1 %3293, %v5188_v31   ;;  %v5213_v20 = vpop.xlane.xlu1 %1129 }
 0x2f5   : > { %2116 = vperm.xlu1 %3293, %v5195_v13  }
 0x2f7   : > { %v1193_v32 = vpop.permute.xlu0 %1192 }
 0x2f8   : > { %v1250_v5 = vmul.f32 %v1193_v32, %v5198_v38 }
 0x2f9   : > { %2126 = vperm.xlu1 %3293, %v5200_v18  }
 0x2fa   : > { %v5206_v61 = vadd.f32 %v3155_v4, %v1250_v5  ;;  %v5217_v4 = vpop.xlane.xlu1 %1135 }
 0x2fb   : > { %v1203_v38 = vpop.permute.xlu0 %1202 }
 0x2fc   : > { %5967 = vst [vmem:[#allocation39_spill] sm:$0xff] %v5206_v61  ;;  %v1252_v60 = vmul.f32 %v1203_v38, %v5231_v14 }
 0x2fd   : > { %2136 = vperm.xlu1 %3293, %v5208_v44  }
 0x2ff   : > { %v3202_v52 = vpop.f32.mrb[0].mxu1 }
 0x300   : > { %v3203_v15 = vpop.f32.mrb[1].mxu1 }
 0x301   : > { %v3204_v10 = vadd.f32 %v3203_v15, %v3202_v52  ;;  %v3205_v0 = vpop.f32.mrb[2].mxu1  ;;  %v5220_v52 = vpop.xlane.xlu1 %1141 }
 0x302   : > { %v3206_v19 = vpop.f32.mrb[3].mxu1 }
 0x303   : > { %v3207_v6 = vadd.f32 %v3206_v19, %v3205_v0  ;;  %2337 = vrot.lane.b32.xlu1 %v3204_v10, %s3615_s11 }
 0x305   : > { %2339 = vrot.lane.b32.xlu0 %v3207_v6, %s3615_s11  ;;  %v5223_v6 = vpop.xlane.xlu1 %1147 }
 0x306   : > { %5969 = vst [vmem:[#allocation13_spill] sm:$0xff] %v5223_v6 }
 0x307   : > { %v3208_v9 = vpop.f32.mrb[4].mxu1 }
 0x308   : > { %v3209_v48 = vpop.f32.mrb[5].mxu1 }
 0x309   : > { %v3210_v23 = vadd.f32 %v3209_v48, %v3208_v9  ;;  %v3211_v32 = vpop.f32.mrb[6].mxu1 }
 0x30a   : > { %v3212_v5 = vpop.f32.mrb[7].mxu1 }
 0x30b   : > { %v3213_v22 = vadd.f32 %v3212_v5, %v3211_v32  ;;  %2341 = vrot.lane.b32.xlu1 %v3210_v23, %s3615_s11  ;;  %v1198_v32 = vpop.permute.xlu1 %1197 }
 0x30d   : > { %2343 = vrot.lane.b32.xlu0 %v3213_v22, %s3615_s11 }
 0x30f   : > { %v3214_v15 = vpop.f32.mrb[8].mxu1 }
 0x310   : > { %v3215_v0 = vpop.f32.mrb[9].mxu1 }
 0x311   : > { %v3216_v19 = vadd.f32 %v3215_v0, %v3214_v15  ;;  %v3217_v10 = vpop.f32.mrb[10].mxu1  ;;  %v1208_v15 = vpop.permute.xlu1 %1207 }
 0x312   : > { %v3218_v61 = vpop.f32.mrb[11].mxu1 }
 0x313   : > { %v3219_v29 = vadd.f32 %v3218_v61, %v3217_v10  ;;  %2345 = vrot.lane.b32.xlu1 %v3216_v19, %s3615_s11  ;;  %v5229_v61 = vld [vmem:[#allocation4 + $0x30] sm:$0xff]  ;;  %v1213_v19 = vpop.permute.xlu0 %1212 }
 0x314   : > { %5970 = vst [vmem:[#allocation14_spill] sm:$0xff] %v5229_v61 }
 0x315   : > { %2347 = vrot.lane.b32.xlu0 %v3219_v29, %s3615_s11 }
 0x317   : > { %v3220_v9 = vpop.f32.mrb[12].mxu1  ;;  %v1223_v43 = vpop.permute.xlu0 %1222 }
 0x318   : > { %v3221_v48 = vpop.f32.mrb[13].mxu1 }
 0x319   : > { %v3222_v23 = vadd.f32 %v3221_v48, %v3220_v9  ;;  %v3223_v5 = vpop.f32.mrb[14].mxu1 }
 0x31a   : > { %v3224_v36 = vpop.f32.mrb[15].mxu1 }
 0x31b   : > { %v3225_v22 = vadd.f32 %v3224_v36, %v3223_v5  ;;  %2349 = vrot.lane.b32.xlu1 %v3222_v23, %s3615_s11  ;;  %v1251_v36 = vmul.f32 %v1198_v32, %v5229_v61 }
 0x31d   : > { %2351 = vrot.lane.b32.xlu0 %v3225_v22, %s3615_s11  ;;  %v1218_v22 = vpop.permute.xlu1 %1217 }
 0x31f   : > { %v3226_v0 = vpop.f32.mrb[16].mxu1 }
 0x320   : > { %v3227_v35 = vpop.f32.mrb[17].mxu1 }
 0x321   : > { %v3228_v10 = vadd.f32 %v3227_v35, %v3226_v0  ;;  %v3229_v29 = vpop.f32.mrb[18].mxu1  ;;  %v5243_v61 = vpop.permute.xlu1 %1227 }
 0x322   : > { %v3156_v54 = vpop.f32.mrb[12].mxu0  ;;  %v3230_v1 = vpop.f32.mrb[19].mxu1 }
 0x323   : > { %v3157_v9 = vpop.f32.mrb[13].mxu0  ;;  %v3231_v48 = vadd.f32 %v3230_v1, %v3229_v29  ;;  %2353 = vrot.lane.b32.xlu1 %v3228_v10, %s3615_s11  ;;  %v5241_v29 = vld [vmem:[#allocation4 + $0x40] sm:$0xff] }
 0x324   : > { %v3158_v23 = vadd.f32 %v3157_v9, %v3156_v54  ;;  %v3159_v5 = vpop.f32.mrb[14].mxu0  ;;  %5974 = vst [vmem:[#allocation52_spill] sm:$0xff] %v5241_v29 }
 0x325   : > { %v3160_v3 = vpop.f32.mrb[15].mxu0  ;;  %2355 = vrot.lane.b32.xlu0 %v3231_v48, %s3615_s11 }
 0x326   : > { %v5237_v35 = vadd.f32 %v3158_v23, %v1251_v36  ;;  %v3161_v0 = vadd.f32 %v3160_v3, %v3159_v5  ;;  %v1253_v3 = vmul.f32 %v1208_v15, %v5241_v29  ;;  %v5251_v5 = vpop.permute.xlu0 %1232  ;;  %v5259_v15 = vpop.permute.xlu1 %1237  ;;  %v5979_v29 = vld [vmem:[#allocation73_spill] sm:$0xff] }
 0x327   : > { %v3232_v21 = vpop.f32.mrb[20].mxu1 }
 0x328   : > { %5972 = vst [vmem:[#allocation44_spill] sm:$0xff] %v5237_v35  ;;  %v5239_v44 = vadd.f32 %v3161_v0, %v1252_v60  ;;  %v3233_v1 = vpop.f32.mrb[21].mxu1  ;;  %v538_v35 = vld [vmem:[#allocation3] sm:$0xff] }
 0x329   : > { %v3234_v10 = vadd.f32 %v3233_v1, %v3232_v21  ;;  %v3235_v32 = vpop.f32.mrb[22].mxu1  ;;  %v1254_v21 = vmul.f32 %v1213_v19, %v5245_v7  ;;  %v1085_v19 = vmul.f32 %v5979_v29, %v538_v35  ;;  %v5262_v7 = vld [vmem:[#allocation4 + $0x58] sm:$0xff] }
 0x32a   : > { %5973 = vst [vmem:[#allocation51_spill] sm:$0xff] %v5239_v44  ;;  %v3162_v54 = vpop.f32.mrb[16].mxu0  ;;  %v3236_v9 = vpop.f32.mrb[23].mxu1 }
 0x32b   : > { %v3163_v48 = vpop.f32.mrb[17].mxu0  ;;  %v3237_v38 = vadd.f32 %v3236_v9, %v3235_v32  ;;  %2357 = vrot.lane.b32.xlu1 %v3234_v10, %s3615_s11  ;;  %v5257_v10 = vld [vmem:[#allocation4 + $0x50] sm:$0xff] }
 0x32c   : > { %v3164_v36 = vadd.f32 %v3163_v48, %v3162_v54  ;;  %v3165_v60 = vpop.f32.mrb[18].mxu0  ;;  %5978 = vst [vmem:[#allocation55_spill] sm:$0xff] %v5257_v10 }
 0x32d   : > { %v3166_v23 = vpop.f32.mrb[19].mxu0  ;;  %2359 = vrot.lane.b32.xlu0 %v3237_v38, %s3615_s11 }
 0x32e   : > { %v5253_v0 = vadd.f32 %v3164_v36, %v1253_v3  ;;  %v3167_v1 = vadd.f32 %v3166_v23, %v3165_v60  ;;  %v539_v60 = vld [vmem:[#allocation3 + $0x8] sm:$0xff]  ;;  %v1255_v23 = vmul.f32 %v1218_v22, %v5257_v10  ;;  %v5980_v22 = vld [vmem:[#allocation72_spill] sm:$0xff] }
 0x32f   : > { %v3238_v44 = vpop.f32.mrb[24].mxu1  ;;  %v1086_v10 = vmul.f32 %v5980_v22, %v539_v60  ;;  %v5982_v22 = vld [vmem:[#allocation74_spill] sm:$0xff] }
 0x330   : > { %5976 = vst [vmem:[#allocation48_spill] sm:$0xff] %v5253_v0  ;;  %v5255_v14 = vadd.f32 %v3167_v1, %v1254_v21  ;;  %v3239_v32 = vpop.f32.mrb[25].mxu1  ;;  %v5266_v21 = vpop.permute.xlu0 %1242  ;;  %v541_v0 = vld [vmem:[#allocation3 + $0x18] sm:$0xff] }
 0x331   : > { %v3240_v54 = vadd.f32 %v3239_v32, %v3238_v44  ;;  %v3241_v9 = vpop.f32.mrb[26].mxu1  ;;  %v1984_v44 = vmul.f32 %v5113_v2, %v538_v35  ;;  %v1149_v32 = vadd.f32 %v5186_v8, %v1085_v19  ;;  %v5981_v2 = vld [vmem:[#allocation76_spill] sm:$0xff]  ;;  %v543_v8 = vld [vmem:[#allocation3 + $0x28] sm:$0xff] }
 0x332   : > { %5977 = vst [vmem:[#allocation54_spill] sm:$0xff] %v5255_v14  ;;  %v3168_v48 = vpop.f32.mrb[20].mxu0  ;;  %v3242_v38 = vpop.f32.mrb[27].mxu1  ;;  %v1088_v35 = vmul.f32 %v5981_v2, %v541_v0  ;;  %v1986_v2 = vmul.f32 %v5099_v30, %v540_v45 }
 0x333   : > { %v3169_v3 = vpop.f32.mrb[21].mxu0  ;;  %v3243_v36 = vadd.f32 %v3242_v38, %v3241_v9  ;;  %2361 = vrot.lane.b32.xlu1 %v3240_v54, %s3615_s11  ;;  %v1256_v9 = vmul.f32 %v1223_v43, %v5262_v7 }
 0x334   : > { %v3170_v1 = vadd.f32 %v3169_v3, %v3168_v48  ;;  %v3171_v14 = vpop.f32.mrb[22].mxu0  ;;  %v1985_v48 = vmul.f32 %v5085_v58, %v539_v60 }
 0x335   : > { %v2002_v6 = vpop.xlane.xlu1 %2001  ;;  %v3172_v29 = vpop.f32.mrb[23].mxu0  ;;  %2363 = vrot.lane.b32.xlu0 %v3243_v36, %s3615_s11  ;;  %v1987_v36 = vmul.f32 %v5117_v59, %v541_v0  ;;  %v1090_v59 = vmul.f32 %v5013_v53, %v543_v8  ;;  %v5288_v0 = vld [vmem:[#allocation4 + $0x68] sm:$0xff] }
 0x336   : > { %v5272_v38 = vadd.f32 %v3170_v1, %v1255_v23  ;;  %v2048_v54 = vadd.f32 %v2002_v6, %v1984_v44  ;;  %v3173_v27 = vadd.f32 %v3172_v29, %v3171_v14  ;;  %v1150_v6 = vadd.f32 %v5072_v25, %v1086_v10  ;;  %v5282_v14 = vld [vmem:[#allocation4 + $0x60] sm:$0xff] }
 0x337   : > { %v3244_v3 = vpop.f32.mrb[28].mxu1  ;;  %v1152_v29 = vadd.f32 %v5191_v26, %v1088_v35  ;;  %v1257_v26 = vmul.f32 %v5243_v61, %v5282_v14  ;;  %v1154_v30 = vadd.f32 %v5203_v57, %v1090_v59  ;;  %v1258_v61 = vmul.f32 %v5251_v5, %v5288_v0 }
 0x338   : > { %v2435_v19 = vsel %vm2401_vm2, %v1149_v32, %v2048_v54  ;;  %v5278_v51 = vadd.f32 %v3173_v27, %v1256_v9  ;;  %v2005_v43 = vpop.xlane.xlu0 %2004  ;;  %v3245_v23 = vpop.f32.mrb[29].mxu1  ;;  %v1087_v32 = vmul.f32 %v5982_v22, %v540_v45  ;;  %v545_v45 = vld [vmem:[#allocation3 + $0x38] sm:$0xff]  ;;  %v544_v22 = vld [vmem:[#allocation3 + $0x30] sm:$0xff] }
 0x339   : > { %2451 = vst.msk [vmem:[#allocation3] sm:$0xff] %vm266_vm0, %v2435_v19  ;;  %v2011_v1 = vpop.xlane.xlu1 %2010  ;;  %v2049_v58 = vadd.f32 %v2005_v43, %v1985_v48  ;;  %v3246_v60 = vadd.f32 %v3245_v23, %v3244_v3  ;;  %v3247_v44 = vpop.f32.mrb[30].mxu1  ;;  %v542_v48 = vld [vmem:[#allocation3 + $0x20] sm:$0xff]  ;;  %v1991_v5 = vmul.f32 %v5175_v56, %v545_v45 }
 0x33a   : > { %v2051_v27 = vadd.f32 %v2011_v1, %v1987_v36  ;;  %v3174_v9 = vpop.f32.mrb[24].mxu0  ;;  %v3248_v54 = vpop.f32.mrb[31].mxu1  ;;  %v1989_v36 = vmul.f32 %v5146_v62, %v543_v8  ;;  %v1151_v23 = vadd.f32 %v5083_v47, %v1087_v32  ;;  %v5983_v8 = vld [vmem:[#allocation75_spill] sm:$0xff]  ;;  %v1988_v57 = vmul.f32 %v5131_v24, %v542_v48 }
 0x33b   : > { %v2436_v25 = vsel %vm2401_vm2, %v1150_v6, %v2049_v58  ;;  %v3175_v10 = vpop.f32.mrb[25].mxu0  ;;  %v3249_v19 = vadd.f32 %v3248_v54, %v3247_v44  ;;  %2365 = vrot.lane.b32.xlu1 %v3246_v60, %s3615_s11  ;;  %v1092_v32 = vmul.f32 %v5021_v39, %v545_v45 }
 0x33c   : > { %v2438_v3 = vsel %vm2401_vm2, %v1152_v29, %v2051_v27  ;;  %2452 = vst.msk [vmem:[#allocation3 + $0x8] sm:$0xff] %vm266_vm0, %v2436_v25  ;;  %v3176_v35 = vadd.f32 %v3175_v10, %v3174_v9  ;;  %v3177_v53 = vpop.f32.mrb[26].mxu0  ;;  %v2008_v43 = vpop.xlane.xlu0 %2007  ;;  %v1089_v29 = vmul.f32 %v5983_v8, %v542_v48  ;;  %v547_v27 = vld [vmem:[#allocation3 + $0x48] sm:$0xff]  ;;  %v5316_v10 = vld [vmem:[#allocation4 + $0x70] sm:$0xff] }
 0x33d   : > { %2454 = vst.msk [vmem:[#allocation3 + $0x18] sm:$0xff] %vm266_vm0, %v2438_v3  ;;  %v2017_v6 = vpop.xlane.xlu1 %2016  ;;  %v2050_v1 = vadd.f32 %v2008_v43, %v1986_v2  ;;  %v3178_v58 = vpop.f32.mrb[27].mxu0  ;;  %2367 = vrot.lane.b32.xlu0 %v3249_v19, %s3615_s11  ;;  %v1156_v39 = vadd.f32 %v5210_v28, %v1092_v32  ;;  %v1094_v3 = vmul.f32 %v5027_v16, %v547_v27 }
 0x33e   : > { %v5304_v60 = vadd.f32 %v3176_v35, %v1257_v26  ;;  %v2053_v44 = vadd.f32 %v2017_v6, %v1989_v36  ;;  %v3179_v62 = vadd.f32 %v3178_v58, %v3177_v53  ;;  %v1153_v25 = vadd.f32 %v5105_v63, %v1089_v29  ;;  %v5322_v35 = vld [vmem:[#allocation4 + $0x78] sm:$0xff]  ;;  %v546_v36 = vld [vmem:[#allocation3 + $0x40] sm:$0xff] }
 0x33f   : > { %v2437_v47 = vsel %vm2401_vm2, %v1151_v23, %v2050_v1  ;;  %v1091_v26 = vmul.f32 %v5008_v46, %v544_v22  ;;  %v1990_v63 = vmul.f32 %v5161_v34, %v544_v22  ;;  %v1259_v43 = vmul.f32 %v5259_v15, %v5316_v10  ;;  %v549_v1 = vld [vmem:[#allocation3 + $0x58] sm:$0xff] }
 0x340   : > { %v2440_v9 = vsel %vm2401_vm2, %v1154_v30, %v2053_v44  ;;  %2453 = vst.msk [vmem:[#allocation3 + $0x10] sm:$0xff] %vm266_vm0, %v2437_v47  ;;  %v5312_v54 = vadd.f32 %v3179_v62, %v1258_v61  ;;  %v2014_v59 = vpop.xlane.xlu0 %2013  ;;  %v1993_v46 = vmul.f32 %v5136_v37, %v547_v27  ;;  %v1158_v6 = vadd.f32 %v5213_v20, %v1094_v3  ;;  %v548_v47 = vld [vmem:[#allocation3 + $0x50] sm:$0xff] }
 0x341   : > { %2456 = vst.msk [vmem:[#allocation3 + $0x28] sm:$0xff] %vm266_vm0, %v2440_v9  ;;  %v2023_v24 = vpop.xlane.xlu1 %2022  ;;  %v2052_v2 = vadd.f32 %v2014_v59, %v1988_v57  ;;  %v1155_v45 = vadd.f32 %v5134_v50, %v1091_v26  ;;  %v1260_v15 = vmul.f32 %v5266_v21, %v5322_v35  ;;  %v1093_v37 = vmul.f32 %v5015_v40, %v546_v36  ;;  %v551_v9 = vld [vmem:[#allocation3 + $0x68] sm:$0xff] }
 0x342   : > { %v2055_v19 = vadd.f32 %v2023_v24, %v1991_v5  ;;  %v3180_v48 = vpop.f32.mrb[28].mxu0  ;;  %v1992_v50 = vmul.f32 %v5188_v31, %v546_v36  ;;  %v1096_v20 = vmul.f32 %v5033_v55, %v549_v1  ;;  %v1995_v21 = vmul.f32 %v5152_v49, %v549_v1  ;;  %v550_v49 = vld [vmem:[#allocation3 + $0x60] sm:$0xff] }
 0x343   : > { %v2439_v56 = vsel %vm2401_vm2, %v1153_v25, %v2052_v2  ;;  %v3181_v53 = vpop.f32.mrb[29].mxu0  ;;  %v1157_v27 = vadd.f32 %v5150_v11, %v1093_v37  ;;  %v1095_v59 = vmul.f32 %v5023_v12, %v548_v47  ;;  %v1994_v24 = vmul.f32 %v5195_v13, %v548_v47 }
 0x344   : > { %v2442_v23 = vsel %vm2401_vm2, %v1156_v39, %v2055_v19  ;;  %2455 = vst.msk [vmem:[#allocation3 + $0x20] sm:$0xff] %vm266_vm0, %v2439_v56  ;;  %v3182_v28 = vadd.f32 %v3181_v53, %v3180_v48  ;;  %v3183_v30 = vpop.f32.mrb[30].mxu0  ;;  %v2020_v16 = vpop.xlane.xlu0 %2019  ;;  %v1160_v31 = vadd.f32 %v5217_v4, %v1096_v20  ;;  %v1098_v2 = vmul.f32 %v5039_v41, %v551_v9  ;;  %v553_v4 = vld [vmem:[#allocation3 + $0x78] sm:$0xff] }
 0x345   : > { %2458 = vst.msk [vmem:[#allocation3 + $0x38] sm:$0xff] %vm266_vm0, %v2442_v23  ;;  %v2029_v34 = vpop.xlane.xlu1 %2028  ;;  %v2054_v58 = vadd.f32 %v2020_v16, %v1990_v63  ;;  %v3184_v61 = vpop.f32.mrb[31].mxu0  ;;  %v1997_v11 = vmul.f32 %v5166_v17, %v551_v9  ;;  %v1159_v48 = vadd.f32 %v5164_v33, %v1095_v59  ;;  %v1097_v41 = vmul.f32 %v5029_v42, %v550_v49  ;;  %v5984_v63 = vld [vmem:[#allocation33_spill] sm:$0xff]  ;;  %v552_v17 = vld [vmem:[#allocation3 + $0x70] sm:$0xff]  ;;  %v5985_v33 = vld [vmem:[#allocation8_spill] sm:$0xff] }
 0x346   : > { %v5336_v44 = vadd.f32 %v3182_v28, %v1259_v43  ;;  %v2057_v62 = vadd.f32 %v2029_v34, %v1993_v46  ;;  %v3185_v8 = vadd.f32 %v3184_v61, %v3183_v30  ;;  %v1162_v3 = vadd.f32 %v5220_v52, %v1098_v2  ;;  %v5986_v30 = vld [vmem:[#allocation9_spill] sm:$0xff]  ;;  %v5991_v2 = vld [vmem:[#allocation36_spill] sm:$0xff] }
 0x347   : > { %v2441_v29 = vsel %vm2401_vm2, %v1155_v45, %v2054_v58  ;;  %v1996_v53 = vmul.f32 %v5200_v18, %v550_v49  ;;  %v1100_v36 = vmul.f32 %v5984_v63, %v553_v4  ;;  %v1999_v23 = vmul.f32 %v5985_v33, %v553_v4  ;;  %v5987_v16 = vld [vmem:[#allocation13_spill] sm:$0xff]  ;;  %v5989_v58 = vld [vmem:[#allocation42_spill] sm:$0xff] }
 0x348   : > { %v2444_v57 = vsel %vm2401_vm2, %v1158_v6, %v2057_v62  ;;  %2457 = vst.msk [vmem:[#allocation3 + $0x30] sm:$0xff] %vm266_vm0, %v2441_v29  ;;  %v5344_v22 = vadd.f32 %v3185_v8, %v1260_v15  ;;  %v2026_v32 = vpop.xlane.xlu0 %2025  ;;  %v1161_v46 = vadd.f32 %v5986_v30, %v1097_v41  ;;  %v5988_v18 = vld [vmem:[#allocation41_spill] sm:$0xff]  ;;  %v1998_v61 = vmul.f32 %v5989_v58, %v552_v17  ;;  %v5990_v8 = vld [vmem:[#allocation10_spill] sm:$0xff] }
 0x349   : > { %2460 = vst.msk [vmem:[#allocation3 + $0x48] sm:$0xff] %vm266_vm0, %v2444_v57  ;;  %v2035_v40 = vpop.xlane.xlu1 %2034  ;;  %v2056_v5 = vadd.f32 %v2026_v32, %v1992_v50  ;;  %v1164_v45 = vadd.f32 %v5987_v16, %v1100_v36  ;;  %v1099_v1 = vmul.f32 %v5988_v18, %v552_v17  ;;  %v5994_v41 = vld [vmem:[#allocation34_spill] sm:$0xff]  ;;  %v5995_v17 = vld [vmem:[#allocation21_spill] sm:$0xff] }
 0x34a   : > { %v2059_v55 = vadd.f32 %v2035_v40, %v1995_v21  ;;  %v5996_v33 = vld [vmem:[#allocation46_spill] sm:$0xff] }
 0x34b   : > { %v2443_v25 = vsel %vm2401_vm2, %v1157_v27, %v2056_v5  ;;  %v1163_v37 = vadd.f32 %v5990_v8, %v1099_v1  ;;  %v6000_v1 = vld [vmem:[#allocation32_spill] sm:$0xff] }
 0x34c   : > { %v2446_v39 = vsel %vm2401_vm2, %v1160_v31, %v2059_v55  ;;  %2459 = vst.msk [vmem:[#allocation3 + $0x40] sm:$0xff] %vm266_vm0, %v2443_v25  ;;  %v2032_v19 = vpop.xlane.xlu0 %2031 }
 0x34d   : > { %2462 = vst.msk [vmem:[#allocation3 + $0x58] sm:$0xff] %vm266_vm0, %v2446_v39  ;;  %v2041_v12 = vpop.xlane.xlu1 %2040  ;;  %v2058_v26 = vadd.f32 %v2032_v19, %v1994_v24 }
 0x34e   : > { %v2061_v13 = vadd.f32 %v2041_v12, %v1997_v11 }
 0x34f   : > { %v2445_v56 = vsel %vm2401_vm2, %v1159_v48, %v2058_v26  ;;  %v5992_v48 = vld [vmem:[#allocation45_spill] sm:$0xff]  ;;  %v5993_v26 = vld [vmem:[#allocation31_spill] sm:$0xff] }
 0x350   : > { %v2448_v43 = vsel %vm2401_vm2, %v1162_v3, %v2061_v13  ;;  %2461 = vst.msk [vmem:[#allocation3 + $0x50] sm:$0xff] %vm266_vm0, %v2445_v56  ;;  %v2038_v28 = vpop.xlane.xlu0 %2037 }
 0x351   : > { %2464 = vst.msk [vmem:[#allocation3 + $0x68] sm:$0xff] %vm266_vm0, %v2448_v43  ;;  %v2047_v52 = vpop.xlane.xlu1 %2046  ;;  %v2060_v42 = vadd.f32 %v2038_v28, %v1996_v53  ;;  %v5997_v28 = vld [vmem:[#allocation37_spill] sm:$0xff] }
 0x352   : > { %v2063_v6 = vadd.f32 %v2047_v52, %v1999_v23  ;;  %v5998_v52 = vld [vmem:[#allocation11_spill] sm:$0xff] }
 0x353   : > { %v2447_v34 = vsel %vm2401_vm2, %v1161_v46, %v2060_v42 }
 0x354   : > { %v2450_v15 = vsel %vm2401_vm2, %v1164_v45, %v2063_v6  ;;  %2463 = vst.msk [vmem:[#allocation3 + $0x60] sm:$0xff] %vm266_vm0, %v2447_v34  ;;  %v2044_v62 = vpop.xlane.xlu0 %2043  ;;  %v5999_v6 = vld [vmem:[#allocation23_spill] sm:$0xff] }
 0x355   : > { %2466 = vst.msk [vmem:[#allocation3 + $0x78] sm:$0xff] %vm266_vm0, %v2450_v15  ;;  %v2072_v29 = vpop.permute.xlu1 %2071  ;;  %v2062_v50 = vadd.f32 %v2044_v62, %v1998_v61  ;;  %v6001_v62 = vld [vmem:[#allocation39_spill] sm:$0xff] }
 0x356   : > { %v2145_v49 = vmul.f32 %v2072_v29, %v5991_v2  ;;  %v6005_v2 = vld [vmem:[#allocation44_spill] sm:$0xff] }
 0x357   : > { %v2449_v20 = vsel %vm2401_vm2, %v1163_v37, %v2062_v50  ;;  %v6002_v37 = vld [vmem:[#allocation14_spill] sm:$0xff]  ;;  %v6003_v50 = vld [vmem:[#allocation29_spill] sm:$0xff] }
 0x358   : > { %2465 = vst.msk [vmem:[#allocation3 + $0x70] sm:$0xff] %vm266_vm0, %v2449_v20 }
 0x359   : > { %v2077_v47 = vpop.permute.xlu1 %2076 }
 0x35a   : > { %v2146_v23 = vmul.f32 %v2077_v47, %v5996_v33 }
 0x35c   : > { %v2067_v57 = vpop.permute.xlu0 %2066 }
 0x35d   : > { %v2082_v21 = vpop.permute.xlu1 %2081  ;;  %v2144_v56 = vmul.f32 %v2067_v57, %v5994_v41  ;;  %v6004_v57 = vld [vmem:[#allocation43_spill] sm:$0xff] }
 0x35e   : > { %v2147_v3 = vmul.f32 %v2082_v21, %v5993_v26 }
 0x360   : > { %v2112_v27 = vpop.permute.xlu0 %2111 }
 0x361   : > { %v2087_v32 = vpop.permute.xlu1 %2086 }
 0x362   : > { %v2148_v18 = vmul.f32 %v2087_v32, %v5999_v6 }
 0x364   : > { %v2122_v40 = vpop.permute.xlu0 %2121 }
 0x365   : > { %v2092_v9 = vpop.permute.xlu1 %2091 }
 0x366   : > { %v2149_v42 = vmul.f32 %v2092_v9, %v5998_v52 }
 0x368   : > { %v5379_v31 = vpop.permute.xlu0 %2131 }
 0x369   : > { %v2097_v5 = vpop.permute.xlu1 %2096 }
 0x36a   : > { %v2150_v29 = vmul.f32 %v2097_v5, %v6002_v37  ;;  %v6007_v5 = vld [vmem:[#allocation52_spill] sm:$0xff] }
 0x36c   : > { %v5381_v25 = vpop.permute.xlu0 %2141 }
 0x36d   : > { %v2102_v55 = vpop.permute.xlu1 %2101 }
 0x36e   : > { %v2151_v21 = vmul.f32 %v2102_v55, %v6004_v57 }
 0x371   : > { %v2107_v59 = vpop.permute.xlu1 %2106 }
 0x375   : > { %v2117_v24 = vpop.permute.xlu1 %2116 }
 0x377   : > { %v2340_v39 = vpop.permute.xlu0 %2339 }
 0x378   : > { %v2386_v11 = vadd.f32 %v2340_v39, %v2145_v49 }
 0x379   : > { %v2127_v19 = vpop.permute.xlu1 %2126 }
 0x37a   : > { %v2469_v4 = vsel %vm2467_vm3, %v5992_v48, %v2386_v11  ;;  %v6006_v11 = vld [vmem:[#allocation51_spill] sm:$0xff] }
 0x37b   : > { %2486 = vst.msk [vmem:[#allocation4 + $0x8] sm:$0xff] %vm299_vm1, %v2469_v4  ;;  %v2152_v4 = vmul.f32 %v2107_v59, %v6007_v5  ;;  %v2155_v59 = vmul.f32 %v2122_v40, %v5262_v7 }
 0x37d   : > { %v5387_v12 = vpop.permute.xlu1 %2136 }
 0x37f   : > { %v2344_v13 = vpop.permute.xlu0 %2343 }
 0x380   : > { %v2388_v53 = vadd.f32 %v2344_v13, %v2147_v3  ;;  %v6008_v3 = vld [vmem:[#allocation47_spill] sm:$0xff] }
 0x381   : > { %v2338_v63 = vpop.permute.xlu1 %2337  ;;  %v2153_v13 = vmul.f32 %v2112_v27, %v6008_v3 }
 0x382   : > { %v2385_v36 = vadd.f32 %v2338_v63, %v2144_v56  ;;  %v2471_v43 = vsel %vm2467_vm3, %v5995_v17, %v2388_v53  ;;  %v6009_v56 = vld [vmem:[#allocation48_spill] sm:$0xff] }
 0x383   : > { %2488 = vst.msk [vmem:[#allocation4 + $0x18] sm:$0xff] %vm299_vm1, %v2471_v43  ;;  %v6011_v43 = vld [vmem:[#allocation55_spill] sm:$0xff] }
 0x384   : > { %v2468_v30 = vsel %vm2467_vm3, %v5997_v28, %v2385_v36  ;;  %v6010_v36 = vld [vmem:[#allocation54_spill] sm:$0xff]  ;;  %v2154_v33 = vmul.f32 %v2117_v24, %v6011_v43  ;;  %v2157_v24 = vmul.f32 %v5379_v31, %v5288_v0  ;;  %v2159_v0 = vmul.f32 %v5381_v25, %v5322_v35 }
 0x385   : > { %2485 = vst.msk [vmem:[#allocation4] sm:$0xff] %vm299_vm1, %v2468_v30  ;;  %v2342_v46 = vpop.permute.xlu1 %2341 }
 0x386   : > { %v2387_v16 = vadd.f32 %v2342_v46, %v2146_v23 }
 0x387   : > { %v2348_v45 = vpop.permute.xlu0 %2347 }
 0x388   : > { %v2470_v34 = vsel %vm2467_vm3, %v6000_v1, %v2387_v16  ;;  %v2390_v58 = vadd.f32 %v2348_v45, %v2149_v42  ;;  %v2156_v42 = vmul.f32 %v2127_v19, %v5282_v14 }
 0x389   : > { %2487 = vst.msk [vmem:[#allocation4 + $0x10] sm:$0xff] %vm299_vm1, %v2470_v34  ;;  %v2346_v61 = vpop.permute.xlu1 %2345 }
 0x38a   : > { %v2389_v15 = vadd.f32 %v2346_v61, %v2148_v18  ;;  %v2473_v8 = vsel %vm2467_vm3, %v6001_v62, %v2390_v58 }
 0x38b   : > { %2490 = vst.msk [vmem:[#allocation4 + $0x28] sm:$0xff] %vm299_vm1, %v2473_v8 }
 0x38c   : > { %v2472_v20 = vsel %vm2467_vm3, %v6003_v50, %v2389_v15 }
 0x38d   : > { %2489 = vst.msk [vmem:[#allocation4 + $0x20] sm:$0xff] %vm299_vm1, %v2472_v20  ;;  %v2350_v47 = vpop.permute.xlu1 %2349 }
 0x38e   : > { %v2391_v32 = vadd.f32 %v2350_v47, %v2150_v29 }
 0x38f   : > { %v2352_v9 = vpop.permute.xlu0 %2351 }
 0x390   : > { %v2474_v49 = vsel %vm2467_vm3, %v6005_v2, %v2391_v32  ;;  %v2392_v39 = vadd.f32 %v2352_v9, %v2151_v21 }
 0x391   : > { %2491 = vst.msk [vmem:[#allocation4 + $0x30] sm:$0xff] %vm299_vm1, %v2474_v49 }
 0x392   : > { %v2475_v48 = vsel %vm2467_vm3, %v6006_v11, %v2392_v39 }
 0x393   : > { %2492 = vst.msk [vmem:[#allocation4 + $0x38] sm:$0xff] %vm299_vm1, %v2475_v48 }
 0x395   : > { %v2354_v26 = vpop.permute.xlu1 %2353 }
 0x396   : > { %v2393_v41 = vadd.f32 %v2354_v26, %v2152_v4 }
 0x397   : > { %v2356_v55 = vpop.permute.xlu0 %2355 }
 0x398   : > { %v2476_v53 = vsel %vm2467_vm3, %v6009_v56, %v2393_v41  ;;  %v2394_v63 = vadd.f32 %v2356_v55, %v2153_v13 }
 0x399   : > { %2493 = vst.msk [vmem:[#allocation4 + $0x40] sm:$0xff] %vm299_vm1, %v2476_v53 }
 0x39a   : > { %v2477_v17 = vsel %vm2467_vm3, %v6010_v36, %v2394_v63 }
 0x39b   : > { %2494 = vst.msk [vmem:[#allocation4 + $0x48] sm:$0xff] %vm299_vm1, %v2477_v17 }
 0x39d   : > { %v2358_v23 = vpop.permute.xlu1 %2357 }
 0x39e   : > { %v2395_v28 = vadd.f32 %v2358_v23, %v2154_v33 }
 0x39f   : > { %v2360_v27 = vpop.permute.xlu0 %2359 }
 0x3a0   : > { %v2478_v30 = vsel %vm2467_vm3, %v5272_v38, %v2395_v28  ;;  %v2396_v46 = vadd.f32 %v2360_v27, %v2155_v59 }
 0x3a1   : > { %2495 = vst.msk [vmem:[#allocation4 + $0x50] sm:$0xff] %vm299_vm1, %v2478_v30 }
 0x3a2   : > { %v2479_v52 = vsel %vm2467_vm3, %v5278_v51, %v2396_v46  ;;  %v2158_v51 = vmul.f32 %v5387_v12, %v5316_v10 }
 0x3a3   : > { %2496 = vst.msk [vmem:[#allocation4 + $0x58] sm:$0xff] %vm299_vm1, %v2479_v52 }
 0x3a5   : > { %v2362_v16 = vpop.permute.xlu1 %2361 }
 0x3a6   : > { %v2397_v7 = vadd.f32 %v2362_v16, %v2156_v42 }
 0x3a7   : > { %v2364_v40 = vpop.permute.xlu0 %2363 }
 0x3a8   : > { %v2480_v45 = vsel %vm2467_vm3, %v5304_v60, %v2397_v7  ;;  %v2398_v38 = vadd.f32 %v2364_v40, %v2157_v24 }
 0x3a9   : > { %2497 = vst.msk [vmem:[#allocation4 + $0x60] sm:$0xff] %vm299_vm1, %v2480_v45 }
 0x3aa   : > { %v2481_v6 = vsel %vm2467_vm3, %v5312_v54, %v2398_v38 }
 0x3ab   : > { %2498 = vst.msk [vmem:[#allocation4 + $0x68] sm:$0xff] %vm299_vm1, %v2481_v6 }
 0x3ad   : > { %v2366_v14 = vpop.permute.xlu1 %2365 }
 0x3ae   : > { %v2399_v31 = vadd.f32 %v2366_v14, %v2158_v51 }
 0x3af   : > { %v2368_v19 = vpop.permute.xlu0 %2367 }
 0x3b0   : > { %v2482_v60 = vsel %vm2467_vm3, %v5336_v44, %v2399_v31  ;;  %v2400_v18 = vadd.f32 %v2368_v19, %v2159_v0 }
 0x3b1   : > { %2499 = vst.msk [vmem:[#allocation4 + $0x70] sm:$0xff] %vm299_vm1, %v2482_v60 }
 0x3b2   : > { %v2483_v54 = vsel %vm2467_vm3, %v5344_v22, %v2400_v18 }
 0x3b3   : > { %2500 = vst.msk [vmem:[#allocation4 + $0x78] sm:$0xff] %vm299_vm1, %v2483_v54 }
 0x3b4 PF: > { %v2506_v1 = vld [vmem:[#allocation3 + $0x10] sm:$0xff]  ;;  %v2504_v10 = vld [vmem:[#allocation3] sm:$0xff]  ;;  %v2507_v12 = vld [vmem:[#allocation3 + $0x18] sm:$0xff]  ;;  %v3616_v34 = vmov 0   ;;  %v3617_v16 = vmov 1   ;;  %vm2744_vm4 = vcmask 64512  }
 0x3b5   : > { %3504 = vset.pattern.permute.xlu1 %v3616_v34  ;;  %3503 = vset.pattern.permute.xlu0 %v3616_v34  ;;  %v2522_v35 = vmax.f32 %v2506_v1, 1e-20  ;;  %v2520_v25 = vmax.f32 %v2504_v10, 1e-20  ;;  %v2523_v58 = vmax.f32 %v2507_v12, 1e-20 }
 0x3b6   : > { %v2505_v61 = vld [vmem:[#allocation3 + $0x8] sm:$0xff]  ;;  %v2508_v62 = vld [vmem:[#allocation3 + $0x20] sm:$0xff]  ;;  %v2511_v37 = vld [vmem:[#allocation3 + $0x38] sm:$0xff]  ;;  %vm2905_vm5 = vcmask 125952  }
 0x3b7   : > { %v2509_v44 = vld [vmem:[#allocation3 + $0x28] sm:$0xff]  ;;  %3507 = vrcp.f32 %v2522_v35  ;;  %v2521_v15 = vmax.f32 %v2505_v61, 1e-20  ;;  %v2524_v8 = vmax.f32 %v2508_v62, 1e-20  ;;  %v2510_v29 = vld [vmem:[#allocation3 + $0x30] sm:$0xff] }
 0x3b8   : > { %3509 = vrcp.f32 %v2520_v25  ;;  %v2525_v22 = vmax.f32 %v2509_v44, 1e-20  ;;  %v2527_v50 = vmax.f32 %v2511_v37, 1e-20  ;;  %v2526_v20 = vmax.f32 %v2510_v29, 1e-20 }
 0x3b9   : > { %3511 = vrcp.f32 %v2523_v58  ;;  %v2513_v47 = vld [vmem:[#allocation3 + $0x48] sm:$0xff]  ;;  %v2512_v57 = vld [vmem:[#allocation3 + $0x40] sm:$0xff]  ;;  %v2515_v49 = vld [vmem:[#allocation3 + $0x58] sm:$0xff] }
 0x3ba   : > { %3513 = vrcp.f32 %v2521_v15  ;;  %v2529_v32 = vmax.f32 %v2513_v47, 1e-20  ;;  %v2528_v2 = vmax.f32 %v2512_v57, 1e-20  ;;  %v2514_v11 = vld [vmem:[#allocation3 + $0x50] sm:$0xff]  ;;  %v2517_v26 = vld [vmem:[#allocation3 + $0x68] sm:$0xff] }
 0x3bb   : > { %3515 = vrcp.f32 %v2525_v22  ;;  %v2531_v5 = vmax.f32 %v2515_v49, 1e-20  ;;  %v2530_v4 = vmax.f32 %v2514_v11, 1e-20  ;;  %v2516_v13 = vld [vmem:[#allocation3 + $0x60] sm:$0xff]  ;;  %v2519_v53 = vld [vmem:[#allocation3 + $0x78] sm:$0xff] }
 0x3bc   : > { %3517 = vrcp.f32 %v2524_v8  ;;  %v2533_v55 = vmax.f32 %v2517_v26, 1e-20  ;;  %v2532_v56 = vmax.f32 %v2516_v13, 1e-20  ;;  %v2518_v36 = vld [vmem:[#allocation3 + $0x70] sm:$0xff]  ;;  %v2553_v12 = vld [vmem:[#allocation4 + $0x8] sm:$0xff] }
 0x3bd   : > { %3519 = vrcp.f32 %v2527_v50  ;;  %v2535_v43 = vmax.f32 %v2519_v53, 1e-20  ;;  %v2534_v33 = vmax.f32 %v2518_v36, 1e-20  ;;  %v2552_v34 = vld [vmem:[#allocation4] sm:$0xff]  ;;  %v2554_v44 = vld [vmem:[#allocation4 + $0x10] sm:$0xff] }
 0x3be   : > { %3521 = vrcp.f32 %v2526_v20  ;;  %v2555_v22 = vld [vmem:[#allocation4 + $0x18] sm:$0xff]  ;;  %v2557_v49 = vld [vmem:[#allocation4 + $0x28] sm:$0xff] }
 0x3bf   : > { %3523 = vrcp.f32 %v2529_v32  ;;  %v2559_v53 = vld [vmem:[#allocation4 + $0x38] sm:$0xff] }
 0x3c0   : > { %3525 = vrcp.f32 %v2528_v2 }
 0x3c1   : > { %v3508_v21 = vpop.eup %3507  ;;  %3527 = vrcp.f32 %v2531_v5 }
 0x3c2   : > { %v3510_v9 = vpop.eup %3509  ;;  %2580 = vperm.xlu1 %3504, %v3508_v21   ;;  %3529 = vrcp.f32 %v2530_v4 }
 0x3c3   : > { %v3512_v39 = vpop.eup %3511  ;;  %2570 = vperm.xlu0 %3503, %v3510_v9   ;;  %3531 = vrcp.f32 %v2533_v55  ;;  %v2558_v55 = vld [vmem:[#allocation4 + $0x30] sm:$0xff] }
 0x3c4   : > { %v3514_v48 = vpop.eup %3513  ;;  %3533 = vrcp.f32 %v2532_v56 }
 0x3c5   : > { %v3516_v3 = vpop.eup %3515  ;;  %3535 = vrcp.f32 %v2535_v43  ;;  %v5487_v43 = vld [vmem:[#allocation4 + $0x58] sm:$0xff] }
 0x3c6   : > { %2585 = vperm.xlu1 %3504, %v3512_v39   ;;  %v3518_v41 = vpop.eup %3517  ;;  %3537 = vrcp.f32 %v2534_v33 }
 0x3c7   : > { %2575 = vperm.xlu0 %3503, %v3514_v48   ;;  %v3520_v63 = vpop.eup %3519 }
 0x3c8   : > { %v3522_v17 = vpop.eup %3521 }
 0x3c9   : > { %v3524_v23 = vpop.eup %3523 }
 0x3ca   : > { %2595 = vperm.xlu1 %3504, %v3516_v3   ;;  %v3526_v59 = vpop.eup %3525 }
 0x3cb   : > { %2590 = vperm.xlu0 %3503, %v3518_v41   ;;  %v3528_v28 = vpop.eup %3527 }
 0x3cc   : > { %v3530_v27 = vpop.eup %3529 }
 0x3cd   : > { %v3532_v30 = vpop.eup %3531 }
 0x3ce   : > { %2605 = vperm.xlu1 %3504, %v3520_v63   ;;  %v3534_v46 = vpop.eup %3533 }
 0x3cf   : > { %2600 = vperm.xlu0 %3503, %v3522_v17   ;;  %v3536_v52 = vpop.eup %3535 }
 0x3d0   : > { %v3538_v42 = vpop.eup %3537 }
 0x3d2   : > { %2615 = vperm.xlu1 %3504, %v3524_v23  }
 0x3d3   : > { %2610 = vperm.xlu0 %3503, %v3526_v59  }
 0x3d6   : > { %2625 = vperm.xlu1 %3504, %v3528_v28  }
 0x3d7   : > { %2620 = vperm.xlu0 %3503, %v3530_v27  }
 0x3da   : > { %2635 = vperm.xlu1 %3504, %v3532_v30  }
 0x3db   : > { %2630 = vperm.xlu0 %3503, %v3534_v46  }
 0x3de   : > { %2645 = vperm.xlu1 %3504, %v3536_v52  }
 0x3df   : > { %2640 = vperm.xlu0 %3503, %v3538_v42  }
 0x3e2   : > { %3506 = vset.pattern.permute.xlu1 %v3617_v16 }
 0x3e3   : > { %3505 = vset.pattern.permute.xlu0 %v3617_v16  ;;  %2669 = vperm.xlu1 %3506, %v3514_v48  }
 0x3e4   : > { %2665 = vperm.xlu0 %3505, %v3510_v9   ;;  %v2556_v9 = vld [vmem:[#allocation4 + $0x20] sm:$0xff] }
 0x3e7   : > { %2673 = vperm.xlu1 %3506, %v3508_v21  }
 0x3e8   : > { %2677 = vperm.xlu0 %3505, %v3512_v39  }
 0x3eb   : > { %2681 = vperm.xlu1 %3506, %v3518_v41  }
 0x3ec   : > { %2685 = vperm.xlu0 %3505, %v3516_v3  }
 0x3ef   : > { %2689 = vperm.xlu1 %3506, %v3522_v17   ;;  %v2560_v17 = vld [vmem:[#allocation4 + $0x40] sm:$0xff] }
 0x3f0   : > { %2693 = vperm.xlu0 %3505, %v3520_v63   ;;  %v2561_v63 = vld [vmem:[#allocation4 + $0x48] sm:$0xff] }
 0x3f3   : > { %2697 = vperm.xlu1 %3506, %v3526_v59  }
 0x3f4   : > { %2701 = vperm.xlu0 %3505, %v3524_v23  }
 0x3f7   : > { %2705 = vperm.xlu1 %3506, %v3530_v27   ;;  %v2562_v27 = vld [vmem:[#allocation4 + $0x50] sm:$0xff] }
 0x3f8   : > { %2709 = vperm.xlu0 %3505, %v3528_v28  }
 0x3fb   : > { %2713 = vperm.xlu1 %3506, %v3534_v46  }
 0x3fc   : > { %2717 = vperm.xlu0 %3505, %v3532_v30   ;;  %v5493_v30 = vld [vmem:[#allocation4 + $0x68] sm:$0xff] }
 0x3ff   : > { %2721 = vperm.xlu1 %3506, %v3538_v42  }
 0x400   : > { %2725 = vperm.xlu0 %3505, %v3536_v52  }
 0x441   : > { %v2581_v24 = vpop.permute.xlu1 %2580 }
 0x442   : > { %v2571_v7 = vpop.permute.xlu0 %2570  ;;  %v2650_v20 = vmul.f32 %v2581_v24, %v2554_v44 }
 0x443   : > { %v2648_v15 = vmul.f32 %v2571_v7, %v2552_v34  ;;  %v5497_v7 = vld [vmem:[#allocation4 + $0x60] sm:$0xff] }
 0x445   : > { %v2586_v40 = vpop.permute.xlu1 %2585 }
 0x446   : > { %v2576_v45 = vpop.permute.xlu0 %2575  ;;  %v2651_v32 = vmul.f32 %v2586_v40, %v2555_v22 }
 0x447   : > { %v2649_v25 = vmul.f32 %v2576_v45, %v2553_v12 }
 0x449   : > { %v2596_v38 = vpop.permute.xlu1 %2595 }
 0x44a   : > { %v2591_v6 = vpop.permute.xlu0 %2590  ;;  %v2653_v41 = vmul.f32 %v2596_v38, %v2557_v49 }
 0x44b   : > { %v2652_v4 = vmul.f32 %v2591_v6, %v2556_v9 }
 0x44d   : > { %v5452_v51 = vpop.permute.xlu1 %2605 }
 0x44e   : > { %v2601_v14 = vpop.permute.xlu0 %2600  ;;  %v2655_v16 = vmul.f32 %v5452_v51, %v2559_v53 }
 0x44f   : > { %v2654_v28 = vmul.f32 %v2601_v14, %v2558_v55 }
 0x451   : > { %v2616_v0 = vpop.permute.xlu1 %2615 }
 0x452   : > { %v5454_v31 = vpop.permute.xlu0 %2610  ;;  %v2657_v24 = vmul.f32 %v2616_v0, %v2561_v63 }
 0x453   : > { %v2656_v45 = vmul.f32 %v5454_v31, %v2560_v17 }
 0x455   : > { %v5456_v19 = vpop.permute.xlu1 %2625 }
 0x456   : > { %v5458_v60 = vpop.permute.xlu0 %2620  ;;  %v2659_v38 = vmul.f32 %v5456_v19, %v5487_v43 }
 0x459   : > { %v5460_v18 = vpop.permute.xlu1 %2635 }
 0x45a   : > { %v5462_v54 = vpop.permute.xlu0 %2630  ;;  %v5508_v51 = vmul.f32 %v5460_v18, %v5493_v30 }
 0x45b   : > { %v5516_v19 = vmul.f32 %v5462_v54, %v5497_v7 }
 0x45d   : > { %v5464_v1 = vpop.permute.xlu1 %2645 }
 0x45e   : > { %v5466_v10 = vpop.permute.xlu0 %2640 }
 0x462   : > { %v2670_v35 = vpop.permute.xlu1 %2669 }
 0x463   : > { %v2729_v58 = vmul.f32 %v2670_v35, %v2553_v12  ;;  %v2666_v61 = vpop.permute.xlu0 %2665  ;;  %v2658_v12 = vmul.f32 %v5458_v60, %v2562_v27 }
 0x464   : > { %v2728_v62 = vmul.f32 %v2666_v61, %v2552_v34 }
 0x465   : > { %v5469_v8 = vsel %vm2744_vm4, %v2649_v25, %v2729_v58  ;;  %v5518_v25 = vld [vmem:[#allocation4 + $0x78] sm:$0xff] }
 0x466   : > { %v2779_v37 = vmul.f32 1.442695, %v5469_v8  ;;  %v5473_v29 = vsel %vm2744_vm4, %v2648_v15, %v2728_v62  ;;  %v2674_v50 = vpop.permute.xlu1 %2673  ;;  %vm2762_vm6 = vcmp.gt.f32.partialorder %v5469_v8, 0.0 }
 0x467   : > { %v2777_v47 = vmul.f32 1.442695, %v5473_v29  ;;  %v2730_v57 = vmul.f32 %v2674_v50, %v2554_v44  ;;  %v2678_v21 = vpop.permute.xlu0 %2677  ;;  %vm2761_vm7 = vcmp.gt.f32.partialorder %v5473_v29, 0.0 }
 0x468   : > { %3539 = vpow2.f32 %v2779_v37  ;;  %v2731_v2 = vmul.f32 %v2678_v21, %v2555_v22  ;;  %v5529_v37 = vmul.f32 %v5464_v1, %v5518_v25  ;;  %v2566_v21 = vld [vmem:[#allocation4 + $0x70] sm:$0xff] }
 0x469   : > { %3541 = vpow2.f32 %v2777_v47  ;;  %v5477_v39 = vsel %vm2744_vm4, %v2650_v20, %v2730_v57 }
 0x46a   : > { %v2781_v11 = vmul.f32 1.442695, %v5477_v39  ;;  %v5481_v48 = vsel %vm2744_vm4, %v2651_v32, %v2731_v2  ;;  %v2682_v5 = vpop.permute.xlu1 %2681  ;;  %vm2763_vm8 = vcmp.gt.f32.partialorder %v5477_v39, 0.0 }
 0x46b   : > { %v2783_v26 = vmul.f32 1.442695, %v5481_v48  ;;  %v2732_v3 = vmul.f32 %v2682_v5, %v2556_v9  ;;  %v2686_v13 = vpop.permute.xlu0 %2685  ;;  %vm2764_vm9 = vcmp.gt.f32.partialorder %v5481_v48, 0.0 }
 0x46c   : > { %3543 = vpow2.f32 %v2781_v11  ;;  %v2733_v56 = vmul.f32 %v2686_v13, %v2557_v49  ;;  %v2662_v13 = vmul.f32 %v5466_v10, %v2566_v21 }
 0x46d   : > { %3545 = vpow2.f32 %v2783_v26  ;;  %v5485_v36 = vsel %vm2744_vm4, %v2652_v4, %v2732_v3 }
 0x46e   : > { %v2785_v33 = vmul.f32 1.442695, %v5485_v36  ;;  %v5491_v23 = vsel %vm2744_vm4, %v2653_v41, %v2733_v56  ;;  %v2690_v59 = vpop.permute.xlu1 %2689  ;;  %vm2765_vm10 = vcmp.gt.f32.partialorder %v5485_v36, 0.0 }
 0x46f   : > { %v2787_v46 = vmul.f32 1.442695, %v5491_v23  ;;  %v2734_v52 = vmul.f32 %v2690_v59, %v2558_v55  ;;  %v2694_v42 = vpop.permute.xlu0 %2693  ;;  %vm2766_vm11 = vcmp.gt.f32.partialorder %v5491_v23, 0.0 }
 0x470   : > { %3547 = vpow2.f32 %v2785_v33  ;;  %v2735_v40 = vmul.f32 %v2694_v42, %v2559_v53 }
 0x471   : > { %3549 = vpow2.f32 %v2787_v46  ;;  %v5503_v6 = vsel %vm2744_vm4, %v2654_v28, %v2734_v52 }
 0x472   : > { %v3540_v14 = vpop.eup %3539  ;;  %v2789_v0 = vmul.f32 1.442695, %v5503_v6  ;;  %v5512_v34 = vsel %vm2744_vm4, %v2655_v16, %v2735_v40  ;;  %v2698_v31 = vpop.permute.xlu1 %2697  ;;  %vm2767_vm12 = vcmp.gt.f32.partialorder %v5503_v6, 0.0 }
 0x473   : > { %v3542_v35 = vpop.eup %3541  ;;  %v3072_v58 = vadd.f32 -1.0, %v3540_v14  ;;  %v2791_v60 = vmul.f32 1.442695, %v5512_v34  ;;  %v2736_v61 = vmul.f32 %v2698_v31, %v2560_v17  ;;  %v2702_v44 = vpop.permute.xlu0 %2701  ;;  %vm2768_vm13 = vcmp.gt.f32.partialorder %v5512_v34, 0.0 }
 0x474   : > { %v3071_v18 = vadd.f32 -1.0, %v3542_v35  ;;  %3551 = vpow2.f32 %v2789_v0  ;;  %v2737_v15 = vmul.f32 %v2702_v44, %v2561_v63 }
 0x475   : > { %v2826_v62 = vsel %vm2762_vm6, %v5469_v8, %v3072_v58  ;;  %3553 = vpow2.f32 %v2791_v60  ;;  %v5525_v54 = vsel %vm2744_vm4, %v2656_v45, %v2736_v61 }
 0x476   : > { %v3544_v22 = vpop.eup %3543  ;;  %v3107_v50 = vpack.c.bf16 %v2826_v62, %v2826_v62  ;;  %v2825_v20 = vsel %vm2761_vm7, %v5473_v29, %v3071_v18  ;;  %v2793_v47 = vmul.f32 1.442695, %v5525_v54  ;;  %v2706_v57 = vpop.permute.xlu1 %2705  ;;  %v5534_v2 = vsel %vm2744_vm4, %v2657_v24, %v2737_v15 }
 0x477   : > { %v3546_v8 = vpop.eup %3545  ;;  %v3106_v32 = vpack.c.bf16 %v2825_v20, %v2825_v20  ;;  %v3073_v9 = vadd.f32 -1.0, %v3544_v22  ;;  %v2738_v49 = vmul.f32 %v2706_v57, %v2562_v27  ;;  %v2710_v11 = vpop.permute.xlu0 %2709  ;;  %v2795_v29 = vmul.f32 1.442695, %v5534_v2 }
 0x478   : > { %2907 = vst.msk [vmem:[%s3755_s17 + $0x4] sm:$0xf] %vm2905_vm5, %v3107_v50  ;;  %v3074_v1 = vadd.f32 -1.0, %v3546_v8  ;;  %3555 = vpow2.f32 %v2793_v47  ;;  %v2739_v26 = vmul.f32 %v2710_v11, %v5487_v43  ;;  %vm2769_vm14 = vcmp.gt.f32.partialorder %v5525_v54, 0.0 }
 0x479   : > { %2906 = vst.msk [vmem:[%s3755_s17] sm:$0xf] %vm2905_vm5, %v3106_v32  ;;  %v2827_v5 = vsel %vm2763_vm8, %v5477_v39, %v3073_v9  ;;  %v5545_v4 = vsel %vm2744_vm4, %v2658_v12, %v2738_v49  ;;  %3557 = vpow2.f32 %v2795_v29  ;;  %vm2770_vm15 = vcmp.gt.f32.partialorder %v5534_v2, 0.0 }
 0x47a   : > { %v3548_v3 = vpop.eup %3547  ;;  %v3108_v41 = vpack.c.bf16 %v2827_v5, %v2827_v5  ;;  %v2828_v55 = vsel %vm2764_vm9, %v5481_v48, %v3074_v1  ;;  %v2714_v56 = vpop.permute.xlu1 %2713  ;;  %v2797_v17 = vmul.f32 1.442695, %v5545_v4  ;;  %v5552_v33 = vsel %vm2744_vm4, %v2659_v38, %v2739_v26 }
 0x47b   : > { %v3550_v53 = vpop.eup %3549  ;;  %v3109_v63 = vpack.c.bf16 %v2828_v55, %v2828_v55  ;;  %v3075_v39 = vadd.f32 -1.0, %v3548_v3  ;;  %v2718_v59 = vpop.permute.xlu0 %2717  ;;  %v2799_v43 = vmul.f32 1.442695, %v5552_v33  ;;  %v2740_v48 = vmul.f32 %v2714_v56, %v5497_v7 }
 0x47c   : > { %2908 = vst.msk [vmem:[%s3755_s17 + $0x8] sm:$0xf] %vm2905_vm5, %v3108_v41  ;;  %v3076_v10 = vadd.f32 -1.0, %v3550_v53  ;;  %3559 = vpow2.f32 %v2797_v17  ;;  %v2741_v27 = vmul.f32 %v2718_v59, %v5493_v30  ;;  %vm2771_vm0 = vcmp.gt.f32.partialorder %v5545_v4, 0.0 }
 0x47d   : > { %2909 = vst.msk [vmem:[%s3755_s17 + $0xc] sm:$0xf] %vm2905_vm5, %v3109_v63  ;;  %v2829_v28 = vsel %vm2765_vm10, %v5485_v36, %v3075_v39  ;;  %3561 = vpow2.f32 %v2799_v43  ;;  %v2757_v16 = vsel %vm2744_vm4, %v5516_v19, %v2740_v48  ;;  %vm2772_vm1 = vcmp.gt.f32.partialorder %v5552_v33, 0.0 }
 0x47e   : > { %v3552_v46 = vpop.eup %3551  ;;  %v3110_v52 = vpack.c.bf16 %v2829_v28, %v2829_v28  ;;  %v2830_v42 = vsel %vm2766_vm11, %v5491_v23, %v3076_v10  ;;  %v2722_v24 = vpop.permute.xlu1 %2721  ;;  %v2801_v45 = vmul.f32 1.442695, %v2757_v16  ;;  %v2758_v14 = vsel %vm2744_vm4, %v5508_v51, %v2741_v27 }
 0x47f   : > { %v3554_v7 = vpop.eup %3553  ;;  %v3111_v40 = vpack.c.bf16 %v2830_v42, %v2830_v42  ;;  %v3077_v36 = vadd.f32 -1.0, %v3552_v46  ;;  %v2726_v38 = vpop.permute.xlu0 %2725  ;;  %v2742_v12 = vmul.f32 %v2722_v24, %v2566_v21  ;;  %v2803_v31 = vmul.f32 1.442695, %v2758_v14 }
 0x480   : > { %2910 = vst.msk [vmem:[%s3755_s17 + $0x10] sm:$0xf] %vm2905_vm5, %v3110_v52  ;;  %v3078_v30 = vadd.f32 -1.0, %v3554_v7  ;;  %v2743_v23 = vmul.f32 %v2726_v38, %v5518_v25  ;;  %3563 = vpow2.f32 %v2801_v45  ;;  %vm2773_vm2 = vcmp.gt.f32.partialorder %v2757_v16, 0.0 }
 0x481   : > { %2911 = vst.msk [vmem:[%s3755_s17 + $0x14] sm:$0xf] %vm2905_vm5, %v3111_v40  ;;  %v2831_v0 = vsel %vm2767_vm12, %v5503_v6, %v3077_v36  ;;  %v2759_v60 = vsel %vm2744_vm4, %v2662_v13, %v2742_v12  ;;  %3565 = vpow2.f32 %v2803_v31  ;;  %vm2774_vm3 = vcmp.gt.f32.partialorder %v2758_v14, 0.0 }
 0x482   : > { %v3556_v35 = vpop.eup %3555  ;;  %v3112_v19 = vpack.c.bf16 %v2831_v0, %v2831_v0  ;;  %v2832_v58 = vsel %vm2768_vm13, %v5512_v34, %v3078_v30  ;;  %v2760_v51 = vsel %vm2744_vm4, %v5529_v37, %v2743_v23  ;;  %v2805_v6 = vmul.f32 1.442695, %v2759_v60 }
 0x483   : > { %v3113_v61 = vpack.c.bf16 %v2832_v58, %v2832_v58  ;;  %v3079_v25 = vadd.f32 -1.0, %v3556_v35  ;;  %v3558_v44 = vpop.eup %3557  ;;  %v2807_v18 = vmul.f32 1.442695, %v2760_v51  ;;  %vm2775_vm4 = vcmp.gt.f32.partialorder %v2759_v60, 0.0 }
 0x484   : > { %2912 = vst.msk [vmem:[%s3755_s17 + $0x18] sm:$0xf] %vm2905_vm5, %v3112_v19  ;;  %v3080_v15 = vadd.f32 -1.0, %v3558_v44  ;;  %3567 = vpow2.f32 %v2805_v6  ;;  %vm2776_vm6 = vcmp.gt.f32.partialorder %v2760_v51, 0.0 }
 0x485   : > { %2913 = vst.msk [vmem:[%s3755_s17 + $0x1c] sm:$0xf] %vm2905_vm5, %v3113_v61  ;;  %v2833_v34 = vsel %vm2769_vm14, %v5525_v54, %v3079_v25  ;;  %3569 = vpow2.f32 %v2807_v18 }
 0x486   : > { %v3114_v62 = vpack.c.bf16 %v2833_v34, %v2833_v34  ;;  %v3560_v22 = vpop.eup %3559  ;;  %v2834_v37 = vsel %vm2770_vm15, %v5534_v2, %v3080_v15 }
 0x487   : > { %v3562_v50 = vpop.eup %3561  ;;  %v3115_v20 = vpack.c.bf16 %v2834_v37, %v2834_v37  ;;  %v3081_v47 = vadd.f32 -1.0, %v3560_v22 }
 0x488   : > { %2914 = vst.msk [vmem:[%s3755_s17 + $0x20] sm:$0xf] %vm2905_vm5, %v3114_v62  ;;  %v3082_v57 = vadd.f32 -1.0, %v3562_v50 }
 0x489   : > { %2915 = vst.msk [vmem:[%s3755_s17 + $0x24] sm:$0xf] %vm2905_vm5, %v3115_v20  ;;  %v2835_v54 = vsel %vm2771_vm0, %v5545_v4, %v3081_v47 }
 0x48a   : > { %v3564_v8 = vpop.eup %3563  ;;  %v3116_v21 = vpack.c.bf16 %v2835_v54, %v2835_v54  ;;  %v2836_v32 = vsel %vm2772_vm1, %v5552_v33, %v3082_v57 }
 0x48b   : > { %v3117_v9 = vpack.c.bf16 %v2836_v32, %v2836_v32  ;;  %v3083_v2 = vadd.f32 -1.0, %v3564_v8  ;;  %v3566_v49 = vpop.eup %3565 }
 0x48c   : > { %2916 = vst.msk [vmem:[%s3755_s17 + $0x28] sm:$0xf] %vm2905_vm5, %v3116_v21  ;;  %v3084_v1 = vadd.f32 -1.0, %v3566_v49 }
 0x48d   : > { %2917 = vst.msk [vmem:[%s3755_s17 + $0x2c] sm:$0xf] %vm2905_vm5, %v3117_v9  ;;  %v2837_v11 = vsel %vm2773_vm2, %v2757_v16, %v3083_v2 }
 0x48e   : > { %v3118_v29 = vpack.c.bf16 %v2837_v11, %v2837_v11  ;;  %v3568_v5 = vpop.eup %3567  ;;  %v2838_v4 = vsel %vm2774_vm3, %v2758_v14, %v3084_v1 }
 0x48f   : > { %v3570_v26 = vpop.eup %3569  ;;  %v3119_v3 = vpack.c.bf16 %v2838_v4, %v2838_v4  ;;  %v3085_v13 = vadd.f32 -1.0, %v3568_v5 }
 0x490   : > { %2918 = vst.msk [vmem:[%s3755_s17 + $0x30] sm:$0xf] %vm2905_vm5, %v3118_v29  ;;  %v3086_v41 = vadd.f32 -1.0, %v3570_v26 }
 0x491   : > { %2919 = vst.msk [vmem:[%s3755_s17 + $0x34] sm:$0xf] %vm2905_vm5, %v3119_v3  ;;  %v2839_v55 = vsel %vm2775_vm4, %v2759_v60, %v3085_v13 }
 0x492   : > { %v3120_v56 = vpack.c.bf16 %v2839_v55, %v2839_v55  ;;  %v2840_v53 = vsel %vm2776_vm6, %v2760_v51, %v3086_v41 }
 0x493   : > { %v3121_v63 = vpack.c.bf16 %v2840_v53, %v2840_v53 }
 0x494   : > { %2920 = vst.msk [vmem:[%s3755_s17 + $0x38] sm:$0xf] %vm2905_vm5, %v3120_v56 }
 0x495   : > { %2921 = vst.msk [vmem:[%s3755_s17 + $0x3c] sm:$0xf] %vm2905_vm5, %v3121_v63 }
 0x496 PF: > { %s21_s25 = sadd.s32 1, %s3607_s25   ;;  %s6012_s23 = smov %s3603_s24 }
 0x497   : > { %p18_p12 = scmp.ge.s32.totalorder %s21_s25, 4   ;;  %s6013_s24 = smov %s6015_s0 }
 0x499   :  { %20 = sbr.rel (!%p18_p12) target bundleno = 17 (0x11), region = 83 }

// kernel: gat_forward.11
= control target key start
LH: loop header
LB: loop body
LE: loop exit
PB: predicated region body
PF: predicated region fallthrough
CT: control target
= control target key end

     0   :  { %s3068_s0 = inlined_call_operand.vmem [shape: s32[2,1], index: 0, kind: input, shape index: {}]   ;;  %s3069_s1 = inlined_call_operand.vmem [shape: f32[256,1], index: 1, kind: input, shape index: {}]   ;;  %s3070_s2 = inlined_call_operand.vmem [shape: f32[1,256], index: 2, kind: input, shape index: {}]   ;;  %s3071_s3 = inlined_call_operand.vmem [shape: s8[256,256], index: 3, kind: input, shape index: {}]   ;;  %s3072_s4 = inlined_call_operand.vmem [shape: bf16[256,4], index: 4, kind: input, shape index: {}]   ;;  %s3073_s5 = inlined_call_operand.vmem [shape: f32[256,4], index: 5, kind: output, shape index: {}]  }
   0x1   :  { %s10_s20 = sshll.u32 %s3068_s0, 4  ;;  %s11_s20 = int_to_ptr.vmem [resolvable:$true] %s10_s20 }
   0x2   :  { %s2115_s21 = scalar_lea.vmem %s11_s20, 32  ;;  %p2120_p1 = scmp.lt.s32.totalorder %s11_s20, %s11_s20 }
   0x3   :  { %p2116_p0 = scmp.ne.s32.totalorder %s11_s20, %s2115_s21  ;;  %p2121_p2 = scmp.lt.s32.totalorder %s2115_s21, %s2115_s21 }
   0x5   :  { %p2122_p3 = por %p2121_p2, %p2120_p1 }
   0x7   :  { %p2123_p4 = pnand %p2122_p3, %p2116_p0 }
   0x9   :  { %2126 = shalt.err (!%p2123_p4)  }
   0xa   :  { %s2153_s22 = smov [#allocation6]  }
   0xb   :  { %13 = dma.vmem_to_smem %s11_s20, 32, %s2153_s22, [#allocation5] }
   0xc   :  { %2139 = dma.done.wait [#allocation5], 32 }
   0xd   :  { %2140 = vsyncadd [#allocation5], 4294967264 }
   0xe   :  { %15 = sfence }
   0xf   :  { %s2191_s23 = smov 0   ;;  %s2193_s24 = smov 0  }
  0x10   :  { %s2195_s25 = smov 0  }
  0x11 LB: > { %s33_s0 = sadd.s32 1, %s2147_s24  ;;  %p1797_p5 = scmp.ge.s32.totalorder %s2151_s25, 1  ;;  %s2151_s25 = sphi %s2195_s25, %s21_s25   ;;  %s2147_s24 = sphi %s2193_s24, %s3079_s24   ;;  %s2143_s23 = sphi %s2191_s23, %s3078_s23  }
  0x12   : > { %p35_p6 = scmp.ge.s32.totalorder %s33_s0, 2  ;;  %p201_p7 = scmp.lt.s32.totalorder %s2151_s25, 3 }
  0x14   : > { %s3081_s0 = smov (%p35_p6, %s33_s0), 0  ;;  %p202_p8 = pnand %p1797_p5, %p201_p7 }
  0x15   : > { %s1798_s26 = sshll.u32 (!%p202_p8), %s2143_s23, 4  ;;  %s1800_s27 = sshll.u32 (!%p202_p8), %s2143_s23, 2  ;;  %vm266_vm0 = vcmask (!%p202_p8), 7168   ;;  %v2154_v0 = vmov (!%p202_p8), -1e+30   ;;  %v2155_v1 = vmov (!%p202_p8), 0.0  }
  0x16   : > { %205 = sbr.rel (%p202_p8) target bundleno = 896 (0x380), region = 36  ;;  %p2215_p9 = scmp.lt.s32.totalorder (!%p202_p8), %s1798_s26, 31  ;;  %267 = vst.msk [vmem:[#allocation2] sm:$0xff] (!%p202_p8), %vm266_vm0, %v2154_v0  ;;  %268 = vst.msk [vmem:[#allocation2 + $0x8] sm:$0xff] (!%p202_p8), %vm266_vm0, %v2154_v0  ;;  %vm299_vm1 = vcmask (!%p202_p8), 31744  }
  0x17   : > { %p2221_p10 = scmp.lt.s32.totalorder (!%p202_p8), %s1800_s27, 7  ;;  %269 = vst.msk [vmem:[#allocation2 + $0x10] sm:$0xff] (!%p202_p8), %vm266_vm0, %v2154_v0  ;;  %270 = vst.msk [vmem:[#allocation2 + $0x18] sm:$0xff] (!%p202_p8), %vm266_vm0, %v2154_v0  ;;  %s1805_s30 = sshll.u32 (!%p202_p8), %s2143_s23, 7 }
  0x18   : > { %271 = vst.msk [vmem:[#allocation2 + $0x20] sm:$0xff] (!%p202_p8), %vm266_vm0, %v2154_v0  ;;  %272 = vst.msk [vmem:[#allocation2 + $0x28] sm:$0xff] (!%p202_p8), %vm266_vm0, %v2154_v0  ;;  %s323_s7 = sld [smem:[#allocation6 + %s1805_s30]] (!%p202_p8) }
  0x19   : > { %273 = vst.msk [vmem:[#allocation2 + $0x30] sm:$0xff] (!%p202_p8), %vm266_vm0, %v2154_v0  ;;  %274 = vst.msk [vmem:[#allocation2 + $0x38] sm:$0xff] (!%p202_p8), %vm266_vm0, %v2154_v0 }
  0x1a   : > { %275 = vst.msk [vmem:[#allocation2 + $0x40] sm:$0xff] (!%p202_p8), %vm266_vm0, %v2154_v0  ;;  %276 = vst.msk [vmem:[#allocation2 + $0x48] sm:$0xff] (!%p202_p8), %vm266_vm0, %v2154_v0 }
  0x1b   : > { %277 = vst.msk [vmem:[#allocation2 + $0x50] sm:$0xff] (!%p202_p8), %vm266_vm0, %v2154_v0  ;;  %278 = vst.msk [vmem:[#allocation2 + $0x58] sm:$0xff] (!%p202_p8), %vm266_vm0, %v2154_v0 }
  0x1c   : > { %279 = vst.msk [vmem:[#allocation2 + $0x60] sm:$0xff] (!%p202_p8), %vm266_vm0, %v2154_v0  ;;  %280 = vst.msk [vmem:[#allocation2 + $0x68] sm:$0xff] (!%p202_p8), %vm266_vm0, %v2154_v0 }
  0x1d   : > { %281 = vst.msk [vmem:[#allocation2 + $0x70] sm:$0xff] %vm266_vm0, %v2154_v0  ;;  %282 = vst.msk [vmem:[#allocation2 + $0x78] sm:$0xff] %vm266_vm0, %v2154_v0  ;;  %s3083_s26 = smov (!%p2215_p9, %s1798_s26), 31  ;;  %s3085_s27 = smov (!%p2221_p10, %s1800_s27), 7 }
  0x1e   : > { %283 = vst.msk [vmem:[#allocation3] sm:$0xff] %vm266_vm0, %v2155_v1  ;;  %284 = vst.msk [vmem:[#allocation3 + $0x8] sm:$0xff] %vm266_vm0, %v2155_v1  ;;  %s1799_s6 = sshll.u32 %s3083_s26, 3  ;;  %s1857_s11 = sshll.u32 %s3085_s27, 4 }
  0x1f   : > { %285 = vst.msk [vmem:[#allocation3 + $0x10] sm:$0xff] %vm266_vm0, %v2155_v1  ;;  %286 = vst.msk [vmem:[#allocation3 + $0x18] sm:$0xff] %vm266_vm0, %v2155_v1  ;;  %s2285_s10 = scalar_lea.vmem %s3069_s1, %s1799_s6  ;;  %s2290_s14 = scalar_lea.vmem %s3071_s3, %s1857_s11 }
  0x20   : > { %287 = vst.msk [vmem:[#allocation3 + $0x20] sm:$0xff] %vm266_vm0, %v2155_v1  ;;  %288 = vst.msk [vmem:[#allocation3 + $0x28] sm:$0xff] %vm266_vm0, %v2155_v1  ;;  %s2295_s17 = scalar_lea.vmem %s3073_s5, %s1799_s6  ;;  %p1806_p11 = scmp.le.s32.totalorder %s323_s7, 0 }
  0x21   : > { %289 = vst.msk [vmem:[#allocation3 + $0x30] sm:$0xff] %vm266_vm0, %v2155_v1  ;;  %290 = vst.msk [vmem:[#allocation3 + $0x38] sm:$0xff] %vm266_vm0, %v2155_v1  ;;  %v513_v2 = vld [vmem:[%s2285_s10 + $0x40] sm:$0xff] (!%p1806_p11)  ;;  %v2156_v4 = vmov (!%p1806_p11), 0   ;;  %v514_v5 = vld [vmem:[%s2285_s10 + $0x48] sm:$0xff] (!%p1806_p11)  ;;  %v650_v20 = vlaneseq (!%p1806_p11) }
  0x22   : > { %291 = vst.msk [vmem:[#allocation3 + $0x40] sm:$0xff] %vm266_vm0, %v2155_v1  ;;  %292 = vst.msk [vmem:[#allocation3 + $0x48] sm:$0xff] %vm266_vm0, %v2155_v1  ;;  %v505_v3 = vld [vmem:[%s2285_s10] sm:$0xff] (!%p1806_p11)  ;;  %1968 = vset.pattern.permute.xlu1 (!%p1806_p11), %v2156_v4  ;;  %1967 = vset.pattern.permute.xlu0 (!%p1806_p11), %v2156_v4  ;;  %v506_v6 = vld [vmem:[%s2285_s10 + $0x8] sm:$0xff] (!%p1806_p11) }
  0x23   : > { %293 = vst.msk [vmem:[#allocation3 + $0x50] sm:$0xff] %vm266_vm0, %v2155_v1  ;;  %294 = vst.msk [vmem:[#allocation3 + $0x58] sm:$0xff] %vm266_vm0, %v2155_v1  ;;  %611 = vperm.xlu1 (!%p1806_p11), %1968, %v513_v2   ;;  %571 = vperm.xlu0 (!%p1806_p11), %1967, %v505_v3   ;;  %v508_v7 = vld [vmem:[%s2285_s10 + $0x18] sm:$0xff] (!%p1806_p11)  ;;  %v507_v8 = vld [vmem:[%s2285_s10 + $0x10] sm:$0xff] (!%p1806_p11)  ;;  %v2321_v26 = vshrl.u32 (!%p1806_p11), %v650_v20, 7 }
  0x24   : > { %295 = vst.msk [vmem:[#allocation3 + $0x60] sm:$0xff] %vm266_vm0, %v2155_v1  ;;  %296 = vst.msk [vmem:[#allocation3 + $0x68] sm:$0xff] %vm266_vm0, %v2155_v1  ;;  %v516_v9 = vld [vmem:[%s2285_s10 + $0x58] sm:$0xff] (!%p1806_p11)  ;;  %v515_v10 = vld [vmem:[%s2285_s10 + $0x50] sm:$0xff] (!%p1806_p11) }
  0x25   : > { %297 = vst.msk [vmem:[#allocation3 + $0x70] sm:$0xff] %vm266_vm0, %v2155_v1  ;;  %298 = vst.msk [vmem:[#allocation3 + $0x78] sm:$0xff] %vm266_vm0, %v2155_v1  ;;  %v510_v11 = vld [vmem:[%s2285_s10 + $0x28] sm:$0xff] (!%p1806_p11)  ;;  %v509_v12 = vld [vmem:[%s2285_s10 + $0x20] sm:$0xff] (!%p1806_p11)  ;;  %v652_v35 = vsub.s32 (!%p1806_p11), 0, %v2321_v26  ;;  %v656_v49 = vsub.s32 (!%p1806_p11), 1, %v2321_v26 }
  0x26   : > { %300 = vst.msk [vmem:[#allocation4] sm:$0xff] %vm299_vm1, %v2155_v1  ;;  %301 = vst.msk [vmem:[#allocation4 + $0x8] sm:$0xff] %vm299_vm1, %v2155_v1  ;;  %v518_v13 = vld [vmem:[%s2285_s10 + $0x68] sm:$0xff] (!%p1806_p11)  ;;  %v517_v14 = vld [vmem:[%s2285_s10 + $0x60] sm:$0xff] (!%p1806_p11) }
  0x27   : > { %302 = vst.msk [vmem:[#allocation4 + $0x10] sm:$0xff] %vm299_vm1, %v2155_v1  ;;  %303 = vst.msk [vmem:[#allocation4 + $0x18] sm:$0xff] %vm299_vm1, %v2155_v1  ;;  %327 = sbr.rel (%p1806_p11) target bundleno = 722 (0x2d2), region = 44  ;;  %616 = vperm.xlu1 (!%p1806_p11), %1968, %v514_v5   ;;  %576 = vperm.xlu0 (!%p1806_p11), %1967, %v506_v6   ;;  %v512_v15 = vld [vmem:[%s2285_s10 + $0x38] sm:$0xff] (!%p1806_p11)  ;;  %v511_v16 = vld [vmem:[%s2285_s10 + $0x30] sm:$0xff] (!%p1806_p11) }
  0x28   : > { %304 = vst.msk [vmem:[#allocation4 + $0x20] sm:$0xff] %vm299_vm1, %v2155_v1  ;;  %305 = vst.msk [vmem:[#allocation4 + $0x28] sm:$0xff] %vm299_vm1, %v2155_v1  ;;  %v520_v17 = vld [vmem:[%s2285_s10 + $0x78] sm:$0xff] (!%p1806_p11)  ;;  %v519_v18 = vld [vmem:[%s2285_s10 + $0x70] sm:$0xff] (!%p1806_p11) }
  0x29   : > { %306 = vst.msk [vmem:[#allocation4 + $0x30] sm:$0xff] %vm299_vm1, %v2155_v1  ;;  %307 = vst.msk [vmem:[#allocation4 + $0x38] sm:$0xff] %vm299_vm1, %v2155_v1  ;;  %v328_v19 = vld [vmem:[%s2290_s14] sm:$0xff] (!%p1806_p11)  ;;  %v329_v21 = vld [vmem:[%s2290_s14 + $0x8] sm:$0xff] (!%p1806_p11) }
  0x2a   : > { %308 = vst.msk [vmem:[#allocation4 + $0x40] sm:$0xff] %vm299_vm1, %v2155_v1  ;;  %309 = vst.msk [vmem:[#allocation4 + $0x48] sm:$0xff] %vm299_vm1, %v2155_v1  ;;  %v336_v22 = vunpack.c.0.s8 (!%p1806_p11), %v328_v19  ;;  %v2316_v23 = vld [vmem:[%s2290_s14 + $0x20] sm:$0xff] (!%p1806_p11)  ;;  %v2319_v24 = vld [vmem:[%s2290_s14 + $0x28] sm:$0xff] (!%p1806_p11)  ;;  %v338_v25 = vunpack.c.1.s8 (!%p1806_p11), %v328_v19  ;;  %v337_v27 = vunpack.c.0.s8 (!%p1806_p11), %v329_v21  ;;  %v339_v28 = vunpack.c.1.s8 (!%p1806_p11), %v329_v21 }
  0x2b   : > { %310 = vst.msk [vmem:[#allocation4 + $0x50] sm:$0xff] %vm299_vm1, %v2155_v1  ;;  %311 = vst.msk [vmem:[#allocation4 + $0x58] sm:$0xff] %vm299_vm1, %v2155_v1  ;;  %586 = vperm.xlu1 (!%p1806_p11), %1968, %v508_v7   ;;  %581 = vperm.xlu0 (!%p1806_p11), %1967, %v507_v8   ;;  %v352_v29 = vunpack.c.0.s8 (!%p1806_p11), %v2316_v23  ;;  %v353_v30 = vunpack.c.0.s8 (!%p1806_p11), %v2319_v24  ;;  %v340_v33 = vunpack.c.2.s8 (!%p1806_p11), %v328_v19  ;;  %v341_v34 = vunpack.c.2.s8 (!%p1806_p11), %v329_v21  ;;  %v2330_v37 = vld [vmem:[%s3070_s2] sm:$0x3] (!%p1806_p11)  ;;  %v2341_v60 = vld [vmem:[%s2290_s14 + $0x10] sm:$0xff] (!%p1806_p11) }
  0x2c   : > { %312 = vst.msk [vmem:[#allocation4 + $0x60] sm:$0xff] %vm299_vm1, %v2155_v1  ;;  %313 = vst.msk [vmem:[#allocation4 + $0x68] sm:$0xff] %vm299_vm1, %v2155_v1  ;;  %v368_v31 = vcvt.s32.f32 (!%p1806_p11), %v336_v22  ;;  %v370_v32 = vcvt.s32.f32 (!%p1806_p11), %v338_v25  ;;  %v354_v36 = vunpack.c.1.s8 (!%p1806_p11), %v2316_v23  ;;  %v369_v38 = vcvt.s32.f32 (!%p1806_p11), %v337_v27  ;;  %v2347_v3 = vld [vmem:[%s2290_s14 + $0x18] sm:$0xff] (!%p1806_p11) }
  0x2d   : > { %314 = vst.msk [vmem:[#allocation4 + $0x70] sm:$0xff] %vm299_vm1, %v2155_v1  ;;  %315 = vst.msk [vmem:[#allocation4 + $0x78] sm:$0xff] %vm299_vm1, %v2155_v1  ;;  %v371_v39 = vcvt.s32.f32 (!%p1806_p11), %v339_v28  ;;  %v384_v40 = vcvt.s32.f32 (!%p1806_p11), %v352_v29  ;;  %v385_v41 = vcvt.s32.f32 (!%p1806_p11), %v353_v30  ;;  %v355_v43 = vunpack.c.1.s8 (!%p1806_p11), %v2319_v24 }
  0x2e   : > { %v1807_v42 = vadd.f32 -1.0, %v368_v31  ;;  %v342_v44 = vunpack.c.3.s8 %v328_v19  ;;  %v1809_v45 = vadd.f32 -1.0, %v370_v32  ;;  %v372_v46 = vcvt.s32.f32 %v340_v33  ;;  %v2369_v19 = vld [vmem:[%s2290_s14 + $0x38] sm:$0xff] }
  0x2f   : > { %626 = vperm.xlu1 %1968, %v516_v9   ;;  %621 = vperm.xlu0 %1967, %v515_v10   ;;  %v373_v47 = vcvt.s32.f32 %v341_v34  ;;  %v343_v48 = vunpack.c.3.s8 %v329_v21  ;;  %v2335_v50 = vrot.slane %v2330_v37, %v652_v35  ;;  %v386_v51 = vcvt.s32.f32 %v354_v36 }
  0x30   : > { %v1808_v52 = vadd.f32 -1.0, %v369_v38  ;;  %v1810_v53 = vadd.f32 -1.0, %v371_v39  ;;  %v1823_v54 = vadd.f32 -1.0, %v384_v40  ;;  %v1824_v55 = vadd.f32 -1.0, %v385_v41 }
  0x31   : > { %v2337_v56 = vmul.f32 1e+30, %v1807_v42  ;;  %v387_v57 = vcvt.s32.f32 %v355_v43  ;;  %v356_v58 = vunpack.c.2.s8 %v2316_v23  ;;  %v374_v59 = vcvt.s32.f32 %v342_v44 }
  0x32   : > { %v2343_v61 = vmul.f32 1e+30, %v1809_v45  ;;  %v1811_v62 = vadd.f32 -1.0, %v372_v46  ;;  %v1812_v63 = vadd.f32 -1.0, %v373_v47  ;;  %v375_v0 = vcvt.s32.f32 %v343_v48 }
  0x33   : > { %596 = vperm.xlu1 %1968, %v510_v11   ;;  %591 = vperm.xlu0 %1967, %v509_v12   ;;  %v1825_v1 = vadd.f32 -1.0, %v386_v51  ;;  %v357_v2 = vunpack.c.2.s8 %v2319_v24  ;;  %v358_v4 = vunpack.c.3.s8 %v2316_v23  ;;  %v359_v5 = vunpack.c.3.s8 %v2319_v24 }
  0x34   : > { %v2351_v6 = vmul.f32 1e+30, %v1808_v52  ;;  %v2353_v7 = vmul.f32 1e+30, %v1810_v53  ;;  %v2355_v8 = vmul.f32 1e+30, %v1823_v54  ;;  %v344_v9 = vunpack.c.0.s8 %v2341_v60 }
  0x35   : > { %v2358_v10 = vmul.f32 1e+30, %v1824_v55  ;;  %v1826_v11 = vadd.f32 -1.0, %v387_v57  ;;  %v388_v12 = vcvt.s32.f32 %v356_v58  ;;  %v2371_v20 = vmul.f32 1e+30, %v1825_v1 }
  0x36   : > { %v389_v21 = vcvt.s32.f32 %v357_v2  ;;  %v390_v22 = vcvt.s32.f32 %v358_v4  ;;  %v391_v23 = vcvt.s32.f32 %v359_v5  ;;  %v376_v24 = vcvt.s32.f32 %v344_v9 }
  0x37   : > { %636 = vperm.xlu1 %1968, %v518_v13   ;;  %631 = vperm.xlu0 %1967, %v517_v14   ;;  %v1813_v13 = vadd.f32 -1.0, %v374_v59  ;;  %v2361_v14 = vld [vmem:[%s2290_s14 + $0x30] sm:$0xff]  ;;  %v346_v27 = vunpack.c.1.s8 %v2341_v60  ;;  %v347_v28 = vunpack.c.1.s8 %v2347_v3  ;;  %v2376_v29 = vmul.f32 1e+30, %v1826_v11 }
  0x38   : > { %v360_v25 = vunpack.c.0.s8 %v2361_v14  ;;  %v1827_v30 = vadd.f32 -1.0, %v388_v12  ;;  %v361_v32 = vunpack.c.0.s8 %v2369_v19  ;;  %v362_v35 = vunpack.c.1.s8 %v2361_v14 }
  0x39   : > { %v2378_v31 = vmul.f32 1e+30, %v1813_v13  ;;  %v363_v36 = vunpack.c.1.s8 %v2369_v19  ;;  %v1828_v38 = vadd.f32 -1.0, %v389_v21  ;;  %v1829_v39 = vadd.f32 -1.0, %v390_v22 }
  0x3a   : > { %v1830_v40 = vadd.f32 -1.0, %v391_v23  ;;  %v348_v41 = vunpack.c.2.s8 %v2341_v60  ;;  %v1815_v42 = vadd.f32 -1.0, %v376_v24  ;;  %v392_v43 = vcvt.s32.f32 %v360_v25 }
  0x3b   : > { %606 = vperm.xlu1 %1968, %v512_v15   ;;  %601 = vperm.xlu0 %1967, %v511_v16   ;;  %v2363_v15 = vmul.f32 1e+30, %v1811_v62  ;;  %v2365_v16 = vmul.f32 1e+30, %v1812_v63  ;;  %v378_v44 = vcvt.s32.f32 %v346_v27  ;;  %v379_v45 = vcvt.s32.f32 %v347_v28 }
  0x3c   : > { %v2386_v46 = vmul.f32 1e+30, %v1827_v30  ;;  %v393_v47 = vcvt.s32.f32 %v361_v32  ;;  %v349_v48 = vunpack.c.2.s8 %v2347_v3  ;;  %v350_v51 = vunpack.c.3.s8 %v2341_v60 }
  0x3d   : > { %v394_v53 = vcvt.s32.f32 %v362_v35  ;;  %v395_v54 = vcvt.s32.f32 %v363_v36  ;;  %v351_v55 = vunpack.c.3.s8 %v2347_v3  ;;  %v2391_v57 = vmul.f32 1e+30, %v1828_v38 }
  0x3e   : > { %v2393_v58 = vmul.f32 1e+30, %v1829_v39  ;;  %v2395_v59 = vmul.f32 1e+30, %v1830_v40  ;;  %v380_v62 = vcvt.s32.f32 %v348_v41  ;;  %v2397_v63 = vmul.f32 1e+30, %v1815_v42 }
  0x3f   : > { %646 = vperm.xlu1 %1968, %v520_v17   ;;  %641 = vperm.xlu0 %1967, %v519_v18   ;;  %v1814_v17 = vadd.f32 -1.0, %v375_v0  ;;  %v345_v18 = vunpack.c.0.s8 %v2347_v3  ;;  %v1831_v0 = vadd.f32 -1.0, %v392_v43  ;;  %v1817_v1 = vadd.f32 -1.0, %v378_v44 }
  0x40   : > { %v1818_v2 = vadd.f32 -1.0, %v379_v45  ;;  %v1832_v4 = vadd.f32 -1.0, %v393_v47  ;;  %v381_v5 = vcvt.s32.f32 %v349_v48  ;;  %v364_v60 = vunpack.c.2.s8 %v2361_v14 }
  0x41   : > { %v2381_v33 = vmul.f32 1e+30, %v1814_v17  ;;  %v377_v34 = vcvt.s32.f32 %v345_v18  ;;  %v382_v9 = vcvt.s32.f32 %v350_v51  ;;  %v1833_v3 = vadd.f32 -1.0, %v394_v53 }
  0x42   : > { %v1834_v12 = vadd.f32 -1.0, %v395_v54  ;;  %v383_v13 = vcvt.s32.f32 %v351_v55  ;;  %v1819_v17 = vadd.f32 -1.0, %v380_v62  ;;  %v365_v18 = vunpack.c.2.s8 %v2369_v19 }
  0x43   : > { %v1816_v52 = vadd.f32 -1.0, %v377_v34  ;;  %v366_v21 = vunpack.c.3.s8 %v2361_v14  ;;  %v367_v22 = vunpack.c.3.s8 %v2369_v19  ;;  %v2408_v23 = vrot.slane %v2330_v37, %v656_v49 }
  0x44   : > { %v2410_v24 = vmul.f32 1e+30, %v1831_v0  ;;  %v2412_v25 = vmul.f32 1e+30, %v1817_v1  ;;  %v2414_v27 = vmul.f32 1e+30, %v1818_v2  ;;  %v396_v32 = vcvt.s32.f32 %v364_v60 }
  0x45   : > { %v2400_v11 = vmul.f32 1e+30, %v1816_v52  ;;  %v2416_v28 = vmul.f32 1e+30, %v1832_v4  ;;  %v1820_v30 = vadd.f32 -1.0, %v381_v5  ;;  %v1821_v34 = vadd.f32 -1.0, %v382_v9 }
  0x46   : > { %v2418_v35 = vmul.f32 1e+30, %v1833_v3  ;;  %v2420_v14 = vmul.f32 1e+30, %v1834_v12  ;;  %v1822_v19 = vadd.f32 -1.0, %v383_v13  ;;  %v397_v49 = vcvt.s32.f32 %v365_v18 }
  0x47   : > { %v2422_v37 = vmul.f32 1e+30, %v1819_v17  ;;  %v398_v38 = vcvt.s32.f32 %v366_v21  ;;  %v399_v39 = vcvt.s32.f32 %v367_v22  ;;  %v2428_v44 = vmul.f32 1e+30, %v1820_v30 }
  0x48   : > { %v1835_v45 = vadd.f32 -1.0, %v396_v32  ;;  %v2430_v47 = vmul.f32 1e+30, %v1821_v34  ;;  %v1836_v62 = vadd.f32 -1.0, %v397_v49  ;;  %v2432_v0 = vmul.f32 1e+30, %v1822_v19 }
  0x49   : > { %v2434_v1 = vadd.f32 -1.0, %v398_v38  ;;  %v2439_v60 = vadd.f32 -1.0, %v399_v39 }
  0x4a   : > { %v2450_v22 = vmul.f32 1e+30, %v1835_v45 }
  0xa2   : > { %v612_v26 = vpop.permute.xlu1 %611  ;;  %v572_v36 = vpop.permute.xlu0 %571 }
  0xa3   : > { %v676_v40 = vadd.f32 %v2335_v50, %v612_v26  ;;  %v677_v41 = vadd.f32 %v2408_v23, %v612_v26  ;;  %v660_v42 = vadd.f32 %v2335_v50, %v572_v36  ;;  %v661_v43 = vadd.f32 %v2408_v23, %v572_v36 }
  0xa4   : > { %v2455_v36 = vmul.f32 1e+30, %v1836_v62 }
  0xa5   : > { %v708_v48 = vmul.f32 0.2, %v676_v40  ;;  %v709_v51 = vmul.f32 0.2, %v677_v41  ;;  %v692_v52 = vmul.f32 0.2, %v660_v42 }
  0xa6   : > { %v693_v53 = vmul.f32 0.2, %v661_v43  ;;  %v617_v54 = vpop.permute.xlu1 %616  ;;  %v577_v55 = vpop.permute.xlu0 %576 }
  0xa7   : > { %v740_v2 = vmax.f32 %v676_v40, %v708_v48  ;;  %v724_v4 = vmax.f32 %v660_v42, %v692_v52  ;;  %v2437_v5 = vadd.f32 %v2335_v50, %v617_v54  ;;  %v2442_v3 = vadd.f32 %v2408_v23, %v617_v54 }
  0xa8   : > { %v725_v9 = vmax.f32 %v661_v43, %v693_v53  ;;  %v662_v12 = vadd.f32 %v2335_v50, %v577_v55  ;;  %v663_v13 = vadd.f32 %v2408_v23, %v577_v55  ;;  %v741_v17 = vmax.f32 %v677_v41, %v709_v51 }
  0xa9   : > { %v710_v18 = vmul.f32 0.2, %v2437_v5  ;;  %v2448_v21 = vadd.f32 %v724_v4, %v2337_v56  ;;  %v711_v49 = vmul.f32 0.2, %v2442_v3  ;;  %v2467_v43 = vadd.f32 %v740_v2, %v2355_v8 }
  0xaa   : > { %v694_v30 = vmul.f32 0.2, %v662_v12  ;;  %v695_v32 = vmul.f32 0.2, %v663_v13  ;;  %v587_v34 = vpop.permute.xlu1 %586  ;;  %v582_v19 = vpop.permute.xlu0 %581  ;;  %v2453_v26 = vadd.f32 %v725_v9, %v2351_v6  ;;  %v2473_v51 = vadd.f32 %v741_v17, %v2358_v10 }
  0xab   : > { %v2459_v38 = vadd.f32 %v2335_v50, %v587_v34  ;;  %v2462_v39 = vadd.f32 %v2408_v23, %v587_v34  ;;  %v664_v56 = vadd.f32 %v2335_v50, %v582_v19  ;;  %v665_v42 = vadd.f32 %v2408_v23, %v582_v19 }
  0xac   : > { %v726_v40 = vmax.f32 %v662_v12, %v694_v30  ;;  %v727_v41 = vmax.f32 %v663_v13, %v695_v32  ;;  %v742_v6 = vmax.f32 %v2437_v5, %v710_v18  ;;  %v788_v48 = vmax.f32 %v2448_v21, %v2453_v26 }
  0xad   : > { %v696_v45 = vmul.f32 0.2, %v664_v56  ;;  %v698_v52 = vmul.f32 0.2, %v2459_v38  ;;  %v697_v53 = vmul.f32 0.2, %v665_v42  ;;  %v743_v2 = vmax.f32 %v2442_v3, %v711_v49 }
  0xae   : > { %v627_v54 = vpop.permute.xlu1 %626  ;;  %v622_v55 = vpop.permute.xlu0 %621  ;;  %v2477_v62 = vadd.f32 %v726_v40, %v2343_v61  ;;  %v2480_v8 = vadd.f32 %v727_v41, %v2353_v7  ;;  %v699_v4 = vmul.f32 0.2, %v2462_v39  ;;  %789 = vmax.xlane.f32.xlu0 %v788_v48  ;;  %v812_v17 = vmax.f32 %v2467_v43, %v2473_v51 }
  0xaf   : > { %v728_v5 = vmax.f32 %v664_v56, %v696_v45  ;;  %v2485_v10 = vadd.f32 %v2335_v50, %v627_v54  ;;  %v729_v9 = vmax.f32 %v665_v42, %v697_v53  ;;  %v2488_v12 = vadd.f32 %v2408_v23, %v627_v54 }
  0xb0   : > { %v680_v13 = vadd.f32 %v2335_v50, %v622_v55  ;;  %v681_v61 = vadd.f32 %v2408_v23, %v622_v55  ;;  %v791_v3 = vmax.f32 %v2477_v62, %v2480_v8  ;;  %v730_v30 = vmax.f32 %v2459_v38, %v698_v52 }
  0xb1   : > { %v2493_v7 = vmul.f32 0.2, %v2485_v10  ;;  %v2500_v18 = vadd.f32 %v728_v5, %v2363_v15  ;;  %v2504_v56 = vadd.f32 %v729_v9, %v2365_v16  ;;  %v731_v40 = vmax.f32 %v2462_v39, %v699_v4 }
  0xb2   : > { %v712_v32 = vmul.f32 0.2, %v680_v13  ;;  %v713_v34 = vmul.f32 0.2, %v681_v61  ;;  %v597_v19 = vpop.permute.xlu1 %596  ;;  %v592_v49 = vpop.permute.xlu0 %591  ;;  %v2508_v41 = vmul.f32 0.2, %v2488_v12  ;;  %792 = vmax.xlane.f32.xlu1 %v791_v3  ;;  %813 = vmax.xlane.f32.xlu0 %v812_v17  ;;  %v2518_v16 = vadd.f32 %v742_v6, %v2371_v20 }
  0xb3   : > { %v2511_v42 = vadd.f32 %v2335_v50, %v597_v19  ;;  %v2514_v15 = vadd.f32 %v2408_v23, %v597_v19  ;;  %v668_v48 = vadd.f32 %v2335_v50, %v592_v49  ;;  %v746_v39 = vmax.f32 %v2485_v10, %v2493_v7 }
  0xb4   : > { %v744_v38 = vmax.f32 %v680_v13, %v712_v32  ;;  %v745_v45 = vmax.f32 %v681_v61, %v713_v34  ;;  %v669_v53 = vadd.f32 %v2408_v23, %v592_v49  ;;  %v794_v54 = vmax.f32 %v2500_v18, %v2504_v56 }
  0xb5   : > { %v2523_v52 = vmul.f32 0.2, %v2511_v42  ;;  %v700_v55 = vmul.f32 0.2, %v668_v48  ;;  %v2529_v4 = vadd.f32 %v743_v2, %v2376_v29  ;;  %v747_v10 = vmax.f32 %v2488_v12, %v2508_v41 }
  0xb6   : > { %v637_v5 = vpop.permute.xlu1 %636  ;;  %v632_v9 = vpop.permute.xlu0 %631  ;;  %v2532_v20 = vadd.f32 %v744_v38, %v2386_v46  ;;  %v2535_v6 = vadd.f32 %v745_v45, %v2391_v57  ;;  %v703_v13 = vmul.f32 0.2, %v2514_v15  ;;  %v701_v61 = vmul.f32 0.2, %v669_v53  ;;  %795 = vmax.xlane.f32.xlu1 %v794_v54 }
  0xb7   : > { %v2541_v7 = vadd.f32 %v2335_v50, %v637_v5  ;;  %v734_v29 = vmax.f32 %v2511_v42, %v2523_v52  ;;  %v815_v46 = vmax.f32 %v2518_v16, %v2529_v4  ;;  %v2548_v2 = vadd.f32 %v2408_v23, %v637_v5 }
  0xb8   : > { %v684_v57 = vadd.f32 %v2335_v50, %v632_v9  ;;  %v732_v3 = vmax.f32 %v668_v48, %v700_v55  ;;  %v733_v12 = vmax.f32 %v669_v53, %v701_v61  ;;  %v685_v17 = vadd.f32 %v2408_v23, %v632_v9 }
  0xb9   : > { %v818_v32 = vmax.f32 %v2532_v20, %v2535_v6  ;;  %816 = vmax.xlane.f32.xlu0 %v815_v46  ;;  %v718_v34 = vmul.f32 0.2, %v2541_v7  ;;  %v2556_v49 = vadd.f32 %v730_v30, %v2378_v31  ;;  %v2559_v41 = vadd.f32 %v731_v40, %v2381_v33 }
  0xba   : > { %v716_v19 = vmul.f32 0.2, %v684_v57  ;;  %v607_v42 = vpop.permute.xlu1 %606  ;;  %v602_v38 = vpop.permute.xlu0 %601  ;;  %v719_v45 = vmul.f32 0.2, %v2548_v2  ;;  %v717_v48 = vmul.f32 0.2, %v685_v17  ;;  %v735_v54 = vmax.f32 %v2514_v15, %v703_v13 }
  0xbb   : > { %819 = vmax.xlane.f32.xlu1 %v818_v32  ;;  %v674_v52 = vadd.f32 %v2335_v50, %v607_v42  ;;  %v675_v53 = vadd.f32 %v2408_v23, %v607_v42  ;;  %v797_v31 = vmax.f32 %v2556_v49, %v2559_v41  ;;  %v672_v30 = vadd.f32 %v2335_v50, %v602_v38 }
  0xbc   : > { %v748_v55 = vmax.f32 %v684_v57, %v716_v19  ;;  %v749_v33 = vmax.f32 %v685_v17, %v717_v48  ;;  %v673_v9 = vadd.f32 %v2408_v23, %v602_v38  ;;  %v2570_v46 = vadd.f32 %v732_v3, %v2397_v63 }
  0xbd   : > { %v706_v40 = vmul.f32 0.2, %v674_v52  ;;  %v707_v5 = vmul.f32 0.2, %v675_v53  ;;  %798 = vmax.xlane.f32.xlu0 %v797_v31  ;;  %v704_v61 = vmul.f32 0.2, %v672_v30  ;;  %v2573_v32 = vadd.f32 %v733_v12, %v2400_v11 }
  0xbe   : > { %v2576_v15 = vadd.f32 %v746_v39, %v2393_v58  ;;  %v647_v13 = vpop.permute.xlu1 %646  ;;  %v642_v57 = vpop.permute.xlu0 %641  ;;  %v750_v19 = vmax.f32 %v2541_v7, %v718_v34  ;;  %v751_v17 = vmax.f32 %v2548_v2, %v719_v45  ;;  %v705_v42 = vmul.f32 0.2, %v673_v9 }
  0xbf   : > { %v2581_v38 = vadd.f32 %v747_v10, %v2395_v59  ;;  %v736_v48 = vmax.f32 %v672_v30, %v704_v61  ;;  %v800_v63 = vmax.f32 %v2570_v46, %v2573_v32  ;;  %v690_v11 = vadd.f32 %v2335_v50, %v647_v13 }
  0xc0   : > { %v691_v3 = vadd.f32 %v2408_v23, %v647_v13  ;;  %v737_v58 = vmax.f32 %v673_v9, %v705_v42  ;;  %v688_v7 = vadd.f32 %v2335_v50, %v642_v57  ;;  %v689_v2 = vadd.f32 %v2408_v23, %v642_v57  ;;  %v1970_v57 = vld [vmem:[%s3072_s4] sm:$0xff]   ;;  %v1973_v42 = vld [vmem:[%s3072_s4 + $0x50] sm:$0xff]  }
  0xc1   : > { %v821_v39 = vmax.f32 %v2576_v15, %v2581_v38  ;;  %v738_v12 = vmax.f32 %v674_v52, %v706_v40  ;;  %v739_v34 = vmax.f32 %v675_v53, %v707_v5  ;;  %801 = vmax.xlane.f32.xlu1 %v800_v63  ;;  %v2592_v59 = vadd.f32 %v748_v55, %v2410_v24  ;;  %v2665_v63 = vld [vmem:[#allocation2] sm:$0xff] }
  0xc2   : > { %v2595_v10 = vadd.f32 %v749_v33, %v2416_v28  ;;  %v720_v45 = vmul.f32 0.2, %v688_v7  ;;  %v721_v31 = vmul.f32 0.2, %v689_v2  ;;  %v2598_v30 = vadd.f32 %v734_v29, %v2412_v25 }
  0xc3   : > { %822 = vmax.xlane.f32.xlu0 %v821_v39  ;;  %v2601_v9 = vadd.f32 %v735_v54, %v2414_v27  ;;  %v722_v50 = vmul.f32 0.2, %v690_v11  ;;  %v723_v23 = vmul.f32 0.2, %v691_v3  ;;  %v2606_v24 = vadd.f32 %v736_v48, %v2422_v37  ;;  %v1974_v48 = vld [vmem:[%s3072_s4 + $0x10] sm:$0xff]   ;;  %v2670_v39 = vld [vmem:[#allocation2 + $0x40] sm:$0xff] }
  0xc4   : > { %v824_v52 = vmax.f32 %v2592_v59, %v2595_v10  ;;  %v752_v53 = vmax.f32 %v688_v7, %v720_v45  ;;  %v753_v28 = vmax.f32 %v689_v2, %v721_v31  ;;  %v2611_v33 = vadd.f32 %v737_v58, %v2428_v44  ;;  %v522_v58 = vld [vmem:[#allocation2 + $0x8] sm:$0xff]  ;;  %v2678_v45 = vld [vmem:[#allocation2 + $0x10] sm:$0xff] }
  0xc5   : > { %v803_v55 = vmax.f32 %v2598_v30, %v2601_v9  ;;  %v2614_v25 = vadd.f32 %v750_v19, %v2418_v35  ;;  %v2617_v27 = vadd.f32 %v751_v17, %v2420_v14  ;;  %v754_v40 = vmax.f32 %v690_v11, %v722_v50  ;;  %v1971_v19 = vld [vmem:[%s3072_s4 + $0x48] sm:$0xff]   ;;  %v1975_v50 = vld [vmem:[%s3072_s4 + $0x58] sm:$0xff]  }
  0xc6   : > { %825 = vmax.xlane.f32.xlu1 %v824_v52  ;;  %v806_v37 = vmax.f32 %v2606_v24, %v2611_v33  ;;  %v2622_v29 = vadd.f32 %v752_v53, %v2450_v22  ;;  %v2625_v54 = vadd.f32 %v753_v28, %v2455_v36  ;;  %v462_v44 = vmul.f32 1e+30, %v2434_v1  ;;  %v1972_v17 = vld [vmem:[%s3072_s4 + $0x8] sm:$0xff]   ;;  %v2695_v28 = vld [vmem:[#allocation2 + $0x50] sm:$0xff] }
  0xc7   : > { %804 = vmax.xlane.f32.xlu0 %v803_v55  ;;  %v463_v5 = vmul.f32 1e+30, %v2439_v60  ;;  %v755_v35 = vmax.f32 %v691_v3, %v723_v23  ;;  %v827_v14 = vmax.f32 %v2614_v25, %v2617_v27  ;;  %v2632_v61 = vadd.f32 %v738_v12, %v2430_v47  ;;  %v1976_v23 = vld [vmem:[%s3072_s4 + $0x18] sm:$0xff]   ;;  %v2693_v53 = vld [vmem:[#allocation2 + $0x48] sm:$0xff] }
  0xc8   : > { %v2635_v13 = vadd.f32 %v739_v34, %v2432_v0  ;;  %v830_v22 = vmax.f32 %v2622_v29, %v2625_v54  ;;  %v2641_v36 = vadd.f32 %v754_v40, %v462_v44  ;;  %v1969_v0 = vld [vmem:[%s3072_s4 + $0x40] sm:$0xff]  }
  0xc9   : > { %v2643_v60 = vadd.f32 %v755_v35, %v463_v5  ;;  %1858 = vmatprep.subr.bf16.mxu0 %v1969_v0  ;;  %1922 = vmatprep.subr.bf16.mxu1 %v1969_v0  ;;  %v2706_v5 = vld [vmem:[#allocation2 + $0x18] sm:$0xff]  ;;  %v1977_v35 = vld [vmem:[%s3072_s4 + $0x60] sm:$0xff]  }
  0xca   : > { %807 = vmax.xlane.f32.xlu1 %v806_v37  ;;  %v809_v1 = vmax.f32 %v2632_v61, %v2635_v13  ;;  %1859 = vmatpush3.bf16.msra.mxu0 %v1970_v57  ;;  %v2726_v0 = vld [vmem:[#allocation2 + $0x58] sm:$0xff] }
  0xcb   : > { %828 = vmax.xlane.f32.xlu0 %v827_v14  ;;  %v833_v47 = vmax.f32 %v2641_v36, %v2643_v60  ;;  %1930 = vmatpush3.bf16.msra.mxu1 %v1970_v57  ;;  %v1978_v14 = vld [vmem:[%s3072_s4 + $0x20] sm:$0xff]  }
  0xcc   : > { %1860 = vmatprep.subr.bf16.mxu0 %v1971_v19  ;;  %1923 = vmatprep.subr.bf16.mxu1 %v1971_v19 }
  0xce   : > { %831 = vmax.xlane.f32.xlu1 %v830_v22  ;;  %1861 = vmatpush3.bf16.msra.mxu0 %v1972_v17 }
  0xcf   : > { %810 = vmax.xlane.f32.xlu0 %v809_v1  ;;  %1931 = vmatpush3.bf16.msra.mxu1 %v1972_v17  ;;  %v1979_v17 = vld [vmem:[%s3072_s4 + $0x68] sm:$0xff]  }
  0xd0   : > { %1862 = vmatprep.subr.bf16.mxu0 %v1973_v42  ;;  %1924 = vmatprep.subr.bf16.mxu1 %v1973_v42  ;;  %v1980_v42 = vld [vmem:[%s3072_s4 + $0x28] sm:$0xff]  }
  0xd2   : > { %1863 = vmatpush3.bf16.msra.mxu0 %v1974_v48 }
  0xd3   : > { %834 = vmax.xlane.f32.xlu0 %v833_v47  ;;  %1932 = vmatpush3.bf16.msra.mxu1 %v1974_v48  ;;  %v525_v47 = vld [vmem:[#allocation2 + $0x20] sm:$0xff] }
  0xd4   : > { %1864 = vmatprep.subr.bf16.mxu0 %v1975_v50  ;;  %1925 = vmatprep.subr.bf16.mxu1 %v1975_v50 }
  0xd6   : > { %1865 = vmatpush3.bf16.msra.mxu0 %v1976_v23 }
  0xd7   : > { %1933 = vmatpush3.bf16.msra.mxu1 %v1976_v23  ;;  %1866 = vmatprep.subr.bf16.mxu0 %v1977_v35 }
  0xd8   : > { %1926 = vmatprep.subr.bf16.mxu1 %v1977_v35 }
  0xda   : > { %1867 = vmatpush3.bf16.msra.mxu0 %v1978_v14 }
  0xdb   : > { %1934 = vmatpush3.bf16.msra.mxu1 %v1978_v14  ;;  %1868 = vmatprep.subr.bf16.mxu0 %v1979_v17  ;;  %v527_v14 = vld [vmem:[#allocation2 + $0x30] sm:$0xff] }
  0xdc   : > { %1927 = vmatprep.subr.bf16.mxu1 %v1979_v17  ;;  %v1983_v17 = vld [vmem:[%s3072_s4 + $0x78] sm:$0xff]  }
  0xde   : > { %1869 = vmatpush3.bf16.msra.mxu0 %v1980_v42 }
  0xdf   : > { %1935 = vmatpush3.bf16.msra.mxu1 %v1980_v42 }
 0x13b   : > { %v790_v11 = vpop.xlane.xlu0 %789 }
 0x13c   : > { %v2668_v3 = vmax.f32 %v2665_v63, %v790_v11 }
 0x13e   : > { %1478 = vst.msk [vmem:[#allocation2] sm:$0xff] %vm266_vm0, %v2668_v3  ;;  %902 = vperm.xlu1 %1968, %v2668_v3  }
 0x13f   : > { %v793_v7 = vpop.xlane.xlu1 %792  ;;  %v814_v2 = vpop.xlane.xlu0 %813 }
 0x140   : > { %v837_v12 = vmax.f32 %v522_v58, %v793_v7  ;;  %v2676_v34 = vmax.f32 %v2670_v39, %v814_v2  ;;  %v2737_v2 = vld [vmem:[#allocation2 + $0x60] sm:$0xff] }
 0x142   : > { %1479 = vst.msk [vmem:[#allocation2 + $0x8] sm:$0xff] %vm266_vm0, %v837_v12  ;;  %1486 = vst.msk [vmem:[#allocation2 + $0x40] sm:$0xff] %vm266_vm0, %v2676_v34  ;;  %907 = vperm.xlu0 %1967, %v837_v12   ;;  %942 = vperm.xlu1 %1968, %v2676_v34   ;;  %v853_v57 = vsub.f32 %v522_v58, %v837_v12  ;;  %v852_v58 = vsub.f32 %v2665_v63, %v2668_v3  ;;  %v2742_v12 = vld [vmem:[#allocation2 + $0x28] sm:$0xff]  ;;  %v1982_v63 = vld [vmem:[%s3072_s4 + $0x30] sm:$0xff]  }
 0x143   : > { %v796_v31 = vpop.xlane.xlu1 %795 }
 0x144   : > { %v2691_v52 = vmax.f32 %v2678_v45, %v796_v31  ;;  %v870_v31 = vmul.f32 1.442695, %v853_v57 }
 0x146   : > { %1480 = vst.msk [vmem:[#allocation2 + $0x10] sm:$0xff] %vm266_vm0, %v2691_v52  ;;  %v817_v55 = vpop.xlane.xlu0 %816  ;;  %912 = vperm.xlu0 %1967, %v2691_v52   ;;  %1985 = vpow2.f32 %v870_v31  ;;  %v854_v42 = vsub.f32 %v2678_v45, %v2691_v52  ;;  %v860_v45 = vsub.f32 %v2670_v39, %v2676_v34  ;;  %v2796_v34 = vld [vmem:[#allocation2 + $0x78] sm:$0xff] }
 0x147   : > { %v2701_v37 = vmax.f32 %v2693_v53, %v817_v55  ;;  %v1981_v55 = vld [vmem:[%s3072_s4 + $0x70] sm:$0xff]  }
 0x148   : > { %v820_v40 = vpop.xlane.xlu1 %819  ;;  %1870 = vmatprep.subr.bf16.mxu0 %v1981_v55  ;;  %1928 = vmatprep.subr.bf16.mxu1 %v1981_v55  ;;  %v528_v55 = vld [vmem:[#allocation2 + $0x38] sm:$0xff] }
 0x149   : > { %v2704_v44 = vmax.f32 %v2695_v28, %v820_v40  ;;  %1487 = vst.msk [vmem:[#allocation2 + $0x48] sm:$0xff] %vm266_vm0, %v2701_v37  ;;  %947 = vperm.xlu1 %1968, %v2701_v37   ;;  %1871 = vmatpush3.bf16.msra.mxu0 %v1982_v63 }
 0x14a   : > { %v799_v22 = vpop.xlane.xlu0 %798  ;;  %1936 = vmatpush3.bf16.msra.mxu1 %v1982_v63  ;;  %1872 = vmatprep.subr.bf16.mxu0 %v1983_v17  ;;  %v872_v63 = vmul.f32 1.442695, %v854_v42 }
 0x14b   : > { %1488 = vst.msk [vmem:[#allocation2 + $0x50] sm:$0xff] %vm266_vm0, %v2704_v44  ;;  %952 = vperm.xlu0 %1967, %v2704_v44   ;;  %v2721_v1 = vmax.f32 %v2706_v5, %v799_v22  ;;  %v868_v22 = vmul.f32 1.442695, %v852_v58  ;;  %v1984_v58 = vld [vmem:[%s3072_s4 + $0x38] sm:$0xff]   ;;  %1929 = vmatprep.subr.bf16.mxu1 %v1983_v17 }
 0x14d   : > { %1481 = vst.msk [vmem:[#allocation2 + $0x18] sm:$0xff] %vm266_vm0, %v2721_v1  ;;  %917 = vperm.xlu1 %1968, %v2721_v1   ;;  %1987 = vpow2.f32 %v868_v22  ;;  %1873 = vmatpush3.bf16.msra.mxu0 %v1984_v58 }
 0x14e   : > { %v802_v19 = vpop.xlane.xlu1 %801  ;;  %1937 = vmatpush3.bf16.msra.mxu1 %v1984_v58 }
 0x14f   : > { %v840_v48 = vmax.f32 %v525_v47, %v802_v19 }
 0x150   : > { %v823_v11 = vpop.xlane.xlu0 %822 }
 0x151   : > { %v2735_v7 = vmax.f32 %v2726_v0, %v823_v11  ;;  %1482 = vst.msk [vmem:[#allocation2 + $0x20] sm:$0xff] %vm266_vm0, %v840_v48  ;;  %922 = vperm.xlu0 %1967, %v840_v48   ;;  %v856_v50 = vsub.f32 %v525_v47, %v840_v48  ;;  %v2762_v47 = vld [vmem:[#allocation2 + $0x68] sm:$0xff] }
 0x153   : > { %1489 = vst.msk [vmem:[#allocation2 + $0x58] sm:$0xff] %vm266_vm0, %v2735_v7  ;;  %957 = vperm.xlu1 %1968, %v2735_v7   ;;  %v826_v23 = vpop.xlane.xlu1 %825  ;;  %v876_v57 = vmul.f32 1.442695, %v856_v50  ;;  %v2778_v50 = vld [vmem:[#allocation2 + $0x70] sm:$0xff] }
 0x154   : > { %v2754_v3 = vmax.f32 %v2737_v2, %v826_v23  ;;  %v805_v40 = vpop.xlane.xlu0 %804 }
 0x155   : > { %v2757_v35 = vmax.f32 %v2742_v12, %v805_v40  ;;  %1989 = vpow2.f32 %v876_v57  ;;  %v855_v40 = vsub.f32 %v2706_v5, %v2721_v1  ;;  %v884_v57 = vmul.f32 1.442695, %v860_v45 }
 0x156   : > { %1490 = vst.msk [vmem:[#allocation2 + $0x60] sm:$0xff] %vm266_vm0, %v2754_v3  ;;  %962 = vperm.xlu0 %1967, %v2754_v3   ;;  %v862_v5 = vsub.f32 %v2695_v28, %v2704_v44  ;;  %v864_v28 = vsub.f32 %v2737_v2, %v2754_v3  ;;  %v861_v3 = vsub.f32 %v2693_v53, %v2701_v37 }
 0x157   : > { %1483 = vst.msk [vmem:[#allocation2 + $0x28] sm:$0xff] %vm266_vm0, %v2757_v35  ;;  %927 = vperm.xlu1 %1968, %v2757_v35   ;;  %v808_v19 = vpop.xlane.xlu1 %807  ;;  %v874_v1 = vmul.f32 1.442695, %v855_v40  ;;  %v857_v42 = vsub.f32 %v2742_v12, %v2757_v35 }
 0x158   : > { %v842_v48 = vmax.f32 %v527_v14, %v808_v19  ;;  %v829_v11 = vpop.xlane.xlu0 %828 }
 0x159   : > { %v2776_v31 = vmax.f32 %v2762_v47, %v829_v11  ;;  %v2803_v11 = vpop.eup %1985  ;;  %v878_v35 = vmul.f32 1.442695, %v857_v42 }
 0x15a   : > { %v858_v23 = vsub.f32 %v527_v14, %v842_v48  ;;  %1484 = vst.msk [vmem:[#allocation2 + $0x30] sm:$0xff] %vm266_vm0, %v842_v48  ;;  %932 = vperm.xlu0 %1967, %v842_v48   ;;  %v2816_v12 = vpop.eup %1987 }
 0x15b   : > { %1491 = vst.msk [vmem:[#allocation2 + $0x68] sm:$0xff] %vm266_vm0, %v2776_v31  ;;  %967 = vperm.xlu1 %1968, %v2776_v31   ;;  %v832_v52 = vpop.xlane.xlu1 %831  ;;  %v865_v37 = vsub.f32 %v2762_v47, %v2776_v31 }
 0x15c   : > { %v880_v14 = vmul.f32 1.442695, %v858_v23  ;;  %v2789_v22 = vmax.f32 %v2778_v50, %v832_v52  ;;  %v811_v19 = vpop.xlane.xlu0 %810  ;;  %v888_v23 = vmul.f32 1.442695, %v862_v5 }
 0x15d   : > { %v843_v17 = vmax.f32 %v528_v55, %v811_v19  ;;  %v863_v19 = vsub.f32 %v2726_v0, %v2735_v7  ;;  %v894_v0 = vmul.f32 1.442695, %v865_v37 }
 0x15e   : > { %1991 = vpow2.f32 %v880_v14  ;;  %1492 = vst.msk [vmem:[#allocation2 + $0x70] sm:$0xff] %vm266_vm0, %v2789_v22  ;;  %972 = vperm.xlu0 %1967, %v2789_v22  }
 0x15f   : > { %1485 = vst.msk [vmem:[#allocation2 + $0x38] sm:$0xff] %vm266_vm0, %v843_v17  ;;  %937 = vperm.xlu1 %1968, %v843_v17   ;;  %1993 = vpow2.f32 %v872_v63  ;;  %v859_v45 = vsub.f32 %v528_v55, %v843_v17  ;;  %v2818_v52 = vpop.eup %1989  ;;  %v892_v63 = vmul.f32 1.442695, %v864_v28  ;;  %v886_v55 = vmul.f32 1.442695, %v861_v3 }
 0x160   : > { %v835_v48 = vpop.xlane.xlu0 %834  ;;  %1995 = vpow2.f32 %v884_v57  ;;  %v890_v53 = vmul.f32 1.442695, %v863_v19 }
 0x161   : > { %v2806_v58 = vmax.f32 %v2796_v34, %v835_v48  ;;  %1997 = vpow2.f32 %v874_v1  ;;  %v882_v40 = vmul.f32 1.442695, %v859_v45 }
 0x162   : > { %1163 = vperm.xlu0 %1967, %v2803_v11   ;;  %1999 = vpow2.f32 %v888_v23 }
 0x163   : > { %1493 = vst.msk [vmem:[#allocation2 + $0x78] sm:$0xff] %vm266_vm0, %v2806_v58  ;;  %977 = vperm.xlu1 %1968, %v2806_v58   ;;  %2001 = vpow2.f32 %v878_v35 }
 0x164   : > { %2003 = vpow2.f32 %v892_v63 }
 0x165   : > { %2005 = vpow2.f32 %v882_v40 }
 0x166   : > { %1178 = vperm.xlu0 %1967, %v2818_v52   ;;  %2007 = vpow2.f32 %v886_v55 }
 0x167   : > { %1158 = vperm.xlu1 %1968, %v2816_v12   ;;  %2009 = vpow2.f32 %v890_v53 }
 0x168   : > { %v2822_v2 = vpop.eup %1991  ;;  %2011 = vpow2.f32 %v894_v0 }
 0x169   : > { %v2826_v14 = vpop.eup %1993 }
 0x16a   : > { %1188 = vperm.xlu0 %1967, %v2822_v2   ;;  %v2832_v17 = vpop.eup %1995 }
 0x16b   : > { %1168 = vperm.xlu1 %1968, %v2826_v14   ;;  %v2834_v57 = vpop.eup %1997 }
 0x16c   : > { %v2840_v5 = vpop.eup %1999 }
 0x16d   : > { %v2842_v1 = vpop.eup %2001 }
 0x16e   : > { %1198 = vperm.xlu0 %1967, %v2832_v17   ;;  %v2846_v7 = vpop.eup %2003 }
 0x16f   : > { %1173 = vperm.xlu1 %1968, %v2834_v57   ;;  %v2848_v42 = vpop.eup %2005 }
 0x170   : > { %v2852_v47 = vpop.eup %2007 }
 0x171   : > { %v2855_v31 = vpop.eup %2009 }
 0x172   : > { %1208 = vperm.xlu0 %1967, %v2840_v5   ;;  %v2858_v48 = vpop.eup %2011 }
 0x173   : > { %1183 = vperm.xlu1 %1968, %v2842_v1  }
 0x176   : > { %1218 = vperm.xlu0 %1967, %v2846_v7  }
 0x177   : > { %1193 = vperm.xlu1 %1968, %v2848_v42  }
 0x17b   : > { %1203 = vperm.xlu1 %1968, %v2852_v47  }
 0x17f   : > { %1213 = vperm.xlu1 %1968, %v2855_v31  }
 0x183   : > { %1223 = vperm.xlu1 %1968, %v2858_v48  }
 0x1bd   : > { %v903_v23 = vpop.permute.xlu1 %902 }
 0x1be   : > { %v980_v28 = vsub.f32 %v2448_v21, %v903_v23  ;;  %v981_v35 = vsub.f32 %v2453_v26, %v903_v23 }
 0x1c0   : > { %v1012_v45 = vmul.f32 1.442695, %v980_v28  ;;  %v1014_v63 = vmul.f32 1.442695, %v981_v35 }
 0x1c1   : > { %v943_v3 = vpop.permute.xlu1 %942  ;;  %v908_v40 = vpop.permute.xlu0 %907 }
 0x1c2   : > { %2013 = vpow2.f32 %v1012_v45  ;;  %v996_v55 = vsub.f32 %v2467_v43, %v943_v3  ;;  %v982_v19 = vsub.f32 %v2477_v62, %v908_v40  ;;  %v983_v53 = vsub.f32 %v2480_v8, %v908_v40 }
 0x1c3   : > { %2015 = vpow2.f32 %v1014_v63  ;;  %v997_v37 = vsub.f32 %v2473_v51, %v943_v3 }
 0x1c4   : > { %v1044_v0 = vmul.f32 1.442695, %v996_v55  ;;  %v1016_v39 = vmul.f32 1.442695, %v982_v19  ;;  %v1018_v44 = vmul.f32 1.442695, %v983_v53 }
 0x1c5   : > { %v913_v21 = vpop.permute.xlu0 %912  ;;  %v1046_v28 = vmul.f32 1.442695, %v997_v37 }
 0x1c6   : > { %v984_v26 = vsub.f32 %v2500_v18, %v913_v21  ;;  %v985_v23 = vsub.f32 %v2504_v56, %v913_v21  ;;  %2017 = vpow2.f32 %v1044_v0 }
 0x1c7   : > { %2019 = vpow2.f32 %v1016_v39 }
 0x1c8   : > { %v948_v35 = vpop.permute.xlu1 %947  ;;  %v1020_v43 = vmul.f32 1.442695, %v984_v26  ;;  %v1022_v45 = vmul.f32 1.442695, %v985_v23  ;;  %2021 = vpow2.f32 %v1018_v44 }
 0x1c9   : > { %v998_v62 = vsub.f32 %v2518_v16, %v948_v35  ;;  %v999_v8 = vsub.f32 %v2529_v4, %v948_v35 }
 0x1ca   : > { %v953_v51 = vpop.permute.xlu0 %952  ;;  %2023 = vpow2.f32 %v1020_v43 }
 0x1cb   : > { %v1000_v63 = vsub.f32 %v2532_v20, %v953_v51  ;;  %v1048_v3 = vmul.f32 1.442695, %v998_v62  ;;  %v1050_v40 = vmul.f32 1.442695, %v999_v8  ;;  %2025 = vpow2.f32 %v1022_v45 }
 0x1cc   : > { %v1001_v18 = vsub.f32 %v2535_v6, %v953_v51  ;;  %v2014_v56 = vpop.eup %2013  ;;  %2027 = vpow2.f32 %v1046_v28  ;;  %v918_v39 = vpop.permute.xlu1 %917 }
 0x1cd   : > { %v1052_v55 = vmul.f32 1.442695, %v1000_v63  ;;  %v2016_v19 = vpop.eup %2015  ;;  %2029 = vpow2.f32 %v1048_v3  ;;  %v986_v44 = vsub.f32 %v2556_v49, %v918_v39  ;;  %v987_v16 = vsub.f32 %v2559_v41, %v918_v39 }
 0x1ce   : > { %2031 = vpow2.f32 %v1050_v40  ;;  %v1092_v4 = vadd.f32 %v2016_v19, %v2014_v56  ;;  %v1054_v20 = vmul.f32 1.442695, %v1001_v18 }
 0x1cf   : > { %v1024_v53 = vmul.f32 1.442695, %v986_v44  ;;  %v1026_v37 = vmul.f32 1.442695, %v987_v16  ;;  %2033 = vpow2.f32 %v1052_v55 }
 0x1d0   : > { %v923_v0 = vpop.permute.xlu0 %922  ;;  %1093 = vadd.xlane.f32.xlu0 %v1092_v4  ;;  %v2875_v21 = vpop.eup %2017 }
 0x1d1   : > { %2035 = vpow2.f32 %v1024_v53  ;;  %v988_v26 = vsub.f32 %v2570_v46, %v923_v0  ;;  %v989_v23 = vsub.f32 %v2573_v32, %v923_v0  ;;  %v2020_v28 = vpop.eup %2019 }
 0x1d2   : > { %v958_v6 = vpop.permute.xlu1 %957  ;;  %2037 = vpow2.f32 %v1026_v37  ;;  %v2022_v35 = vpop.eup %2021  ;;  %v1252_v62 = vpack.c.bf16 %v2020_v28, %v2014_v56 }
 0x1d3   : > { %v1002_v49 = vsub.f32 %v2576_v15, %v958_v6  ;;  %v1003_v41 = vsub.f32 %v2581_v38, %v958_v6  ;;  %2039 = vpow2.f32 %v1054_v20  ;;  %v1028_v43 = vmul.f32 1.442695, %v988_v26 }
 0x1d4   : > { %v1030_v45 = vmul.f32 1.442695, %v989_v23  ;;  %v2881_v8 = vpop.eup %2023  ;;  %v1253_v40 = vpack.c.bf16 %v2022_v35, %v2016_v19  ;;  %v1095_v46 = vadd.f32 %v2022_v35, %v2020_v28 }
 0x1d5   : > { %v1056_v51 = vmul.f32 1.442695, %v1002_v49  ;;  %v1058_v63 = vmul.f32 1.442695, %v1003_v41  ;;  %v963_v3 = vpop.permute.xlu0 %962  ;;  %v2026_v18 = vpop.eup %2025  ;;  %2041 = vpow2.f32 %v1028_v43 }
 0x1d6   : > { %v928_v32 = vpop.permute.xlu1 %927  ;;  %v1004_v39 = vsub.f32 %v2592_v59, %v963_v3  ;;  %v1005_v15 = vsub.f32 %v2595_v10, %v963_v3  ;;  %v2885_v38 = vpop.eup %2027  ;;  %1396 = vmatprep.mubr.bf16.mxu0 %v1253_v40  ;;  %1096 = vadd.xlane.f32.xlu1 %v1095_v46  ;;  %v1098_v44 = vadd.f32 %v2026_v18, %v2881_v8 }
 0x1d7   : > { %2043 = vpow2.f32 %v1056_v51  ;;  %v990_v55 = vsub.f32 %v2598_v30, %v928_v32  ;;  %v991_v56 = vsub.f32 %v2601_v9, %v928_v32  ;;  %v2890_v19 = vpop.eup %2029  ;;  %1397 = vmatmul.mubr.bf16.vlgmr.msra.gmra.mrb[0].mxu0 %v1252_v62 }
 0x1d8   : > { %2045 = vpow2.f32 %v1058_v63  ;;  %v1060_v16 = vmul.f32 1.442695, %v1004_v39  ;;  %v1062_v4 = vmul.f32 1.442695, %v1005_v15  ;;  %v2892_v59 = vpop.eup %2031  ;;  %1099 = vadd.xlane.f32.xlu0 %v1098_v44  ;;  %v1260_v30 = vpack.c.bf16 %v2890_v19, %v2875_v21 }
 0x1d9   : > { %2047 = vpow2.f32 %v1030_v45  ;;  %v1032_v10 = vmul.f32 1.442695, %v990_v55  ;;  %v1034_v53 = vmul.f32 1.442695, %v991_v56  ;;  %v933_v37 = vpop.permute.xlu0 %932  ;;  %v1261_v6 = vpack.c.bf16 %v2892_v59, %v2885_v38  ;;  %v2900_v26 = vpop.eup %2033 }
 0x1da   : > { %2049 = vpow2.f32 %v1060_v16  ;;  %v968_v9 = vpop.permute.xlu1 %967  ;;  %v992_v20 = vsub.f32 %v2606_v24, %v933_v37  ;;  %v993_v0 = vsub.f32 %v2611_v33, %v933_v37 }
 0x1db   : > { %2051 = vpow2.f32 %v1032_v10  ;;  %v1006_v23 = vsub.f32 %v2614_v25, %v968_v9  ;;  %v1007_v28 = vsub.f32 %v2617_v27, %v968_v9  ;;  %v2036_v49 = vpop.eup %2035  ;;  %1428 = vmatprep.mubr.bf16.mxu1 %v1261_v6 }
 0x1dc   : > { %2053 = vpow2.f32 %v1034_v53  ;;  %v1036_v41 = vmul.f32 1.442695, %v992_v20  ;;  %v1038_v35 = vmul.f32 1.442695, %v993_v0  ;;  %v2038_v43 = vpop.eup %2037  ;;  %1429 = vmatmul.mubr.bf16.vlgmr.msra.gmra.mrb[0].mxu1 %v1260_v30  ;;  %v1254_v62 = vpack.c.bf16 %v2036_v49, %v2881_v8 }
 0x1dd   : > { %2055 = vpow2.f32 %v1062_v4  ;;  %v1064_v24 = vmul.f32 1.442695, %v1006_v23  ;;  %v1066_v45 = vmul.f32 1.442695, %v1007_v28  ;;  %v973_v33 = vpop.permute.xlu0 %972  ;;  %v2905_v51 = vpop.eup %2039  ;;  %v1255_v3 = vpack.c.bf16 %v2038_v43, %v2026_v18 }
 0x1de   : > { %2057 = vpow2.f32 %v1036_v41  ;;  %v938_v63 = vpop.permute.xlu1 %937  ;;  %v1008_v25 = vsub.f32 %v2622_v29, %v973_v33  ;;  %v1009_v27 = vsub.f32 %v2625_v54, %v973_v33  ;;  %v1101_v32 = vadd.f32 %v2038_v43, %v2036_v49 }
 0x1df   : > { %2059 = vpow2.f32 %v1064_v24  ;;  %v994_v40 = vsub.f32 %v2632_v61, %v938_v63  ;;  %v995_v46 = vsub.f32 %v2635_v13, %v938_v63  ;;  %v2042_v39 = vpop.eup %2041  ;;  %1404 = vmatprep.mubr.bf16.mxu0 %v1255_v3 }
 0x1e0   : > { %2061 = vpow2.f32 %v1066_v45  ;;  %v1068_v56 = vmul.f32 1.442695, %v1008_v25  ;;  %1102 = vadd.xlane.f32.xlu0 %v1101_v32  ;;  %1405 = vmatmul.mubr.bf16.gmra.mrb[4].mxu0 %v1254_v62  ;;  %v1070_v54 = vmul.f32 1.442695, %v1009_v27 }
 0x1e1   : > { %v2911_v15 = vpop.eup %2043  ;;  %2063 = vpow2.f32 %v1038_v35  ;;  %v1040_v8 = vmul.f32 1.442695, %v994_v40  ;;  %v1042_v55 = vmul.f32 1.442695, %v995_v46  ;;  %v1116_v40 = vadd.f32 %v2885_v38, %v2875_v21 }
 0x1e2   : > { %v2046_v29 = vpop.eup %2045  ;;  %v978_v18 = vpop.permute.xlu1 %977  ;;  %v1262_v61 = vpack.c.bf16 %v2911_v15, %v2900_v26 }
 0x1e3   : > { %v2048_v44 = vpop.eup %2047  ;;  %2065 = vpow2.f32 %v1040_v8  ;;  %v1010_v13 = vsub.f32 %v2641_v36, %v978_v18  ;;  %v1011_v16 = vsub.f32 %v2643_v60, %v978_v18  ;;  %v1263_v4 = vpack.c.bf16 %v2046_v29, %v2905_v51 }
 0x1e4   : > { %v2050_v10 = vpop.eup %2049  ;;  %2067 = vpow2.f32 %v1042_v55  ;;  %v1104_v53 = vadd.f32 %v2048_v44, %v2042_v39  ;;  %v1119_v8 = vadd.f32 %v2892_v59, %v2890_v19  ;;  %v1125_v21 = vadd.f32 %v2046_v29, %v2911_v15 }
 0x1e5   : > { %v2052_v37 = vpop.eup %2051  ;;  %2069 = vpow2.f32 %v1068_v56  ;;  %v1072_v30 = vmul.f32 1.442695, %v1010_v13  ;;  %v1074_v9 = vmul.f32 1.442695, %v1011_v16  ;;  %1436 = vmatprep.mubr.bf16.mxu1 %v1263_v4  ;;  %v1122_v56 = vadd.f32 %v2905_v51, %v2900_v26  ;;  %v2939_v13 = vpop.permute.xlu0 %1163 }
 0x1e6   : > { %v2054_v20 = vpop.eup %2053  ;;  %2071 = vpow2.f32 %v1070_v54  ;;  %1105 = vadd.xlane.f32.xlu1 %v1104_v53  ;;  %1437 = vmatmul.mubr.bf16.gmra.mrb[4].mxu1 %v1262_v61  ;;  %v1256_v0 = vpack.c.bf16 %v2052_v37, %v2042_v39  ;;  %v3076_v19 = vsub.f32 %v2796_v34, %v2806_v58  ;;  %v3077_v26 = vsub.f32 %v2778_v50, %v2789_v22 }
 0x1e7   : > { %v2056_v6 = vpop.eup %2055  ;;  %2073 = vpow2.f32 %v1072_v30  ;;  %v1107_v36 = vadd.f32 %v2054_v20, %v2052_v37  ;;  %v1257_v23 = vpack.c.bf16 %v2054_v20, %v2048_v44  ;;  %v2937_v44 = vpop.permute.xlu1 %1158  ;;  %v537_v20 = vld [vmem:[#allocation3] sm:$0xff] }
 0x1e8   : > { %v2058_v60 = vpop.eup %2057  ;;  %2075 = vpow2.f32 %v1074_v9  ;;  %v1128_v38 = vadd.f32 %v2056_v6, %v2050_v10  ;;  %v898_v59 = vmul.f32 1.442695, %v3076_v19  ;;  %v896_v51 = vmul.f32 1.442695, %v3077_v26  ;;  %v547_v19 = vld [vmem:[#allocation3 + $0x50] sm:$0xff] }
 0x1e9   : > { %v2060_v28 = vpop.eup %2059  ;;  %1108 = vadd.xlane.f32.xlu0 %v1107_v36  ;;  %1412 = vmatprep.mubr.bf16.mxu0 %v1257_v23  ;;  %v2943_v58 = vpop.permute.xlu0 %1178  ;;  %v1086_v26 = vmul.f32 %v2840_v5, %v547_v19 }
 0x1ea   : > { %v2062_v49 = vpop.eup %2061  ;;  %1413 = vmatmul.mubr.bf16.gmra.mrb[8].mxu0 %v1256_v0  ;;  %v1264_v41 = vpack.c.bf16 %v2060_v28, %v2050_v10  ;;  %2077 = vpow2.f32 %v898_v59  ;;  %v1076_v0 = vmul.f32 %v2816_v12, %v537_v20  ;;  %v540_v12 = vld [vmem:[#allocation3 + $0x18] sm:$0xff] }
 0x1eb   : > { %v2064_v35 = vpop.eup %2063  ;;  %v1265_v43 = vpack.c.bf16 %v2062_v49, %v2056_v6  ;;  %v1131_v54 = vadd.f32 %v2062_v49, %v2060_v28  ;;  %2079 = vpow2.f32 %v896_v51  ;;  %v2941_v34 = vpop.permute.xlu1 %1168  ;;  %v539_v28 = vld [vmem:[#allocation3 + $0x10] sm:$0xff] }
 0x1ec   : > { %v1110_v24 = vadd.f32 %v2064_v35, %v2058_v60 }
 0x1ed   : > { %v2066_v45 = vpop.eup %2065  ;;  %1444 = vmatprep.mubr.bf16.mxu1 %v1265_v43  ;;  %v2947_v50 = vpop.permute.xlu0 %1188  ;;  %v1078_v43 = vmul.f32 %v2826_v14, %v539_v28 }
 0x1ee   : > { %v2068_v33 = vpop.eup %2067  ;;  %1111 = vadd.xlane.f32.xlu1 %v1110_v24  ;;  %1445 = vmatmul.mubr.bf16.gmra.mrb[8].mxu1 %v1264_v41  ;;  %v1258_v62 = vpack.c.bf16 %v2066_v45, %v2058_v60  ;;  %v538_v60 = vld [vmem:[#allocation3 + $0x8] sm:$0xff] }
 0x1ef   : > { %v2070_v63 = vpop.eup %2069  ;;  %v1113_v25 = vadd.f32 %v2068_v33, %v2066_v45  ;;  %v1259_v27 = vpack.c.bf16 %v2068_v33, %v2064_v35  ;;  %v2945_v16 = vpop.permute.xlu1 %1173  ;;  %v1077_v49 = vmul.f32 %v2803_v11, %v538_v60  ;;  %v1079_v33 = vmul.f32 %v2834_v57, %v540_v12 }
 0x1f0   : > { %v2072_v3 = vpop.eup %2071 }
 0x1f1   : > { %v2074_v46 = vpop.eup %2073  ;;  %1114 = vadd.xlane.f32.xlu0 %v1113_v25  ;;  %1420 = vmatprep.mubr.bf16.mxu0 %v1259_v27  ;;  %v1134_v18 = vadd.f32 %v2072_v3, %v2070_v63  ;;  %v2951_v4 = vpop.permute.xlu0 %1198  ;;  %v541_v25 = vld [vmem:[#allocation3 + $0x20] sm:$0xff]  ;;  %v542_v27 = vld [vmem:[#allocation3 + $0x28] sm:$0xff] }
 0x1f2   : > { %v2076_v32 = vpop.eup %2075  ;;  %1117 = vadd.xlane.f32.xlu1 %v1116_v40  ;;  %1421 = vmatmul.mubr.bf16.gmra.mrb[12].mxu0 %v1258_v62  ;;  %v1266_v39 = vpack.c.bf16 %v2074_v46, %v2070_v63  ;;  %v1080_v11 = vmul.f32 %v2818_v52, %v541_v25  ;;  %v1081_v14 = vmul.f32 %v2842_v1, %v542_v27  ;;  %v554_v27 = vld [vmem:[#allocation4 + $0x8] sm:$0xff] }
 0x1f3   : > { %v1267_v55 = vpack.c.bf16 %v2076_v32, %v2072_v3  ;;  %v1137_v61 = vadd.f32 %v2076_v32, %v2074_v46  ;;  %v2949_v22 = vpop.permute.xlu1 %1183 }
 0x1f4   : > { %v2931_v15 = vpop.eup %2077 }
 0x1f5   : > { %1120 = vadd.xlane.f32.xlu0 %v1119_v8  ;;  %1452 = vmatprep.mubr.bf16.mxu1 %v1267_v55  ;;  %v2934_v29 = vpop.eup %2079  ;;  %v2955_v53 = vpop.permute.xlu0 %1208  ;;  %v544_v8 = vld [vmem:[#allocation3 + $0x38] sm:$0xff] }
 0x1f6   : > { %1123 = vadd.xlane.f32.xlu1 %v1122_v56  ;;  %1453 = vmatmul.mubr.bf16.gmra.mrb[12].mxu1 %v1266_v39  ;;  %v543_v39 = vld [vmem:[#allocation3 + $0x30] sm:$0xff]  ;;  %v545_v56 = vld [vmem:[#allocation3 + $0x40] sm:$0xff]  ;;  %v1083_v52 = vmul.f32 %v2848_v42, %v544_v8  ;;  %v548_v42 = vld [vmem:[#allocation3 + $0x58] sm:$0xff] }
 0x1f7   : > { %v2953_v10 = vpop.permute.xlu1 %1193  ;;  %v1082_v57 = vmul.f32 %v2822_v2, %v543_v39  ;;  %v561_v39 = vld [vmem:[#allocation4 + $0x40] sm:$0xff] }
 0x1f9   : > { %1126 = vadd.xlane.f32.xlu0 %v1125_v21  ;;  %v2959_v30 = vpop.permute.xlu0 %1218 }
 0x1fa   : > { %1129 = vadd.xlane.f32.xlu1 %v1128_v38  ;;  %v1084_v38 = vmul.f32 %v2832_v17, %v545_v56 }
 0x1fb   : > { %v2957_v37 = vpop.permute.xlu1 %1203 }
 0x1fd   : > { %1132 = vadd.xlane.f32.xlu0 %v1131_v54  ;;  %v546_v54 = vld [vmem:[#allocation3 + $0x48] sm:$0xff] }
 0x1fe   : > { %1135 = vadd.xlane.f32.xlu1 %v1134_v18  ;;  %v1085_v2 = vmul.f32 %v2852_v47, %v546_v54  ;;  %v550_v47 = vld [vmem:[#allocation3 + $0x68] sm:$0xff]  ;;  %v555_v54 = vld [vmem:[#allocation4 + $0x10] sm:$0xff] }
 0x1ff   : > { %v2961_v9 = vpop.permute.xlu1 %1213 }
 0x201   : > { %1138 = vadd.xlane.f32.xlu0 %v1137_v61 }
 0x203   : > { %v2964_v23 = vpop.permute.xlu1 %1223 }
 0x20f   : > { %1233 = vperm.xlu1 %1968, %v2931_v15  }
 0x217   : > { %1228 = vperm.xlu0 %1967, %v2934_v29  }
 0x25d   : > { %v1094_v6 = vpop.xlane.xlu0 %1093 }
 0x25e   : > { %v1140_v36 = vadd.f32 %v1094_v6, %v1076_v0  ;;  %v549_v6 = vld [vmem:[#allocation3 + $0x60] sm:$0xff] }
 0x25f   : > { %v1088_v60 = vmul.f32 %v2846_v7, %v549_v6  ;;  %v563_v6 = vld [vmem:[#allocation4 + $0x50] sm:$0xff] }
 0x260   : > { %1494 = vst.msk [vmem:[#allocation3] sm:$0xff] %vm266_vm0, %v1140_v36  ;;  %v1087_v36 = vmul.f32 %v2855_v31, %v548_v42  ;;  %v552_v31 = vld [vmem:[#allocation3 + $0x78] sm:$0xff] }
 0x261   : > { %v1091_v7 = vmul.f32 %v2931_v15, %v552_v31  ;;  %v558_v31 = vld [vmem:[#allocation4 + $0x28] sm:$0xff] }
 0x263   : > { %v1097_v41 = vpop.xlane.xlu1 %1096 }
 0x264   : > { %v1141_v35 = vadd.f32 %v1097_v41, %v1077_v49 }
 0x265   : > { %v1100_v24 = vpop.xlane.xlu0 %1099 }
 0x266   : > { %1495 = vst.msk [vmem:[#allocation3 + $0x8] sm:$0xff] %vm266_vm0, %v1141_v35  ;;  %v1142_v45 = vadd.f32 %v1100_v24, %v1078_v43  ;;  %v551_v35 = vld [vmem:[#allocation3 + $0x70] sm:$0xff]  ;;  %v1089_v43 = vmul.f32 %v2858_v48, %v550_v47  ;;  %v553_v48 = vld [vmem:[#allocation4] sm:$0xff] }
 0x267   : > { %v1090_v24 = vmul.f32 %v2934_v29, %v551_v35  ;;  %v1236_v29 = vmul.f32 %v2937_v44, %v553_v48  ;;  %v557_v35 = vld [vmem:[#allocation4 + $0x20] sm:$0xff]  ;;  %v1241_v48 = vmul.f32 %v2949_v22, %v558_v31 }
 0x268   : > { %1496 = vst.msk [vmem:[#allocation3 + $0x10] sm:$0xff] %vm266_vm0, %v1142_v45 }
 0x26d   : > { %v1103_v62 = vpop.xlane.xlu0 %1102 }
 0x26e   : > { %v1143_v63 = vadd.f32 %v1103_v62, %v1079_v33 }
 0x270   : > { %1497 = vst.msk [vmem:[#allocation3 + $0x18] sm:$0xff] %vm266_vm0, %v1143_v63 }
 0x273   : > { %v1106_v3 = vpop.xlane.xlu1 %1105 }
 0x274   : > { %v1144_v40 = vadd.f32 %v1106_v3, %v1080_v11 }
 0x276   : > { %1498 = vst.msk [vmem:[#allocation3 + $0x20] sm:$0xff] %vm266_vm0, %v1144_v40  ;;  %v1109_v46 = vpop.xlane.xlu0 %1108 }
 0x277   : > { %v1145_v32 = vadd.f32 %v1109_v46, %v1081_v14 }
 0x279   : > { %1499 = vst.msk [vmem:[#allocation3 + $0x28] sm:$0xff] %vm266_vm0, %v1145_v32  ;;  %v1237_v32 = vmul.f32 %v2939_v13, %v554_v27 }
 0x27b   : > { %v1112_v55 = vpop.xlane.xlu1 %1111 }
 0x27c   : > { %v1146_v21 = vadd.f32 %v1112_v55, %v1082_v57  ;;  %v562_v55 = vld [vmem:[#allocation4 + $0x48] sm:$0xff] }
 0x27e   : > { %1500 = vst.msk [vmem:[#allocation3 + $0x30] sm:$0xff] %vm266_vm0, %v1146_v21  ;;  %v1115_v1 = vpop.xlane.xlu0 %1114 }
 0x27f   : > { %v1118_v18 = vpop.xlane.xlu1 %1117  ;;  %v1147_v61 = vadd.f32 %v1115_v1, %v1083_v52  ;;  %v1244_v52 = vmul.f32 %v2951_v4, %v561_v39 }
 0x280   : > { %v1148_v59 = vadd.f32 %v1118_v18, %v1084_v38  ;;  %v1245_v18 = vmul.f32 %v2957_v37, %v562_v55  ;;  %v560_v55 = vld [vmem:[#allocation4 + $0x38] sm:$0xff] }
 0x281   : > { %1501 = vst.msk [vmem:[#allocation3 + $0x38] sm:$0xff] %vm266_vm0, %v1147_v61 }
 0x282   : > { %1502 = vst.msk [vmem:[#allocation3 + $0x40] sm:$0xff] %vm266_vm0, %v1148_v59  ;;  %v1121_v51 = vpop.xlane.xlu0 %1120  ;;  %v556_v59 = vld [vmem:[#allocation4 + $0x18] sm:$0xff] }
 0x283   : > { %v1124_v20 = vpop.xlane.xlu1 %1123  ;;  %v1149_v0 = vadd.f32 %v1121_v51, %v1085_v2 }
 0x284   : > { %v1150_v17 = vadd.f32 %v1124_v20, %v1086_v26  ;;  %v1238_v26 = vmul.f32 %v2941_v34, %v555_v54  ;;  %v1246_v34 = vmul.f32 %v2955_v53, %v563_v6 }
 0x285   : > { %1503 = vst.msk [vmem:[#allocation3 + $0x48] sm:$0xff] %vm266_vm0, %v1149_v0  ;;  %v1239_v0 = vmul.f32 %v2945_v16, %v556_v59 }
 0x286   : > { %1504 = vst.msk [vmem:[#allocation3 + $0x50] sm:$0xff] %vm266_vm0, %v1150_v17  ;;  %v1127_v28 = vpop.xlane.xlu0 %1126 }
 0x287   : > { %v1130_v49 = vpop.xlane.xlu1 %1129  ;;  %v1151_v41 = vadd.f32 %v1127_v28, %v1087_v36 }
 0x288   : > { %v1152_v5 = vadd.f32 %v1130_v49, %v1088_v60  ;;  %v564_v60 = vld [vmem:[#allocation4 + $0x58] sm:$0xff] }
 0x289   : > { %1505 = vst.msk [vmem:[#allocation3 + $0x58] sm:$0xff] %vm266_vm0, %v1151_v41  ;;  %v1247_v16 = vmul.f32 %v2961_v9, %v564_v60 }
 0x28a   : > { %1506 = vst.msk [vmem:[#allocation3 + $0x60] sm:$0xff] %vm266_vm0, %v1152_v5  ;;  %v1133_v45 = vpop.xlane.xlu0 %1132 }
 0x28b   : > { %v1136_v12 = vpop.xlane.xlu1 %1135  ;;  %v1153_v33 = vadd.f32 %v1133_v45, %v1089_v43 }
 0x28c   : > { %v1154_v62 = vadd.f32 %v1136_v12, %v1090_v24 }
 0x28d   : > { %1507 = vst.msk [vmem:[#allocation3 + $0x68] sm:$0xff] %vm266_vm0, %v1153_v33  ;;  %v1240_v33 = vmul.f32 %v2943_v58, %v557_v35 }
 0x28e   : > { %1508 = vst.msk [vmem:[#allocation3 + $0x70] sm:$0xff] %vm266_vm0, %v1154_v62  ;;  %v1139_v63 = vpop.xlane.xlu0 %1138 }
 0x28f   : > { %v1155_v25 = vadd.f32 %v1139_v63, %v1091_v7  ;;  %v565_v63 = vld [vmem:[#allocation4 + $0x60] sm:$0xff]  ;;  %v1234_v59 = vpop.permute.xlu1 %1233 }
 0x291   : > { %1509 = vst.msk [vmem:[#allocation3 + $0x78] sm:$0xff] %vm266_vm0, %v1155_v25 }
 0x296   : > { %v1229_v54 = vpop.permute.xlu0 %1228 }
 0x2aa   : > { %v1874_v11 = vpop.f32.mrb[0].mxu0 }
 0x2ab   : > { %v1875_v3 = vpop.f32.mrb[1].mxu0 }
 0x2ac   : > { %v1876_v40 = vadd.f32 %v1875_v3, %v1874_v11  ;;  %v1877_v14 = vpop.f32.mrb[2].mxu0  ;;  %v566_v3 = vld [vmem:[#allocation4 + $0x68] sm:$0xff] }
 0x2ad   : > { %v1878_v46 = vpop.f32.mrb[3].mxu0 }
 0x2ae   : > { %v1461_v57 = vadd.f32 %v1876_v40, %v1236_v29  ;;  %v1879_v15 = vadd.f32 %v1878_v46, %v1877_v14  ;;  %v1248_v40 = vmul.f32 %v2959_v30, %v565_v63 }
 0x2af   : > { %v1898_v8 = vpop.f32.mrb[0].mxu1 }
 0x2b0   : > { %1511 = vst.msk [vmem:[#allocation4] sm:$0xff] %vm299_vm1, %v1461_v57  ;;  %v1462_v56 = vadd.f32 %v1879_v15, %v1237_v32  ;;  %v1899_v21 = vpop.f32.mrb[1].mxu1  ;;  %v559_v32 = vld [vmem:[#allocation4 + $0x30] sm:$0xff]  ;;  %v1249_v57 = vmul.f32 %v2964_v23, %v566_v3 }
 0x2b1   : > { %v1900_v38 = vadd.f32 %v1899_v21, %v1898_v8  ;;  %v1901_v1 = vpop.f32.mrb[2].mxu1  ;;  %v1242_v21 = vmul.f32 %v2947_v50, %v559_v32 }
 0x2b2   : > { %1512 = vst.msk [vmem:[#allocation4 + $0x8] sm:$0xff] %vm299_vm1, %v1462_v56  ;;  %v1902_v44 = vpop.f32.mrb[3].mxu1 }
 0x2b3   : > { %v1469_v13 = vadd.f32 %v1900_v38, %v1244_v52  ;;  %v1903_v61 = vadd.f32 %v1902_v44, %v1901_v1  ;;  %v1880_v19 = vpop.f32.mrb[4].mxu0  ;;  %v567_v1 = vld [vmem:[#allocation4 + $0x70] sm:$0xff] }
 0x2b4   : > { %v1881_v2 = vpop.f32.mrb[5].mxu0 }
 0x2b5   : > { %1519 = vst.msk [vmem:[#allocation4 + $0x40] sm:$0xff] %vm299_vm1, %v1469_v13  ;;  %v1470_v51 = vadd.f32 %v1903_v61, %v1245_v18  ;;  %v1882_v42 = vadd.f32 %v1881_v2, %v1880_v19  ;;  %v1883_v4 = vpop.f32.mrb[6].mxu0  ;;  %v1243_v18 = vmul.f32 %v2953_v10, %v560_v55  ;;  %v568_v19 = vld [vmem:[#allocation4 + $0x78] sm:$0xff] }
 0x2b6   : > { %v1884_v20 = vpop.f32.mrb[7].mxu0 }
 0x2b7   : > { %1520 = vst.msk [vmem:[#allocation4 + $0x48] sm:$0xff] %vm299_vm1, %v1470_v51  ;;  %v1463_v17 = vadd.f32 %v1882_v42, %v1238_v26  ;;  %v1885_v37 = vadd.f32 %v1884_v20, %v1883_v4  ;;  %v1250_v26 = vmul.f32 %v1229_v54, %v567_v1  ;;  %v1251_v20 = vmul.f32 %v1234_v59, %v568_v19 }
 0x2b9   : > { %v1904_v36 = vpop.f32.mrb[4].mxu1  ;;  %1513 = vst.msk [vmem:[#allocation4 + $0x10] sm:$0xff] %vm299_vm1, %v1463_v17  ;;  %v1464_v28 = vadd.f32 %v1885_v37, %v1239_v0 }
 0x2ba   : > { %v1905_v47 = vpop.f32.mrb[5].mxu1 }
 0x2bb   : > { %v1906_v49 = vadd.f32 %v1905_v47, %v1904_v36  ;;  %v1907_v41 = vpop.f32.mrb[6].mxu1  ;;  %1514 = vst.msk [vmem:[#allocation4 + $0x18] sm:$0xff] %vm299_vm1, %v1464_v28 }
 0x2bc   : > { %v1908_v5 = vpop.f32.mrb[7].mxu1 }
 0x2bd   : > { %v1471_v43 = vadd.f32 %v1906_v49, %v1246_v34  ;;  %v1909_v24 = vadd.f32 %v1908_v5, %v1907_v41  ;;  %v1886_v45 = vpop.f32.mrb[8].mxu0 }
 0x2be   : > { %v1887_v12 = vpop.f32.mrb[9].mxu0 }
 0x2bf   : > { %1521 = vst.msk [vmem:[#allocation4 + $0x50] sm:$0xff] %vm299_vm1, %v1471_v43  ;;  %v1472_v62 = vadd.f32 %v1909_v24, %v1247_v16  ;;  %v1888_v7 = vadd.f32 %v1887_v12, %v1886_v45  ;;  %v1889_v53 = vpop.f32.mrb[10].mxu0 }
 0x2c0   : > { %v1890_v25 = vpop.f32.mrb[11].mxu0 }
 0x2c1   : > { %1522 = vst.msk [vmem:[#allocation4 + $0x58] sm:$0xff] %vm299_vm1, %v1472_v62  ;;  %v1465_v11 = vadd.f32 %v1888_v7, %v1240_v33  ;;  %v1891_v9 = vadd.f32 %v1890_v25, %v1889_v53  ;;  %v1910_v27 = vpop.f32.mrb[8].mxu1 }
 0x2c2   : > { %v1911_v29 = vpop.f32.mrb[9].mxu1 }
 0x2c3   : > { %1515 = vst.msk [vmem:[#allocation4 + $0x20] sm:$0xff] %vm299_vm1, %v1465_v11  ;;  %v1466_v58 = vadd.f32 %v1891_v9, %v1241_v48  ;;  %v1912_v14 = vadd.f32 %v1911_v29, %v1910_v27  ;;  %v1913_v46 = vpop.f32.mrb[10].mxu1 }
 0x2c4   : > { %v1914_v39 = vpop.f32.mrb[11].mxu1 }
 0x2c5   : > { %1516 = vst.msk [vmem:[#allocation4 + $0x28] sm:$0xff] %vm299_vm1, %v1466_v58  ;;  %v1473_v22 = vadd.f32 %v1912_v14, %v1248_v40  ;;  %v1915_v15 = vadd.f32 %v1914_v39, %v1913_v46  ;;  %v1892_v8 = vpop.f32.mrb[12].mxu0 }
 0x2c6   : > { %v1893_v56 = vpop.f32.mrb[13].mxu0 }
 0x2c7   : > { %1523 = vst.msk [vmem:[#allocation4 + $0x60] sm:$0xff] %vm299_vm1, %v1473_v22  ;;  %v1474_v30 = vadd.f32 %v1915_v15, %v1249_v57  ;;  %v1894_v52 = vadd.f32 %v1893_v56, %v1892_v8  ;;  %v1895_v38 = vpop.f32.mrb[14].mxu0 }
 0x2c8   : > { %v1896_v44 = vpop.f32.mrb[15].mxu0 }
 0x2c9   : > { %1524 = vst.msk [vmem:[#allocation4 + $0x68] sm:$0xff] %vm299_vm1, %v1474_v30  ;;  %v1467_v23 = vadd.f32 %v1894_v52, %v1242_v21  ;;  %v1897_v13 = vadd.f32 %v1896_v44, %v1895_v38  ;;  %v1916_v61 = vpop.f32.mrb[12].mxu1 }
 0x2ca   : > { %v1917_v2 = vpop.f32.mrb[13].mxu1 }
 0x2cb   : > { %1517 = vst.msk [vmem:[#allocation4 + $0x30] sm:$0xff] %vm299_vm1, %v1467_v23  ;;  %v1468_v50 = vadd.f32 %v1897_v13, %v1243_v18  ;;  %v1918_v51 = vadd.f32 %v1917_v2, %v1916_v61  ;;  %v1919_v42 = vpop.f32.mrb[14].mxu1 }
 0x2cc   : > { %v1920_v4 = vpop.f32.mrb[15].mxu1 }
 0x2cd   : > { %1518 = vst.msk [vmem:[#allocation4 + $0x38] sm:$0xff] %vm299_vm1, %v1468_v50  ;;  %v1475_v0 = vadd.f32 %v1918_v51, %v1250_v26  ;;  %v1921_v10 = vadd.f32 %v1920_v4, %v1919_v42 }
 0x2cf   : > { %1525 = vst.msk [vmem:[#allocation4 + $0x70] sm:$0xff] %vm299_vm1, %v1475_v0  ;;  %v1476_v6 = vadd.f32 %v1921_v10, %v1251_v20 }
 0x2d1   : > { %1526 = vst.msk [vmem:[#allocation4 + $0x78] sm:$0xff] %vm299_vm1, %v1476_v6 }
 0x2d2 PF: > { %v1532_v17 = vld [vmem:[#allocation3 + $0x10] sm:$0xff]  ;;  %v1530_v37 = vld [vmem:[#allocation3] sm:$0xff]  ;;  %v1533_v36 = vld [vmem:[#allocation3 + $0x18] sm:$0xff]  ;;  %v2157_v60 = vmov 0  }
 0x2d3   : > { %2082 = vset.pattern.permute.xlu1 %v2157_v60  ;;  %2081 = vset.pattern.permute.xlu0 %v2157_v60  ;;  %v1548_v28 = vmax.f32 %v1532_v17, 1e-20  ;;  %v1546_v47 = vmax.f32 %v1530_v37, 1e-20  ;;  %v1549_v34 = vmax.f32 %v1533_v36, 1e-20 }
 0x2d4   : > { %v1531_v49 = vld [vmem:[#allocation3 + $0x8] sm:$0xff]  ;;  %v1534_v5 = vld [vmem:[#allocation3 + $0x20] sm:$0xff]  ;;  %v1537_v24 = vld [vmem:[#allocation3 + $0x38] sm:$0xff] }
 0x2d5   : > { %v1535_v41 = vld [vmem:[#allocation3 + $0x28] sm:$0xff]  ;;  %2083 = vrcp.f32 %v1548_v28  ;;  %v1547_v35 = vmax.f32 %v1531_v49, 1e-20  ;;  %v1550_v43 = vmax.f32 %v1534_v5, 1e-20  ;;  %v1536_v45 = vld [vmem:[#allocation3 + $0x30] sm:$0xff] }
 0x2d6   : > { %2085 = vrcp.f32 %v1546_v47  ;;  %v1551_v16 = vmax.f32 %v1535_v41, 1e-20  ;;  %v1553_v31 = vmax.f32 %v1537_v24, 1e-20  ;;  %v1552_v12 = vmax.f32 %v1536_v45, 1e-20 }
 0x2d7   : > { %2087 = vrcp.f32 %v1549_v34  ;;  %v1539_v33 = vld [vmem:[#allocation3 + $0x48] sm:$0xff]  ;;  %v1538_v62 = vld [vmem:[#allocation3 + $0x40] sm:$0xff]  ;;  %v1541_v48 = vld [vmem:[#allocation3 + $0x58] sm:$0xff] }
 0x2d8   : > { %2089 = vrcp.f32 %v1547_v35  ;;  %v1555_v53 = vmax.f32 %v1539_v33, 1e-20  ;;  %v1554_v25 = vmax.f32 %v1538_v62, 1e-20  ;;  %v1540_v9 = vld [vmem:[#allocation3 + $0x50] sm:$0xff]  ;;  %v1543_v40 = vld [vmem:[#allocation3 + $0x68] sm:$0xff] }
 0x2d9   : > { %2091 = vrcp.f32 %v1551_v16  ;;  %v1557_v3 = vmax.f32 %v1541_v48, 1e-20  ;;  %v1556_v29 = vmax.f32 %v1540_v9, 1e-20  ;;  %v1542_v14 = vld [vmem:[#allocation3 + $0x60] sm:$0xff]  ;;  %v1545_v57 = vld [vmem:[#allocation3 + $0x78] sm:$0xff] }
 0x2da   : > { %2093 = vrcp.f32 %v1550_v43  ;;  %v1559_v32 = vmax.f32 %v1543_v40, 1e-20  ;;  %v1558_v39 = vmax.f32 %v1542_v14, 1e-20  ;;  %v1544_v15 = vld [vmem:[#allocation3 + $0x70] sm:$0xff]  ;;  %v1578_v13 = vld [vmem:[#allocation4] sm:$0xff] }
 0x2db   : > { %2095 = vrcp.f32 %v1553_v31  ;;  %v1561_v55 = vmax.f32 %v1545_v57, 1e-20  ;;  %v1560_v56 = vmax.f32 %v1544_v15, 1e-20  ;;  %v1580_v23 = vld [vmem:[#allocation4 + $0x10] sm:$0xff]  ;;  %v1581_v26 = vld [vmem:[#allocation4 + $0x18] sm:$0xff] }
 0x2dc   : > { %2097 = vrcp.f32 %v1552_v12  ;;  %v1579_v50 = vld [vmem:[#allocation4 + $0x8] sm:$0xff]  ;;  %v1582_v10 = vld [vmem:[#allocation4 + $0x20] sm:$0xff]  ;;  %v1585_v60 = vld [vmem:[#allocation4 + $0x38] sm:$0xff] }
 0x2dd   : > { %2099 = vrcp.f32 %v1555_v53  ;;  %v1583_v0 = vld [vmem:[#allocation4 + $0x28] sm:$0xff]  ;;  %v1584_v28 = vld [vmem:[#allocation4 + $0x30] sm:$0xff]  ;;  %v1586_v5 = vld [vmem:[#allocation4 + $0x40] sm:$0xff] }
 0x2de   : > { %2101 = vrcp.f32 %v1554_v25  ;;  %v1587_v35 = vld [vmem:[#allocation4 + $0x48] sm:$0xff]  ;;  %v1589_v31 = vld [vmem:[#allocation4 + $0x58] sm:$0xff]  ;;  %v1588_v12 = vld [vmem:[#allocation4 + $0x50] sm:$0xff] }
 0x2df   : > { %v2084_v7 = vpop.eup %2083  ;;  %2103 = vrcp.f32 %v1557_v3  ;;  %v1590_v25 = vld [vmem:[#allocation4 + $0x60] sm:$0xff]  ;;  %v1593_v3 = vld [vmem:[#allocation4 + $0x78] sm:$0xff] }
 0x2e0   : > { %v2086_v63 = vpop.eup %2085  ;;  %1606 = vperm.xlu1 %2082, %v2084_v7   ;;  %2105 = vrcp.f32 %v1556_v29  ;;  %v1592_v29 = vld [vmem:[#allocation4 + $0x70] sm:$0xff] }
 0x2e1   : > { %v2088_v11 = vpop.eup %2087  ;;  %1596 = vperm.xlu0 %2081, %v2086_v63   ;;  %2107 = vrcp.f32 %v1559_v32  ;;  %v1591_v63 = vld [vmem:[#allocation4 + $0x68] sm:$0xff] }
 0x2e2   : > { %v2090_v27 = vpop.eup %2089  ;;  %2109 = vrcp.f32 %v1558_v39 }
 0x2e3   : > { %v2092_v58 = vpop.eup %2091  ;;  %2111 = vrcp.f32 %v1561_v55 }
 0x2e4   : > { %1611 = vperm.xlu1 %2082, %v2088_v11   ;;  %v2094_v46 = vpop.eup %2093  ;;  %2113 = vrcp.f32 %v1560_v56 }
 0x2e5   : > { %1601 = vperm.xlu0 %2081, %v2090_v27   ;;  %v2096_v22 = vpop.eup %2095 }
 0x2e6   : > { %v2098_v8 = vpop.eup %2097 }
 0x2e7   : > { %v2100_v21 = vpop.eup %2099 }
 0x2e8   : > { %1621 = vperm.xlu1 %2082, %v2092_v58   ;;  %v2102_v30 = vpop.eup %2101 }
 0x2e9   : > { %1616 = vperm.xlu0 %2081, %v2094_v46   ;;  %v2104_v52 = vpop.eup %2103 }
 0x2ea   : > { %v2106_v38 = vpop.eup %2105 }
 0x2eb   : > { %v2108_v1 = vpop.eup %2107 }
 0x2ec   : > { %1631 = vperm.xlu1 %2082, %v2096_v22   ;;  %v2110_v54 = vpop.eup %2109 }
 0x2ed   : > { %1626 = vperm.xlu0 %2081, %v2098_v8   ;;  %v2112_v44 = vpop.eup %2111 }
 0x2ee   : > { %v2114_v18 = vpop.eup %2113 }
 0x2f0   : > { %1641 = vperm.xlu1 %2082, %v2100_v21  }
 0x2f1   : > { %1636 = vperm.xlu0 %2081, %v2102_v30  }
 0x2f4   : > { %1651 = vperm.xlu1 %2082, %v2104_v52  }
 0x2f5   : > { %1646 = vperm.xlu0 %2081, %v2106_v38  }
 0x2f8   : > { %1661 = vperm.xlu1 %2082, %v2108_v1  }
 0x2f9   : > { %1656 = vperm.xlu0 %2081, %v2110_v54  }
 0x2fc   : > { %1671 = vperm.xlu1 %2082, %v2112_v44  }
 0x2fd   : > { %1666 = vperm.xlu0 %2081, %v2114_v18  }
 0x35f   : > { %v1607_v61 = vpop.permute.xlu1 %1606 }
 0x360   : > { %v1676_v19 = vmul.f32 %v1607_v61, %v1580_v23  ;;  %v1597_v59 = vpop.permute.xlu0 %1596 }
 0x361   : > { %v1674_v2 = vmul.f32 %v1597_v59, %v1578_v13 }
 0x362   : > { %1693 = vst.msk [vmem:[%s2295_s17 + $0x10] sm:$0xff] %vm299_vm1, %v1676_v19 }
 0x363   : > { %1691 = vst.msk [vmem:[%s2295_s17] sm:$0xff] %vm299_vm1, %v1674_v2  ;;  %v1612_v51 = vpop.permute.xlu1 %1611 }
 0x364   : > { %v1677_v42 = vmul.f32 %v1612_v51, %v1581_v26  ;;  %v1602_v4 = vpop.permute.xlu0 %1601 }
 0x365   : > { %v1675_v20 = vmul.f32 %v1602_v4, %v1579_v50 }
 0x366   : > { %1694 = vst.msk [vmem:[%s2295_s17 + $0x18] sm:$0xff] %vm299_vm1, %v1677_v42 }
 0x367   : > { %1692 = vst.msk [vmem:[%s2295_s17 + $0x8] sm:$0xff] %vm299_vm1, %v1675_v20  ;;  %v1622_v6 = vpop.permute.xlu1 %1621 }
 0x368   : > { %v1679_v17 = vmul.f32 %v1622_v6, %v1583_v0  ;;  %v1617_v37 = vpop.permute.xlu0 %1616 }
 0x369   : > { %v1678_v36 = vmul.f32 %v1617_v37, %v1582_v10 }
 0x36a   : > { %1696 = vst.msk [vmem:[%s2295_s17 + $0x28] sm:$0xff] %vm299_vm1, %v1679_v17 }
 0x36b   : > { %1695 = vst.msk [vmem:[%s2295_s17 + $0x20] sm:$0xff] %vm299_vm1, %v1678_v36  ;;  %v1632_v47 = vpop.permute.xlu1 %1631 }
 0x36c   : > { %v1681_v34 = vmul.f32 %v1632_v47, %v1585_v60  ;;  %v1627_v49 = vpop.permute.xlu0 %1626 }
 0x36d   : > { %v1680_v41 = vmul.f32 %v1627_v49, %v1584_v28 }
 0x36e   : > { %1698 = vst.msk [vmem:[%s2295_s17 + $0x38] sm:$0xff] %vm299_vm1, %v1681_v34 }
 0x36f   : > { %1697 = vst.msk [vmem:[%s2295_s17 + $0x30] sm:$0xff] %vm299_vm1, %v1680_v41  ;;  %v1642_v16 = vpop.permute.xlu1 %1641 }
 0x370   : > { %v1683_v43 = vmul.f32 %v1642_v16, %v1587_v35  ;;  %v1637_v24 = vpop.permute.xlu0 %1636 }
 0x371   : > { %v1682_v45 = vmul.f32 %v1637_v24, %v1586_v5 }
 0x372   : > { %1700 = vst.msk [vmem:[%s2295_s17 + $0x48] sm:$0xff] %vm299_vm1, %v1683_v43 }
 0x373   : > { %1699 = vst.msk [vmem:[%s2295_s17 + $0x40] sm:$0xff] %vm299_vm1, %v1682_v45  ;;  %v1652_v33 = vpop.permute.xlu1 %1651 }
 0x374   : > { %v1685_v62 = vmul.f32 %v1652_v33, %v1589_v31  ;;  %v1647_v7 = vpop.permute.xlu0 %1646 }
 0x375   : > { %v1684_v53 = vmul.f32 %v1647_v7, %v1588_v12 }
 0x376   : > { %1702 = vst.msk [vmem:[%s2295_s17 + $0x58] sm:$0xff] %vm299_vm1, %v1685_v62 }
 0x377   : > { %1701 = vst.msk [vmem:[%s2295_s17 + $0x50] sm:$0xff] %vm299_vm1, %v1684_v53  ;;  %v1662_v48 = vpop.permute.xlu1 %1661 }
 0x378   : > { %v1687_v11 = vmul.f32 %v1662_v48, %v1591_v63  ;;  %v1657_v9 = vpop.permute.xlu0 %1656 }
 0x379   : > { %v1686_v27 = vmul.f32 %v1657_v9, %v1590_v25 }
 0x37a   : > { %1704 = vst.msk [vmem:[%s2295_s17 + $0x68] sm:$0xff] %vm299_vm1, %v1687_v11 }
 0x37b   : > { %1703 = vst.msk [vmem:[%s2295_s17 + $0x60] sm:$0xff] %vm299_vm1, %v1686_v27  ;;  %v1672_v40 = vpop.permute.xlu1 %1671 }
 0x37c   : > { %v1689_v58 = vmul.f32 %v1672_v40, %v1593_v3  ;;  %v1667_v14 = vpop.permute.xlu0 %1666 }
 0x37d   : > { %v1688_v46 = vmul.f32 %v1667_v14, %v1592_v29 }
 0x37e   : > { %1706 = vst.msk [vmem:[%s2295_s17 + $0x78] sm:$0xff] %vm299_vm1, %v1689_v58 }
 0x37f   : > { %1705 = vst.msk [vmem:[%s2295_s17 + $0x70] sm:$0xff] %vm299_vm1, %v1688_v46 }
 0x380 PF: > { %s21_s25 = sadd.s32 1, %s2151_s25   ;;  %s3078_s23 = smov %s2147_s24 }
 0x381   : > { %p18_p12 = scmp.ge.s32.totalorder %s21_s25, 4   ;;  %s3079_s24 = smov %s3081_s0 }
 0x383   :  { %20 = sbr.rel (!%p18_p12) target bundleno = 17 (0x11), region = 83 }

</bundles_post_ra>
